<compile_context>
chip_gen: v7x
topology: tpu7x:2x2x1
jax: 0.10.0
libtpu: 0.0.40
codegen_flags: <defaults>
</compile_context>

<pallas_src>
import functools

import jax
import jax.numpy as jnp
from jax.experimental import pallas as pl
from jax.experimental.pallas import tpu as pltpu


# ---------------------------------------------------------------------------
# Tile-size helpers (static, shape-derived; keep double-buffered VMEM bounded)
# ---------------------------------------------------------------------------
_VMEM_BUDGET = 20 << 20          # conservative vs 32 MiB default scoped VMEM


def _choose_tm(M, row_elems, weight_elems, tm_cap=512, budget=_VMEM_BUDGET):
    """Largest multiple-of-8 M-tile whose double-buffered input/output rows
    plus (conservatively double-buffered) resident weights fit the budget."""
    fixed = 2 * 4 * weight_elems
    per_row = 2 * 4 * row_elems
    avail = max(budget - fixed, 2 << 20)
    tm = max(8, min(tm_cap, (avail // per_row) // 8 * 8))
    return M if M <= tm else tm


def _pick_group(n_items, rows_per_item, bytes_per_row, gmax=16,
                budget=_VMEM_BUDGET // 2):
    """Largest divisor g of n_items (<= gmax) whose double-buffered tile of
    g*rows_per_item rows fits the budget."""
    g = max(1, min(n_items, gmax))
    while g > 1 and (n_items % g or 2 * g * rows_per_item * bytes_per_row > budget):
        g -= 1
    return g


# ---------------------------------------------------------------------------
# Pallas kernels
# ---------------------------------------------------------------------------
def _linear_kernel(x_ref, w_ref, b_ref, o_ref, *, relu):
    """out = x @ w + b (optionally ReLU).  x:(tm,K)  w:(K,N)  b:(1,N)."""
    acc = jnp.dot(x_ref[...], w_ref[...], preferred_element_type=jnp.float32)
    acc = acc + b_ref[...]
    if relu:
        acc = jnp.maximum(acc, 0.0)
    o_ref[...] = acc.astype(o_ref.dtype)


def pallas_linear(x, w, b, relu=False):
    """Matmul + bias (+ReLU), gridded over M so the input tile double-buffers
    against the MXU and VMEM usage is bounded independent of batch size."""
    M, K = x.shape
    K2, N = w.shape
    assert K == K2, (K, K2)
    tm = _choose_tm(M, row_elems=K + N, weight_elems=K * N + N)
    grid = (pl.cdiv(M, tm),)
    cost = pl.CostEstimate(flops=2 * M * K * N, transcendentals=0,
                           bytes_accessed=4 * (M * K + K * N + M * N))
    return pl.pallas_call(
        functools.partial(_linear_kernel, relu=relu),
        out_shape=jax.ShapeDtypeStruct((M, N), jnp.float32),
        grid=grid,
        in_specs=[pl.BlockSpec((tm, K), lambda i: (i, 0)),
                  pl.BlockSpec((K, N), lambda i: (0, 0)),
                  pl.BlockSpec((1, N), lambda i: (0, 0))],
        out_specs=pl.BlockSpec((tm, N), lambda i: (i, 0)),
        compiler_params=pltpu.CompilerParams(
            dimension_semantics=("parallel",)),
        cost_estimate=cost,
    )(x, w, b.reshape(1, N))


def _conv_relu_pool_kernel(p_ref, w_ref, b_ref, o_ref):
    """Fused conv2 (as im2col matmul) + bias + ReLU + 2x2 max-pool.

    p_ref: (4, tq, K) — leading axis holds the 4 members of each pool window
           (dy, dx shifts); rows within a slice are (n, ph, pw) pool outputs.
    w_ref: (K, C)   b_ref: (1, C)   o_ref: (tq, C) pooled output block.

    relu(max_s(y_s + b)) == max_s relu(y_s + b), so bias + ReLU are applied
    once after the shift-max (saves 3 bias adds + 3 ReLUs per tile).
    """
    w = w_ref[...]
    m = jnp.dot(p_ref[0], w, preferred_element_type=jnp.float32)
    for s in range(1, 4):                              # unrolled at trace time
        m = jnp.maximum(m, jnp.dot(p_ref[s], w,
                                   preferred_element_type=jnp.float32))
    o_ref[...] = jnp.maximum(m + b_ref[...], 0.0).astype(o_ref.dtype)


def conv_relu_pool(p4, w, b, rows_per_item, n_items):
    """p4: (4, Q, K) pool-ordered im2col patches -> pooled (Q, C) activations."""
    _, Q, K = p4.shape
    K2, C = w.shape
    assert K == K2 and Q == rows_per_item * n_items
    # Group several batch elements per grid step (fewer steps, bounded VMEM).
    g = _pick_group(n_items, rows_per_item, bytes_per_row=4 * (4 * K + C))
    tq = rows_per_item * g
    assert Q % tq == 0 and tq % 8 == 0
    grid = (Q // tq,)
    cost = pl.CostEstimate(flops=2 * 4 * Q * K * C, transcendentals=0,
                           bytes_accessed=4 * (4 * Q * K + K * C + Q * C))
    return pl.pallas_call(
        _conv_relu_pool_kernel,
        out_shape=jax.ShapeDtypeStruct((Q, C), jnp.float32),
        grid=grid,
        in_specs=[pl.BlockSpec((4, tq, K), lambda i: (0, i, 0)),
                  pl.BlockSpec((K, C), lambda i: (0, 0)),
                  pl.BlockSpec((1, C), lambda i: (0, 0))],
        out_specs=pl.BlockSpec((tq, C), lambda i: (i, 0)),
        compiler_params=pltpu.CompilerParams(
            dimension_semantics=("parallel",)),
        cost_estimate=cost,
    )(p4, w, b.reshape(1, C))


def _fc_tail_kernel(x_ref, w1_ref, b1_ref, w2_ref, b2_ref, o_ref):
    """Fused fc1 -> ReLU -> fc (dropout is identity in eval mode)."""
    h = jnp.dot(x_ref[...], w1_ref[...], preferred_element_type=jnp.float32)
    h = jnp.maximum(h + b1_ref[...], 0.0)
    o = jnp.dot(h, w2_ref[...], preferred_element_type=jnp.float32) + b2_ref[...]
    o_ref[...] = o.astype(o_ref.dtype)


def pallas_fc_tail(x, w1, b1, w2, b2):
    M, K = x.shape
    H = w1.shape[1]
    Nc = w2.shape[1]
    tm = _choose_tm(M, row_elems=K + H + Nc,
                    weight_elems=K * H + H + H * Nc + Nc, tm_cap=256)
    grid = (pl.cdiv(M, tm),)
    cost = pl.CostEstimate(flops=2 * M * (K * H + H * Nc), transcendentals=0,
                           bytes_accessed=4 * (M * K + K * H + H * Nc + M * Nc))
    return pl.pallas_call(
        _fc_tail_kernel,
        out_shape=jax.ShapeDtypeStruct((M, Nc), jnp.float32),
        grid=grid,
        in_specs=[pl.BlockSpec((tm, K), lambda i: (i, 0)),
                  pl.BlockSpec((K, H), lambda i: (0, 0)),
                  pl.BlockSpec((1, H), lambda i: (0, 0)),
                  pl.BlockSpec((H, Nc), lambda i: (0, 0)),
                  pl.BlockSpec((1, Nc), lambda i: (0, 0))],
        out_specs=pl.BlockSpec((tm, Nc), lambda i: (i, 0)),
        compiler_params=pltpu.CompilerParams(
            dimension_semantics=("parallel",)),
        cost_estimate=cost,
    )(x, w1, b1.reshape(1, H), w2, b2.reshape(1, Nc))


# ---------------------------------------------------------------------------
# Glue (plain JAX, fused by XLA under jit): im2col patch extraction, params
# ---------------------------------------------------------------------------
def _im2col(x_nhwc, kh=3, kw=3):
    """Valid 3x3 patches. Returns (N*Ho*Wo, kh*kw*C), features in (kh,kw,c)
    order to match a (out,in,kh,kw)->(kh,kw,in,out) weight reshape."""
    N, H, W, C = x_nhwc.shape
    Ho, Wo = H - kh + 1, W - kw + 1
    views = [x_nhwc[:, i:i + Ho, j:j + Wo, :] for i in range(kh) for j in range(kw)]
    p = jnp.stack(views, axis=3)                       # (N, Ho, Wo, kh*kw, C)
    return p.reshape(N * Ho * Wo, kh * kw * C), (N, Ho, Wo)


def _im2col_pool(x_nhwc, kh=3, kw=3):
    """Valid 3x3 patches, reordered so the 4 members of each 2x2 pool window
    sit on a leading shift axis: output (4, N*Hp*Wp, kh*kw*C) where
    slice s = dy*2+dx holds the patch for conv pixel (2*ph+dy, 2*pw+dx)."""
    N, H, W, C = x_nhwc.shape
    Ho, Wo = H - kh + 1, W - kw + 1
    Hp, Wp = Ho // 2, Wo // 2
    K = kh * kw * C
    views = [x_nhwc[:, i:i + Ho, j:j + Wo, :] for i in range(kh) for j in range(kw)]
    p = jnp.stack(views, axis=3).reshape(N, Ho, Wo, K)      # (N,Ho,Wo,K)
    p = p.reshape(N, Hp, 2, Wp, 2, K)                       # (n,ph,dy,pw,dx,K)
    p = jnp.transpose(p, (2, 4, 0, 1, 3, 5))                # (dy,dx,n,ph,pw,K)
    return p.reshape(4, N * Hp * Wp, K), (N, Hp, Wp)


def init_params(key, num_features=128, num_classes=10):
    """Parameters in PyTorch layout: conv (out,in,kh,kw), linear (out,in)."""
    ks = jax.random.split(key, 8)

    def _w(k, shape, fan_in):
        return (jax.random.normal(k, shape, jnp.float32)
                * (1.0 / jnp.sqrt(jnp.float32(fan_in))))

    return {
        "conv1_w": _w(ks[0], (32, 1, 3, 3), 1 * 9),
        "conv1_b": _w(ks[1], (32,), 1 * 9),
        "conv2_w": _w(ks[2], (64, 32, 3, 3), 32 * 9),
        "conv2_b": _w(ks[3], (64,), 32 * 9),
        "fc1_w": _w(ks[4], (num_features, 9216), 9216),
        "fc1_b": _w(ks[5], (num_features,), 9216),
        "fc_w": _w(ks[6], (num_classes, num_features), num_features),
        "fc_b": _w(ks[7], (num_classes,), num_features),
    }


def prepare_params(p):
    """One-time offline re-layout of the torch-style parameters into the
    matmul layouts the kernels consume (no transposes in the hot path)."""
    c1_out = p["conv1_w"].shape[0]
    c2_out = p["conv2_w"].shape[0]
    num_features = p["fc1_w"].shape[0]
    hw = p["fc1_w"].shape[1] // c2_out            # pooled H*W (= 144)
    hp = int(round(hw ** 0.5))                    # = 12
    # fc1 consumes features in (h, w, c) order (our pooled-NHWC flatten); the
    # torch weight indexes them (c, h, w): permute rows once offline.
    fc1_w = p["fc1_w"].reshape(num_features, c2_out, hp, hp)
    return {
        "conv1_wm": jnp.transpose(p["conv1_w"], (2, 3, 1, 0)).reshape(-1, c1_out),
        "conv1_b": p["conv1_b"],
        "conv2_wm": jnp.transpose(p["conv2_w"], (2, 3, 1, 0)).reshape(-1, c2_out),
        "conv2_b": p["conv2_b"],
        "fc1_wm": jnp.transpose(fc1_w, (2, 3, 1, 0)).reshape(hp * hp * c2_out,
                                                             num_features),
        "fc1_b": p["fc1_b"],
        "fc_wm": jnp.transpose(p["fc_w"], (1, 0)),
        "fc_b": p["fc_b"],
    }


def cnn_forward(x_nchw, mparams, classifier=False):
    N = x_nchw.shape[0]
    x = jnp.transpose(x_nchw, (0, 2, 3, 1))                  # NHWC (C=1: trivial)

    # conv1 (1->32, 3x3, stride 1) + ReLU   (im2col matmul, gridded over rows)
    # TODO(synk): conv1's K=9 patch matrix pads to 128 lanes in VMEM; a
    # K-on-sublanes layout (W^T @ P^T) would cut that ~14x but changes the
    # output layout feeding conv2's im2col — not worth it at these sizes.
    p, (_, Ho, Wo) = _im2col(x)                              # (N*676, 9)
    c1 = mparams["conv1_wm"].shape[1]
    y = pallas_linear(p, mparams["conv1_wm"], mparams["conv1_b"], relu=True)
    x = y.reshape(N, Ho, Wo, c1)                             # (N,26,26,32)

    # conv2 (32->64) + ReLU + 2x2 max-pool fused in one gridded Pallas kernel.
    p4, (_, Hp, Wp) = _im2col_pool(x)                        # (4, N*144, 288)
    pooled = conv_relu_pool(p4, mparams["conv2_wm"], mparams["conv2_b"],
                            rows_per_item=Hp * Wp, n_items=N)   # (N*144, 64)

    # dropout1: identity in eval mode

    # flatten: pooled rows are already (n, h, w) with channels last, so this
    # is a free reshape; fc1_wm rows were permuted offline to (h, w, c) order.
    x = pooled.reshape(N, -1)                                # (N, 9216)

    if classifier:
        # fused fc1 -> ReLU -> (dropout2 = identity) -> fc
        return pallas_fc_tail(x, mparams["fc1_wm"], mparams["fc1_b"],
                              mparams["fc_wm"], mparams["fc_b"])
    # fc1 + ReLU; dropout2 identity
    return pallas_linear(x, mparams["fc1_wm"], mparams["fc1_b"], relu=True)


# ---------------------------------------------------------------------------
# Pure-JAX reference of the PyTorch module (for correctness validation)
# ---------------------------------------------------------------------------
def _reference_forward(x_nchw, params, classifier=False):
    y = jax.lax.conv_general_dilated(
        x_nchw, params["conv1_w"], (1, 1), "VALID",
        dimension_numbers=("NCHW", "OIHW", "NCHW"))
    y = jax.nn.relu(y + params["conv1_b"][None, :, None, None])
    y = jax.lax.conv_general_dilated(
        y, params["conv2_w"], (1, 1), "VALID",
        dimension_numbers=("NCHW", "OIHW", "NCHW"))
    y = jax.nn.relu(y + params["conv2_b"][None, :, None, None])
    y = jax.lax.reduce_window(y, -jnp.inf, jax.lax.max,
                              (1, 1, 2, 2), (1, 1, 2, 2), "VALID")
    y = y.reshape(y.shape[0], -1)                            # torch flatten (c,h,w)
    y = jax.nn.relu(y @ params["fc1_w"].T + params["fc1_b"])
    if classifier:
        y = y @ params["fc_w"].T + params["fc_b"]
    return y


if __name__ == "__main__":
    key = jax.random.PRNGKey(0)
    pkey, xkey = jax.random.split(key)
    params = init_params(pkey)
    mparams = prepare_params(params)          # one-time offline re-layout

    # 28x28 input is required by the architecture (fc1 expects 64*12*12=9216).
    x = jax.random.normal(xkey, (2, 1, 28, 28), jnp.float32)

    fwd = jax.jit(cnn_forward, static_argnames=("classifier",))

    feats = jax.block_until_ready(fwd(x, mparams, classifier=False))
    logits = jax.block_until_ready(fwd(x, mparams, classifier=True))
    assert feats.shape == (2, 128), feats.shape
    assert logits.shape == (2, 10), logits.shape
    assert bool(jnp.all(jnp.isfinite(feats)))
    assert bool(jnp.all(jnp.isfinite(logits)))

    # Validate against the pure-JAX/XLA reference of the PyTorch forward.
    ref_feats = _reference_forward(x, params, classifier=False)
    ref_logits = _reference_forward(x, params, classifier=True)
    assert jnp.allclose(feats, ref_feats, rtol=2e-2, atol=2e-2)
    assert jnp.allclose(logits, ref_logits, rtol=2e-2, atol=2e-2)

    print("KERNEL_OK")
</pallas_src>

<mosaic_0001>
module attributes {stable_mosaic.version = 11 : i64} {
  func.func @_linear_kernel(%arg0: i32, %arg1: memref<512x9xf32, #tpu.memory_space<vmem>>, %arg2: memref<9x32xf32, #tpu.memory_space<vmem>>, %arg3: memref<1x32xf32, #tpu.memory_space<vmem>>, %arg4: memref<512x32xf32, #tpu.memory_space<vmem>>) attributes {dimension_semantics = [#tpu.dimension_semantics<parallel>], iteration_bounds = array<i64: 3>, scalar_prefetch = 0 : i64, scratch_operands = 0 : i64, tpu.core_type = #tpu.core_type<tc>, window_params = [{transform_indices = @transform_0, window_bounds = array<i64: 512, 9>}, {pipeline_mode = #tpu.pipeline_mode<synchronous>, transform_indices = @transform_1, window_bounds = array<i64: 9, 32>}, {pipeline_mode = #tpu.pipeline_mode<synchronous>, transform_indices = @transform_2, window_bounds = array<i64: 1, 32>}, {transform_indices = @transform_3, window_bounds = array<i64: 512, 32>}]} {
    %c0 = arith.constant 0 : index
    %c0_0 = arith.constant 0 : index
    %0 = vector.load %arg1[%c0, %c0_0] : memref<512x9xf32, #tpu.memory_space<vmem>>, vector<512x9xf32>
    %c0_1 = arith.constant 0 : index
    %c0_2 = arith.constant 0 : index
    %1 = vector.load %arg2[%c0_1, %c0_2] : memref<9x32xf32, #tpu.memory_space<vmem>>, vector<9x32xf32>
    %cst = arith.constant dense<0.000000e+00> : vector<512x32xf32>
    %2 = tpu.matmul %0, %1, %cst {dimension_numbers = #tpu.dot_dimension_numbers<[1], [0], [0], [1], [0, 0, 1, 1], [], []>} : vector<512x9xf32>, vector<9x32xf32>, vector<512x32xf32> -> vector<512x32xf32>
    %c0_3 = arith.constant 0 : index
    %c0_4 = arith.constant 0 : index
    %3 = vector.load %arg3[%c0_3, %c0_4] : memref<1x32xf32, #tpu.memory_space<vmem>>, vector<1x32xf32>
    %4 = vector.broadcast %3 : vector<1x32xf32> to vector<512x32xf32>
    %5 = arith.addf %2, %4 : vector<512x32xf32>
    %cst_5 = arith.constant 0.000000e+00 : f32
    %6 = vector.broadcast %cst_5 : f32 to vector<512x32xf32>
    %7 = arith.maximumf %5, %6 : vector<512x32xf32>
    %c0_6 = arith.constant 0 : index
    %c0_7 = arith.constant 0 : index
    %8 = vector.load %arg4[%c0_6, %c0_7] : memref<512x32xf32, #tpu.memory_space<vmem>>, vector<512x32xf32>
    tpu.vector_store %arg4[%c0_6, %c0_7], %7 {strides = array<i32>} : memref<512x32xf32, #tpu.memory_space<vmem>>, vector<512x32xf32>,
    return
  }
  func.func @transform_0(%arg0: i32) -> (i32, i32) {
    %c0_i32 = arith.constant 0 : i32
    %c0_i32_0 = arith.constant 0 : i32
    return %arg0, %c0_i32 : i32, i32
  }
  func.func @transform_1(%arg0: i32) -> (i32, i32) {
    %c0_i32 = arith.constant 0 : i32
    %c0_i32_0 = arith.constant 0 : i32
    %c0_i32_1 = arith.constant 0 : i32
    return %c0_i32, %c0_i32_0 : i32, i32
  }
  func.func @transform_2(%arg0: i32) -> (i32, i32) {
    %c0_i32 = arith.constant 0 : i32
    %c0_i32_0 = arith.constant 0 : i32
    %c0_i32_1 = arith.constant 0 : i32
    return %c0_i32, %c0_i32_0 : i32, i32
  }
  func.func @transform_3(%arg0: i32) -> (i32, i32) {
    %c0_i32 = arith.constant 0 : i32
    %c0_i32_0 = arith.constant 0 : i32
    return %arg0, %c0_i32 : i32, i32
  }
}

module attributes {stable_mosaic.version = 11 : i64} {
  func.func @_conv_relu_pool_kernel(%arg0: i32, %arg1: memref<4x288x288xf32, #tpu.memory_space<vmem>>, %arg2: memref<288x64xf32, #tpu.memory_space<vmem>>, %arg3: memref<1x64xf32, #tpu.memory_space<vmem>>, %arg4: memref<288x64xf32, #tpu.memory_space<vmem>>) attributes {dimension_semantics = [#tpu.dimension_semantics<parallel>], iteration_bounds = array<i64: 1>, scalar_prefetch = 0 : i64, scratch_operands = 0 : i64, tpu.core_type = #tpu.core_type<tc>, window_params = [{transform_indices = @transform_0, window_bounds = array<i64: 4, 288, 288>}, {pipeline_mode = #tpu.pipeline_mode<synchronous>, transform_indices = @transform_1, window_bounds = array<i64: 288, 64>}, {pipeline_mode = #tpu.pipeline_mode<synchronous>, transform_indices = @transform_2, window_bounds = array<i64: 1, 64>}, {transform_indices = @transform_3, window_bounds = array<i64: 288, 64>}]} {
    %c0 = arith.constant 0 : index
    %c0_0 = arith.constant 0 : index
    %0 = vector.load %arg2[%c0, %c0_0] : memref<288x64xf32, #tpu.memory_space<vmem>>, vector<288x64xf32>
    %c0_1 = arith.constant 0 : index
    %c0_2 = arith.constant 0 : index
    %c0_3 = arith.constant 0 : index
    %1 = vector.load %arg1[%c0_1, %c0_2, %c0_3] : memref<4x288x288xf32, #tpu.memory_space<vmem>>, vector<1x288x288xf32>
    %2 = vector.shape_cast %1 : vector<1x288x288xf32> to vector<288x288xf32>
    %cst = arith.constant dense<0.000000e+00> : vector<288x64xf32>
    %3 = tpu.matmul %2, %0, %cst {dimension_numbers = #tpu.dot_dimension_numbers<[1], [0], [0], [1], [0, 0, 1, 1], [], []>} : vector<288x288xf32>, vector<288x64xf32>, vector<288x64xf32> -> vector<288x64xf32>
    %c1 = arith.constant 1 : index
    %c0_4 = arith.constant 0 : index
    %c0_5 = arith.constant 0 : index
    %4 = vector.load %arg1[%c1, %c0_4, %c0_5] : memref<4x288x288xf32, #tpu.memory_space<vmem>>, vector<1x288x288xf32>
    %5 = vector.shape_cast %4 : vector<1x288x288xf32> to vector<288x288xf32>
    %cst_6 = arith.constant dense<0.000000e+00> : vector<288x64xf32>
    %6 = tpu.matmul %5, %0, %cst_6 {dimension_numbers = #tpu.dot_dimension_numbers<[1], [0], [0], [1], [0, 0, 1, 1], [], []>} : vector<288x288xf32>, vector<288x64xf32>, vector<288x64xf32> -> vector<288x64xf32>
    %7 = arith.maximumf %3, %6 : vector<288x64xf32>
    %c2 = arith.constant 2 : index
    %c0_7 = arith.constant 0 : index
    %c0_8 = arith.constant 0 : index
    %8 = vector.load %arg1[%c2, %c0_7, %c0_8] : memref<4x288x288xf32, #tpu.memory_space<vmem>>, vector<1x288x288xf32>
    %9 = vector.shape_cast %8 : vector<1x288x288xf32> to vector<288x288xf32>
    %cst_9 = arith.constant dense<0.000000e+00> : vector<288x64xf32>
    %10 = tpu.matmul %9, %0, %cst_9 {dimension_numbers = #tpu.dot_dimension_numbers<[1], [0], [0], [1], [0, 0, 1, 1], [], []>} : vector<288x288xf32>, vector<288x64xf32>, vector<288x64xf32> -> vector<288x64xf32>
    %11 = arith.maximumf %7, %10 : vector<288x64xf32>
    %c3 = arith.constant 3 : index
    %c0_10 = arith.constant 0 : index
    %c0_11 = arith.constant 0 : index
    %12 = vector.load %arg1[%c3, %c0_10, %c0_11] : memref<4x288x288xf32, #tpu.memory_space<vmem>>, vector<1x288x288xf32>
    %13 = vector.shape_cast %12 : vector<1x288x288xf32> to vector<288x288xf32>
    %cst_12 = arith.constant dense<0.000000e+00> : vector<288x64xf32>
    %14 = tpu.matmul %13, %0, %cst_12 {dimension_numbers = #tpu.dot_dimension_numbers<[1], [0], [0], [1], [0, 0, 1, 1], [], []>} : vector<288x288xf32>, vector<288x64xf32>, vector<288x64xf32> -> vector<288x64xf32>
    %15 = arith.maximumf %11, %14 : vector<288x64xf32>
    %c0_13 = arith.constant 0 : index
    %c0_14 = arith.constant 0 : index
    %16 = vector.load %arg3[%c0_13, %c0_14] : memref<1x64xf32, #tpu.memory_space<vmem>>, vector<1x64xf32>
    %17 = vector.broadcast %16 : vector<1x64xf32> to vector<288x64xf32>
    %18 = arith.addf %15, %17 : vector<288x64xf32>
    %cst_15 = arith.constant 0.000000e+00 : f32
    %19 = vector.broadcast %cst_15 : f32 to vector<288x64xf32>
    %20 = arith.maximumf %18, %19 : vector<288x64xf32>
    %c0_16 = arith.constant 0 : index
    %c0_17 = arith.constant 0 : index
    %21 = vector.load %arg4[%c0_16, %c0_17] : memref<288x64xf32, #tpu.memory_space<vmem>>, vector<288x64xf32>
    tpu.vector_store %arg4[%c0_16, %c0_17], %20 {strides = array<i32>} : memref<288x64xf32, #tpu.memory_space<vmem>>, vector<288x64xf32>,
    return
  }
  func.func @transform_0(%arg0: i32) -> (i32, i32, i32) {
    %c0_i32 = arith.constant 0 : i32
    %c0_i32_0 = arith.constant 0 : i32
    %c0_i32_1 = arith.constant 0 : i32
    return %c0_i32, %arg0, %c0_i32_0 : i32, i32, i32
  }
  func.func @transform_1(%arg0: i32) -> (i32, i32) {
    %c0_i32 = arith.constant 0 : i32
    %c0_i32_0 = arith.constant 0 : i32
    %c0_i32_1 = arith.constant 0 : i32
    return %c0_i32, %c0_i32_0 : i32, i32
  }
  func.func @transform_2(%arg0: i32) -> (i32, i32) {
    %c0_i32 = arith.constant 0 : i32
    %c0_i32_0 = arith.constant 0 : i32
    %c0_i32_1 = arith.constant 0 : i32
    return %c0_i32, %c0_i32_0 : i32, i32
  }
  func.func @transform_3(%arg0: i32) -> (i32, i32) {
    %c0_i32 = arith.constant 0 : i32
    %c0_i32_0 = arith.constant 0 : i32
    return %arg0, %c0_i32 : i32, i32
  }
}

module attributes {stable_mosaic.version = 11 : i64} {
  func.func @_linear_kernel(%arg0: i32, %arg1: memref<2x9216xf32, #tpu.memory_space<vmem>>, %arg2: memref<9216x128xf32, #tpu.memory_space<vmem>>, %arg3: memref<1x128xf32, #tpu.memory_space<vmem>>, %arg4: memref<2x128xf32, #tpu.memory_space<vmem>>) attributes {dimension_semantics = [#tpu.dimension_semantics<parallel>], iteration_bounds = array<i64: 1>, scalar_prefetch = 0 : i64, scratch_operands = 0 : i64, tpu.core_type = #tpu.core_type<tc>, window_params = [{transform_indices = @transform_0, window_bounds = array<i64: 2, 9216>}, {pipeline_mode = #tpu.pipeline_mode<synchronous>, transform_indices = @transform_1, window_bounds = array<i64: 9216, 128>}, {pipeline_mode = #tpu.pipeline_mode<synchronous>, transform_indices = @transform_2, window_bounds = array<i64: 1, 128>}, {transform_indices = @transform_3, window_bounds = array<i64: 2, 128>}]} {
    %c0 = arith.constant 0 : index
    %c0_0 = arith.constant 0 : index
    %0 = vector.load %arg1[%c0, %c0_0] : memref<2x9216xf32, #tpu.memory_space<vmem>>, vector<2x9216xf32>
    %c0_1 = arith.constant 0 : index
    %c0_2 = arith.constant 0 : index
    %1 = vector.load %arg2[%c0_1, %c0_2] : memref<9216x128xf32, #tpu.memory_space<vmem>>, vector<9216x128xf32>
    %cst = arith.constant dense<0.000000e+00> : vector<2x128xf32>
    %2 = tpu.matmul %0, %1, %cst {dimension_numbers = #tpu.dot_dimension_numbers<[1], [0], [0], [1], [0, 0, 1, 1], [], []>} : vector<2x9216xf32>, vector<9216x128xf32>, vector<2x128xf32> -> vector<2x128xf32>
    %c0_3 = arith.constant 0 : index
    %c0_4 = arith.constant 0 : index
    %3 = vector.load %arg3[%c0_3, %c0_4] : memref<1x128xf32, #tpu.memory_space<vmem>>, vector<1x128xf32>
    %4 = vector.broadcast %3 : vector<1x128xf32> to vector<2x128xf32>
    %5 = arith.addf %2, %4 : vector<2x128xf32>
    %cst_5 = arith.constant 0.000000e+00 : f32
    %6 = vector.broadcast %cst_5 : f32 to vector<2x128xf32>
    %7 = arith.maximumf %5, %6 : vector<2x128xf32>
    %c0_6 = arith.constant 0 : index
    %c0_7 = arith.constant 0 : index
    %8 = vector.load %arg4[%c0_6, %c0_7] : memref<2x128xf32, #tpu.memory_space<vmem>>, vector<2x128xf32>
    tpu.vector_store %arg4[%c0_6, %c0_7], %7 {strides = array<i32>} : memref<2x128xf32, #tpu.memory_space<vmem>>, vector<2x128xf32>,
    return
  }
  func.func @transform_0(%arg0: i32) -> (i32, i32) {
    %c0_i32 = arith.constant 0 : i32
    %c0_i32_0 = arith.constant 0 : i32
    return %arg0, %c0_i32 : i32, i32
  }
  func.func @transform_1(%arg0: i32) -> (i32, i32) {
    %c0_i32 = arith.constant 0 : i32
    %c0_i32_0 = arith.constant 0 : i32
    %c0_i32_1 = arith.constant 0 : i32
    return %c0_i32, %c0_i32_0 : i32, i32
  }
  func.func @transform_2(%arg0: i32) -> (i32, i32) {
    %c0_i32 = arith.constant 0 : i32
    %c0_i32_0 = arith.constant 0 : i32
    %c0_i32_1 = arith.constant 0 : i32
    return %c0_i32, %c0_i32_0 : i32, i32
  }
  func.func @transform_3(%arg0: i32) -> (i32, i32) {
    %c0_i32 = arith.constant 0 : i32
    %c0_i32_0 = arith.constant 0 : i32
    return %arg0, %c0_i32 : i32, i32
  }
}

</mosaic_0001>

<bundles_post_ra>
// kernel: cnn_forward.3
= control target key start
LH: loop header
LB: loop body
LE: loop exit
PB: predicated region body
PF: predicated region fallthrough
CT: control target
= control target key end

     0   :  { %8 = vsyncpa [#allocation3], 0  ;;  %s2696_s0 = inlined_call_operand.vmem [shape: f32[1352,9], index: 0, kind: input, shape index: {}]   ;;  %s2697_s1 = inlined_call_operand.hbm [shape: f32[9,32], index: 1, kind: input, shape index: {}]   ;;  %s2698_s2 = inlined_call_operand.hbm [shape: f32[1,32], index: 2, kind: input, shape index: {}]   ;;  %s2699_s3 = inlined_call_operand.vmem [shape: f32[1352,32], index: 3, kind: output, shape index: {}]  }
   0x1   :  { %9 = vsyncpa [#allocation5], 0  ;;  %s2053_s12 = smov 0   ;;  %s2055_s13 = smov 0  }
   0x2   :  { %s2057_s14 = smov 0  }
   0x3 LB: > { %s2066_s15 = sadd.s32 4294967295, %s1994_s14   ;;  %s2068_s16 = sadd.s32 1, %s1994_s14   ;;  %s1994_s14 = sphi %s2057_s14, %s2718_s14   ;;  %s1990_s13 = sphi %s2055_s13, %s2717_s13   ;;  %s1986_s12 = sphi %s2053_s12, %s2716_s12  }
   0x4   : > { %s87_s17 = ssub.s32 %s1994_s14, %s2068_s16  ;;  %s90_s18 = sadd.s32 1, %s1990_s13 }
   0x5   : > { %p88_p0 = scmp.eq.s32.totalorder %s87_s17, 0  ;;  %p100_p1 = scmp.ne.s32.totalorder %s1990_s13, %s1986_s12 }
   0x6   : > { %p101_p2 = scmp.eq.s32.totalorder %s2066_s15, 2  ;;  %p1494_p3 = scmp.ge.s32.totalorder %s1994_s14, 1 }
   0x7   : > { %s2076_s19 = scalar_select %p88_p0, %s1990_s13, %s90_s18  }
   0x8   : > { %p2078_p4 = por %p101_p2, %p100_p1  ;;  %p114_p5 = scmp.lt.s32.totalorder %s1994_s14, 4 }
   0x9   : > { %p2700_p6 = scmp.eq.s32.totalorder %s2066_s15, 0  ;;  %s2028_s22 = smov [#allocation2]  }
   0xa   : > { %s2702_s20 = scalar_select %p2078_p4, 1, 0 }
   0xb   : > { %p2083_p7 = pnand %p1494_p3, %p114_p5  ;;  %s126_s23 = sshll.u32 %s2028_s22, 4  ;;  %s127_s23 = int_to_ptr.vmem [resolvable:$true] %s126_s23 }
   0xc   : > { %s2029_s25 = smov [#allocation4]   ;;  %s1876_s29 = scalar_lea.hbm %s2697_s1, 256 }
   0xd   : > { %s2703_s21 = scalar_select %p2083_p7, 1, 0 }
   0xe   : > { %p1772_p8 = pneg %p2083_p7  ;;  %s140_s26 = sshll.u32 %s2029_s25, 4  ;;  %s2095_s26 = int_to_ptr.vmem [resolvable:$true] %s140_s26 }
   0xf   : > { %p1877_p10 = scmp.ne.s32.totalorder %s2697_s1, %s1876_s29  ;;  %p1883_p0 = scmp.lt.u32.totalorder %s1876_s29, %s2697_s1 }
  0x10   : > { %p2091_p9 = pnand %p2700_p6, %p1772_p8 }
  0x12   : > { %p1878_p11 = pneg %p2091_p9 }
  0x14   : > { %p1879_p12 = pnand %p1878_p11, %p1877_p10 }
  0x16   : > { %p1880_p13 = pneg %p1879_p12 }
  0x18   : > { %p1885_p1 = pnand %p1883_p0, %p1880_p13 }
  0x1a   : > { %1888 = shalt.err (!%p1885_p1)
}
  0x1b   : > { %s1889_s7 = scalar_lea.vmem %s127_s23, 256  ;;  %p1897_p8 = scmp.lt.s32.totalorder %s127_s23, %s127_s23 }
  0x1c   : > { %p1890_p2 = scmp.ne.s32.totalorder %s127_s23, %s1889_s7  ;;  %p1898_p6 = scmp.lt.s32.totalorder %s1889_s7, %s1889_s7 }
  0x1e   : > { %p1892_p3 = pnand %p1890_p2, %p1878_p11  ;;  %p1899_p4 = por %p1898_p6, %p1897_p8 }
  0x20   : > { %p1893_p5 = pneg %p1892_p3 }
  0x22   : > { %p1900_p7 = pnand %p1899_p4, %p1893_p5 }
  0x24   : > { %1903 = shalt.err (!%p1900_p7)
}
  0x25   : > { %s2030_s8 = smov 128   ;;  %s2031_s9 = smov 8  }
  0x26   : > { %1775 = dma.hbm_to_vmem [thread:$0]  (!%p2091_p9), %s2697_s1, 256, %s127_s23, [#allocation3], %s2030_s8, %s2030_s8, %s2031_s9  }
  0x27   : > { %s1904_s18 = scalar_lea.hbm %s2698_s2, 16 }
  0x28   : > { %p1905_p10 = scmp.ne.s32.totalorder %s2698_s2, %s1904_s18  ;;  %p1911_p7 = scmp.lt.u32.totalorder %s1904_s18, %s2698_s2 }
  0x2a   : > { %p1907_p4 = pnand %p1905_p10, %p1878_p11 }
  0x2c   : > { %p1908_p6 = pneg %p1907_p4 }
  0x2e   : > { %p1913_p12 = pnand %p1911_p7, %p1908_p6 }
  0x30   : > { %1916 = shalt.err (!%p1913_p12)
}
  0x31   : > { %s1917_s23 = scalar_lea.vmem %s2095_s26, 16  ;;  %s1924_s29 = scalar_lea.vmem %s2095_s26, 32 }
  0x32   : > { %p1918_p13 = scmp.ne.s32.totalorder %s2095_s26, %s1917_s23  ;;  %p1925_p2 = scmp.lt.s32.totalorder %s2095_s26, %s2095_s26 }
  0x33   : > { %p1926_p3 = scmp.lt.s32.totalorder %s1924_s29, %s1917_s23 }
  0x34   : > { %p1920_p0 = pnand %p1918_p13, %p1878_p11 }
  0x35   : > { %p1927_p5 = por %p1926_p3, %p1925_p2 }
  0x36   : > { %p1921_p1 = pneg %p1920_p0 }
  0x38   : > { %p1928_p8 = pnand %p1927_p5, %p1921_p1 }
  0x3a   : > { %1931 = shalt.err (!%p1928_p8)
}
  0x3b   : > { %1778 = dma.hbm_to_vmem [thread:$0]  (!%p2091_p9), %s2698_s2, 16, %s2095_s26, [#allocation5]  }
  0x3c   : > { %p2705_p10 = scmp.ne.s32.totalorder %s2703_s21, 0 }
  0x3d   : > { %p2706_p11 = scmp.eq.s32.totalorder (!%p2705_p10), %s2066_s15, 0 }
  0x3e   : > { %170 = sbr.rel (%p2705_p10) target bundleno = 434 (0x1b2), region = 32 }
  0x45   : > { %1977 = dma.done.wait (%p2706_p11), [#allocation3], 256   ;;  %p2707_p4 = pmov %p2706_p11 }
  0x47   : > { %1979 = vsyncadd (%p2707_p4), [#allocation3], 4294967040  ;;  %p2708_p6 = pmov %p2707_p4 }
  0x48   : > { %p2709_p7 = pmov %p2707_p4 }
  0x49   : > { %1981 = dma.done.wait (%p2708_p6), [#allocation5], 16  }
  0x4a   : > { %1983 = vsyncadd (%p2709_p7), [#allocation5], 4294967280  ;;  %s2156_s24 = sshll.u32 %s2066_s15, 6  ;;  %vm486_vm0 = vcmask 1040384   ;;  %vm293_vm1 = vcmask 72704   ;;  %vm2032_vm2 = vmmov 1  }
  0x4b   : > { %p206_p9 = scmp.lt.s32.totalorder %s2156_s24, 168  ;;  %vm1757_vm3 = vmpackc.low %vm486_vm0, %vm2032_vm2  ;;  %v284_v0 = vld [vmem:[#allocation2] sm:$0xff]  ;;  %v285_v1 = vld [vmem:[#allocation2 + $0x8] sm:$0x1]  ;;  %s198_s8 = sand.u32 1, %s1986_s12   ;;  %vm939_vm4 = vcmask 261120  }
  0x4c   : > { %v1756_v3 = vpack.c.bf16 %v285_v1, %v284_v0  ;;  %s1501_s9 = sshll.u32 %s198_s8, 9  ;;  %p2710_p12 = scmp.ne.s32.totalorder %s2702_s20, 0 }
  0x4d   : > { %s207_s21 = scalar_select %p206_p9, %s2156_s24, 168 }
  0x4e   : > { %1758 = vmatprep.subr.msk.bf16.mxu0 %vm1757_vm3, %v1756_v3  ;;  %1762 = vmatprep.subr.msk.bf16.mxu1 %vm1757_vm3, %v1756_v3  ;;  %s2300_s12 = scalar_lea.vmem [#allocation6], %s1501_s9   ;;  %s1012_s10 = ssub.s32 (%p2710_p12), 169, %s2156_s24 }
  0x4f   : > { %s1503_s26 = sshll.u32 %s207_s21, 3  ;;  %1761 = vmatpush3.bf16.msk.msra.mxu0 %vm1757_vm3, %v1756_v3  ;;  %1763 = vmatpush3.bf16.msk.msra.mxu1 %vm1757_vm3, %v1756_v3  ;;  %v2294_v3 = vld [vmem:[#allocation4] ss:$0 sm:$0xff]  ;;  %s1587_s11 = sshll.u32 (%p2710_p12), %s2066_s15, 9 }
  0x50   : > { %s2163_s7 = scalar_lea.vmem %s2696_s0, %s1503_s26  ;;  %p1013_p13 = scmp.lt.s32.totalorder (%p2710_p12), %s1012_s10, 64 }
  0x51   : > { %v220_v2 = vld [vmem:[%s2163_s7] sm:$0xff]  ;;  %v221_v5 = vld [vmem:[%s2163_s7 + $0x8] sm:$0xff]  ;;  %v222_v7 = vld [vmem:[%s2163_s7 + $0x10] sm:$0xff]  ;;  %s2497_s18 = scalar_lea.vmem (%p2710_p12), %s2699_s3, %s1587_s11  }
  0x52   : > { %1660 = vmatprep.mubr.msk.f32.mxu0 %vm293_vm1, %v220_v2  ;;  %v252_v4 = vld [vmem:[%s2163_s7 + $0x100] sm:$0xff]  ;;  %v253_v6 = vld [vmem:[%s2163_s7 + $0x108] sm:$0xff]  ;;  %v254_v8 = vld [vmem:[%s2163_s7 + $0x110] sm:$0xff] }
  0x53   : > { %1708 = vmatprep.mubr.msk.f32.mxu1 %vm293_vm1, %v252_v4  ;;  %1661 = vmatmul.mubr.msk.f32.vlgmr.msra.gmra.mrb[0].mxu0 %vm293_vm1, %v221_v5  ;;  %v223_v9 = vld [vmem:[%s2163_s7 + $0x18] sm:$0xff]  ;;  %v224_v11 = vld [vmem:[%s2163_s7 + $0x20] sm:$0xff]  ;;  %v225_v13 = vld [vmem:[%s2163_s7 + $0x28] sm:$0xff] }
  0x54   : > { %1709 = vmatmul.mubr.msk.f32.vlgmr.msra.gmra.mrb[0].mxu1 %vm293_vm1, %v253_v6  ;;  %1663 = vmatprep.mubr.msk.f32.mxu0 %vm293_vm1, %v222_v7  ;;  %v255_v10 = vld [vmem:[%s2163_s7 + $0x118] sm:$0xff]  ;;  %v256_v12 = vld [vmem:[%s2163_s7 + $0x120] sm:$0xff]  ;;  %v257_v14 = vld [vmem:[%s2163_s7 + $0x128] sm:$0xff] }
  0x55   : > { %1711 = vmatprep.mubr.msk.f32.mxu1 %vm293_vm1, %v254_v8  ;;  %v226_v15 = vld [vmem:[%s2163_s7 + $0x30] sm:$0xff]  ;;  %v227_v17 = vld [vmem:[%s2163_s7 + $0x38] sm:$0xff]  ;;  %v228_v19 = vld [vmem:[%s2163_s7 + $0x40] sm:$0xff] }
  0x56   : > { %v258_v16 = vld [vmem:[%s2163_s7 + $0x130] sm:$0xff]  ;;  %v259_v18 = vld [vmem:[%s2163_s7 + $0x138] sm:$0xff]  ;;  %v260_v20 = vld [vmem:[%s2163_s7 + $0x140] sm:$0xff] }
  0x57   : > { %1664 = vmatmul.mubr.msk.f32.gmra.mrb[2].mxu0 %vm293_vm1, %v223_v9  ;;  %v229_v21 = vld [vmem:[%s2163_s7 + $0x48] sm:$0xff]  ;;  %v230_v23 = vld [vmem:[%s2163_s7 + $0x50] sm:$0xff]  ;;  %v231_v25 = vld [vmem:[%s2163_s7 + $0x58] sm:$0xff] }
  0x58   : > { %1712 = vmatmul.mubr.msk.f32.gmra.mrb[2].mxu1 %vm293_vm1, %v255_v10  ;;  %1666 = vmatprep.mubr.msk.f32.mxu0 %vm293_vm1, %v224_v11  ;;  %v261_v22 = vld [vmem:[%s2163_s7 + $0x148] sm:$0xff]  ;;  %v262_v24 = vld [vmem:[%s2163_s7 + $0x150] sm:$0xff]  ;;  %v263_v26 = vld [vmem:[%s2163_s7 + $0x158] sm:$0xff] }
  0x59   : > { %1714 = vmatprep.mubr.msk.f32.mxu1 %vm293_vm1, %v256_v12  ;;  %v232_v27 = vld [vmem:[%s2163_s7 + $0x60] sm:$0xff]  ;;  %v233_v29 = vld [vmem:[%s2163_s7 + $0x68] sm:$0xff]  ;;  %v234_v31 = vld [vmem:[%s2163_s7 + $0x70] sm:$0xff] }
  0x5a   : > { %v264_v28 = vld [vmem:[%s2163_s7 + $0x160] sm:$0xff]  ;;  %v265_v30 = vld [vmem:[%s2163_s7 + $0x168] sm:$0xff]  ;;  %v266_v32 = vld [vmem:[%s2163_s7 + $0x170] sm:$0xff] }
  0x5b   : > { %1667 = vmatmul.mubr.msk.f32.gmra.mrb[4].mxu0 %vm293_vm1, %v225_v13  ;;  %v235_v33 = vld [vmem:[%s2163_s7 + $0x78] sm:$0xff]  ;;  %v236_v35 = vld [vmem:[%s2163_s7 + $0x80] sm:$0xff]  ;;  %v237_v37 = vld [vmem:[%s2163_s7 + $0x88] sm:$0xff] }
  0x5c   : > { %1715 = vmatmul.mubr.msk.f32.gmra.mrb[4].mxu1 %vm293_vm1, %v257_v14  ;;  %1669 = vmatprep.mubr.msk.f32.mxu0 %vm293_vm1, %v226_v15  ;;  %v267_v34 = vld [vmem:[%s2163_s7 + $0x178] sm:$0xff]  ;;  %v268_v36 = vld [vmem:[%s2163_s7 + $0x180] sm:$0xff]  ;;  %v269_v38 = vld [vmem:[%s2163_s7 + $0x188] sm:$0xff] }
  0x5d   : > { %1717 = vmatprep.mubr.msk.f32.mxu1 %vm293_vm1, %v258_v16  ;;  %v238_v39 = vld [vmem:[%s2163_s7 + $0x90] sm:$0xff]  ;;  %v239_v41 = vld [vmem:[%s2163_s7 + $0x98] sm:$0xff]  ;;  %v240_v43 = vld [vmem:[%s2163_s7 + $0xa0] sm:$0xff] }
  0x5e   : > { %v270_v40 = vld [vmem:[%s2163_s7 + $0x190] sm:$0xff]  ;;  %v271_v42 = vld [vmem:[%s2163_s7 + $0x198] sm:$0xff]  ;;  %v272_v44 = vld [vmem:[%s2163_s7 + $0x1a0] sm:$0xff] }
  0x5f   : > { %1670 = vmatmul.mubr.msk.f32.gmra.mrb[6].mxu0 %vm293_vm1, %v227_v17  ;;  %v241_v45 = vld [vmem:[%s2163_s7 + $0xa8] sm:$0xff]  ;;  %v242_v47 = vld [vmem:[%s2163_s7 + $0xb0] sm:$0xff]  ;;  %v243_v49 = vld [vmem:[%s2163_s7 + $0xb8] sm:$0xff] }
  0x60   : > { %1718 = vmatmul.mubr.msk.f32.gmra.mrb[6].mxu1 %vm293_vm1, %v259_v18  ;;  %1672 = vmatprep.mubr.msk.f32.mxu0 %vm293_vm1, %v228_v19  ;;  %v273_v46 = vld [vmem:[%s2163_s7 + $0x1a8] sm:$0xff]  ;;  %v274_v48 = vld [vmem:[%s2163_s7 + $0x1b0] sm:$0xff]  ;;  %v275_v50 = vld [vmem:[%s2163_s7 + $0x1b8] sm:$0xff] }
  0x61   : > { %1720 = vmatprep.mubr.msk.f32.mxu1 %vm293_vm1, %v260_v20  ;;  %v244_v51 = vld [vmem:[%s2163_s7 + $0xc0] sm:$0xff]  ;;  %v245_v53 = vld [vmem:[%s2163_s7 + $0xc8] sm:$0xff]  ;;  %v246_v55 = vld [vmem:[%s2163_s7 + $0xd0] sm:$0xff] }
  0x62   : > { %v276_v52 = vld [vmem:[%s2163_s7 + $0x1c0] sm:$0xff]  ;;  %v277_v54 = vld [vmem:[%s2163_s7 + $0x1c8] sm:$0xff]  ;;  %v278_v56 = vld [vmem:[%s2163_s7 + $0x1d0] sm:$0xff] }
  0x63   : > { %1673 = vmatmul.mubr.msk.f32.gmra.mrb[8].mxu0 %vm293_vm1, %v229_v21  ;;  %v247_v57 = vld [vmem:[%s2163_s7 + $0xd8] sm:$0xff]  ;;  %v248_v59 = vld [vmem:[%s2163_s7 + $0xe0] sm:$0xff]  ;;  %v249_v61 = vld [vmem:[%s2163_s7 + $0xe8] sm:$0xff] }
  0x64   : > { %1721 = vmatmul.mubr.msk.f32.gmra.mrb[8].mxu1 %vm293_vm1, %v261_v22  ;;  %1675 = vmatprep.mubr.msk.f32.mxu0 %vm293_vm1, %v230_v23  ;;  %v279_v58 = vld [vmem:[%s2163_s7 + $0x1d8] sm:$0xff]  ;;  %v280_v60 = vld [vmem:[%s2163_s7 + $0x1e0] sm:$0xff]  ;;  %v281_v62 = vld [vmem:[%s2163_s7 + $0x1e8] sm:$0xff] }
  0x65   : > { %1723 = vmatprep.mubr.msk.f32.mxu1 %vm293_vm1, %v262_v24  ;;  %v250_v63 = vld [vmem:[%s2163_s7 + $0xf0] sm:$0xff]  ;;  %v251_v1 = vld [vmem:[%s2163_s7 + $0xf8] sm:$0xff] }
  0x66   : > { %v282_v0 = vld [vmem:[%s2163_s7 + $0x1f0] sm:$0xff]  ;;  %v283_v2 = vld [vmem:[%s2163_s7 + $0x1f8] sm:$0xff] }
  0x67   : > { %1676 = vmatmul.mubr.msk.f32.gmra.mrb[10].mxu0 %vm293_vm1, %v231_v25 }
  0x68   : > { %1724 = vmatmul.mubr.msk.f32.gmra.mrb[10].mxu1 %vm293_vm1, %v263_v26  ;;  %1678 = vmatprep.mubr.msk.f32.mxu0 %vm293_vm1, %v232_v27 }
  0x69   : > { %1726 = vmatprep.mubr.msk.f32.mxu1 %vm293_vm1, %v264_v28 }
  0x6b   : > { %1679 = vmatmul.mubr.msk.f32.gmra.mrb[12].mxu0 %vm293_vm1, %v233_v29 }
  0x6c   : > { %1727 = vmatmul.mubr.msk.f32.gmra.mrb[12].mxu1 %vm293_vm1, %v265_v30  ;;  %1681 = vmatprep.mubr.msk.f32.mxu0 %vm293_vm1, %v234_v31 }
  0x6d   : > { %1729 = vmatprep.mubr.msk.f32.mxu1 %vm293_vm1, %v266_v32 }
  0x6f   : > { %1682 = vmatmul.mubr.msk.f32.gmra.mrb[14].mxu0 %vm293_vm1, %v235_v33 }
  0x70   : > { %1730 = vmatmul.mubr.msk.f32.gmra.mrb[14].mxu1 %vm293_vm1, %v267_v34  ;;  %1684 = vmatprep.mubr.msk.f32.mxu0 %vm293_vm1, %v236_v35 }
  0x71   : > { %1732 = vmatprep.mubr.msk.f32.mxu1 %vm293_vm1, %v268_v36 }
  0x73   : > { %1685 = vmatmul.mubr.msk.f32.gmra.mrb[16].mxu0 %vm293_vm1, %v237_v37 }
  0x74   : > { %1733 = vmatmul.mubr.msk.f32.gmra.mrb[16].mxu1 %vm293_vm1, %v269_v38  ;;  %1687 = vmatprep.mubr.msk.f32.mxu0 %vm293_vm1, %v238_v39 }
  0x75   : > { %1735 = vmatprep.mubr.msk.f32.mxu1 %vm293_vm1, %v270_v40 }
  0x77   : > { %1688 = vmatmul.mubr.msk.f32.gmra.mrb[18].mxu0 %vm293_vm1, %v239_v41 }
  0x78   : > { %1736 = vmatmul.mubr.msk.f32.gmra.mrb[18].mxu1 %vm293_vm1, %v271_v42  ;;  %1690 = vmatprep.mubr.msk.f32.mxu0 %vm293_vm1, %v240_v43 }
  0x79   : > { %1738 = vmatprep.mubr.msk.f32.mxu1 %vm293_vm1, %v272_v44 }
  0x7b   : > { %1691 = vmatmul.mubr.msk.f32.gmra.mrb[20].mxu0 %vm293_vm1, %v241_v45 }
  0x7c   : > { %1739 = vmatmul.mubr.msk.f32.gmra.mrb[20].mxu1 %vm293_vm1, %v273_v46  ;;  %1693 = vmatprep.mubr.msk.f32.mxu0 %vm293_vm1, %v242_v47 }
  0x7d   : > { %1741 = vmatprep.mubr.msk.f32.mxu1 %vm293_vm1, %v274_v48 }
  0x7f   : > { %1694 = vmatmul.mubr.msk.f32.gmra.mrb[22].mxu0 %vm293_vm1, %v243_v49 }
  0x80   : > { %1742 = vmatmul.mubr.msk.f32.gmra.mrb[22].mxu1 %vm293_vm1, %v275_v50  ;;  %1696 = vmatprep.mubr.msk.f32.mxu0 %vm293_vm1, %v244_v51 }
  0x81   : > { %1744 = vmatprep.mubr.msk.f32.mxu1 %vm293_vm1, %v276_v52 }
  0x83   : > { %1697 = vmatmul.mubr.msk.f32.gmra.mrb[24].mxu0 %vm293_vm1, %v245_v53 }
  0x84   : > { %1745 = vmatmul.mubr.msk.f32.gmra.mrb[24].mxu1 %vm293_vm1, %v277_v54  ;;  %1699 = vmatprep.mubr.msk.f32.mxu0 %vm293_vm1, %v246_v55 }
  0x85   : > { %1747 = vmatprep.mubr.msk.f32.mxu1 %vm293_vm1, %v278_v56 }
  0x87   : > { %1700 = vmatmul.mubr.msk.f32.gmra.mrb[26].mxu0 %vm293_vm1, %v247_v57 }
  0x88   : > { %1748 = vmatmul.mubr.msk.f32.gmra.mrb[26].mxu1 %vm293_vm1, %v279_v58  ;;  %1702 = vmatprep.mubr.msk.f32.mxu0 %vm293_vm1, %v248_v59 }
  0x89   : > { %1750 = vmatprep.mubr.msk.f32.mxu1 %vm293_vm1, %v280_v60 }
  0x8b   : > { %1703 = vmatmul.mubr.msk.f32.gmra.mrb[28].mxu0 %vm293_vm1, %v249_v61 }
  0x8c   : > { %1751 = vmatmul.mubr.msk.f32.gmra.mrb[28].mxu1 %vm293_vm1, %v281_v62  ;;  %1705 = vmatprep.mubr.msk.f32.mxu0 %vm293_vm1, %v250_v63 }
  0x8d   : > { %1753 = vmatprep.mubr.msk.f32.mxu1 %vm293_vm1, %v282_v0 }
  0x8f   : > { %1706 = vmatmul.mubr.msk.f32.gmra.mrb[30].mxu0 %vm293_vm1, %v251_v1 }
  0x90   : > { %1754 = vmatmul.mubr.msk.f32.gmra.mrb[30].mxu1 %vm293_vm1, %v283_v2 }
 0x126   : > { %v1662_v4 = vpop.f32.mrb[0].mxu0 }
 0x127   : > { %v1710_v5 = vpop.f32.mrb[0].mxu1  ;;  %v562_v6 = vadd.f32 %v1662_v4, %v2294_v3  ;;  %v556_v8 = vpop.f32.mrb[1].mxu0 }
 0x128   : > { %v722_v7 = vadd.f32 %v1710_v5, %v2294_v3  ;;  %v716_v9 = vpop.f32.mrb[1].mxu1  ;;  %v557_v10 = vadd.f32 %v2294_v3, %v556_v8 }
 0x129   : > { %v717_v11 = vadd.f32 %v2294_v3, %v716_v9  ;;  %v876_v12 = vmax.f32 %v562_v6, 0.0 }
 0x12a   : > { %v908_v13 = vmax.f32 %v722_v7, 0.0  ;;  %v875_v14 = vmax.f32 %v557_v10, 0.0  ;;  %v1665_v16 = vpop.f32.mrb[2].mxu0 }
 0x12b   : > { %v907_v15 = vmax.f32 %v717_v11, 0.0  ;;  %v1713_v17 = vpop.f32.mrb[2].mxu1  ;;  %941 = vst.msk [vmem:[%s2300_s12 + $0x8] sm:$0xff] %vm939_vm4, %v876_v12  ;;  %v572_v18 = vadd.f32 %v1665_v16, %v2294_v3  ;;  %v566_v20 = vpop.f32.mrb[3].mxu0 }
 0x12c   : > { %973 = vst.msk [vmem:[%s2300_s12 + $0x108] sm:$0xff] %vm939_vm4, %v908_v13  ;;  %v732_v19 = vadd.f32 %v1713_v17, %v2294_v3  ;;  %v726_v21 = vpop.f32.mrb[3].mxu1  ;;  %940 = vst.msk [vmem:[%s2300_s12] sm:$0xff] %vm939_vm4, %v875_v14  ;;  %v567_v22 = vadd.f32 %v2294_v3, %v566_v20 }
 0x12d   : > { %972 = vst.msk [vmem:[%s2300_s12 + $0x100] sm:$0xff] %vm939_vm4, %v907_v15  ;;  %v727_v23 = vadd.f32 %v2294_v3, %v726_v21  ;;  %v878_v24 = vmax.f32 %v572_v18, 0.0 }
 0x12e   : > { %v910_v25 = vmax.f32 %v732_v19, 0.0  ;;  %v877_v26 = vmax.f32 %v567_v22, 0.0  ;;  %v1668_v28 = vpop.f32.mrb[4].mxu0 }
 0x12f   : > { %v909_v27 = vmax.f32 %v727_v23, 0.0  ;;  %v1716_v29 = vpop.f32.mrb[4].mxu1  ;;  %943 = vst.msk [vmem:[%s2300_s12 + $0x18] sm:$0xff] %vm939_vm4, %v878_v24  ;;  %v582_v30 = vadd.f32 %v1668_v28, %v2294_v3  ;;  %v576_v32 = vpop.f32.mrb[5].mxu0 }
 0x130   : > { %975 = vst.msk [vmem:[%s2300_s12 + $0x118] sm:$0xff] %vm939_vm4, %v910_v25  ;;  %v742_v31 = vadd.f32 %v1716_v29, %v2294_v3  ;;  %v736_v33 = vpop.f32.mrb[5].mxu1  ;;  %942 = vst.msk [vmem:[%s2300_s12 + $0x10] sm:$0xff] %vm939_vm4, %v877_v26  ;;  %v577_v34 = vadd.f32 %v2294_v3, %v576_v32 }
 0x131   : > { %974 = vst.msk [vmem:[%s2300_s12 + $0x110] sm:$0xff] %vm939_vm4, %v909_v27  ;;  %v737_v35 = vadd.f32 %v2294_v3, %v736_v33  ;;  %v880_v36 = vmax.f32 %v582_v30, 0.0 }
 0x132   : > { %v912_v37 = vmax.f32 %v742_v31, 0.0  ;;  %v879_v38 = vmax.f32 %v577_v34, 0.0  ;;  %v1671_v40 = vpop.f32.mrb[6].mxu0 }
 0x133   : > { %v911_v39 = vmax.f32 %v737_v35, 0.0  ;;  %v1719_v41 = vpop.f32.mrb[6].mxu1  ;;  %945 = vst.msk [vmem:[%s2300_s12 + $0x28] sm:$0xff] %vm939_vm4, %v880_v36  ;;  %v592_v42 = vadd.f32 %v1671_v40, %v2294_v3  ;;  %v586_v44 = vpop.f32.mrb[7].mxu0 }
 0x134   : > { %977 = vst.msk [vmem:[%s2300_s12 + $0x128] sm:$0xff] %vm939_vm4, %v912_v37  ;;  %v752_v43 = vadd.f32 %v1719_v41, %v2294_v3  ;;  %v746_v45 = vpop.f32.mrb[7].mxu1  ;;  %944 = vst.msk [vmem:[%s2300_s12 + $0x20] sm:$0xff] %vm939_vm4, %v879_v38  ;;  %v587_v46 = vadd.f32 %v2294_v3, %v586_v44 }
 0x135   : > { %976 = vst.msk [vmem:[%s2300_s12 + $0x120] sm:$0xff] %vm939_vm4, %v911_v39  ;;  %v747_v47 = vadd.f32 %v2294_v3, %v746_v45  ;;  %v882_v48 = vmax.f32 %v592_v42, 0.0 }
 0x136   : > { %v914_v49 = vmax.f32 %v752_v43, 0.0  ;;  %v881_v50 = vmax.f32 %v587_v46, 0.0  ;;  %v1674_v52 = vpop.f32.mrb[8].mxu0 }
 0x137   : > { %v913_v51 = vmax.f32 %v747_v47, 0.0  ;;  %v1722_v53 = vpop.f32.mrb[8].mxu1  ;;  %947 = vst.msk [vmem:[%s2300_s12 + $0x38] sm:$0xff] %vm939_vm4, %v882_v48  ;;  %v602_v54 = vadd.f32 %v1674_v52, %v2294_v3  ;;  %v596_v56 = vpop.f32.mrb[9].mxu0 }
 0x138   : > { %979 = vst.msk [vmem:[%s2300_s12 + $0x138] sm:$0xff] %vm939_vm4, %v914_v49  ;;  %v762_v55 = vadd.f32 %v1722_v53, %v2294_v3  ;;  %v756_v57 = vpop.f32.mrb[9].mxu1  ;;  %946 = vst.msk [vmem:[%s2300_s12 + $0x30] sm:$0xff] %vm939_vm4, %v881_v50  ;;  %v597_v58 = vadd.f32 %v2294_v3, %v596_v56 }
 0x139   : > { %978 = vst.msk [vmem:[%s2300_s12 + $0x130] sm:$0xff] %vm939_vm4, %v913_v51  ;;  %v757_v59 = vadd.f32 %v2294_v3, %v756_v57  ;;  %v884_v60 = vmax.f32 %v602_v54, 0.0 }
 0x13a   : > { %v916_v61 = vmax.f32 %v762_v55, 0.0  ;;  %v883_v62 = vmax.f32 %v597_v58, 0.0  ;;  %v1677_v0 = vpop.f32.mrb[10].mxu0 }
 0x13b   : > { %v915_v63 = vmax.f32 %v757_v59, 0.0  ;;  %v1725_v1 = vpop.f32.mrb[10].mxu1  ;;  %949 = vst.msk [vmem:[%s2300_s12 + $0x48] sm:$0xff] %vm939_vm4, %v884_v60  ;;  %v612_v2 = vadd.f32 %v1677_v0, %v2294_v3  ;;  %v606_v5 = vpop.f32.mrb[11].mxu0 }
 0x13c   : > { %981 = vst.msk [vmem:[%s2300_s12 + $0x148] sm:$0xff] %vm939_vm4, %v916_v61  ;;  %v772_v4 = vadd.f32 %v1725_v1, %v2294_v3  ;;  %v766_v6 = vpop.f32.mrb[11].mxu1  ;;  %948 = vst.msk [vmem:[%s2300_s12 + $0x40] sm:$0xff] %vm939_vm4, %v883_v62  ;;  %v607_v7 = vadd.f32 %v2294_v3, %v606_v5 }
 0x13d   : > { %980 = vst.msk [vmem:[%s2300_s12 + $0x140] sm:$0xff] %vm939_vm4, %v915_v63  ;;  %v767_v8 = vadd.f32 %v2294_v3, %v766_v6  ;;  %v886_v9 = vmax.f32 %v612_v2, 0.0 }
 0x13e   : > { %v918_v10 = vmax.f32 %v772_v4, 0.0  ;;  %v885_v11 = vmax.f32 %v607_v7, 0.0  ;;  %v1680_v13 = vpop.f32.mrb[12].mxu0 }
 0x13f   : > { %v917_v12 = vmax.f32 %v767_v8, 0.0  ;;  %v1728_v14 = vpop.f32.mrb[12].mxu1  ;;  %951 = vst.msk [vmem:[%s2300_s12 + $0x58] sm:$0xff] %vm939_vm4, %v886_v9  ;;  %v622_v15 = vadd.f32 %v1680_v13, %v2294_v3  ;;  %v616_v17 = vpop.f32.mrb[13].mxu0 }
 0x140   : > { %983 = vst.msk [vmem:[%s2300_s12 + $0x158] sm:$0xff] %vm939_vm4, %v918_v10  ;;  %v782_v16 = vadd.f32 %v1728_v14, %v2294_v3  ;;  %v776_v18 = vpop.f32.mrb[13].mxu1  ;;  %950 = vst.msk [vmem:[%s2300_s12 + $0x50] sm:$0xff] %vm939_vm4, %v885_v11  ;;  %v617_v19 = vadd.f32 %v2294_v3, %v616_v17 }
 0x141   : > { %982 = vst.msk [vmem:[%s2300_s12 + $0x150] sm:$0xff] %vm939_vm4, %v917_v12  ;;  %v777_v20 = vadd.f32 %v2294_v3, %v776_v18  ;;  %v888_v21 = vmax.f32 %v622_v15, 0.0 }
 0x142   : > { %v920_v22 = vmax.f32 %v782_v16, 0.0  ;;  %v887_v23 = vmax.f32 %v617_v19, 0.0  ;;  %v1683_v25 = vpop.f32.mrb[14].mxu0 }
 0x143   : > { %v919_v24 = vmax.f32 %v777_v20, 0.0  ;;  %v1731_v26 = vpop.f32.mrb[14].mxu1  ;;  %953 = vst.msk [vmem:[%s2300_s12 + $0x68] sm:$0xff] %vm939_vm4, %v888_v21  ;;  %v632_v27 = vadd.f32 %v1683_v25, %v2294_v3  ;;  %v626_v29 = vpop.f32.mrb[15].mxu0 }
 0x144   : > { %985 = vst.msk [vmem:[%s2300_s12 + $0x168] sm:$0xff] %vm939_vm4, %v920_v22  ;;  %v792_v28 = vadd.f32 %v1731_v26, %v2294_v3  ;;  %v786_v30 = vpop.f32.mrb[15].mxu1  ;;  %952 = vst.msk [vmem:[%s2300_s12 + $0x60] sm:$0xff] %vm939_vm4, %v887_v23  ;;  %v627_v31 = vadd.f32 %v2294_v3, %v626_v29 }
 0x145   : > { %984 = vst.msk [vmem:[%s2300_s12 + $0x160] sm:$0xff] %vm939_vm4, %v919_v24  ;;  %v787_v32 = vadd.f32 %v2294_v3, %v786_v30  ;;  %v890_v33 = vmax.f32 %v632_v27, 0.0 }
 0x146   : > { %v922_v34 = vmax.f32 %v792_v28, 0.0  ;;  %v889_v35 = vmax.f32 %v627_v31, 0.0  ;;  %v1686_v37 = vpop.f32.mrb[16].mxu0 }
 0x147   : > { %v921_v36 = vmax.f32 %v787_v32, 0.0  ;;  %v1734_v38 = vpop.f32.mrb[16].mxu1  ;;  %955 = vst.msk [vmem:[%s2300_s12 + $0x78] sm:$0xff] %vm939_vm4, %v890_v33  ;;  %v642_v39 = vadd.f32 %v1686_v37, %v2294_v3  ;;  %v636_v41 = vpop.f32.mrb[17].mxu0 }
 0x148   : > { %987 = vst.msk [vmem:[%s2300_s12 + $0x178] sm:$0xff] %vm939_vm4, %v922_v34  ;;  %v802_v40 = vadd.f32 %v1734_v38, %v2294_v3  ;;  %v796_v42 = vpop.f32.mrb[17].mxu1  ;;  %954 = vst.msk [vmem:[%s2300_s12 + $0x70] sm:$0xff] %vm939_vm4, %v889_v35  ;;  %v637_v43 = vadd.f32 %v2294_v3, %v636_v41 }
 0x149   : > { %986 = vst.msk [vmem:[%s2300_s12 + $0x170] sm:$0xff] %vm939_vm4, %v921_v36  ;;  %v797_v44 = vadd.f32 %v2294_v3, %v796_v42  ;;  %v892_v45 = vmax.f32 %v642_v39, 0.0 }
 0x14a   : > { %v924_v46 = vmax.f32 %v802_v40, 0.0  ;;  %v891_v47 = vmax.f32 %v637_v43, 0.0  ;;  %v1689_v49 = vpop.f32.mrb[18].mxu0 }
 0x14b   : > { %v923_v48 = vmax.f32 %v797_v44, 0.0  ;;  %v1737_v50 = vpop.f32.mrb[18].mxu1  ;;  %957 = vst.msk [vmem:[%s2300_s12 + $0x88] sm:$0xff] %vm939_vm4, %v892_v45  ;;  %v652_v51 = vadd.f32 %v1689_v49, %v2294_v3  ;;  %v646_v53 = vpop.f32.mrb[19].mxu0 }
 0x14c   : > { %989 = vst.msk [vmem:[%s2300_s12 + $0x188] sm:$0xff] %vm939_vm4, %v924_v46  ;;  %v812_v52 = vadd.f32 %v1737_v50, %v2294_v3  ;;  %v806_v54 = vpop.f32.mrb[19].mxu1  ;;  %956 = vst.msk [vmem:[%s2300_s12 + $0x80] sm:$0xff] %vm939_vm4, %v891_v47  ;;  %v647_v55 = vadd.f32 %v2294_v3, %v646_v53 }
 0x14d   : > { %988 = vst.msk [vmem:[%s2300_s12 + $0x180] sm:$0xff] %vm939_vm4, %v923_v48  ;;  %v807_v56 = vadd.f32 %v2294_v3, %v806_v54  ;;  %v894_v57 = vmax.f32 %v652_v51, 0.0 }
 0x14e   : > { %v926_v58 = vmax.f32 %v812_v52, 0.0  ;;  %v893_v59 = vmax.f32 %v647_v55, 0.0  ;;  %v1692_v61 = vpop.f32.mrb[20].mxu0 }
 0x14f   : > { %v925_v60 = vmax.f32 %v807_v56, 0.0  ;;  %v1740_v62 = vpop.f32.mrb[20].mxu1  ;;  %959 = vst.msk [vmem:[%s2300_s12 + $0x98] sm:$0xff] %vm939_vm4, %v894_v57  ;;  %v662_v63 = vadd.f32 %v1692_v61, %v2294_v3  ;;  %v656_v1 = vpop.f32.mrb[21].mxu0 }
 0x150   : > { %991 = vst.msk [vmem:[%s2300_s12 + $0x198] sm:$0xff] %vm939_vm4, %v926_v58  ;;  %v822_v0 = vadd.f32 %v1740_v62, %v2294_v3  ;;  %v816_v2 = vpop.f32.mrb[21].mxu1  ;;  %958 = vst.msk [vmem:[%s2300_s12 + $0x90] sm:$0xff] %vm939_vm4, %v893_v59  ;;  %v657_v4 = vadd.f32 %v2294_v3, %v656_v1 }
 0x151   : > { %990 = vst.msk [vmem:[%s2300_s12 + $0x190] sm:$0xff] %vm939_vm4, %v925_v60  ;;  %v817_v5 = vadd.f32 %v2294_v3, %v816_v2  ;;  %v896_v6 = vmax.f32 %v662_v63, 0.0 }
 0x152   : > { %v928_v7 = vmax.f32 %v822_v0, 0.0  ;;  %v895_v8 = vmax.f32 %v657_v4, 0.0  ;;  %v1695_v10 = vpop.f32.mrb[22].mxu0 }
 0x153   : > { %v927_v9 = vmax.f32 %v817_v5, 0.0  ;;  %v1743_v11 = vpop.f32.mrb[22].mxu1  ;;  %961 = vst.msk [vmem:[%s2300_s12 + $0xa8] sm:$0xff] %vm939_vm4, %v896_v6  ;;  %v672_v12 = vadd.f32 %v1695_v10, %v2294_v3  ;;  %v666_v14 = vpop.f32.mrb[23].mxu0 }
 0x154   : > { %993 = vst.msk [vmem:[%s2300_s12 + $0x1a8] sm:$0xff] %vm939_vm4, %v928_v7  ;;  %v832_v13 = vadd.f32 %v1743_v11, %v2294_v3  ;;  %v826_v15 = vpop.f32.mrb[23].mxu1  ;;  %960 = vst.msk [vmem:[%s2300_s12 + $0xa0] sm:$0xff] %vm939_vm4, %v895_v8  ;;  %v667_v16 = vadd.f32 %v2294_v3, %v666_v14 }
 0x155   : > { %992 = vst.msk [vmem:[%s2300_s12 + $0x1a0] sm:$0xff] %vm939_vm4, %v927_v9  ;;  %v827_v17 = vadd.f32 %v2294_v3, %v826_v15  ;;  %v898_v18 = vmax.f32 %v672_v12, 0.0 }
 0x156   : > { %v930_v19 = vmax.f32 %v832_v13, 0.0  ;;  %v897_v20 = vmax.f32 %v667_v16, 0.0  ;;  %v1698_v22 = vpop.f32.mrb[24].mxu0 }
 0x157   : > { %v929_v21 = vmax.f32 %v827_v17, 0.0  ;;  %v1746_v23 = vpop.f32.mrb[24].mxu1  ;;  %963 = vst.msk [vmem:[%s2300_s12 + $0xb8] sm:$0xff] %vm939_vm4, %v898_v18  ;;  %v682_v24 = vadd.f32 %v1698_v22, %v2294_v3  ;;  %v676_v26 = vpop.f32.mrb[25].mxu0 }
 0x158   : > { %995 = vst.msk [vmem:[%s2300_s12 + $0x1b8] sm:$0xff] %vm939_vm4, %v930_v19  ;;  %v842_v25 = vadd.f32 %v1746_v23, %v2294_v3  ;;  %v836_v27 = vpop.f32.mrb[25].mxu1  ;;  %962 = vst.msk [vmem:[%s2300_s12 + $0xb0] sm:$0xff] %vm939_vm4, %v897_v20  ;;  %v677_v28 = vadd.f32 %v2294_v3, %v676_v26 }
 0x159   : > { %994 = vst.msk [vmem:[%s2300_s12 + $0x1b0] sm:$0xff] %vm939_vm4, %v929_v21  ;;  %v837_v29 = vadd.f32 %v2294_v3, %v836_v27  ;;  %v900_v30 = vmax.f32 %v682_v24, 0.0 }
 0x15a   : > { %v932_v31 = vmax.f32 %v842_v25, 0.0  ;;  %v899_v32 = vmax.f32 %v677_v28, 0.0  ;;  %v1701_v34 = vpop.f32.mrb[26].mxu0 }
 0x15b   : > { %v931_v33 = vmax.f32 %v837_v29, 0.0  ;;  %v1749_v35 = vpop.f32.mrb[26].mxu1  ;;  %965 = vst.msk [vmem:[%s2300_s12 + $0xc8] sm:$0xff] %vm939_vm4, %v900_v30  ;;  %v692_v36 = vadd.f32 %v1701_v34, %v2294_v3  ;;  %v686_v38 = vpop.f32.mrb[27].mxu0 }
 0x15c   : > { %997 = vst.msk [vmem:[%s2300_s12 + $0x1c8] sm:$0xff] %vm939_vm4, %v932_v31  ;;  %v852_v37 = vadd.f32 %v1749_v35, %v2294_v3  ;;  %v846_v39 = vpop.f32.mrb[27].mxu1  ;;  %964 = vst.msk [vmem:[%s2300_s12 + $0xc0] sm:$0xff] %vm939_vm4, %v899_v32  ;;  %v687_v40 = vadd.f32 %v2294_v3, %v686_v38 }
 0x15d   : > { %996 = vst.msk [vmem:[%s2300_s12 + $0x1c0] sm:$0xff] %vm939_vm4, %v931_v33  ;;  %v847_v41 = vadd.f32 %v2294_v3, %v846_v39  ;;  %v902_v42 = vmax.f32 %v692_v36, 0.0 }
 0x15e   : > { %v934_v43 = vmax.f32 %v852_v37, 0.0  ;;  %v901_v44 = vmax.f32 %v687_v40, 0.0  ;;  %v1704_v46 = vpop.f32.mrb[28].mxu0 }
 0x15f   : > { %v933_v45 = vmax.f32 %v847_v41, 0.0  ;;  %v1752_v47 = vpop.f32.mrb[28].mxu1  ;;  %967 = vst.msk [vmem:[%s2300_s12 + $0xd8] sm:$0xff] %vm939_vm4, %v902_v42  ;;  %v702_v48 = vadd.f32 %v1704_v46, %v2294_v3  ;;  %v696_v50 = vpop.f32.mrb[29].mxu0 }
 0x160   : > { %999 = vst.msk [vmem:[%s2300_s12 + $0x1d8] sm:$0xff] %vm939_vm4, %v934_v43  ;;  %v862_v49 = vadd.f32 %v1752_v47, %v2294_v3  ;;  %v856_v51 = vpop.f32.mrb[29].mxu1  ;;  %966 = vst.msk [vmem:[%s2300_s12 + $0xd0] sm:$0xff] %vm939_vm4, %v901_v44  ;;  %v697_v52 = vadd.f32 %v2294_v3, %v696_v50 }
 0x161   : > { %998 = vst.msk [vmem:[%s2300_s12 + $0x1d0] sm:$0xff] %vm939_vm4, %v933_v45  ;;  %v857_v53 = vadd.f32 %v2294_v3, %v856_v51  ;;  %v904_v54 = vmax.f32 %v702_v48, 0.0 }
 0x162   : > { %v936_v55 = vmax.f32 %v862_v49, 0.0  ;;  %v903_v56 = vmax.f32 %v697_v52, 0.0  ;;  %v1707_v58 = vpop.f32.mrb[30].mxu0 }
 0x163   : > { %v935_v57 = vmax.f32 %v857_v53, 0.0  ;;  %v1755_v59 = vpop.f32.mrb[30].mxu1  ;;  %969 = vst.msk [vmem:[%s2300_s12 + $0xe8] sm:$0xff] %vm939_vm4, %v904_v54  ;;  %v712_v60 = vadd.f32 %v1707_v58, %v2294_v3  ;;  %v706_v62 = vpop.f32.mrb[31].mxu0  ;;  %1010 = sbr.rel (!%p2710_p12) target bundleno = 434 (0x1b2), region = 44 }
 0x164   : > { %1001 = vst.msk [vmem:[%s2300_s12 + $0x1e8] sm:$0xff] %vm939_vm4, %v936_v55  ;;  %v872_v61 = vadd.f32 %v1755_v59, %v2294_v3  ;;  %v866_v63 = vpop.f32.mrb[31].mxu1  ;;  %968 = vst.msk [vmem:[%s2300_s12 + $0xe0] sm:$0xff] %vm939_vm4, %v903_v56  ;;  %v707_v0 = vadd.f32 %v2294_v3, %v706_v62 }
 0x165   : > { %1000 = vst.msk [vmem:[%s2300_s12 + $0x1e0] sm:$0xff] %vm939_vm4, %v935_v57  ;;  %v867_v1 = vadd.f32 %v2294_v3, %v866_v63  ;;  %v906_v2 = vmax.f32 %v712_v60, 0.0 }
 0x166   : > { %v938_v4 = vmax.f32 %v872_v61, 0.0  ;;  %v905_v5 = vmax.f32 %v707_v0, 0.0 }
 0x167   : > { %v937_v6 = vmax.f32 %v867_v1, 0.0  ;;  %971 = vst.msk [vmem:[%s2300_s12 + $0xf8] sm:$0xff] %vm939_vm4, %v906_v2 }
 0x168   : > { %1003 = vst.msk [vmem:[%s2300_s12 + $0x1f8] sm:$0xff] %vm939_vm4, %v938_v4  ;;  %970 = vst.msk [vmem:[%s2300_s12 + $0xf0] sm:$0xff] %vm939_vm4, %v905_v5 }
 0x169   : > { %1002 = vst.msk [vmem:[%s2300_s12 + $0x1f0] sm:$0xff] %vm939_vm4, %v937_v6 }
 0x16a   : > { %s2720_s10 = smov (!%p1013_p13, %s1012_s10), 64 }
 0x16b   : > { %s1572_s22 = sshll.u32 %s2720_s10, 7 }
 0x16c   : > { %p1575_p0 = scmp.eq.s32.totalorder %s1572_s22, 0 }
 0x16d   : > { %s2503_s25 = sshrl.u32 (!%p1575_p0), %s2720_s10, 6 }
 0x16e   : > { %1021 = sbr.rel (%p1575_p0) target bundleno = 434 (0x1b2), region = 48  ;;  %p1576_p1 = scmp.le.s32.totalorder (!%p1575_p0), %s2503_s25, 0 }
 0x175   : > { %1431 = sbr.rel (%p1576_p1) target bundleno = 413 (0x19d), region = 125  ;;  %s2711_s15 = smov (!%p1576_p1), %s2497_s18 }
 0x176   : > { %s2712_s20 = smov (!%p1576_p1), %s2300_s12  ;;  %s2512_s27 = smov (!%p1576_p1), 0  }
 0x177   : > { %s2514_s28 = smov (!%p1576_p1), 0  }
 0x17c LB: >> { %v1209_v3 = vld [vmem:[%s2002_s20] sm:$0xff]  ;;  %v1211_v7 = vld [vmem:[%s2002_s20 + $0x8] sm:$0xff]  ;;  %v1213_v8 = vld [vmem:[%s2002_s20 + $0x10] sm:$0xff]  ;;  %s1337_s23 = sadd.s32 1, %s2006_s27  ;;  %s1203_s28 = sadd.s32 1, %s2010_s28   ;;  %s2010_s28 = sphi %s2514_s28, %s1203_s28   ;;  %s2006_s27 = sphi %s2512_s27, %s2715_s27   ;;  %s2002_s20 = sphi %s2712_s20, %s2714_s20   ;;  %s1998_s15 = sphi %s2711_s15, %s2713_s15  }
 0x17d   : >> { %1210 = vst [vmem:[%s1998_s15] sm:$0xff] %v1209_v3  ;;  %1212 = vst [vmem:[%s1998_s15 + $0x8] sm:$0xff] %v1211_v7  ;;  %v1215_v9 = vld [vmem:[%s2002_s20 + $0x18] sm:$0xff]  ;;  %v1217_v10 = vld [vmem:[%s2002_s20 + $0x20] sm:$0xff]  ;;  %p1338_p2 = scmp.ge.s32.totalorder %s1337_s23, %s2503_s25  ;;  %p1202_p3 = scmp.ge.s32.totalorder %s1203_s28, %s2503_s25 }
 0x17e   : >> { %1214 = vst [vmem:[%s1998_s15 + $0x10] sm:$0xff] %v1213_v8  ;;  %v1219_v11 = vld [vmem:[%s2002_s20 + $0x28] sm:$0xff]  ;;  %1216 = vst [vmem:[%s1998_s15 + $0x18] sm:$0xff] %v1215_v9  ;;  %v1221_v12 = vld [vmem:[%s2002_s20 + $0x30] sm:$0xff] }
 0x17f   : >> { %1218 = vst [vmem:[%s1998_s15 + $0x20] sm:$0xff] %v1217_v10  ;;  %1220 = vst [vmem:[%s1998_s15 + $0x28] sm:$0xff] %v1219_v11  ;;  %v1223_v13 = vld [vmem:[%s2002_s20 + $0x38] sm:$0xff]  ;;  %v1225_v14 = vld [vmem:[%s2002_s20 + $0x40] sm:$0xff]  ;;  %s2722_s23 = smov (%p1338_p2, %s1337_s23), 0 }
 0x180   : >> { %1222 = vst [vmem:[%s1998_s15 + $0x30] sm:$0xff] %v1221_v12  ;;  %1224 = vst [vmem:[%s1998_s15 + $0x38] sm:$0xff] %v1223_v13  ;;  %v1227_v15 = vld [vmem:[%s2002_s20 + $0x48] sm:$0xff]  ;;  %v1229_v16 = vld [vmem:[%s2002_s20 + $0x50] sm:$0xff]  ;;  %s1577_s29 = sshll.u32 %s2722_s23, 9  ;;  %s2715_s27 = smov %s2722_s23 }
 0x181   : >> { %1226 = vst [vmem:[%s1998_s15 + $0x40] sm:$0xff] %v1225_v14  ;;  %v1231_v17 = vld [vmem:[%s2002_s20 + $0x58] sm:$0xff]  ;;  %1228 = vst [vmem:[%s1998_s15 + $0x48] sm:$0xff] %v1227_v15  ;;  %v1233_v18 = vld [vmem:[%s2002_s20 + $0x60] sm:$0xff]  ;;  %s2570_s30 = scalar_lea.vmem %s2300_s12, %s1577_s29 [#allocation6]   ;;  %s2573_s4 = scalar_lea.vmem %s2497_s18, %s1577_s29  }
 0x182   : >> { %1230 = vst [vmem:[%s1998_s15 + $0x50] sm:$0xff] %v1229_v16  ;;  %1232 = vst [vmem:[%s1998_s15 + $0x58] sm:$0xff] %v1231_v17  ;;  %v1235_v19 = vld [vmem:[%s2002_s20 + $0x68] sm:$0xff]  ;;  %v1237_v20 = vld [vmem:[%s2002_s20 + $0x70] sm:$0xff] }
 0x183   : >> { %1234 = vst [vmem:[%s1998_s15 + $0x60] sm:$0xff] %v1233_v18  ;;  %1236 = vst [vmem:[%s1998_s15 + $0x68] sm:$0xff] %v1235_v19  ;;  %v1239_v21 = vld [vmem:[%s2002_s20 + $0x78] sm:$0xff]  ;;  %v1241_v22 = vld [vmem:[%s2002_s20 + $0x80] sm:$0xff] }
 0x184   : >> { %1238 = vst [vmem:[%s1998_s15 + $0x70] sm:$0xff] %v1237_v20  ;;  %v1243_v23 = vld [vmem:[%s2002_s20 + $0x88] sm:$0xff]  ;;  %1240 = vst [vmem:[%s1998_s15 + $0x78] sm:$0xff] %v1239_v21  ;;  %v1245_v24 = vld [vmem:[%s2002_s20 + $0x90] sm:$0xff] }
 0x185   : >> { %1242 = vst [vmem:[%s1998_s15 + $0x80] sm:$0xff] %v1241_v22  ;;  %1244 = vst [vmem:[%s1998_s15 + $0x88] sm:$0xff] %v1243_v23  ;;  %v1247_v25 = vld [vmem:[%s2002_s20 + $0x98] sm:$0xff]  ;;  %v1249_v26 = vld [vmem:[%s2002_s20 + $0xa0] sm:$0xff] }
 0x186   : >> { %1246 = vst [vmem:[%s1998_s15 + $0x90] sm:$0xff] %v1245_v24  ;;  %1248 = vst [vmem:[%s1998_s15 + $0x98] sm:$0xff] %v1247_v25  ;;  %v1251_v27 = vld [vmem:[%s2002_s20 + $0xa8] sm:$0xff]  ;;  %v1253_v28 = vld [vmem:[%s2002_s20 + $0xb0] sm:$0xff] }
 0x187   : >> { %1250 = vst [vmem:[%s1998_s15 + $0xa0] sm:$0xff] %v1249_v26  ;;  %v1255_v29 = vld [vmem:[%s2002_s20 + $0xb8] sm:$0xff]  ;;  %1252 = vst [vmem:[%s1998_s15 + $0xa8] sm:$0xff] %v1251_v27  ;;  %v1257_v30 = vld [vmem:[%s2002_s20 + $0xc0] sm:$0xff] }
 0x188   : >> { %1254 = vst [vmem:[%s1998_s15 + $0xb0] sm:$0xff] %v1253_v28  ;;  %1256 = vst [vmem:[%s1998_s15 + $0xb8] sm:$0xff] %v1255_v29  ;;  %v1259_v31 = vld [vmem:[%s2002_s20 + $0xc8] sm:$0xff]  ;;  %v1261_v32 = vld [vmem:[%s2002_s20 + $0xd0] sm:$0xff] }
 0x189   : >> { %1258 = vst [vmem:[%s1998_s15 + $0xc0] sm:$0xff] %v1257_v30  ;;  %1260 = vst [vmem:[%s1998_s15 + $0xc8] sm:$0xff] %v1259_v31  ;;  %v1263_v33 = vld [vmem:[%s2002_s20 + $0xd8] sm:$0xff]  ;;  %v1265_v34 = vld [vmem:[%s2002_s20 + $0xe0] sm:$0xff] }
 0x18a   : >> { %1262 = vst [vmem:[%s1998_s15 + $0xd0] sm:$0xff] %v1261_v32  ;;  %v1267_v35 = vld [vmem:[%s2002_s20 + $0xe8] sm:$0xff]  ;;  %1264 = vst [vmem:[%s1998_s15 + $0xd8] sm:$0xff] %v1263_v33  ;;  %v1269_v36 = vld [vmem:[%s2002_s20 + $0xf0] sm:$0xff] }
 0x18b   : >> { %1266 = vst [vmem:[%s1998_s15 + $0xe0] sm:$0xff] %v1265_v34  ;;  %1268 = vst [vmem:[%s1998_s15 + $0xe8] sm:$0xff] %v1267_v35  ;;  %v1271_v37 = vld [vmem:[%s2002_s20 + $0xf8] sm:$0xff]  ;;  %v1273_v38 = vld [vmem:[%s2002_s20 + $0x100] sm:$0xff] }
 0x18c   : >> { %1270 = vst [vmem:[%s1998_s15 + $0xf0] sm:$0xff] %v1269_v36  ;;  %1272 = vst [vmem:[%s1998_s15 + $0xf8] sm:$0xff] %v1271_v37  ;;  %v1275_v39 = vld [vmem:[%s2002_s20 + $0x108] sm:$0xff]  ;;  %v1277_v40 = vld [vmem:[%s2002_s20 + $0x110] sm:$0xff] }
 0x18d   : >> { %1274 = vst [vmem:[%s1998_s15 + $0x100] sm:$0xff] %v1273_v38  ;;  %v1279_v41 = vld [vmem:[%s2002_s20 + $0x118] sm:$0xff]  ;;  %1276 = vst [vmem:[%s1998_s15 + $0x108] sm:$0xff] %v1275_v39  ;;  %v1281_v42 = vld [vmem:[%s2002_s20 + $0x120] sm:$0xff] }
 0x18e   : >> { %1278 = vst [vmem:[%s1998_s15 + $0x110] sm:$0xff] %v1277_v40  ;;  %1280 = vst [vmem:[%s1998_s15 + $0x118] sm:$0xff] %v1279_v41  ;;  %v1283_v43 = vld [vmem:[%s2002_s20 + $0x128] sm:$0xff]  ;;  %v1285_v44 = vld [vmem:[%s2002_s20 + $0x130] sm:$0xff] }
 0x18f   : >> { %1282 = vst [vmem:[%s1998_s15 + $0x120] sm:$0xff] %v1281_v42  ;;  %1284 = vst [vmem:[%s1998_s15 + $0x128] sm:$0xff] %v1283_v43  ;;  %v1287_v45 = vld [vmem:[%s2002_s20 + $0x138] sm:$0xff]  ;;  %v1289_v46 = vld [vmem:[%s2002_s20 + $0x140] sm:$0xff] }
 0x190   : >> { %1286 = vst [vmem:[%s1998_s15 + $0x130] sm:$0xff] %v1285_v44  ;;  %v1291_v47 = vld [vmem:[%s2002_s20 + $0x148] sm:$0xff]  ;;  %1288 = vst [vmem:[%s1998_s15 + $0x138] sm:$0xff] %v1287_v45  ;;  %v1293_v48 = vld [vmem:[%s2002_s20 + $0x150] sm:$0xff] }
 0x191   : >> { %1290 = vst [vmem:[%s1998_s15 + $0x140] sm:$0xff] %v1289_v46  ;;  %1292 = vst [vmem:[%s1998_s15 + $0x148] sm:$0xff] %v1291_v47  ;;  %v1295_v49 = vld [vmem:[%s2002_s20 + $0x158] sm:$0xff]  ;;  %v1297_v50 = vld [vmem:[%s2002_s20 + $0x160] sm:$0xff] }
 0x192   : >> { %1294 = vst [vmem:[%s1998_s15 + $0x150] sm:$0xff] %v1293_v48  ;;  %1296 = vst [vmem:[%s1998_s15 + $0x158] sm:$0xff] %v1295_v49  ;;  %v1299_v51 = vld [vmem:[%s2002_s20 + $0x168] sm:$0xff]  ;;  %v1301_v52 = vld [vmem:[%s2002_s20 + $0x170] sm:$0xff] }
 0x193   : >> { %1298 = vst [vmem:[%s1998_s15 + $0x160] sm:$0xff] %v1297_v50  ;;  %v1303_v53 = vld [vmem:[%s2002_s20 + $0x178] sm:$0xff]  ;;  %1300 = vst [vmem:[%s1998_s15 + $0x168] sm:$0xff] %v1299_v51  ;;  %v1305_v54 = vld [vmem:[%s2002_s20 + $0x180] sm:$0xff] }
 0x194   : >> { %1302 = vst [vmem:[%s1998_s15 + $0x170] sm:$0xff] %v1301_v52  ;;  %1304 = vst [vmem:[%s1998_s15 + $0x178] sm:$0xff] %v1303_v53  ;;  %v1307_v55 = vld [vmem:[%s2002_s20 + $0x188] sm:$0xff]  ;;  %v1309_v56 = vld [vmem:[%s2002_s20 + $0x190] sm:$0xff] }
 0x195   : >> { %1306 = vst [vmem:[%s1998_s15 + $0x180] sm:$0xff] %v1305_v54  ;;  %1308 = vst [vmem:[%s1998_s15 + $0x188] sm:$0xff] %v1307_v55  ;;  %v1311_v57 = vld [vmem:[%s2002_s20 + $0x198] sm:$0xff]  ;;  %v1313_v58 = vld [vmem:[%s2002_s20 + $0x1a0] sm:$0xff] }
 0x196   : >> { %1310 = vst [vmem:[%s1998_s15 + $0x190] sm:$0xff] %v1309_v56  ;;  %v1315_v59 = vld [vmem:[%s2002_s20 + $0x1a8] sm:$0xff]  ;;  %1312 = vst [vmem:[%s1998_s15 + $0x198] sm:$0xff] %v1311_v57  ;;  %v1317_v60 = vld [vmem:[%s2002_s20 + $0x1b0] sm:$0xff]  ;;  %1205 = sbr.rel (!%p1202_p3) target bundleno = 380 (0x17c), region = 131 }
 0x197   : >> { %1314 = vst [vmem:[%s1998_s15 + $0x1a0] sm:$0xff] %v1313_v58  ;;  %1316 = vst [vmem:[%s1998_s15 + $0x1a8] sm:$0xff] %v1315_v59  ;;  %v1319_v61 = vld [vmem:[%s2002_s20 + $0x1b8] sm:$0xff]  ;;  %v1321_v62 = vld [vmem:[%s2002_s20 + $0x1c0] sm:$0xff] }
 0x198   : >> { %1318 = vst [vmem:[%s1998_s15 + $0x1b0] sm:$0xff] %v1317_v60  ;;  %1320 = vst [vmem:[%s1998_s15 + $0x1b8] sm:$0xff] %v1319_v61  ;;  %v1323_v63 = vld [vmem:[%s2002_s20 + $0x1c8] sm:$0xff]  ;;  %v1325_v0 = vld [vmem:[%s2002_s20 + $0x1d0] sm:$0xff] }
 0x199   : >> { %1322 = vst [vmem:[%s1998_s15 + $0x1c0] sm:$0xff] %v1321_v62  ;;  %v1327_v1 = vld [vmem:[%s2002_s20 + $0x1d8] sm:$0xff]  ;;  %1324 = vst [vmem:[%s1998_s15 + $0x1c8] sm:$0xff] %v1323_v63  ;;  %v1329_v2 = vld [vmem:[%s2002_s20 + $0x1e0] sm:$0xff] }
 0x19a   : >> { %1326 = vst [vmem:[%s1998_s15 + $0x1d0] sm:$0xff] %v1325_v0  ;;  %1328 = vst [vmem:[%s1998_s15 + $0x1d8] sm:$0xff] %v1327_v1  ;;  %v1331_v4 = vld [vmem:[%s2002_s20 + $0x1e8] sm:$0xff]  ;;  %v1333_v5 = vld [vmem:[%s2002_s20 + $0x1f0] sm:$0xff] }
 0x19b   : >> { %1330 = vst [vmem:[%s1998_s15 + $0x1e0] sm:$0xff] %v1329_v2  ;;  %1332 = vst [vmem:[%s1998_s15 + $0x1e8] sm:$0xff] %v1331_v4  ;;  %v1335_v6 = vld [vmem:[%s2002_s20 + $0x1f8] sm:$0xff]  ;;  %s2714_s20 = smov %s2570_s30 }
 0x19c   : >> { %1334 = vst [vmem:[%s1998_s15 + $0x1f0] sm:$0xff] %v1333_v5  ;;  %1336 = vst [vmem:[%s1998_s15 + $0x1f8] sm:$0xff] %v1335_v6  ;;  %s2713_s15 = smov %s2573_s4 }
 0x19d PF: > { %s2678_s24 = sand.u32 63, %s2720_s10   ;;  %s1588_s21 = sshll.u32 %s2503_s25, 9 }
 0x19e   : > { %s1348_s26 = scalar_lea.vmem %s2300_s12, %s1588_s21 [#allocation6]   ;;  %s1350_s5 = scalar_lea.vmem %s2497_s18, %s1588_s21  }
 0x19f   : > { %p1582_p5 = scmp.le.s32.totalorder %s2678_s24, 0 }
 0x1a0   : > { %s2012_s6 = smov (!%p1582_p5), %s1350_s5   ;;  %s2016_s7 = smov (!%p1582_p5), %s1348_s26  }
 0x1a1   : > { %1445 = sbr.rel (%p1582_p5) target bundleno = 434 (0x1b2), region = 136  ;;  %s2020_s8 = smov (!%p1582_p5), 0  }
 0x1a2   : > { %s2024_s9 = smov (!%p1582_p5), 0  }
 0x1a8 LB: >> { %v1360_v3 = vld [vmem:[%s2018_s7] sm:$0xff]  ;;  %s1362_s10 = sadd.s32 1, %s2022_s8  ;;  %s1354_s9 = sadd.s32 1, %s2026_s9   ;;  %s2026_s9 = sphi %s2024_s9, %s1354_s9   ;;  %s2022_s8 = sphi %s2020_s8, %s2021_s8   ;;  %s2018_s7 = sphi %s2016_s7, %s1367_s7   ;;  %s2014_s6 = sphi %s2012_s6, %s1368_s6  }
 0x1a9   : >> { %1361 = vst [vmem:[%s2014_s6] sm:$0xff] %v1360_v3  ;;  %p1363_p8 = scmp.ge.s32.totalorder %s1362_s10, %s2678_s24  ;;  %p1353_p10 = scmp.ge.s32.totalorder %s1354_s9, %s2678_s24 }
 0x1ab   : >> { %s2724_s10 = smov (%p1363_p8, %s1362_s10), 0  ;;  %1356 = sbr.rel (!%p1353_p10) target bundleno = 424 (0x1a8), region = 142 }
 0x1ac   : >> { %s1583_s12 = sshll.u32 %s2724_s10, 3  ;;  %s2021_s8 = smov %s2724_s10  }
 0x1ad   : >> { %s1367_s7 = scalar_lea.vmem %s1348_s26, %s1583_s12 [#allocation6]   ;;  %s1368_s6 = scalar_lea.vmem %s1350_s5, %s1583_s12  }
 0x1b2 PF: > { %p12_p11 = scmp.ge.s32.totalorder %s2068_s16, 5   ;;  %s2716_s12 = smov %s1990_s13 }
 0x1b3   : > { %s2717_s13 = smov %s2076_s19  ;;  %s2718_s14 = smov %s2068_s16 }
 0x1b4   :  { %14 = sbr.rel (!%p12_p11) target bundleno = 3 (0x3), region = 153 }
 0x1bb   :  { %1384 = vsyncpa [#allocation3], 1 }
 0x1bc   :  { %1386 = vsyncpa [#allocation3 + $0x1], 1 }
 0x1bd   :  { %1387 = vsyncpa [#allocation5], 1 }

// kernel: cnn_forward.4
= control target key start
LH: loop header
LB: loop body
LE: loop exit
PB: predicated region body
PF: predicated region fallthrough
CT: control target
= control target key end

     0   :  { %v4240_v0 = vmov 0.0|0.0   ;;  %vm158_vm0 = vcmask 261120   ;;  %vm3065_vm1 = vcmask 523264   ;;  %s6935_s1 = inlined_call_operand.vmem [shape: f32[288,64], index: 1, kind: input, shape index: {}]   ;;  %s6936_s0 = inlined_call_operand.vmem [shape: f32[4,288,288], index: 0, kind: input, shape index: {}]   ;;  %s6937_s2 = inlined_call_operand.vmem [shape: f32[1,64], index: 2, kind: input, shape index: {}]   ;;  %s6938_s3 = inlined_call_operand.vmem [shape: f32[288,64], index: 3, kind: output, shape index: {}]  }
   0x1   :  { %3983 = vmatprep.subr.bf16.mxu0 %v4240_v0  ;;  %v14_v1 = vld [vmem:[%s6935_s1] sm:$0xff]  ;;  %v15_v2 = vld [vmem:[%s6935_s1 + $0x8] sm:$0xff]  ;;  %v16_v6 = vld [vmem:[%s6935_s1 + $0x10] sm:$0xff] }
   0x2   :  { %v46_v3 = vld [vmem:[%s6935_s1 + $0x100] sm:$0xff]  ;;  %v4271_v4 = vpack.c.bf16 %v15_v2, %v14_v1  ;;  %v47_v5 = vld [vmem:[%s6935_s1 + $0x108] sm:$0xff]  ;;  %v17_v7 = vld [vmem:[%s6935_s1 + $0x18] sm:$0xff] }
   0x3   :  { %v4282_v8 = vpack.c.bf16 %v47_v5, %v46_v3  ;;  %v48_v9 = vld [vmem:[%s6935_s1 + $0x110] sm:$0xff]  ;;  %v49_v10 = vld [vmem:[%s6935_s1 + $0x118] sm:$0xff]  ;;  %v4294_v12 = vpack.c.bf16 %v17_v7, %v16_v6  ;;  %v18_v14 = vld [vmem:[%s6935_s1 + $0x20] sm:$0xff] }
   0x4   :  { %v52_v11 = vld [vmem:[%s6936_s0 + $0x10] sm:$0xff]  ;;  %3985 = vmatpush1.bf16.msra.mxu0 %v4271_v4  ;;  %v4296_v13 = vpack.c.bf16 %v49_v10, %v48_v9  ;;  %v19_v15 = vld [vmem:[%s6935_s1 + $0x28] sm:$0xff]  ;;  %v21_v18 = vld [vmem:[%s6935_s1 + $0x38] sm:$0xff] }
   0x5   :  { %3743 = vmatprep.mubr.msk.f32.mxu1 %vm158_vm0, %v52_v11  ;;  %4032 = vmatprep.subr.bf16.mxu1 %v4282_v8  ;;  %v4310_v16 = vpack.c.bf16 %v19_v15, %v18_v14  ;;  %v20_v17 = vld [vmem:[%s6935_s1 + $0x30] sm:$0xff]  ;;  %v55_v19 = vld [vmem:[%s6936_s0 + $0x28] sm:$0xff]  ;;  %v58_v20 = vld [vmem:[%s6936_s0 + $0x40] sm:$0xff] }
   0x6   :  { %3986 = vmatprep.subr.bf16.mxu0 %v4240_v0  ;;  %4034 = vmatpush3.bf16.msra.mxu1 %v4282_v8  ;;  %v4328_v21 = vpack.c.bf16 %v21_v18, %v20_v17  ;;  %v22_v22 = vld [vmem:[%s6935_s1 + $0x40] sm:$0xff]  ;;  %v23_v23 = vld [vmem:[%s6935_s1 + $0x48] sm:$0xff]  ;;  %v61_v24 = vld [vmem:[%s6936_s0 + $0x58] sm:$0xff] }
   0x7   :  { %4036 = vmatprep.subr.bf16.mxu1 %v4296_v13  ;;  %v64_v25 = vld [vmem:[%s6936_s0 + $0x70] sm:$0xff]  ;;  %v4348_v26 = vpack.c.bf16 %v23_v23, %v22_v22  ;;  %v25_v28 = vld [vmem:[%s6935_s1 + $0x58] sm:$0xff]  ;;  %v67_v29 = vld [vmem:[%s6936_s0 + $0x88] sm:$0xff] }
   0x8   :  { %3988 = vmatpush1.bf16.msra.mxu0 %v4294_v12  ;;  %v24_v27 = vld [vmem:[%s6935_s1 + $0x50] sm:$0xff]  ;;  %v70_v30 = vld [vmem:[%s6936_s0 + $0xa0] sm:$0xff]  ;;  %v27_v33 = vld [vmem:[%s6935_s1 + $0x68] sm:$0xff] }
   0x9   :  { %3989 = vmatprep.subr.bf16.mxu0 %v4240_v0  ;;  %v4368_v31 = vpack.c.bf16 %v25_v28, %v24_v27  ;;  %v26_v32 = vld [vmem:[%s6935_s1 + $0x60] sm:$0xff]  ;;  %v73_v34 = vld [vmem:[%s6936_s0 + $0xb8] sm:$0xff]  ;;  %v51_v35 = vld [vmem:[%s6936_s0 + $0x8] sm:$0xff] }
   0xa   :  { %4038 = vmatpush3.bf16.msra.mxu1 %v4296_v13  ;;  %v76_v36 = vld [vmem:[%s6936_s0 + $0xd0] sm:$0xff]  ;;  %331 = vmatprep.mubr.f32.mxu0 %v51_v35  ;;  %v4391_v37 = vpack.c.bf16 %v27_v33, %v26_v32  ;;  %v29_v39 = vld [vmem:[%s6935_s1 + $0x78] sm:$0xff]  ;;  %v79_v40 = vld [vmem:[%s6936_s0 + $0xe8] sm:$0xff] }
   0xb   :  { %4039 = vmatprep.subr.bf16.mxu1 %v4240_v0  ;;  %v28_v38 = vld [vmem:[%s6935_s1 + $0x70] sm:$0xff]  ;;  %v82_v41 = vld [vmem:[%s6936_s0 + $0x100] sm:$0xff]  ;;  %v31_v44 = vld [vmem:[%s6935_s1 + $0x88] sm:$0xff] }
   0xc   :  { %3991 = vmatpush1.bf16.msra.mxu0 %v4310_v16  ;;  %v4411_v42 = vpack.c.bf16 %v29_v39, %v28_v38  ;;  %v30_v43 = vld [vmem:[%s6935_s1 + $0x80] sm:$0xff]  ;;  %v85_v45 = vld [vmem:[%s6936_s0 + $0x118] sm:$0xff]  ;;  %v88_v46 = vld [vmem:[%s6936_s0 + $0x130] sm:$0xff] }
   0xd   :  { %3744 = vmatmul.mubr.msk.f32.vlgmr.msra.gmra.mrb[0].mxu1 %vm158_vm0, %v55_v19  ;;  %3992 = vmatprep.subr.bf16.mxu0 %v4240_v0  ;;  %v4431_v47 = vpack.c.bf16 %v31_v44, %v30_v43  ;;  %v32_v48 = vld [vmem:[%s6935_s1 + $0x90] sm:$0xff]  ;;  %v33_v49 = vld [vmem:[%s6935_s1 + $0x98] sm:$0xff]  ;;  %v91_v50 = vld [vmem:[%s6936_s0 + $0x148] sm:$0xff] }
   0xe   :  { %4041 = vmatpush1.bf16.msra.mxu1 %v4271_v4  ;;  %3746 = vmatprep.mubr.msk.f32.mxu1 %vm158_vm0, %v58_v20  ;;  %v94_v51 = vld [vmem:[%s6936_s0 + $0x160] sm:$0xff]  ;;  %v4451_v52 = vpack.c.bf16 %v33_v49, %v32_v48  ;;  %v35_v54 = vld [vmem:[%s6935_s1 + $0xa8] sm:$0xff]  ;;  %v97_v55 = vld [vmem:[%s6936_s0 + $0x178] sm:$0xff] }
   0xf   :  { %4042 = vmatprep.subr.bf16.mxu1 %v4240_v0  ;;  %v34_v53 = vld [vmem:[%s6935_s1 + $0xa0] sm:$0xff]  ;;  %v100_v56 = vld [vmem:[%s6936_s0 + $0x190] sm:$0xff]  ;;  %v37_v59 = vld [vmem:[%s6935_s1 + $0xb8] sm:$0xff] }
  0x10   :  { %3994 = vmatpush1.bf16.msra.mxu0 %v4328_v21  ;;  %v4471_v57 = vpack.c.bf16 %v35_v54, %v34_v53  ;;  %v36_v58 = vld [vmem:[%s6935_s1 + $0xb0] sm:$0xff]  ;;  %v103_v60 = vld [vmem:[%s6936_s0 + $0x1a8] sm:$0xff]  ;;  %v106_v61 = vld [vmem:[%s6936_s0 + $0x1c0] sm:$0xff] }
  0x11   :  { %3747 = vmatmul.mubr.msk.f32.gmra.mrb[2].mxu1 %vm158_vm0, %v61_v24  ;;  %3995 = vmatprep.subr.bf16.mxu0 %v4240_v0  ;;  %v4491_v62 = vpack.c.bf16 %v37_v59, %v36_v58  ;;  %v38_v63 = vld [vmem:[%s6935_s1 + $0xc0] sm:$0xff]  ;;  %v39_v1 = vld [vmem:[%s6935_s1 + $0xc8] sm:$0xff]  ;;  %v109_v2 = vld [vmem:[%s6936_s0 + $0x1d8] sm:$0xff] }
  0x12   :  { %4044 = vmatpush1.bf16.msra.mxu1 %v4294_v12  ;;  %3749 = vmatprep.mubr.msk.f32.mxu1 %vm158_vm0, %v64_v25  ;;  %v112_v3 = vld [vmem:[%s6936_s0 + $0x1f0] sm:$0xff]  ;;  %v4511_v5 = vpack.c.bf16 %v39_v1, %v38_v63  ;;  %v41_v7 = vld [vmem:[%s6935_s1 + $0xd8] sm:$0xff]  ;;  %v115_v9 = vld [vmem:[%s6936_s0 + $0x208] sm:$0xff] }
  0x13   :  { %4045 = vmatprep.subr.bf16.mxu1 %v4240_v0  ;;  %v40_v6 = vld [vmem:[%s6935_s1 + $0xd0] sm:$0xff]  ;;  %v118_v10 = vld [vmem:[%s6936_s0 + $0x220] sm:$0xff]  ;;  %v43_v15 = vld [vmem:[%s6935_s1 + $0xe8] sm:$0xff] }
  0x14   :  { %3997 = vmatpush1.bf16.msra.mxu0 %v4348_v26  ;;  %v4531_v11 = vpack.c.bf16 %v41_v7, %v40_v6  ;;  %v42_v14 = vld [vmem:[%s6935_s1 + $0xe0] sm:$0xff]  ;;  %v121_v17 = vld [vmem:[%s6936_s0 + $0x238] sm:$0xff]  ;;  %v124_v18 = vld [vmem:[%s6936_s0 + $0x250] sm:$0xff] }
  0x15   :  { %3750 = vmatmul.mubr.msk.f32.gmra.mrb[4].mxu1 %vm158_vm0, %v67_v29  ;;  %3998 = vmatprep.subr.bf16.mxu0 %v4240_v0  ;;  %v4551_v19 = vpack.c.bf16 %v43_v15, %v42_v14  ;;  %v44_v20 = vld [vmem:[%s6935_s1 + $0xf0] sm:$0xff]  ;;  %v45_v22 = vld [vmem:[%s6935_s1 + $0xf8] sm:$0xff]  ;;  %v127_v23 = vld [vmem:[%s6936_s0 + $0x268] sm:$0xff] }
  0x16   :  { %4047 = vmatpush1.bf16.msra.mxu1 %v4310_v16  ;;  %3752 = vmatprep.mubr.msk.f32.mxu1 %vm158_vm0, %v70_v30  ;;  %v130_v24 = vld [vmem:[%s6936_s0 + $0x280] sm:$0xff]  ;;  %v4571_v25 = vpack.c.bf16 %v45_v22, %v44_v20  ;;  %v133_v27 = vld [vmem:[%s6936_s0 + $0x298] sm:$0xff]  ;;  %v136_v28 = vld [vmem:[%s6936_s0 + $0x2b0] sm:$0xff] }
  0x17   :  { %4048 = vmatprep.subr.bf16.mxu1 %v4240_v0  ;;  %v50_v29 = vld [vmem:[%s6936_s0] sm:$0xff]  ;;  %v139_v32 = vld [vmem:[%s6936_s0 + $0x2c8] sm:$0xff]  ;;  %v57_v35 = vld [vmem:[%s6936_s0 + $0x38] sm:$0xff] }
  0x18   :  { %4000 = vmatpush1.bf16.msra.mxu0 %v4368_v31  ;;  %v54_v30 = vld [vmem:[%s6936_s0 + $0x20] sm:$0xff]  ;;  %v148_v38 = vld [vmem:[%s6936_s0 + $0x310] sm:$0xff]  ;;  %v59_v44 = vld [vmem:[%s6936_s0 + $0x48] sm:$0xff] }
  0x19   :  { %3753 = vmatmul.mubr.msk.f32.gmra.mrb[6].mxu1 %vm158_vm0, %v73_v34  ;;  %4001 = vmatprep.subr.bf16.mxu0 %v4240_v0  ;;  %v142_v33 = vld [vmem:[%s6936_s0 + $0x2e0] sm:$0xff]  ;;  %v53_v34 = vld [vmem:[%s6936_s0 + $0x18] sm:$0xff]  ;;  %v56_v39 = vld [vmem:[%s6936_s0 + $0x30] sm:$0xff] }
  0x1a   :  { %3755 = vmatprep.mubr.msk.f32.mxu1 %vm158_vm0, %v76_v36  ;;  %4050 = vmatpush1.bf16.msra.mxu1 %v4328_v21  ;;  %v145_v36 = vld [vmem:[%s6936_s0 + $0x2f8] sm:$0xff]  ;;  %v154_v43 = vld [vmem:[%s6936_s0 + $0x340] sm:$0xff]  ;;  %v3143_v48 = vld [vmem:[%s6936_s0 + $0x368] sm:$0xff] }
  0x1b   :  { %4051 = vmatprep.subr.bf16.mxu1 %v4240_v0  ;;  %v62_v49 = vld [vmem:[%s6936_s0 + $0x60] sm:$0xff]  ;;  %v65_v54 = vld [vmem:[%s6936_s0 + $0x78] sm:$0xff]  ;;  %v68_v59 = vld [vmem:[%s6936_s0 + $0x90] sm:$0xff] }
  0x1c   :  { %4003 = vmatpush1.bf16.msra.mxu0 %v4391_v37  ;;  %v3146_v53 = vld [vmem:[%s6936_s0 + $0x380] sm:$0xff]  ;;  %v3149_v58 = vld [vmem:[%s6936_s0 + $0x398] sm:$0xff]  ;;  %v3152_v63 = vld [vmem:[%s6936_s0 + $0x3b0] sm:$0xff] }
  0x1d   :  { %3756 = vmatmul.mubr.msk.f32.gmra.mrb[8].mxu1 %vm158_vm0, %v79_v40  ;;  %4004 = vmatprep.subr.bf16.mxu0 %v4240_v0  ;;  %v60_v40 = vld [vmem:[%s6936_s0 + $0x50] sm:$0xff]  ;;  %v71_v1 = vld [vmem:[%s6936_s0 + $0xa8] sm:$0xff]  ;;  %v74_v7 = vld [vmem:[%s6936_s0 + $0xc0] sm:$0xff] }
  0x1e   :  { %3758 = vmatprep.mubr.msk.f32.mxu1 %vm158_vm0, %v82_v41  ;;  %4053 = vmatpush1.bf16.msra.mxu1 %v4348_v26  ;;  %v151_v41 = vld [vmem:[%s6936_s0 + $0x328] sm:$0xff]  ;;  %v3158_v14 = vld [vmem:[%s6936_s0 + $0x3e0] sm:$0xff]  ;;  %v77_v15 = vld [vmem:[%s6936_s0 + $0xd8] sm:$0xff] }
  0x1f   :  { %4054 = vmatprep.subr.bf16.mxu1 %v4240_v0  ;;  %v3155_v6 = vld [vmem:[%s6936_s0 + $0x3c8] sm:$0xff]  ;;  %v3161_v20 = vld [vmem:[%s6936_s0 + $0x3f8] sm:$0xff]  ;;  %v80_v22 = vld [vmem:[%s6936_s0 + $0xf0] sm:$0xff] }
  0x20   :  { %4006 = vmatpush1.bf16.msra.mxu0 %v4411_v42 }
  0x21   :  { %3759 = vmatmul.mubr.msk.f32.gmra.mrb[10].mxu1 %vm158_vm0, %v85_v45  ;;  %4007 = vmatprep.subr.bf16.mxu0 %v4240_v0  ;;  %v63_v45 = vld [vmem:[%s6936_s0 + $0x68] sm:$0xff] }
  0x22   :  { %3761 = vmatprep.mubr.msk.f32.mxu1 %vm158_vm0, %v88_v46  ;;  %4056 = vmatpush1.bf16.msra.mxu1 %v4368_v31  ;;  %v157_v46 = vld [vmem:[%s6936_s0 + $0x358] sm:$0xff] }
  0x23   :  { %4057 = vmatprep.subr.bf16.mxu1 %v4240_v0 }
  0x24   :  { %4009 = vmatpush1.bf16.msra.mxu0 %v4431_v47 }
  0x25   :  { %3762 = vmatmul.mubr.msk.f32.gmra.mrb[12].mxu1 %vm158_vm0, %v91_v50  ;;  %4010 = vmatprep.subr.bf16.mxu0 %v4240_v0  ;;  %v66_v50 = vld [vmem:[%s6936_s0 + $0x80] sm:$0xff] }
  0x26   :  { %3764 = vmatprep.mubr.msk.f32.mxu1 %vm158_vm0, %v94_v51  ;;  %4059 = vmatpush1.bf16.msra.mxu1 %v4391_v37  ;;  %v3142_v51 = vld [vmem:[%s6936_s0 + $0x360] sm:$0xff] }
  0x27   :  { %4060 = vmatprep.subr.bf16.mxu1 %v4240_v0 }
  0x28   :  { %4012 = vmatpush1.bf16.msra.mxu0 %v4451_v52 }
  0x29   :  { %3765 = vmatmul.mubr.msk.f32.gmra.mrb[14].mxu1 %vm158_vm0, %v97_v55  ;;  %4013 = vmatprep.subr.bf16.mxu0 %v4240_v0  ;;  %v69_v55 = vld [vmem:[%s6936_s0 + $0x98] sm:$0xff] }
  0x2a   :  { %3767 = vmatprep.mubr.msk.f32.mxu1 %vm158_vm0, %v100_v56  ;;  %4062 = vmatpush1.bf16.msra.mxu1 %v4411_v42  ;;  %v3145_v56 = vld [vmem:[%s6936_s0 + $0x378] sm:$0xff] }
  0x2b   :  { %4063 = vmatprep.subr.bf16.mxu1 %v4240_v0 }
  0x2c   :  { %4015 = vmatpush1.bf16.msra.mxu0 %v4471_v57 }
  0x2d   :  { %3768 = vmatmul.mubr.msk.f32.gmra.mrb[16].mxu1 %vm158_vm0, %v103_v60  ;;  %4016 = vmatprep.subr.bf16.mxu0 %v4240_v0  ;;  %v72_v60 = vld [vmem:[%s6936_s0 + $0xb0] sm:$0xff] }
  0x2e   :  { %3770 = vmatprep.mubr.msk.f32.mxu1 %vm158_vm0, %v106_v61  ;;  %4065 = vmatpush1.bf16.msra.mxu1 %v4431_v47  ;;  %v3148_v61 = vld [vmem:[%s6936_s0 + $0x390] sm:$0xff] }
  0x2f   :  { %4066 = vmatprep.subr.bf16.mxu1 %v4240_v0 }
  0x30   :  { %4018 = vmatpush1.bf16.msra.mxu0 %v4491_v62 }
  0x31   :  { %3771 = vmatmul.mubr.msk.f32.gmra.mrb[18].mxu1 %vm158_vm0, %v109_v2  ;;  %4019 = vmatprep.subr.bf16.mxu0 %v4240_v0  ;;  %v75_v2 = vld [vmem:[%s6936_s0 + $0xc8] sm:$0xff] }
  0x32   :  { %3773 = vmatprep.mubr.msk.f32.mxu1 %vm158_vm0, %v112_v3  ;;  %4068 = vmatpush1.bf16.msra.mxu1 %v4451_v52  ;;  %v3151_v3 = vld [vmem:[%s6936_s0 + $0x3a8] sm:$0xff] }
  0x33   :  { %4069 = vmatprep.subr.bf16.mxu1 %v4240_v0 }
  0x34   :  { %4021 = vmatpush1.bf16.msra.mxu0 %v4511_v5 }
  0x35   :  { %3774 = vmatmul.mubr.msk.f32.gmra.mrb[20].mxu1 %vm158_vm0, %v115_v9  ;;  %4022 = vmatprep.subr.bf16.mxu0 %v4240_v0  ;;  %v78_v9 = vld [vmem:[%s6936_s0 + $0xe0] sm:$0xff] }
  0x36   :  { %3776 = vmatprep.mubr.msk.f32.mxu1 %vm158_vm0, %v118_v10  ;;  %4071 = vmatpush1.bf16.msra.mxu1 %v4471_v57  ;;  %v3154_v10 = vld [vmem:[%s6936_s0 + $0x3c0] sm:$0xff] }
  0x37   :  { %4072 = vmatprep.subr.bf16.mxu1 %v4240_v0 }
  0x38   :  { %4024 = vmatpush1.bf16.msra.mxu0 %v4531_v11 }
  0x39   :  { %3777 = vmatmul.mubr.msk.f32.gmra.mrb[22].mxu1 %vm158_vm0, %v121_v17  ;;  %4025 = vmatprep.subr.bf16.mxu0 %v4240_v0  ;;  %v81_v17 = vld [vmem:[%s6936_s0 + $0xf8] sm:$0xff] }
  0x3a   :  { %3779 = vmatprep.mubr.msk.f32.mxu1 %vm158_vm0, %v124_v18  ;;  %4074 = vmatpush1.bf16.msra.mxu1 %v4491_v62  ;;  %v3157_v18 = vld [vmem:[%s6936_s0 + $0x3d8] sm:$0xff] }
  0x3b   :  { %4075 = vmatprep.subr.bf16.mxu1 %v4240_v0 }
  0x3c   :  { %4027 = vmatpush1.bf16.msra.mxu0 %v4551_v19 }
  0x3d   :  { %3780 = vmatmul.mubr.msk.f32.gmra.mrb[24].mxu1 %vm158_vm0, %v127_v23  ;;  %4028 = vmatprep.subr.bf16.mxu0 %v4240_v0  ;;  %v84_v23 = vld [vmem:[%s6936_s0 + $0x110] sm:$0xff] }
  0x3e   :  { %3782 = vmatprep.mubr.msk.f32.mxu1 %vm158_vm0, %v130_v24  ;;  %4077 = vmatpush1.bf16.msra.mxu1 %v4511_v5  ;;  %v3160_v24 = vld [vmem:[%s6936_s0 + $0x3f0] sm:$0xff] }
  0x3f   :  { %4078 = vmatprep.subr.bf16.mxu1 %v4240_v0 }
  0x40   :  { %4030 = vmatpush1.bf16.msra.mxu0 %v4571_v25 }
  0x41   :  { %3783 = vmatmul.mubr.msk.f32.gmra.mrb[26].mxu1 %vm158_vm0, %v133_v27  ;;  %4088 = vmatprep.subr.bf16.mxu0 %v4282_v8  ;;  %v3164_v27 = vld [vmem:[%s6936_s0 + $0x410] sm:$0xff] }
  0x42   :  { %3785 = vmatprep.mubr.msk.f32.mxu1 %vm158_vm0, %v136_v28  ;;  %4080 = vmatpush1.bf16.msra.mxu1 %v4531_v11  ;;  %v83_v28 = vld [vmem:[%s6936_s0 + $0x108] sm:$0xff] }
  0x43   :  { %332 = vmatmul.mubr.f32.vlgmr.msra.gmra.mrb[0].mxu0 %v50_v29  ;;  %4081 = vmatprep.subr.bf16.mxu1 %v4240_v0  ;;  %v87_v29 = vld [vmem:[%s6936_s0 + $0x128] sm:$0xff] }
  0x44   :  { %336 = vmatprep.mubr.f32.mxu0 %v54_v30  ;;  %4090 = vmatpush3.bf16.msra.mxu0 %v4282_v8  ;;  %v3163_v30 = vld [vmem:[%s6936_s0 + $0x408] sm:$0xff] }
  0x45   :  { %3786 = vmatmul.mubr.msk.f32.gmra.mrb[28].mxu1 %vm158_vm0, %v139_v32  ;;  %4092 = vmatprep.subr.bf16.mxu0 %v4296_v13  ;;  %v3167_v32 = vld [vmem:[%s6936_s0 + $0x428] sm:$0xff] }
  0x46   :  { %3788 = vmatprep.mubr.msk.f32.mxu1 %vm158_vm0, %v142_v33  ;;  %4083 = vmatpush1.bf16.msra.mxu1 %v4551_v19  ;;  %v86_v33 = vld [vmem:[%s6936_s0 + $0x120] sm:$0xff] }
  0x47   :  { %337 = vmatmul.mubr.f32.gmra.mrb[2].mxu0 %v53_v34  ;;  %4084 = vmatprep.subr.bf16.mxu1 %v4240_v0  ;;  %v90_v34 = vld [vmem:[%s6936_s0 + $0x140] sm:$0xff] }
  0x48   :  { %341 = vmatprep.mubr.f32.mxu0 %v57_v35  ;;  %4094 = vmatpush3.bf16.msra.mxu0 %v4296_v13  ;;  %v3166_v35 = vld [vmem:[%s6936_s0 + $0x420] sm:$0xff] }
  0x49   :  { %3789 = vmatmul.mubr.msk.f32.gmra.mrb[30].mxu1 %vm158_vm0, %v145_v36  ;;  %4144 = vmatprep.subr.bf16.mxu0 %v4282_v8  ;;  %v3170_v36 = vld [vmem:[%s6936_s0 + $0x440] sm:$0xff] }
  0x4a   :  { %3791 = vmatprep.mubr.msk.f32.mxu1 %vm158_vm0, %v148_v38  ;;  %4086 = vmatpush1.bf16.msra.mxu1 %v4571_v25  ;;  %v89_v38 = vld [vmem:[%s6936_s0 + $0x138] sm:$0xff] }
  0x4b   :  { %342 = vmatmul.mubr.f32.gmra.mrb[4].mxu0 %v56_v39  ;;  %4095 = vmatprep.subr.bf16.mxu1 %v4240_v0  ;;  %v93_v39 = vld [vmem:[%s6936_s0 + $0x158] sm:$0xff] }
  0x4c   :  { %346 = vmatprep.mubr.f32.mxu0 %v60_v40  ;;  %v3169_v40 = vld [vmem:[%s6936_s0 + $0x438] sm:$0xff] }
  0x4d   :  { %3792 = vmatmul.mubr.msk.f32.gmra.mrb[32].mxu1 %vm158_vm0, %v151_v41  ;;  %v3173_v41 = vld [vmem:[%s6936_s0 + $0x458] sm:$0xff] }
  0x4e   :  { %3794 = vmatprep.mubr.msk.f32.mxu1 %vm158_vm0, %v154_v43  ;;  %v92_v43 = vld [vmem:[%s6936_s0 + $0x150] sm:$0xff] }
  0x4f   :  { %347 = vmatmul.mubr.f32.gmra.mrb[6].mxu0 %v59_v44  ;;  %v96_v44 = vld [vmem:[%s6936_s0 + $0x170] sm:$0xff] }
  0x50   :  { %351 = vmatprep.mubr.f32.mxu0 %v63_v45  ;;  %v3172_v45 = vld [vmem:[%s6936_s0 + $0x450] sm:$0xff] }
  0x51   :  { %3795 = vmatmul.mubr.msk.f32.gmra.mrb[34].mxu1 %vm158_vm0, %v157_v46  ;;  %v3176_v46 = vld [vmem:[%s6936_s0 + $0x470] sm:$0xff] }
  0x52   :  { %1038 = vmatprep.mubr.f32.mxu1 %v3143_v48  ;;  %v95_v48 = vld [vmem:[%s6936_s0 + $0x168] sm:$0xff] }
  0x53   :  { %352 = vmatmul.mubr.f32.gmra.mrb[8].mxu0 %v62_v49  ;;  %v99_v49 = vld [vmem:[%s6936_s0 + $0x188] sm:$0xff] }
  0x54   :  { %356 = vmatprep.mubr.f32.mxu0 %v66_v50  ;;  %v3175_v50 = vld [vmem:[%s6936_s0 + $0x468] sm:$0xff] }
  0x55   :  { %1039 = vmatmul.mubr.f32.vlgmr.msra.gmra.mrb[36].mxu1 %v3142_v51  ;;  %v3179_v51 = vld [vmem:[%s6936_s0 + $0x488] sm:$0xff] }
  0x56   :  { %4097 = vmatpush1.bf16.msra.mxu1 %v4271_v4  ;;  %1043 = vmatprep.mubr.f32.mxu1 %v3146_v53  ;;  %v98_v53 = vld [vmem:[%s6936_s0 + $0x180] sm:$0xff] }
  0x57   :  { %357 = vmatmul.mubr.f32.gmra.mrb[10].mxu0 %v65_v54  ;;  %4098 = vmatprep.subr.bf16.mxu1 %v4240_v0  ;;  %v102_v54 = vld [vmem:[%s6936_s0 + $0x1a0] sm:$0xff] }
  0x58   :  { %361 = vmatprep.mubr.f32.mxu0 %v69_v55  ;;  %v3178_v55 = vld [vmem:[%s6936_s0 + $0x480] sm:$0xff] }
  0x59   :  { %1044 = vmatmul.mubr.f32.gmra.mrb[38].mxu1 %v3145_v56  ;;  %v3182_v56 = vld [vmem:[%s6936_s0 + $0x4a0] sm:$0xff] }
  0x5a   :  { %1048 = vmatprep.mubr.f32.mxu1 %v3149_v58  ;;  %4100 = vmatpush1.bf16.msra.mxu1 %v4294_v12  ;;  %v101_v58 = vld [vmem:[%s6936_s0 + $0x198] sm:$0xff] }
  0x5b   :  { %362 = vmatmul.mubr.f32.gmra.mrb[12].mxu0 %v68_v59  ;;  %4101 = vmatprep.subr.bf16.mxu1 %v4240_v0  ;;  %v105_v59 = vld [vmem:[%s6936_s0 + $0x1b8] sm:$0xff] }
  0x5c   :  { %366 = vmatprep.mubr.f32.mxu0 %v72_v60  ;;  %v3181_v60 = vld [vmem:[%s6936_s0 + $0x498] sm:$0xff] }
  0x5d   :  { %1049 = vmatmul.mubr.f32.gmra.mrb[40].mxu1 %v3148_v61  ;;  %v3185_v61 = vld [vmem:[%s6936_s0 + $0x4b8] sm:$0xff] }
  0x5e   :  { %1053 = vmatprep.mubr.f32.mxu1 %v3152_v63  ;;  %4103 = vmatpush1.bf16.msra.mxu1 %v4310_v16  ;;  %v104_v63 = vld [vmem:[%s6936_s0 + $0x1b0] sm:$0xff] }
  0x5f   :  { %367 = vmatmul.mubr.f32.gmra.mrb[14].mxu0 %v71_v1  ;;  %4104 = vmatprep.subr.bf16.mxu1 %v4240_v0  ;;  %v108_v1 = vld [vmem:[%s6936_s0 + $0x1d0] sm:$0xff] }
  0x60   :  { %371 = vmatprep.mubr.f32.mxu0 %v75_v2  ;;  %v3184_v2 = vld [vmem:[%s6936_s0 + $0x4b0] sm:$0xff] }
  0x61   :  { %1054 = vmatmul.mubr.f32.gmra.mrb[42].mxu1 %v3151_v3  ;;  %v3188_v3 = vld [vmem:[%s6936_s0 + $0x4d0] sm:$0xff] }
  0x62   :  { %1058 = vmatprep.mubr.f32.mxu1 %v3155_v6  ;;  %4106 = vmatpush1.bf16.msra.mxu1 %v4328_v21  ;;  %v107_v6 = vld [vmem:[%s6936_s0 + $0x1c8] sm:$0xff] }
  0x63   :  { %372 = vmatmul.mubr.f32.gmra.mrb[16].mxu0 %v74_v7  ;;  %4107 = vmatprep.subr.bf16.mxu1 %v4240_v0  ;;  %v111_v7 = vld [vmem:[%s6936_s0 + $0x1e8] sm:$0xff] }
  0x64   :  { %376 = vmatprep.mubr.f32.mxu0 %v78_v9  ;;  %v3187_v9 = vld [vmem:[%s6936_s0 + $0x4c8] sm:$0xff] }
  0x65   :  { %1059 = vmatmul.mubr.f32.gmra.mrb[44].mxu1 %v3154_v10  ;;  %v3191_v10 = vld [vmem:[%s6936_s0 + $0x4e8] sm:$0xff] }
  0x66   :  { %1063 = vmatprep.mubr.f32.mxu1 %v3158_v14  ;;  %4109 = vmatpush1.bf16.msra.mxu1 %v4348_v26  ;;  %v110_v14 = vld [vmem:[%s6936_s0 + $0x1e0] sm:$0xff] }
  0x67   :  { %377 = vmatmul.mubr.f32.gmra.mrb[18].mxu0 %v77_v15  ;;  %4110 = vmatprep.subr.bf16.mxu1 %v4240_v0  ;;  %v114_v15 = vld [vmem:[%s6936_s0 + $0x200] sm:$0xff] }
  0x68   :  { %381 = vmatprep.mubr.f32.mxu0 %v81_v17  ;;  %v3190_v17 = vld [vmem:[%s6936_s0 + $0x4e0] sm:$0xff] }
  0x69   :  { %1064 = vmatmul.mubr.f32.gmra.mrb[46].mxu1 %v3157_v18  ;;  %v3194_v18 = vld [vmem:[%s6936_s0 + $0x500] sm:$0xff] }
  0x6a   :  { %1068 = vmatprep.mubr.f32.mxu1 %v3161_v20  ;;  %4112 = vmatpush1.bf16.msra.mxu1 %v4368_v31  ;;  %v113_v20 = vld [vmem:[%s6936_s0 + $0x1f8] sm:$0xff] }
  0x6b   :  { %382 = vmatmul.mubr.f32.gmra.mrb[20].mxu0 %v80_v22  ;;  %4113 = vmatprep.subr.bf16.mxu1 %v4240_v0  ;;  %v117_v22 = vld [vmem:[%s6936_s0 + $0x218] sm:$0xff] }
  0x6c   :  { %386 = vmatprep.mubr.f32.mxu0 %v84_v23  ;;  %v3193_v23 = vld [vmem:[%s6936_s0 + $0x4f8] sm:$0xff] }
  0x6d   :  { %1069 = vmatmul.mubr.f32.gmra.mrb[48].mxu1 %v3160_v24  ;;  %v3197_v24 = vld [vmem:[%s6936_s0 + $0x518] sm:$0xff] }
  0x6e   :  { %1073 = vmatprep.mubr.f32.mxu1 %v3164_v27  ;;  %4115 = vmatpush1.bf16.msra.mxu1 %v4391_v37  ;;  %v116_v27 = vld [vmem:[%s6936_s0 + $0x210] sm:$0xff] }
  0x6f   :  { %387 = vmatmul.mubr.f32.gmra.mrb[22].mxu0 %v83_v28  ;;  %4116 = vmatprep.subr.bf16.mxu1 %v4240_v0  ;;  %v120_v28 = vld [vmem:[%s6936_s0 + $0x230] sm:$0xff] }
  0x70   :  { %391 = vmatprep.mubr.f32.mxu0 %v87_v29  ;;  %v3196_v29 = vld [vmem:[%s6936_s0 + $0x510] sm:$0xff] }
  0x71   :  { %1074 = vmatmul.mubr.f32.gmra.mrb[50].mxu1 %v3163_v30  ;;  %v3200_v30 = vld [vmem:[%s6936_s0 + $0x530] sm:$0xff] }
  0x72   :  { %1078 = vmatprep.mubr.f32.mxu1 %v3167_v32  ;;  %4118 = vmatpush1.bf16.msra.mxu1 %v4411_v42  ;;  %v119_v32 = vld [vmem:[%s6936_s0 + $0x228] sm:$0xff] }
  0x73   :  { %392 = vmatmul.mubr.f32.gmra.mrb[24].mxu0 %v86_v33  ;;  %4119 = vmatprep.subr.bf16.mxu1 %v4240_v0  ;;  %v123_v33 = vld [vmem:[%s6936_s0 + $0x248] sm:$0xff] }
  0x74   :  { %396 = vmatprep.mubr.f32.mxu0 %v90_v34  ;;  %v3199_v34 = vld [vmem:[%s6936_s0 + $0x528] sm:$0xff] }
  0x75   :  { %1079 = vmatmul.mubr.f32.gmra.mrb[52].mxu1 %v3166_v35  ;;  %v3203_v35 = vld [vmem:[%s6936_s0 + $0x548] sm:$0xff] }
  0x76   :  { %1083 = vmatprep.mubr.f32.mxu1 %v3170_v36  ;;  %4121 = vmatpush1.bf16.msra.mxu1 %v4431_v47  ;;  %v122_v36 = vld [vmem:[%s6936_s0 + $0x240] sm:$0xff] }
  0x77   :  { %397 = vmatmul.mubr.f32.gmra.mrb[26].mxu0 %v89_v38  ;;  %4122 = vmatprep.subr.bf16.mxu1 %v4240_v0  ;;  %v126_v38 = vld [vmem:[%s6936_s0 + $0x260] sm:$0xff] }
  0x78   :  { %401 = vmatprep.mubr.f32.mxu0 %v93_v39  ;;  %v3202_v39 = vld [vmem:[%s6936_s0 + $0x540] sm:$0xff] }
  0x79   :  { %1084 = vmatmul.mubr.f32.gmra.mrb[54].mxu1 %v3169_v40  ;;  %v3206_v40 = vld [vmem:[%s6936_s0 + $0x560] sm:$0xff] }
  0x7a   :  { %1088 = vmatprep.mubr.f32.mxu1 %v3173_v41  ;;  %4124 = vmatpush1.bf16.msra.mxu1 %v4451_v52  ;;  %v125_v41 = vld [vmem:[%s6936_s0 + $0x258] sm:$0xff] }
  0x7b   :  { %402 = vmatmul.mubr.f32.gmra.mrb[28].mxu0 %v92_v43  ;;  %4125 = vmatprep.subr.bf16.mxu1 %v4240_v0  ;;  %v129_v43 = vld [vmem:[%s6936_s0 + $0x278] sm:$0xff] }
  0x7c   :  { %406 = vmatprep.mubr.f32.mxu0 %v96_v44  ;;  %v3205_v44 = vld [vmem:[%s6936_s0 + $0x558] sm:$0xff] }
  0x7d   :  { %1089 = vmatmul.mubr.f32.gmra.mrb[56].mxu1 %v3172_v45  ;;  %v3209_v45 = vld [vmem:[%s6936_s0 + $0x578] sm:$0xff] }
  0x7e   :  { %1093 = vmatprep.mubr.f32.mxu1 %v3176_v46  ;;  %4127 = vmatpush1.bf16.msra.mxu1 %v4471_v57  ;;  %v128_v46 = vld [vmem:[%s6936_s0 + $0x270] sm:$0xff] }
  0x7f   :  { %407 = vmatmul.mubr.f32.gmra.mrb[30].mxu0 %v95_v48  ;;  %4128 = vmatprep.subr.bf16.mxu1 %v4240_v0  ;;  %v132_v48 = vld [vmem:[%s6936_s0 + $0x290] sm:$0xff] }
  0x80   :  { %411 = vmatprep.mubr.f32.mxu0 %v99_v49  ;;  %v3208_v49 = vld [vmem:[%s6936_s0 + $0x570] sm:$0xff] }
  0x81   :  { %1094 = vmatmul.mubr.f32.gmra.mrb[58].mxu1 %v3175_v50  ;;  %v3212_v50 = vld [vmem:[%s6936_s0 + $0x590] sm:$0xff] }
  0x82   :  { %1098 = vmatprep.mubr.f32.mxu1 %v3179_v51  ;;  %4130 = vmatpush1.bf16.msra.mxu1 %v4491_v62  ;;  %v131_v51 = vld [vmem:[%s6936_s0 + $0x288] sm:$0xff] }
  0x83   :  { %412 = vmatmul.mubr.f32.gmra.mrb[32].mxu0 %v98_v53  ;;  %4131 = vmatprep.subr.bf16.mxu1 %v4240_v0  ;;  %v135_v53 = vld [vmem:[%s6936_s0 + $0x2a8] sm:$0xff] }
  0x84   :  { %416 = vmatprep.mubr.f32.mxu0 %v102_v54  ;;  %v3211_v54 = vld [vmem:[%s6936_s0 + $0x588] sm:$0xff] }
  0x85   :  { %1099 = vmatmul.mubr.f32.gmra.mrb[60].mxu1 %v3178_v55  ;;  %v3215_v55 = vld [vmem:[%s6936_s0 + $0x5a8] sm:$0xff] }
  0x86   :  { %1103 = vmatprep.mubr.f32.mxu1 %v3182_v56  ;;  %4133 = vmatpush1.bf16.msra.mxu1 %v4511_v5  ;;  %v134_v56 = vld [vmem:[%s6936_s0 + $0x2a0] sm:$0xff] }
  0x87   :  { %417 = vmatmul.mubr.f32.gmra.mrb[34].mxu0 %v101_v58  ;;  %4134 = vmatprep.subr.bf16.mxu1 %v4240_v0  ;;  %v138_v58 = vld [vmem:[%s6936_s0 + $0x2c0] sm:$0xff] }
  0x88   :  { %421 = vmatprep.mubr.f32.mxu0 %v105_v59  ;;  %v3214_v59 = vld [vmem:[%s6936_s0 + $0x5a0] sm:$0xff] }
  0x89   :  { %1104 = vmatmul.mubr.f32.gmra.mrb[62].mxu1 %v3181_v60  ;;  %v3218_v60 = vld [vmem:[%s6936_s0 + $0x5c0] sm:$0xff] }
  0x8a   :  { %1108 = vmatprep.mubr.f32.mxu1 %v3185_v61  ;;  %4136 = vmatpush1.bf16.msra.mxu1 %v4531_v11  ;;  %v137_v61 = vld [vmem:[%s6936_s0 + $0x2b8] sm:$0xff] }
  0x8b   :  { %422 = vmatmul.mubr.f32.gmra.mrb[36].mxu0 %v104_v63  ;;  %4137 = vmatprep.subr.bf16.mxu1 %v4240_v0  ;;  %v141_v63 = vld [vmem:[%s6936_s0 + $0x2d8] sm:$0xff] }
  0x8c   :  { %426 = vmatprep.mubr.f32.mxu0 %v108_v1  ;;  %v3217_v1 = vld [vmem:[%s6936_s0 + $0x5b8] sm:$0xff] }
  0x8d   :  { %1109 = vmatmul.mubr.f32.gmra.mrb[64].mxu1 %v3184_v2  ;;  %v3221_v2 = vld [vmem:[%s6936_s0 + $0x5d8] sm:$0xff] }
  0x8e   :  { %1113 = vmatprep.mubr.f32.mxu1 %v3188_v3  ;;  %4139 = vmatpush1.bf16.msra.mxu1 %v4551_v19  ;;  %v140_v3 = vld [vmem:[%s6936_s0 + $0x2d0] sm:$0xff] }
  0x8f   :  { %427 = vmatmul.mubr.f32.gmra.mrb[38].mxu0 %v107_v6  ;;  %4140 = vmatprep.subr.bf16.mxu1 %v4240_v0  ;;  %v144_v6 = vld [vmem:[%s6936_s0 + $0x2f0] sm:$0xff] }
  0x90   :  { %431 = vmatprep.mubr.f32.mxu0 %v111_v7  ;;  %v3220_v7 = vld [vmem:[%s6936_s0 + $0x5d0] sm:$0xff] }
  0x91   :  { %1114 = vmatmul.mubr.f32.gmra.mrb[66].mxu1 %v3187_v9  ;;  %v3224_v9 = vld [vmem:[%s6936_s0 + $0x5f0] sm:$0xff] }
  0x92   :  { %1118 = vmatprep.mubr.f32.mxu1 %v3191_v10  ;;  %4142 = vmatpush1.bf16.msra.mxu1 %v4571_v25  ;;  %v143_v10 = vld [vmem:[%s6936_s0 + $0x2e8] sm:$0xff] }
  0x93   :  { %432 = vmatmul.mubr.f32.gmra.mrb[40].mxu0 %v110_v14  ;;  %4207 = vmatprep.subr.bf16.mxu1 %v4240_v0  ;;  %v147_v14 = vld [vmem:[%s6936_s0 + $0x308] sm:$0xff] }
  0x94   :  { %436 = vmatprep.mubr.f32.mxu0 %v114_v15  ;;  %v3223_v15 = vld [vmem:[%s6936_s0 + $0x5e8] sm:$0xff] }
  0x95   :  { %1119 = vmatmul.mubr.f32.gmra.mrb[68].mxu1 %v3190_v17  ;;  %v3227_v17 = vld [vmem:[%s6936_s0 + $0x608] sm:$0xff] }
  0x96   :  { %1123 = vmatprep.mubr.f32.mxu1 %v3194_v18  ;;  %v146_v18 = vld [vmem:[%s6936_s0 + $0x300] sm:$0xff] }
  0x97   :  { %437 = vmatmul.mubr.f32.gmra.mrb[42].mxu0 %v113_v20  ;;  %v150_v20 = vld [vmem:[%s6936_s0 + $0x320] sm:$0xff] }
  0x98   :  { %441 = vmatprep.mubr.f32.mxu0 %v117_v22  ;;  %v3226_v22 = vld [vmem:[%s6936_s0 + $0x600] sm:$0xff] }
  0x99   :  { %1124 = vmatmul.mubr.f32.gmra.mrb[70].mxu1 %v3193_v23  ;;  %v3230_v23 = vld [vmem:[%s6936_s0 + $0x620] sm:$0xff] }
  0x9a   :  { %1128 = vmatprep.mubr.f32.mxu1 %v3197_v24  ;;  %v149_v24 = vld [vmem:[%s6936_s0 + $0x318] sm:$0xff] }
  0x9b   :  { %442 = vmatmul.mubr.f32.gmra.mrb[44].mxu0 %v116_v27  ;;  %v153_v27 = vld [vmem:[%s6936_s0 + $0x338] sm:$0xff] }
  0x9c   :  { %446 = vmatprep.mubr.f32.mxu0 %v120_v28  ;;  %v3229_v28 = vld [vmem:[%s6936_s0 + $0x618] sm:$0xff] }
  0x9d   :  { %1129 = vmatmul.mubr.f32.gmra.mrb[72].mxu1 %v3196_v29  ;;  %v3233_v29 = vld [vmem:[%s6936_s0 + $0x638] sm:$0xff] }
  0x9e   :  { %1133 = vmatprep.mubr.f32.mxu1 %v3200_v30  ;;  %v152_v30 = vld [vmem:[%s6936_s0 + $0x330] sm:$0xff] }
  0x9f   :  { %447 = vmatmul.mubr.f32.gmra.mrb[46].mxu0 %v119_v32  ;;  %v156_v32 = vld [vmem:[%s6936_s0 + $0x350] sm:$0xff] }
  0xa0   :  { %451 = vmatprep.mubr.f32.mxu0 %v123_v33  ;;  %v3232_v33 = vld [vmem:[%s6936_s0 + $0x630] sm:$0xff] }
  0xa1   :  { %1134 = vmatmul.mubr.f32.gmra.mrb[74].mxu1 %v3199_v34  ;;  %v3236_v34 = vld [vmem:[%s6936_s0 + $0x650] sm:$0xff] }
  0xa2   :  { %1138 = vmatprep.mubr.f32.mxu1 %v3203_v35  ;;  %v155_v35 = vld [vmem:[%s6936_s0 + $0x348] sm:$0xff] }
  0xa3   :  { %452 = vmatmul.mubr.f32.gmra.mrb[48].mxu0 %v122_v36  ;;  %v3144_v36 = vld [vmem:[%s6936_s0 + $0x370] sm:$0xff] }
  0xa4   :  { %456 = vmatprep.mubr.f32.mxu0 %v126_v38  ;;  %v3235_v38 = vld [vmem:[%s6936_s0 + $0x648] sm:$0xff] }
  0xa5   :  { %1139 = vmatmul.mubr.f32.gmra.mrb[76].mxu1 %v3202_v39  ;;  %v3239_v39 = vld [vmem:[%s6936_s0 + $0x668] sm:$0xff] }
  0xa6   :  { %1143 = vmatprep.mubr.f32.mxu1 %v3206_v40  ;;  %v3147_v40 = vld [vmem:[%s6936_s0 + $0x388] sm:$0xff] }
  0xa7   :  { %457 = vmatmul.mubr.f32.gmra.mrb[50].mxu0 %v125_v41  ;;  %v3150_v41 = vld [vmem:[%s6936_s0 + $0x3a0] sm:$0xff] }
  0xa8   :  { %461 = vmatprep.mubr.f32.mxu0 %v129_v43  ;;  %v3238_v43 = vld [vmem:[%s6936_s0 + $0x660] sm:$0xff] }
  0xa9   :  { %1144 = vmatmul.mubr.f32.gmra.mrb[78].mxu1 %v3205_v44  ;;  %v3242_v44 = vld [vmem:[%s6936_s0 + $0x680] sm:$0xff] }
  0xaa   :  { %1148 = vmatprep.mubr.f32.mxu1 %v3209_v45  ;;  %v3153_v45 = vld [vmem:[%s6936_s0 + $0x3b8] sm:$0xff] }
  0xab   :  { %462 = vmatmul.mubr.f32.gmra.mrb[52].mxu0 %v128_v46  ;;  %v3156_v46 = vld [vmem:[%s6936_s0 + $0x3d0] sm:$0xff] }
  0xac   :  { %466 = vmatprep.mubr.f32.mxu0 %v132_v48  ;;  %v3241_v48 = vld [vmem:[%s6936_s0 + $0x678] sm:$0xff] }
  0xad   :  { %1149 = vmatmul.mubr.f32.gmra.mrb[80].mxu1 %v3208_v49  ;;  %v3245_v49 = vld [vmem:[%s6936_s0 + $0x698] sm:$0xff] }
  0xae   :  { %1153 = vmatprep.mubr.f32.mxu1 %v3212_v50  ;;  %v3159_v50 = vld [vmem:[%s6936_s0 + $0x3e8] sm:$0xff] }
  0xaf   :  { %467 = vmatmul.mubr.f32.gmra.mrb[54].mxu0 %v131_v51  ;;  %v3162_v51 = vld [vmem:[%s6936_s0 + $0x400] sm:$0xff] }
  0xb0   :  { %471 = vmatprep.mubr.f32.mxu0 %v135_v53  ;;  %v3244_v53 = vld [vmem:[%s6936_s0 + $0x690] sm:$0xff] }
  0xb1   :  { %1154 = vmatmul.mubr.f32.gmra.mrb[82].mxu1 %v3211_v54  ;;  %v3248_v54 = vld [vmem:[%s6936_s0 + $0x6b0] sm:$0xff] }
  0xb2   :  { %1158 = vmatprep.mubr.f32.mxu1 %v3215_v55  ;;  %v3165_v55 = vld [vmem:[%s6936_s0 + $0x418] sm:$0xff] }
  0xb3   :  { %472 = vmatmul.mubr.f32.gmra.mrb[56].mxu0 %v134_v56  ;;  %v3168_v56 = vld [vmem:[%s6936_s0 + $0x430] sm:$0xff] }
  0xb4   :  { %476 = vmatprep.mubr.f32.mxu0 %v138_v58  ;;  %v3247_v58 = vld [vmem:[%s6936_s0 + $0x6a8] sm:$0xff] }
  0xb5   :  { %1159 = vmatmul.mubr.f32.gmra.mrb[84].mxu1 %v3214_v59  ;;  %v3287_v59 = vld [vmem:[%s6936_s0 + $0x6c8] sm:$0xff] }
  0xb6   :  { %1163 = vmatprep.mubr.f32.mxu1 %v3218_v60 }
  0xb7   :  { %477 = vmatmul.mubr.f32.gmra.mrb[58].mxu0 %v137_v61  ;;  %v3171_v61 = vld [vmem:[%s6936_s0 + $0x448] sm:$0xff] }
  0xb8   :  { %481 = vmatprep.mubr.f32.mxu0 %v141_v63 }
  0xb9   :  { %1164 = vmatmul.mubr.f32.gmra.mrb[86].mxu1 %v3217_v1  ;;  %v3174_v1 = vld [vmem:[%s6936_s0 + $0x460] sm:$0xff] }
  0xba   :  { %1168 = vmatprep.mubr.f32.mxu1 %v3221_v2  ;;  %v3286_v2 = vld [vmem:[%s6936_s0 + $0x6c0] sm:$0xff] }
  0xbb   :  { %482 = vmatmul.mubr.f32.gmra.mrb[60].mxu0 %v140_v3  ;;  %v3290_v3 = vld [vmem:[%s6936_s0 + $0x6e0] sm:$0xff] }
  0xbc   :  { %486 = vmatprep.mubr.f32.mxu0 %v144_v6 }
  0xbd   :  { %1169 = vmatmul.mubr.f32.gmra.mrb[88].mxu1 %v3220_v7  ;;  %v3177_v7 = vld [vmem:[%s6936_s0 + $0x478] sm:$0xff] }
  0xbe   :  { %1173 = vmatprep.mubr.f32.mxu1 %v3224_v9 }
  0xbf   :  { %487 = vmatmul.mubr.f32.gmra.mrb[62].mxu0 %v143_v10  ;;  %v3180_v10 = vld [vmem:[%s6936_s0 + $0x490] sm:$0xff] }
  0xc0   :  { %491 = vmatprep.mubr.f32.mxu0 %v147_v14  ;;  %v3289_v14 = vld [vmem:[%s6936_s0 + $0x6d8] sm:$0xff] }
  0xc1   :  { %1174 = vmatmul.mubr.f32.gmra.mrb[90].mxu1 %v3223_v15  ;;  %v3293_v15 = vld [vmem:[%s6936_s0 + $0x6f8] sm:$0xff] }
  0xc2   :  { %1178 = vmatprep.mubr.f32.mxu1 %v3227_v17 }
  0xc3   :  { %492 = vmatmul.mubr.f32.gmra.mrb[64].mxu0 %v146_v18  ;;  %v3183_v18 = vld [vmem:[%s6936_s0 + $0x4a8] sm:$0xff] }
  0xc4   :  { %496 = vmatprep.mubr.f32.mxu0 %v150_v20 }
  0xc5   :  { %1179 = vmatmul.mubr.f32.gmra.mrb[92].mxu1 %v3226_v22  ;;  %v3186_v22 = vld [vmem:[%s6936_s0 + $0x4c0] sm:$0xff] }
  0xc6   :  { %1183 = vmatprep.mubr.f32.mxu1 %v3230_v23  ;;  %v3292_v23 = vld [vmem:[%s6936_s0 + $0x6f0] sm:$0xff] }
  0xc7   :  { %497 = vmatmul.mubr.f32.gmra.mrb[66].mxu0 %v149_v24  ;;  %v3296_v24 = vld [vmem:[%s6936_s0 + $0x710] sm:$0xff] }
  0xc8   :  { %501 = vmatprep.mubr.f32.mxu0 %v153_v27 }
  0xc9   :  { %1184 = vmatmul.mubr.f32.gmra.mrb[94].mxu1 %v3229_v28  ;;  %v3189_v28 = vld [vmem:[%s6936_s0 + $0x4d8] sm:$0xff] }
  0xca   :  { %1188 = vmatprep.mubr.f32.mxu1 %v3233_v29 }
  0xcb   :  { %502 = vmatmul.mubr.f32.gmra.mrb[68].mxu0 %v152_v30  ;;  %v3192_v30 = vld [vmem:[%s6936_s0 + $0x4f0] sm:$0xff] }
  0xcc   :  { %506 = vmatprep.mubr.f32.mxu0 %v156_v32  ;;  %v3295_v32 = vld [vmem:[%s6936_s0 + $0x708] sm:$0xff] }
  0xcd   :  { %1189 = vmatmul.mubr.f32.gmra.mrb[96].mxu1 %v3232_v33  ;;  %v3299_v33 = vld [vmem:[%s6936_s0 + $0x728] sm:$0xff] }
  0xce   :  { %1193 = vmatprep.mubr.f32.mxu1 %v3236_v34 }
  0xcf   :  { %507 = vmatmul.mubr.f32.gmra.mrb[70].mxu0 %v155_v35  ;;  %v3195_v35 = vld [vmem:[%s6936_s0 + $0x508] sm:$0xff] }
  0xd0   :  { %3805 = vmatprep.mubr.msk.f32.mxu0 %vm158_vm0, %v3144_v36 }
  0xd1   :  { %1194 = vmatmul.mubr.f32.gmra.mrb[98].mxu1 %v3235_v38  ;;  %v3198_v38 = vld [vmem:[%s6936_s0 + $0x520] sm:$0xff] }
  0xd2   :  { %1198 = vmatprep.mubr.f32.mxu1 %v3239_v39  ;;  %v3298_v39 = vld [vmem:[%s6936_s0 + $0x720] sm:$0xff] }
  0xd3   :  { %3806 = vmatmul.mubr.msk.f32.vlgmr.msra.gmra.mrb[72].mxu0 %vm158_vm0, %v3147_v40  ;;  %v3302_v40 = vld [vmem:[%s6936_s0 + $0x740] sm:$0xff] }
  0xd4   :  { %3808 = vmatprep.mubr.msk.f32.mxu0 %vm158_vm0, %v3150_v41  ;;  %4146 = vmatpush3.bf16.msra.mxu0 %v4282_v8 }
  0xd5   :  { %1199 = vmatmul.mubr.f32.gmra.mrb[100].mxu1 %v3238_v43  ;;  %4148 = vmatprep.subr.bf16.mxu0 %v4296_v13  ;;  %v3201_v43 = vld [vmem:[%s6936_s0 + $0x538] sm:$0xff] }
  0xd6   :  { %1203 = vmatprep.mubr.f32.mxu1 %v3242_v44 }
  0xd7   :  { %3809 = vmatmul.mubr.msk.f32.gmra.mrb[74].mxu0 %vm158_vm0, %v3153_v45  ;;  %v3204_v45 = vld [vmem:[%s6936_s0 + $0x550] sm:$0xff] }
  0xd8   :  { %3811 = vmatprep.mubr.msk.f32.mxu0 %vm158_vm0, %v3156_v46  ;;  %4150 = vmatpush3.bf16.msra.mxu0 %v4296_v13  ;;  %v3301_v46 = vld [vmem:[%s6936_s0 + $0x738] sm:$0xff] }
  0xd9   :  { %1204 = vmatmul.mubr.f32.gmra.mrb[102].mxu1 %v3241_v48  ;;  %4151 = vmatprep.subr.bf16.mxu0 %v4240_v0  ;;  %v3305_v48 = vld [vmem:[%s6936_s0 + $0x758] sm:$0xff] }
  0xda   :  { %1208 = vmatprep.mubr.f32.mxu1 %v3245_v49 }
  0xdb   :  { %3812 = vmatmul.mubr.msk.f32.gmra.mrb[76].mxu0 %vm158_vm0, %v3159_v50  ;;  %v3207_v50 = vld [vmem:[%s6936_s0 + $0x568] sm:$0xff] }
  0xdc   :  { %3814 = vmatprep.mubr.msk.f32.mxu0 %vm158_vm0, %v3162_v51 }
  0xdd   :  { %1209 = vmatmul.mubr.f32.gmra.mrb[104].mxu1 %v3244_v53  ;;  %v3210_v53 = vld [vmem:[%s6936_s0 + $0x580] sm:$0xff] }
  0xde   :  { %1213 = vmatprep.mubr.f32.mxu1 %v3248_v54  ;;  %v3304_v54 = vld [vmem:[%s6936_s0 + $0x750] sm:$0xff] }
  0xdf   :  { %3815 = vmatmul.mubr.msk.f32.gmra.mrb[78].mxu0 %vm158_vm0, %v3165_v55  ;;  %v3308_v55 = vld [vmem:[%s6936_s0 + $0x770] sm:$0xff] }
  0xe0   :  { %v5129_v60 = vpop.f32.mrb[0].mxu1  ;;  %3817 = vmatprep.mubr.msk.f32.mxu0 %vm158_vm0, %v3168_v56 }
  0xe1   :  { %v5135_v63 = vpop.f32.mrb[1].mxu1  ;;  %1214 = vmatmul.mubr.f32.gmra.mrb[106].mxu1 %v3247_v58  ;;  %v3213_v58 = vld [vmem:[%s6936_s0 + $0x598] sm:$0xff] }
  0xe2   :  { %1781 = vmatprep.mubr.f32.mxu1 %v3287_v59 }
  0xe3   :  { %3818 = vmatmul.mubr.msk.f32.gmra.mrb[80].mxu0 %vm158_vm0, %v3171_v61  ;;  %v3216_v61 = vld [vmem:[%s6936_s0 + $0x5b0] sm:$0xff] }
  0xe4   :  { %v5147_v6 = vpop.f32.mrb[2].mxu1  ;;  %3820 = vmatprep.mubr.msk.f32.mxu0 %vm158_vm0, %v3174_v1  ;;  %v3307_v1 = vld [vmem:[%s6936_s0 + $0x768] sm:$0xff] }
  0xe5   :  { %v5153_v9 = vpop.f32.mrb[3].mxu1  ;;  %1782 = vmatmul.mubr.f32.vlgmr.msra.gmra.mrb[108].mxu1 %v3286_v2  ;;  %v3311_v2 = vld [vmem:[%s6936_s0 + $0x788] sm:$0xff] }
  0xe6   :  { %4223 = vmatpush1.bf16.msra.mxu1 %v4271_v4  ;;  %1786 = vmatprep.mubr.f32.mxu1 %v3290_v3 }
  0xe7   :  { %3821 = vmatmul.mubr.msk.f32.gmra.mrb[82].mxu0 %vm158_vm0, %v3177_v7  ;;  %4208 = vmatprep.subr.bf16.mxu1 %v4240_v0  ;;  %v3219_v7 = vld [vmem:[%s6936_s0 + $0x5c8] sm:$0xff] }
  0xe8   :  { %v5167_v17 = vpop.f32.mrb[4].mxu1  ;;  %3823 = vmatprep.mubr.msk.f32.mxu0 %vm158_vm0, %v3180_v10 }
  0xe9   :  { %v5173_v20 = vpop.f32.mrb[5].mxu1  ;;  %1787 = vmatmul.mubr.f32.gmra.mrb[110].mxu1 %v3289_v14  ;;  %v3222_v14 = vld [vmem:[%s6936_s0 + $0x5e0] sm:$0xff] }
  0xea   :  { %1791 = vmatprep.mubr.f32.mxu1 %v3293_v15  ;;  %4224 = vmatpush1.bf16.msra.mxu1 %v4294_v12  ;;  %v3310_v15 = vld [vmem:[%s6936_s0 + $0x780] sm:$0xff] }
  0xeb   :  { %3824 = vmatmul.mubr.msk.f32.gmra.mrb[84].mxu0 %vm158_vm0, %v3183_v18  ;;  %4209 = vmatprep.subr.bf16.mxu1 %v4240_v0  ;;  %v3314_v18 = vld [vmem:[%s6936_s0 + $0x7a0] sm:$0xff] }
  0xec   :  { %v5187_v27 = vpop.f32.mrb[6].mxu1  ;;  %3826 = vmatprep.mubr.msk.f32.mxu0 %vm158_vm0, %v3186_v22 }
  0xed   :  { %v5193_v29 = vpop.f32.mrb[7].mxu1  ;;  %1792 = vmatmul.mubr.f32.gmra.mrb[112].mxu1 %v3292_v23  ;;  %v3225_v23 = vld [vmem:[%s6936_s0 + $0x5f8] sm:$0xff] }
  0xee   :  { %1796 = vmatprep.mubr.f32.mxu1 %v3296_v24  ;;  %4225 = vmatpush1.bf16.msra.mxu1 %v4310_v16 }
  0xef   :  { %3827 = vmatmul.mubr.msk.f32.gmra.mrb[86].mxu0 %vm158_vm0, %v3189_v28  ;;  %4210 = vmatprep.subr.bf16.mxu1 %v4240_v0  ;;  %v3228_v28 = vld [vmem:[%s6936_s0 + $0x610] sm:$0xff] }
  0xf0   :  { %v5207_v34 = vpop.f32.mrb[8].mxu1  ;;  %3829 = vmatprep.mubr.msk.f32.mxu0 %vm158_vm0, %v3192_v30  ;;  %v3313_v30 = vld [vmem:[%s6936_s0 + $0x798] sm:$0xff] }
  0xf1   :  { %v5213_v36 = vpop.f32.mrb[9].mxu1  ;;  %1797 = vmatmul.mubr.f32.gmra.mrb[114].mxu1 %v3295_v32  ;;  %v3317_v32 = vld [vmem:[%s6936_s0 + $0x7b8] sm:$0xff] }
  0xf2   :  { %1801 = vmatprep.mubr.f32.mxu1 %v3299_v33  ;;  %4226 = vmatpush1.bf16.msra.mxu1 %v4328_v21 }
  0xf3   :  { %3830 = vmatmul.mubr.msk.f32.gmra.mrb[88].mxu0 %vm158_vm0, %v3195_v35  ;;  %4211 = vmatprep.subr.bf16.mxu1 %v4240_v0  ;;  %v3231_v35 = vld [vmem:[%s6936_s0 + $0x628] sm:$0xff] }
  0xf4   :  { %v5227_v41 = vpop.f32.mrb[10].mxu1  ;;  %3832 = vmatprep.mubr.msk.f32.mxu0 %vm158_vm0, %v3198_v38 }
  0xf5   :  { %v5233_v44 = vpop.f32.mrb[11].mxu1  ;;  %1802 = vmatmul.mubr.f32.gmra.mrb[116].mxu1 %v3298_v39  ;;  %v3234_v39 = vld [vmem:[%s6936_s0 + $0x640] sm:$0xff] }
  0xf6   :  { %1806 = vmatprep.mubr.f32.mxu1 %v3302_v40  ;;  %4227 = vmatpush1.bf16.msra.mxu1 %v4348_v26  ;;  %v3316_v40 = vld [vmem:[%s6936_s0 + $0x7b0] sm:$0xff] }
  0xf7   :  { %3833 = vmatmul.mubr.msk.f32.gmra.mrb[90].mxu0 %vm158_vm0, %v3201_v43  ;;  %4212 = vmatprep.subr.bf16.mxu1 %v4240_v0  ;;  %v3320_v43 = vld [vmem:[%s6936_s0 + $0x7d0] sm:$0xff] }
  0xf8   :  { %v5247_v49 = vpop.f32.mrb[12].mxu1  ;;  %3835 = vmatprep.mubr.msk.f32.mxu0 %vm158_vm0, %v3204_v45 }
  0xf9   :  { %v5253_v51 = vpop.f32.mrb[13].mxu1  ;;  %1807 = vmatmul.mubr.f32.gmra.mrb[118].mxu1 %v3301_v46  ;;  %v3237_v46 = vld [vmem:[%s6936_s0 + $0x658] sm:$0xff] }
  0xfa   :  { %1811 = vmatprep.mubr.f32.mxu1 %v3305_v48  ;;  %4228 = vmatpush1.bf16.msra.mxu1 %v4368_v31 }
  0xfb   :  { %3836 = vmatmul.mubr.msk.f32.gmra.mrb[92].mxu0 %vm158_vm0, %v3207_v50  ;;  %4213 = vmatprep.subr.bf16.mxu1 %v4240_v0  ;;  %v3240_v50 = vld [vmem:[%s6936_s0 + $0x670] sm:$0xff] }
  0xfc   :  { %v5267_v56 = vpop.f32.mrb[14].mxu1  ;;  %3838 = vmatprep.mubr.msk.f32.mxu0 %vm158_vm0, %v3210_v53  ;;  %v3319_v53 = vld [vmem:[%s6936_s0 + $0x7c8] sm:$0xff] }
  0xfd   :  { %v5273_v59 = vpop.f32.mrb[15].mxu1  ;;  %1812 = vmatmul.mubr.f32.gmra.mrb[120].mxu1 %v3304_v54  ;;  %v3323_v54 = vld [vmem:[%s6936_s0 + $0x7e8] sm:$0xff] }
  0xfe   :  { %1816 = vmatprep.mubr.f32.mxu1 %v3308_v55  ;;  %4229 = vmatpush1.bf16.msra.mxu1 %v4391_v37 }
  0xff   :  { %3839 = vmatmul.mubr.msk.f32.gmra.mrb[94].mxu0 %vm158_vm0, %v3213_v58  ;;  %4214 = vmatprep.subr.bf16.mxu1 %v4240_v0  ;;  %v3243_v58 = vld [vmem:[%s6936_s0 + $0x688] sm:$0xff] }
 0x100   :  { %v5287_v3 = vpop.f32.mrb[16].mxu1  ;;  %3841 = vmatprep.mubr.msk.f32.mxu0 %vm158_vm0, %v3216_v61 }
 0x101   :  { %v5293_v10 = vpop.f32.mrb[17].mxu1  ;;  %1817 = vmatmul.mubr.f32.gmra.mrb[122].mxu1 %v3307_v1  ;;  %v3246_v1 = vld [vmem:[%s6936_s0 + $0x6a0] sm:$0xff] }
 0x102   :  { %1821 = vmatprep.mubr.f32.mxu1 %v3311_v2  ;;  %4230 = vmatpush1.bf16.msra.mxu1 %v4411_v42  ;;  %v3322_v2 = vld [vmem:[%s6936_s0 + $0x7e0] sm:$0xff] }
 0x103   :  { %3842 = vmatmul.mubr.msk.f32.gmra.mrb[96].mxu0 %vm158_vm0, %v3219_v7  ;;  %4215 = vmatprep.subr.bf16.mxu1 %v4240_v0  ;;  %v3326_v7 = vld [vmem:[%s6936_s0 + $0x800] sm:$0xff] }
 0x104   :  { %v5307_v22 = vpop.f32.mrb[18].mxu1  ;;  %3844 = vmatprep.mubr.msk.f32.mxu0 %vm158_vm0, %v3222_v14 }
 0x105   :  { %v5313_v24 = vpop.f32.mrb[19].mxu1  ;;  %1822 = vmatmul.mubr.f32.gmra.mrb[124].mxu1 %v3310_v15  ;;  %v3249_v15 = vld [vmem:[%s6936_s0 + $0x6b8] sm:$0xff] }
 0x106   :  { %1826 = vmatprep.mubr.f32.mxu1 %v3314_v18  ;;  %4231 = vmatpush1.bf16.msra.mxu1 %v4431_v47 }
 0x107   :  { %3845 = vmatmul.mubr.msk.f32.gmra.mrb[98].mxu0 %vm158_vm0, %v3225_v23  ;;  %4216 = vmatprep.subr.bf16.mxu1 %v4240_v0  ;;  %v3288_v23 = vld [vmem:[%s6936_s0 + $0x6d0] sm:$0xff] }
 0x108   :  { %v5327_v33 = vpop.f32.mrb[20].mxu1  ;;  %3847 = vmatprep.mubr.msk.f32.mxu0 %vm158_vm0, %v3228_v28 }
 0x109   :  { %v5333_v38 = vpop.f32.mrb[21].mxu1  ;;  %1827 = vmatmul.mubr.f32.gmra.mrb[126].mxu1 %v3313_v30  ;;  %v3325_v30 = vld [vmem:[%s6936_s0 + $0x7f8] sm:$0xff] }
 0x10a   :  { %1831 = vmatprep.mubr.f32.mxu1 %v3317_v32  ;;  %4232 = vmatpush1.bf16.msra.mxu1 %v4451_v52 }
 0x10b   :  { %3848 = vmatmul.mubr.msk.f32.gmra.mrb[100].mxu0 %vm158_vm0, %v3231_v35  ;;  %4217 = vmatprep.subr.bf16.mxu1 %v4240_v0 }
 0x10c   :  { %v5347_v45 = vpop.f32.mrb[22].mxu1  ;;  %3850 = vmatprep.mubr.msk.f32.mxu0 %vm158_vm0, %v3234_v39  ;;  %v3329_v39 = vld [vmem:[%s6936_s0 + $0x818] sm:$0xff] }
 0x10d   :  { %v5353_v48 = vpop.f32.mrb[23].mxu1  ;;  %1832 = vmatmul.mubr.f32.gmra.mrb[128].mxu1 %v3316_v40 }
 0x10e   :  { %1836 = vmatprep.mubr.f32.mxu1 %v3320_v43  ;;  %4233 = vmatpush1.bf16.msra.mxu1 %v4471_v57  ;;  %v3291_v43 = vld [vmem:[%s6936_s0 + $0x6e8] sm:$0xff] }
 0x10f   :  { %3851 = vmatmul.mubr.msk.f32.gmra.mrb[102].mxu0 %vm158_vm0, %v3237_v46  ;;  %4218 = vmatprep.subr.bf16.mxu1 %v4240_v0 }
 0x110   :  { %v5367_v55 = vpop.f32.mrb[24].mxu1  ;;  %3853 = vmatprep.mubr.msk.f32.mxu0 %vm158_vm0, %v3240_v50 }
 0x111   :  { %v5373_v61 = vpop.f32.mrb[25].mxu1  ;;  %1837 = vmatmul.mubr.f32.gmra.mrb[130].mxu1 %v3319_v53  ;;  %v3328_v53 = vld [vmem:[%s6936_s0 + $0x810] sm:$0xff] }
 0x112   :  { %1841 = vmatprep.mubr.f32.mxu1 %v3323_v54  ;;  %4234 = vmatpush1.bf16.msra.mxu1 %v4491_v62 }
 0x113   :  { %3854 = vmatmul.mubr.msk.f32.gmra.mrb[104].mxu0 %vm158_vm0, %v3243_v58  ;;  %4219 = vmatprep.subr.bf16.mxu1 %v4240_v0 }
 0x114   :  { %v5387_v14 = vpop.f32.mrb[26].mxu1  ;;  %3856 = vmatprep.mubr.msk.f32.mxu0 %vm158_vm0, %v3246_v1  ;;  %v3332_v1 = vld [vmem:[%s6936_s0 + $0x830] sm:$0xff] }
 0x115   :  { %v5393_v18 = vpop.f32.mrb[27].mxu1  ;;  %1842 = vmatmul.mubr.f32.gmra.mrb[132].mxu1 %v3322_v2 }
 0x116   :  { %v333_v28 = vpop.f32.mrb[0].mxu0  ;;  %1846 = vmatprep.mubr.f32.mxu1 %v3326_v7  ;;  %4235 = vmatpush1.bf16.msra.mxu1 %v4511_v5 }
 0x117   :  { %v5403_v32 = vadd.f32 %v5135_v63, %v333_v28  ;;  %3857 = vmatmul.mubr.msk.f32.gmra.mrb[106].mxu0 %vm158_vm0, %v3249_v15  ;;  %v335_v35 = vpop.f32.mrb[1].mxu0  ;;  %4220 = vmatprep.subr.bf16.mxu1 %v4240_v0  ;;  %v3294_v63 = vld [vmem:[%s6936_s0 + $0x700] sm:$0xff]  ;;  %v3300_v15 = vld [vmem:[%s6936_s0 + $0x730] sm:$0xff]  ;;  %v3331_v28 = vld [vmem:[%s6936_s0 + $0x828] sm:$0xff] }
 0x118   :  { %v5410_v40 = vpop.f32.mrb[28].mxu1  ;;  %3867 = vmatprep.mubr.msk.f32.mxu0 %vm158_vm0, %v3288_v23  ;;  %v3335_v35 = vld [vmem:[%s6936_s0 + $0x848] sm:$0xff] }
 0x119   :  { %v5416_v46 = vpop.f32.mrb[29].mxu1  ;;  %1847 = vmatmul.mubr.f32.gmra.mrb[134].mxu1 %v3325_v30 }
 0x11a   :  { %v338_v50 = vpop.f32.mrb[2].mxu0  ;;  %1851 = vmatprep.mubr.f32.mxu1 %v3329_v39  ;;  %4236 = vmatpush1.bf16.msra.mxu1 %v4531_v11 }
 0x11b   :  { %v5426_v54 = vadd.f32 %v5129_v60, %v338_v50  ;;  %3868 = vmatmul.mubr.msk.f32.vlgmr.msra.gmra.mrb[108].mxu0 %vm158_vm0, %v3291_v43  ;;  %v340_v58 = vpop.f32.mrb[3].mxu0  ;;  %4221 = vmatprep.subr.bf16.mxu1 %v4240_v0  ;;  %v3297_v60 = vld [vmem:[%s6936_s0 + $0x718] sm:$0xff]  ;;  %v3303_v43 = vld [vmem:[%s6936_s0 + $0x748] sm:$0xff] }
 0x11c   :  { %v5433_v2 = vpop.f32.mrb[30].mxu1  ;;  %3870 = vmatprep.mubr.msk.f32.mxu0 %vm158_vm0, %v3294_v63  ;;  %4153 = vmatpush1.bf16.msra.mxu0 %v4271_v4  ;;  %v3306_v63 = vld [vmem:[%s6936_s0 + $0x760] sm:$0xff] }
 0x11d   :  { %v5440_v7 = vpop.f32.mrb[31].mxu1  ;;  %1852 = vmatmul.mubr.f32.gmra.mrb[136].mxu1 %v3328_v53  ;;  %4154 = vmatprep.subr.bf16.mxu0 %v4240_v0  ;;  %v3334_v53 = vld [vmem:[%s6936_s0 + $0x840] sm:$0xff] }
 0x11e   :  { %v343_v23 = vpop.f32.mrb[4].mxu0  ;;  %1856 = vmatprep.mubr.f32.mxu1 %v3332_v1  ;;  %4237 = vmatpush1.bf16.msra.mxu1 %v4551_v19  ;;  %v3338_v1 = vld [vmem:[%s6936_s0 + $0x860] sm:$0xff] }
 0x11f   :  { %v5451_v4 = vadd.f32 %v5153_v9, %v343_v23  ;;  %3871 = vmatmul.mubr.msk.f32.gmra.mrb[110].mxu0 %vm158_vm0, %v3297_v60  ;;  %v345_v30 = vpop.f32.mrb[5].mxu0  ;;  %4222 = vmatprep.subr.bf16.mxu1 %v4240_v0  ;;  %v3312_v23 = vld [vmem:[%s6936_s0 + $0x790] sm:$0xff] }
 0x120   :  { %v5458_v39 = vpop.f32.mrb[32].mxu1  ;;  %3873 = vmatprep.mubr.msk.f32.mxu0 %vm158_vm0, %v3300_v15  ;;  %4156 = vmatpush1.bf16.msra.mxu0 %v4294_v12  ;;  %v3309_v15 = vld [vmem:[%s6936_s0 + $0x778] sm:$0xff] }
 0x121   :  { %v5465_v9 = vpop.f32.mrb[33].mxu1  ;;  %1857 = vmatmul.mubr.f32.gmra.mrb[138].mxu1 %v3331_v28  ;;  %4157 = vmatprep.subr.bf16.mxu0 %v4240_v0  ;;  %v3337_v30 = vld [vmem:[%s6936_s0 + $0x858] sm:$0xff] }
 0x122   :  { %v348_v50 = vpop.f32.mrb[6].mxu0  ;;  %1861 = vmatprep.mubr.f32.mxu1 %v3335_v35  ;;  %4238 = vmatpush1.bf16.msra.mxu1 %v4571_v25 }
 0x123   :  { %v5476_v58 = vadd.f32 %v5147_v6, %v348_v50  ;;  %3874 = vmatmul.mubr.msk.f32.gmra.mrb[112].mxu0 %vm158_vm0, %v3303_v43  ;;  %v350_v12 = vpop.f32.mrb[7].mxu0  ;;  %4200 = vmatprep.subr.bf16.mxu1 %v4282_v8  ;;  %v3341_v43 = vld [vmem:[%s6936_s0 + $0x878] sm:$0xff]  ;;  %v3315_v50 = vld [vmem:[%s6936_s0 + $0x7a8] sm:$0xff] }
 0x124   :  { %v5483_v60 = vpop.f32.mrb[34].mxu1  ;;  %3876 = vmatprep.mubr.msk.f32.mxu0 %vm158_vm0, %v3306_v63  ;;  %4159 = vmatpush1.bf16.msra.mxu0 %v4310_v16 }
 0x125   :  { %v5490_v6 = vpop.f32.mrb[35].mxu1  ;;  %1862 = vmatmul.mubr.f32.gmra.mrb[140].mxu1 %v3334_v53  ;;  %4160 = vmatprep.subr.bf16.mxu0 %v4240_v0 }
 0x126   :  { %v353_v28 = vpop.f32.mrb[8].mxu0  ;;  %1866 = vmatprep.mubr.f32.mxu1 %v3338_v1  ;;  %v3340_v1 = vld [vmem:[%s6936_s0 + $0x870] sm:$0xff] }
 0x127   :  { %v5500_v35 = vadd.f32 %v5173_v20, %v353_v28  ;;  %3877 = vmatmul.mubr.msk.f32.gmra.mrb[114].mxu0 %vm158_vm0, %v3309_v15  ;;  %v355_v16 = vpop.f32.mrb[9].mxu0  ;;  %v3318_v20 = vld [vmem:[%s6936_s0 + $0x7c0] sm:$0xff] }
 0x128   :  { %v5506_v63 = vpop.f32.mrb[36].mxu1  ;;  %3879 = vmatprep.mubr.msk.f32.mxu0 %vm158_vm0, %v3312_v23  ;;  %4162 = vmatpush1.bf16.msra.mxu0 %v4328_v21  ;;  %v3344_v23 = vld [vmem:[%s6936_s0 + $0x890] sm:$0xff] }
 0x129   :  { %v1042_v53 = vpop.f32.mrb[37].mxu1  ;;  %1867 = vmatmul.mubr.f32.gmra.mrb[142].mxu1 %v3337_v30  ;;  %4163 = vmatprep.subr.bf16.mxu0 %v4240_v0  ;;  %v3321_v30 = vld [vmem:[%s6936_s0 + $0x7d8] sm:$0xff] }
 0x12a   :  { %v358_v12 = vpop.f32.mrb[10].mxu0  ;;  %1871 = vmatprep.mubr.f32.mxu1 %v3341_v43 }
 0x12b   :  { %v5521_v15 = vadd.f32 %v5167_v17, %v358_v12  ;;  %3880 = vmatmul.mubr.msk.f32.gmra.mrb[116].mxu0 %vm158_vm0, %v3315_v50  ;;  %v360_v21 = vpop.f32.mrb[11].mxu0  ;;  %v3324_v17 = vld [vmem:[%s6936_s0 + $0x7f0] sm:$0xff]  ;;  %v3343_v50 = vld [vmem:[%s6936_s0 + $0x888] sm:$0xff] }
 0x12c   :  { %v5527_v28 = vpop.f32.mrb[38].mxu1  ;;  %3882 = vmatprep.mubr.msk.f32.mxu0 %vm158_vm0, %v3318_v20  ;;  %4165 = vmatpush1.bf16.msra.mxu0 %v4348_v26  ;;  %v3347_v20 = vld [vmem:[%s6936_s0 + $0x8a8] sm:$0xff] }
 0x12d   :  { %v1047_v16 = vpop.f32.mrb[39].mxu1  ;;  %1872 = vmatmul.mubr.f32.gmra.mrb[144].mxu1 %v3340_v1  ;;  %4166 = vmatprep.subr.bf16.mxu0 %v4240_v0  ;;  %v3327_v1 = vld [vmem:[%s6936_s0 + $0x808] sm:$0xff] }
 0x12e   :  { %v363_v43 = vpop.f32.mrb[12].mxu0  ;;  %1876 = vmatprep.mubr.f32.mxu1 %v3344_v23 }
 0x12f   :  { %v5542_v53 = vadd.f32 %v5193_v29, %v363_v43  ;;  %3883 = vmatmul.mubr.msk.f32.gmra.mrb[118].mxu0 %vm158_vm0, %v3321_v30  ;;  %v365_v26 = vpop.f32.mrb[13].mxu0  ;;  %v3330_v29 = vld [vmem:[%s6936_s0 + $0x820] sm:$0xff] }
 0x130   :  { %v5548_v12 = vpop.f32.mrb[40].mxu1  ;;  %3885 = vmatprep.mubr.msk.f32.mxu0 %vm158_vm0, %v3324_v17  ;;  %4168 = vmatpush1.bf16.msra.mxu0 %v4368_v31  ;;  %v3346_v30 = vld [vmem:[%s6936_s0 + $0x8a0] sm:$0xff] }
 0x131   :  { %v1052_v21 = vpop.f32.mrb[41].mxu1  ;;  %1877 = vmatmul.mubr.f32.gmra.mrb[146].mxu1 %v3343_v50  ;;  %4169 = vmatprep.subr.bf16.mxu0 %v4240_v0  ;;  %v3350_v17 = vld [vmem:[%s6936_s0 + $0x8c0] sm:$0xff]  ;;  %v3333_v50 = vld [vmem:[%s6936_s0 + $0x838] sm:$0xff] }
 0x132   :  { %v368_v23 = vpop.f32.mrb[14].mxu0  ;;  %1881 = vmatprep.mubr.f32.mxu1 %v3347_v20 }
 0x133   :  { %v5563_v16 = vadd.f32 %v5187_v27, %v368_v23  ;;  %3886 = vmatmul.mubr.msk.f32.gmra.mrb[120].mxu0 %vm158_vm0, %v3327_v1  ;;  %v370_v31 = vpop.f32.mrb[15].mxu0  ;;  %v3336_v27 = vld [vmem:[%s6936_s0 + $0x850] sm:$0xff]  ;;  %v3349_v1 = vld [vmem:[%s6936_s0 + $0x8b8] sm:$0xff] }
 0x134   :  { %v5569_v43 = vpop.f32.mrb[42].mxu1  ;;  %3888 = vmatprep.mubr.msk.f32.mxu0 %vm158_vm0, %v3330_v29  ;;  %4171 = vmatpush1.bf16.msra.mxu0 %v4391_v37  ;;  %v3353_v29 = vld [vmem:[%s6936_s0 + $0x8d8] sm:$0xff] }
 0x135   :  { %v1057_v26 = vpop.f32.mrb[43].mxu1  ;;  %1882 = vmatmul.mubr.f32.gmra.mrb[148].mxu1 %v3346_v30  ;;  %4172 = vmatprep.subr.bf16.mxu0 %v4240_v0  ;;  %v3339_v30 = vld [vmem:[%s6936_s0 + $0x868] sm:$0xff] }
 0x136   :  { %v373_v20 = vpop.f32.mrb[16].mxu0  ;;  %1886 = vmatprep.mubr.f32.mxu1 %v3350_v17 }
 0x137   :  { %v5584_v21 = vadd.f32 %v5213_v36, %v373_v20  ;;  %3889 = vmatmul.mubr.msk.f32.gmra.mrb[122].mxu0 %vm158_vm0, %v3333_v50  ;;  %v375_v37 = vpop.f32.mrb[17].mxu0  ;;  %v3342_v36 = vld [vmem:[%s6936_s0 + $0x880] sm:$0xff]  ;;  %v3352_v50 = vld [vmem:[%s6936_s0 + $0x8d0] sm:$0xff] }
 0x138   :  { %v5590_v23 = vpop.f32.mrb[44].mxu1  ;;  %3891 = vmatprep.mubr.msk.f32.mxu0 %vm158_vm0, %v3336_v27  ;;  %4174 = vmatpush1.bf16.msra.mxu0 %v4411_v42  ;;  %v3356_v27 = vld [vmem:[%s6936_s0 + $0x8f0] sm:$0xff] }
 0x139   :  { %v1062_v31 = vpop.f32.mrb[45].mxu1  ;;  %1887 = vmatmul.mubr.f32.gmra.mrb[150].mxu1 %v3349_v1  ;;  %4175 = vmatprep.subr.bf16.mxu0 %v4240_v0  ;;  %v3345_v1 = vld [vmem:[%s6936_s0 + $0x898] sm:$0xff] }
 0x13a   :  { %v378_v17 = vpop.f32.mrb[18].mxu0  ;;  %1891 = vmatprep.mubr.f32.mxu1 %v3353_v29 }
 0x13b   :  { %v5605_v26 = vadd.f32 %v5207_v34, %v378_v17  ;;  %3892 = vmatmul.mubr.msk.f32.gmra.mrb[124].mxu0 %vm158_vm0, %v3339_v30  ;;  %v380_v42 = vpop.f32.mrb[19].mxu0  ;;  %v3348_v34 = vld [vmem:[%s6936_s0 + $0x8b0] sm:$0xff]  ;;  %v3355_v30 = vld [vmem:[%s6936_s0 + $0x8e8] sm:$0xff] }
 0x13c   :  { %v5611_v20 = vpop.f32.mrb[46].mxu1  ;;  %3894 = vmatprep.mubr.msk.f32.mxu0 %vm158_vm0, %v3342_v36  ;;  %4177 = vmatpush1.bf16.msra.mxu0 %v4431_v47  ;;  %v3359_v36 = vld [vmem:[%s6936_s0 + $0x908] sm:$0xff] }
 0x13d   :  { %v1067_v37 = vpop.f32.mrb[47].mxu1  ;;  %1892 = vmatmul.mubr.f32.gmra.mrb[152].mxu1 %v3352_v50  ;;  %4178 = vmatprep.subr.bf16.mxu0 %v4240_v0  ;;  %v3351_v50 = vld [vmem:[%s6936_s0 + $0x8c8] sm:$0xff] }
 0x13e   :  { %v383_v29 = vpop.f32.mrb[20].mxu0  ;;  %1896 = vmatprep.mubr.f32.mxu1 %v3356_v27 }
 0x13f   :  { %v5626_v31 = vadd.f32 %v5233_v44, %v383_v29  ;;  %3895 = vmatmul.mubr.msk.f32.gmra.mrb[126].mxu0 %vm158_vm0, %v3345_v1  ;;  %v385_v47 = vpop.f32.mrb[21].mxu0  ;;  %v3354_v44 = vld [vmem:[%s6936_s0 + $0x8e0] sm:$0xff] }
 0x140   :  { %v5632_v17 = vpop.f32.mrb[48].mxu1  ;;  %3897 = vmatprep.mubr.msk.f32.mxu0 %vm158_vm0, %v3348_v34  ;;  %4180 = vmatpush1.bf16.msra.mxu0 %v4451_v52  ;;  %v3358_v1 = vld [vmem:[%s6936_s0 + $0x900] sm:$0xff] }
 0x141   :  { %v1072_v42 = vpop.f32.mrb[49].mxu1  ;;  %1897 = vmatmul.mubr.f32.gmra.mrb[154].mxu1 %v3355_v30  ;;  %4181 = vmatprep.subr.bf16.mxu0 %v4240_v0  ;;  %v3362_v34 = vld [vmem:[%s6936_s0 + $0x920] sm:$0xff]  ;;  %v3357_v30 = vld [vmem:[%s6936_s0 + $0x8f8] sm:$0xff] }
 0x142   :  { %v388_v27 = vpop.f32.mrb[22].mxu0  ;;  %1901 = vmatprep.mubr.f32.mxu1 %v3359_v36 }
 0x143   :  { %v5647_v37 = vadd.f32 %v5227_v41, %v388_v27  ;;  %3898 = vmatmul.mubr.msk.f32.gmra.mrb[128].mxu0 %vm158_vm0, %v3351_v50  ;;  %v390_v52 = vpop.f32.mrb[23].mxu0  ;;  %v3360_v41 = vld [vmem:[%s6936_s0 + $0x910] sm:$0xff]  ;;  %v3361_v50 = vld [vmem:[%s6936_s0 + $0x918] sm:$0xff] }
 0x144   :  { %v5653_v29 = vpop.f32.mrb[50].mxu1  ;;  %3900 = vmatprep.mubr.msk.f32.mxu0 %vm158_vm0, %v3354_v44  ;;  %4183 = vmatpush1.bf16.msra.mxu0 %v4471_v57  ;;  %v3365_v44 = vld [vmem:[%s6936_s0 + $0x938] sm:$0xff] }
 0x145   :  { %v1077_v47 = vpop.f32.mrb[51].mxu1  ;;  %1902 = vmatmul.mubr.f32.gmra.mrb[156].mxu1 %v3358_v1  ;;  %4184 = vmatprep.subr.bf16.mxu0 %v4240_v0  ;;  %v3363_v1 = vld [vmem:[%s6936_s0 + $0x928] sm:$0xff] }
 0x146   :  { %v393_v36 = vpop.f32.mrb[24].mxu0  ;;  %1906 = vmatprep.mubr.f32.mxu1 %v3362_v34 }
 0x147   :  { %v5668_v42 = vadd.f32 %v5253_v51, %v393_v36  ;;  %3901 = vmatmul.mubr.msk.f32.gmra.mrb[130].mxu0 %vm158_vm0, %v3357_v30  ;;  %v395_v57 = vpop.f32.mrb[25].mxu0  ;;  %v3366_v51 = vld [vmem:[%s6936_s0 + $0x940] sm:$0xff]  ;;  %v3364_v30 = vld [vmem:[%s6936_s0 + $0x930] sm:$0xff] }
 0x148   :  { %v5674_v27 = vpop.f32.mrb[52].mxu1  ;;  %3903 = vmatprep.mubr.msk.f32.mxu0 %vm158_vm0, %v3360_v41  ;;  %4186 = vmatpush1.bf16.msra.mxu0 %v4491_v62  ;;  %v3368_v41 = vld [vmem:[%s6936_s0 + $0x950] sm:$0xff] }
 0x149   :  { %v1082_v52 = vpop.f32.mrb[53].mxu1  ;;  %1907 = vmatmul.mubr.f32.gmra.mrb[158].mxu1 %v3361_v50  ;;  %4187 = vmatprep.subr.bf16.mxu0 %v4240_v0  ;;  %v3369_v50 = vld [vmem:[%s6936_s0 + $0x958] sm:$0xff] }
 0x14a   :  { %v398_v34 = vpop.f32.mrb[26].mxu0  ;;  %1911 = vmatprep.mubr.f32.mxu1 %v3365_v44 }
 0x14b   :  { %v5689_v47 = vadd.f32 %v5247_v49, %v398_v34  ;;  %3904 = vmatmul.mubr.msk.f32.gmra.mrb[132].mxu0 %vm158_vm0, %v3363_v1  ;;  %v400_v62 = vpop.f32.mrb[27].mxu0  ;;  %v3372_v49 = vld [vmem:[%s6936_s0 + $0x970] sm:$0xff]  ;;  %v3367_v1 = vld [vmem:[%s6936_s0 + $0x948] sm:$0xff] }
 0x14c   :  { %v5695_v36 = vpop.f32.mrb[54].mxu1  ;;  %3906 = vmatprep.mubr.msk.f32.mxu0 %vm158_vm0, %v3366_v51  ;;  %4189 = vmatpush1.bf16.msra.mxu0 %v4511_v5  ;;  %v3371_v51 = vld [vmem:[%s6936_s0 + $0x968] sm:$0xff] }
 0x14d   :  { %v1087_v57 = vpop.f32.mrb[55].mxu1  ;;  %1912 = vmatmul.mubr.f32.gmra.mrb[160].mxu1 %v3364_v30  ;;  %4190 = vmatprep.subr.bf16.mxu0 %v4240_v0  ;;  %v3375_v30 = vld [vmem:[%s6936_s0 + $0x988] sm:$0xff] }
 0x14e   :  { %v403_v44 = vpop.f32.mrb[28].mxu0  ;;  %1916 = vmatprep.mubr.f32.mxu1 %v3368_v41 }
 0x14f   :  { %v5710_v52 = vadd.f32 %v5273_v59, %v403_v44  ;;  %3907 = vmatmul.mubr.msk.f32.gmra.mrb[134].mxu0 %vm158_vm0, %v3369_v50  ;;  %v405_v5 = vpop.f32.mrb[29].mxu0  ;;  %v3378_v59 = vld [vmem:[%s6936_s0 + $0x9a0] sm:$0xff] }
 0x150   :  { %v5716_v34 = vpop.f32.mrb[56].mxu1  ;;  %3909 = vmatprep.mubr.msk.f32.mxu0 %vm158_vm0, %v3372_v49  ;;  %4192 = vmatpush1.bf16.msra.mxu0 %v4531_v11  ;;  %v3370_v50 = vld [vmem:[%s6936_s0 + $0x960] sm:$0xff] }
 0x151   :  { %v1092_v62 = vpop.f32.mrb[57].mxu1  ;;  %1917 = vmatmul.mubr.f32.gmra.mrb[162].mxu1 %v3367_v1  ;;  %4193 = vmatprep.subr.bf16.mxu0 %v4240_v0  ;;  %v3374_v49 = vld [vmem:[%s6936_s0 + $0x980] sm:$0xff]  ;;  %v3381_v1 = vld [vmem:[%s6936_s0 + $0x9b8] sm:$0xff] }
 0x152   :  { %v408_v41 = vpop.f32.mrb[30].mxu0  ;;  %1921 = vmatprep.mubr.f32.mxu1 %v3371_v51 }
 0x153   :  { %v5731_v57 = vadd.f32 %v5267_v56, %v408_v41  ;;  %3910 = vmatmul.mubr.msk.f32.gmra.mrb[136].mxu0 %vm158_vm0, %v3375_v30  ;;  %v410_v11 = vpop.f32.mrb[31].mxu0  ;;  %v3384_v56 = vld [vmem:[%s6936_s0 + $0x9d0] sm:$0xff]  ;;  %v3373_v30 = vld [vmem:[%s6936_s0 + $0x978] sm:$0xff] }
 0x154   :  { %v5737_v44 = vpop.f32.mrb[58].mxu1  ;;  %3912 = vmatprep.mubr.msk.f32.mxu0 %vm158_vm0, %v3378_v59  ;;  %4195 = vmatpush1.bf16.msra.mxu0 %v4551_v19  ;;  %v3377_v59 = vld [vmem:[%s6936_s0 + $0x998] sm:$0xff] }
 0x155   :  { %v1097_v5 = vpop.f32.mrb[59].mxu1  ;;  %1922 = vmatmul.mubr.f32.gmra.mrb[164].mxu1 %v3370_v50  ;;  %4196 = vmatprep.subr.bf16.mxu0 %v4240_v0  ;;  %v3387_v0 = vld [vmem:[%s6936_s0 + $0x9e8] sm:$0xff] }
 0x156   :  { %v413_v51 = vpop.f32.mrb[32].mxu0  ;;  %1926 = vmatprep.mubr.f32.mxu1 %v3374_v49  ;;  %v3376_v49 = vld [vmem:[%s6936_s0 + $0x990] sm:$0xff] }
 0x157   :  { %v5752_v62 = vadd.f32 %v5293_v10, %v413_v51  ;;  %3913 = vmatmul.mubr.msk.f32.gmra.mrb[138].mxu0 %vm158_vm0, %v3381_v1  ;;  %v415_v19 = vpop.f32.mrb[33].mxu0  ;;  %v3390_v10 = vld [vmem:[%s6936_s0 + $0xa00] sm:$0xff]  ;;  %v3393_v51 = vld [vmem:[%s6936_s0 + $0xa18] sm:$0xff] }
 0x158   :  { %v5758_v41 = vpop.f32.mrb[60].mxu1  ;;  %3915 = vmatprep.mubr.msk.f32.mxu0 %vm158_vm0, %v3384_v56  ;;  %4198 = vmatpush1.bf16.msra.mxu0 %v4571_v25  ;;  %v3380_v25 = vld [vmem:[%s6936_s0 + $0x9b0] sm:$0xff] }
 0x159   :  { %v1102_v50 = vpop.f32.mrb[61].mxu1  ;;  %1927 = vmatmul.mubr.f32.gmra.mrb[166].mxu1 %v3373_v30 }
 0x15a   :  { %v418_v11 = vpop.f32.mrb[34].mxu0  ;;  %1931 = vmatprep.mubr.f32.mxu1 %v3377_v59  ;;  %v3379_v59 = vld [vmem:[%s6936_s0 + $0x9a8] sm:$0xff] }
 0x15b   :  { %v5772_v1 = vadd.f32 %v5287_v3, %v418_v11  ;;  %3916 = vmatmul.mubr.msk.f32.gmra.mrb[140].mxu0 %vm158_vm0, %v3387_v0  ;;  %v420_v5 = vpop.f32.mrb[35].mxu0  ;;  %v3431_v3 = vld [vmem:[%s6936_s0 + $0xa28] sm:$0xff] }
 0x15c   :  { %v5778_v56 = vpop.f32.mrb[62].mxu1  ;;  %3918 = vmatprep.mubr.msk.f32.mxu0 %vm158_vm0, %v3390_v10  ;;  %v3383_v10 = vld [vmem:[%s6936_s0 + $0x9c8] sm:$0xff] }
 0x15d   :  { %v1107_v30 = vpop.f32.mrb[63].mxu1  ;;  %1932 = vmatmul.mubr.f32.gmra.mrb[168].mxu1 %v3376_v49  ;;  %v3430_v49 = vld [vmem:[%s6936_s0 + $0xa20] sm:$0xff] }
 0x15e   :  { %v423_v19 = vpop.f32.mrb[36].mxu0  ;;  %1936 = vmatprep.mubr.f32.mxu1 %v3380_v25 }
 0x15f   :  { %v5791_v0 = vadd.f32 %v5313_v24, %v423_v19  ;;  %3919 = vmatmul.mubr.msk.f32.gmra.mrb[142].mxu0 %vm158_vm0, %v3393_v51  ;;  %v425_v50 = vpop.f32.mrb[37].mxu0  ;;  %v3434_v24 = vld [vmem:[%s6936_s0 + $0xa40] sm:$0xff] }
 0x160   :  { %v5797_v11 = vpop.f32.mrb[64].mxu1  ;;  %2524 = vmatprep.mubr.f32.mxu0 %v3431_v3  ;;  %v3382_v51 = vld [vmem:[%s6936_s0 + $0x9c0] sm:$0xff]  ;;  %v3433_v50 = vld [vmem:[%s6936_s0 + $0xa38] sm:$0xff] }
 0x161   :  { %6979 = vst [vmem:[#allocation2_spill] sm:$0xff] %v5791_v0  ;;  %v1112_v5 = vpop.f32.mrb[65].mxu1  ;;  %1937 = vmatmul.mubr.f32.gmra.mrb[170].mxu1 %v3379_v59  ;;  %v3386_v19 = vld [vmem:[%s6936_s0 + $0x9e0] sm:$0xff] }
 0x162   :  { %v428_v25 = vpop.f32.mrb[38].mxu0  ;;  %1941 = vmatprep.mubr.f32.mxu1 %v3383_v10 }
 0x163   :  { %v5809_v30 = vadd.f32 %v5307_v22, %v428_v25  ;;  %2525 = vmatmul.mubr.f32.vlgmr.msra.gmra.mrb[144].mxu0 %v3430_v49  ;;  %v430_v3 = vpop.f32.mrb[39].mxu0  ;;  %v3437_v22 = vld [vmem:[%s6936_s0 + $0xa58] sm:$0xff] }
 0x164   :  { %v5814_v59 = vpop.f32.mrb[66].mxu1  ;;  %2529 = vmatprep.mubr.f32.mxu0 %v3434_v24  ;;  %v3385_v49 = vld [vmem:[%s6936_s0 + $0x9d8] sm:$0xff] }
 0x165   :  { %v1117_v10 = vpop.f32.mrb[67].mxu1  ;;  %1942 = vmatmul.mubr.f32.gmra.mrb[172].mxu1 %v3382_v51  ;;  %v3389_v3 = vld [vmem:[%s6936_s0 + $0x9f8] sm:$0xff] }
 0x166   :  { %v433_v5 = vpop.f32.mrb[40].mxu0  ;;  %1946 = vmatprep.mubr.f32.mxu1 %v3386_v19  ;;  %v3436_v19 = vld [vmem:[%s6936_s0 + $0xa50] sm:$0xff] }
 0x167   :  { %v5826_v25 = vadd.f32 %v5333_v38, %v433_v5  ;;  %2530 = vmatmul.mubr.f32.gmra.mrb[146].mxu0 %v3433_v50  ;;  %v435_v24 = vpop.f32.mrb[41].mxu0  ;;  %v3440_v38 = vld [vmem:[%s6936_s0 + $0xa70] sm:$0xff] }
 0x168   :  { %v5831_v51 = vpop.f32.mrb[68].mxu1  ;;  %2534 = vmatprep.mubr.f32.mxu0 %v3437_v22  ;;  %v3388_v50 = vld [vmem:[%s6936_s0 + $0x9f0] sm:$0xff] }
 0x169   :  { %6980 = vst [vmem:[#allocation3_spill] sm:$0xff] %v5826_v25  ;;  %v1122_v10 = vpop.f32.mrb[69].mxu1  ;;  %1947 = vmatmul.mubr.f32.gmra.mrb[174].mxu1 %v3385_v49 }
 0x16a   :  { %v438_v5 = vpop.f32.mrb[42].mxu0  ;;  %1951 = vmatprep.mubr.f32.mxu1 %v3389_v3  ;;  %v3392_v10 = vld [vmem:[%s6936_s0 + $0xa10] sm:$0xff]  ;;  %v3439_v3 = vld [vmem:[%s6936_s0 + $0xa68] sm:$0xff] }
 0x16b   :  { %v5843_v24 = vadd.f32 %v5327_v33, %v438_v5  ;;  %2535 = vmatmul.mubr.f32.gmra.mrb[148].mxu0 %v3436_v19  ;;  %v440_v22 = vpop.f32.mrb[43].mxu0  ;;  %v3443_v33 = vld [vmem:[%s6936_s0 + $0xa88] sm:$0xff] }
 0x16c   :  { %v5848_v49 = vpop.f32.mrb[70].mxu1  ;;  %2539 = vmatprep.mubr.f32.mxu0 %v3440_v38  ;;  %v3391_v19 = vld [vmem:[%s6936_s0 + $0xa08] sm:$0xff] }
 0x16d   :  { %6981 = vst [vmem:[#allocation4_spill] sm:$0xff] %v5843_v24  ;;  %v1127_v25 = vpop.f32.mrb[71].mxu1  ;;  %1952 = vmatmul.mubr.f32.gmra.mrb[176].mxu1 %v3388_v50 }
 0x16e   :  { %v443_v5 = vpop.f32.mrb[44].mxu0  ;;  %1956 = vmatprep.mubr.f32.mxu1 %v3392_v10  ;;  %v3518_v25 = vld [vmem:[%s6936_s0 + $0xce0] sm:$0xff] }
 0x16f   :  { %v5860_v22 = vadd.f32 %v5353_v48, %v443_v5  ;;  %2540 = vmatmul.mubr.f32.gmra.mrb[150].mxu0 %v3439_v3  ;;  %v445_v38 = vpop.f32.mrb[45].mxu0  ;;  %v3442_v10 = vld [vmem:[%s6936_s0 + $0xa80] sm:$0xff]  ;;  %v3517_v3 = vld [vmem:[%s6936_s0 + $0xcd8] sm:$0xff] }
 0x170   :  { %v5865_v50 = vpop.f32.mrb[72].mxu1  ;;  %2544 = vmatprep.mubr.f32.mxu0 %v3443_v33  ;;  %v3446_v48 = vld [vmem:[%s6936_s0 + $0xaa0] sm:$0xff] }
 0x171   :  { %6982 = vst [vmem:[#allocation5_spill] sm:$0xff] %v5860_v22  ;;  %v1132_v24 = vpop.f32.mrb[73].mxu1  ;;  %1957 = vmatmul.mubr.f32.gmra.mrb[178].mxu1 %v3391_v19 }
 0x172   :  { %v448_v5 = vpop.f32.mrb[46].mxu0  ;;  %2669 = vmatprep.mubr.f32.mxu1 %v3518_v25  ;;  %v3521_v24 = vld [vmem:[%s6936_s0 + $0xcf8] sm:$0xff] }
 0x173   :  { %v5877_v38 = vadd.f32 %v5347_v45, %v448_v5  ;;  %2545 = vmatmul.mubr.f32.gmra.mrb[152].mxu0 %v3442_v10  ;;  %v450_v33 = vpop.f32.mrb[47].mxu0  ;;  %v3445_v25 = vld [vmem:[%s6936_s0 + $0xa98] sm:$0xff]  ;;  %v3520_v5 = vld [vmem:[%s6936_s0 + $0xcf0] sm:$0xff] }
 0x174   :  { %v5882_v19 = vpop.f32.mrb[74].mxu1  ;;  %2549 = vmatprep.mubr.f32.mxu0 %v3446_v48  ;;  %v3449_v45 = vld [vmem:[%s6936_s0 + $0xab8] sm:$0xff] }
 0x175   :  { %v1137_v22 = vpop.f32.mrb[75].mxu1  ;;  %2670 = vmatmul.mubr.f32.vlgmr.msra.gmra.mrb[180].mxu1 %v3517_v3 }
 0x176   :  { %4202 = vmatpush3.bf16.msra.mxu1 %v4282_v8  ;;  %v453_v10 = vpop.f32.mrb[48].mxu0  ;;  %2674 = vmatprep.mubr.f32.mxu1 %v3521_v24  ;;  %v3524_v22 = vld [vmem:[%s6936_s0 + $0xd10] sm:$0xff] }
 0x177   :  { %v5895_v48 = vadd.f32 %v5373_v61, %v453_v10  ;;  %2550 = vmatmul.mubr.f32.gmra.mrb[154].mxu0 %v3445_v25  ;;  %v455_v33 = vpop.f32.mrb[49].mxu0  ;;  %4204 = vmatprep.subr.bf16.mxu1 %v4296_v13  ;;  %v3448_v8 = vld [vmem:[%s6936_s0 + $0xab0] sm:$0xff]  ;;  %v3523_v10 = vld [vmem:[%s6936_s0 + $0xd08] sm:$0xff] }
 0x178   :  { %v5901_v3 = vpop.f32.mrb[76].mxu1  ;;  %2554 = vmatprep.mubr.f32.mxu0 %v3449_v45  ;;  %v3452_v61 = vld [vmem:[%s6936_s0 + $0xad0] sm:$0xff] }
 0x179   :  { %6983 = vst [vmem:[#allocation6_spill] sm:$0xff] %v5895_v48  ;;  %v1142_v24 = vpop.f32.mrb[77].mxu1  ;;  %2675 = vmatmul.mubr.f32.gmra.mrb[182].mxu1 %v3520_v5  ;;  %v3527_v5 = vld [vmem:[%s6936_s0 + $0xd28] sm:$0xff] }
 0x17a   :  { %v458_v25 = vpop.f32.mrb[50].mxu0  ;;  %2679 = vmatprep.mubr.f32.mxu1 %v3524_v22  ;;  %4206 = vmatpush3.bf16.msra.mxu1 %v4296_v13  ;;  %v3451_v22 = vld [vmem:[%s6936_s0 + $0xac8] sm:$0xff] }
 0x17b   :  { %v5914_v45 = vadd.f32 %v5367_v55, %v458_v25  ;;  %2555 = vmatmul.mubr.f32.gmra.mrb[156].mxu0 %v3448_v8  ;;  %v460_v33 = vpop.f32.mrb[51].mxu0  ;;  %v3455_v13 = vld [vmem:[%s6936_s0 + $0xae8] sm:$0xff]  ;;  %v3526_v8 = vld [vmem:[%s6936_s0 + $0xd20] sm:$0xff] }
 0x17c   :  { %v5919_v24 = vpop.f32.mrb[78].mxu1  ;;  %2559 = vmatprep.mubr.f32.mxu0 %v3452_v61  ;;  %v3454_v33 = vld [vmem:[%s6936_s0 + $0xae0] sm:$0xff] }
 0x17d   :  { %v1147_v48 = vpop.f32.mrb[79].mxu1  ;;  %2680 = vmatmul.mubr.f32.gmra.mrb[184].mxu1 %v3523_v10 }
 0x17e   :  { %v463_v55 = vpop.f32.mrb[52].mxu0  ;;  %2684 = vmatprep.mubr.f32.mxu1 %v3527_v5  ;;  %v3530_v48 = vld [vmem:[%s6936_s0 + $0xd40] sm:$0xff] }
 0x17f   :  { %v5931_v25 = vadd.f32 %v5393_v18, %v463_v55  ;;  %2560 = vmatmul.mubr.f32.gmra.mrb[158].mxu0 %v3451_v22  ;;  %v465_v61 = vpop.f32.mrb[53].mxu0  ;;  %v3458_v18 = vld [vmem:[%s6936_s0 + $0xb00] sm:$0xff]  ;;  %v3529_v22 = vld [vmem:[%s6936_s0 + $0xd38] sm:$0xff] }
 0x180   :  { %v5936_v10 = vpop.f32.mrb[80].mxu1  ;;  %2564 = vmatprep.mubr.f32.mxu0 %v3455_v13 }
 0x181   :  { %6984 = vst [vmem:[#allocation7_spill] sm:$0xff] %v5931_v25  ;;  %v1152_v5 = vpop.f32.mrb[81].mxu1  ;;  %2685 = vmatmul.mubr.f32.gmra.mrb[186].mxu1 %v3526_v8 }
 0x182   :  { %v468_v55 = vpop.f32.mrb[54].mxu0  ;;  %2689 = vmatprep.mubr.f32.mxu1 %v3530_v48  ;;  %v3533_v5 = vld [vmem:[%s6936_s0 + $0xd58] sm:$0xff] }
 0x183   :  { %v5948_v61 = vadd.f32 %v5387_v14, %v468_v55  ;;  %2565 = vmatmul.mubr.f32.gmra.mrb[160].mxu0 %v3454_v33  ;;  %v470_v13 = vpop.f32.mrb[55].mxu0  ;;  %v3457_v48 = vld [vmem:[%s6936_s0 + $0xaf8] sm:$0xff]  ;;  %v3532_v33 = vld [vmem:[%s6936_s0 + $0xd50] sm:$0xff] }
 0x184   :  { %v5953_v8 = vpop.f32.mrb[82].mxu1  ;;  %2569 = vmatprep.mubr.f32.mxu0 %v3458_v18  ;;  %v3461_v14 = vld [vmem:[%s6936_s0 + $0xb18] sm:$0xff] }
 0x185   :  { %6985 = vst [vmem:[#allocation8_spill] sm:$0xff] %v5948_v61  ;;  %v1157_v25 = vpop.f32.mrb[83].mxu1  ;;  %2690 = vmatmul.mubr.f32.gmra.mrb[188].mxu1 %v3529_v22 }
 0x186   :  { %v473_v55 = vpop.f32.mrb[56].mxu0  ;;  %2694 = vmatprep.mubr.f32.mxu1 %v3533_v5  ;;  %v3536_v25 = vld [vmem:[%s6936_s0 + $0xd70] sm:$0xff] }
 0x187   :  { %v5965_v13 = vadd.f32 %v5416_v46, %v473_v55  ;;  %2570 = vmatmul.mubr.f32.gmra.mrb[162].mxu0 %v3457_v48  ;;  %v475_v18 = vpop.f32.mrb[57].mxu0  ;;  %v3460_v5 = vld [vmem:[%s6936_s0 + $0xb10] sm:$0xff]  ;;  %v3535_v48 = vld [vmem:[%s6936_s0 + $0xd68] sm:$0xff] }
 0x188   :  { %v5970_v22 = vpop.f32.mrb[84].mxu1  ;;  %2574 = vmatprep.mubr.f32.mxu0 %v3461_v14  ;;  %v3464_v46 = vld [vmem:[%s6936_s0 + $0xb30] sm:$0xff] }
 0x189   :  { %6986 = vst [vmem:[#allocation9_spill] sm:$0xff] %v5965_v13  ;;  %v1162_v61 = vpop.f32.mrb[85].mxu1  ;;  %2695 = vmatmul.mubr.f32.gmra.mrb[190].mxu1 %v3532_v33 }
 0x18a   :  { %v478_v55 = vpop.f32.mrb[58].mxu0  ;;  %2699 = vmatprep.mubr.f32.mxu1 %v3536_v25  ;;  %v3432_v61 = vld [vmem:[%s6936_s0 + $0xa30] sm:$0xff]  ;;  %v3463_v25 = vld [vmem:[%s6936_s0 + $0xb28] sm:$0xff] }
 0x18b   :  { %v5982_v18 = vadd.f32 %v5410_v40, %v478_v55  ;;  %2575 = vmatmul.mubr.f32.gmra.mrb[164].mxu0 %v3460_v5  ;;  %v480_v14 = vpop.f32.mrb[59].mxu0  ;;  %v3467_v40 = vld [vmem:[%s6936_s0 + $0xb48] sm:$0xff] }
 0x18c   :  { %v5987_v33 = vpop.f32.mrb[86].mxu1  ;;  %2579 = vmatprep.mubr.f32.mxu0 %v3464_v46  ;;  %v3435_v5 = vld [vmem:[%s6936_s0 + $0xa48] sm:$0xff] }
 0x18d   :  { %6987 = vst [vmem:[#allocation10_spill] sm:$0xff] %v5982_v18  ;;  %v1167_v13 = vpop.f32.mrb[87].mxu1  ;;  %2700 = vmatmul.mubr.f32.gmra.mrb[192].mxu1 %v3535_v48 }
 0x18e   :  { %v483_v55 = vpop.f32.mrb[60].mxu0  ;;  %3929 = vmatprep.mubr.msk.f32.mxu1 %vm158_vm0, %v3432_v61  ;;  %v3438_v13 = vld [vmem:[%s6936_s0 + $0xa60] sm:$0xff] }
 0x18f   :  { %v6000_v14 = vadd.f32 %v5440_v7, %v483_v55  ;;  %2580 = vmatmul.mubr.f32.gmra.mrb[166].mxu0 %v3463_v25  ;;  %v485_v46 = vpop.f32.mrb[61].mxu0  ;;  %v3466_v61 = vld [vmem:[%s6936_s0 + $0xb40] sm:$0xff]  ;;  %v3441_v55 = vld [vmem:[%s6936_s0 + $0xa78] sm:$0xff] }
 0x190   :  { %v6005_v48 = vpop.f32.mrb[88].mxu1  ;;  %2584 = vmatprep.mubr.f32.mxu0 %v3467_v40  ;;  %v3470_v7 = vld [vmem:[%s6936_s0 + $0xb60] sm:$0xff] }
 0x191   :  { %6988 = vst [vmem:[#allocation11_spill] sm:$0xff] %v6000_v14  ;;  %v1172_v18 = vpop.f32.mrb[89].mxu1  ;;  %3930 = vmatmul.mubr.msk.f32.vlgmr.msra.gmra.mrb[194].mxu1 %vm158_vm0, %v3435_v5 }
 0x192   :  { %v488_v25 = vpop.f32.mrb[62].mxu0  ;;  %3932 = vmatprep.mubr.msk.f32.mxu1 %vm158_vm0, %v3438_v13  ;;  %v3444_v18 = vld [vmem:[%s6936_s0 + $0xa90] sm:$0xff]  ;;  %v3469_v13 = vld [vmem:[%s6936_s0 + $0xb58] sm:$0xff] }
 0x193   :  { %v6019_v40 = vadd.f32 %v5433_v2, %v488_v25  ;;  %2585 = vmatmul.mubr.f32.gmra.mrb[168].mxu0 %v3466_v61  ;;  %v490_v46 = vpop.f32.mrb[63].mxu0  ;;  %v3473_v2 = vld [vmem:[%s6936_s0 + $0xb78] sm:$0xff]  ;;  %v3447_v25 = vld [vmem:[%s6936_s0 + $0xaa8] sm:$0xff] }
 0x194   :  { %v6024_v5 = vpop.f32.mrb[90].mxu1  ;;  %2589 = vmatprep.mubr.f32.mxu0 %v3470_v7 }
 0x195   :  { %6989 = vst [vmem:[#allocation12_spill] sm:$0xff] %v6019_v40  ;;  %v1177_v14 = vpop.f32.mrb[91].mxu1  ;;  %3933 = vmatmul.mubr.msk.f32.gmra.mrb[196].mxu1 %vm158_vm0, %v3441_v55 }
 0x196   :  { %v493_v61 = vpop.f32.mrb[64].mxu0  ;;  %3935 = vmatprep.mubr.msk.f32.mxu1 %vm158_vm0, %v3444_v18  ;;  %v3450_v14 = vld [vmem:[%s6936_s0 + $0xac0] sm:$0xff]  ;;  %v3472_v18 = vld [vmem:[%s6936_s0 + $0xb70] sm:$0xff] }
 0x197   :  { %v6038_v7 = vadd.f32 %v5465_v9, %v493_v61  ;;  %2590 = vmatmul.mubr.f32.gmra.mrb[170].mxu0 %v3469_v13  ;;  %v495_v46 = vpop.f32.mrb[65].mxu0  ;;  %v3476_v9 = vld [vmem:[%s6936_s0 + $0xb90] sm:$0xff]  ;;  %v3453_v61 = vld [vmem:[%s6936_s0 + $0xad8] sm:$0xff] }
 0x198   :  { %v6043_v55 = vpop.f32.mrb[92].mxu1  ;;  %2594 = vmatprep.mubr.f32.mxu0 %v3473_v2 }
 0x199   :  { %6990 = vst [vmem:[#allocation13_spill] sm:$0xff] %v6038_v7  ;;  %v1182_v40 = vpop.f32.mrb[93].mxu1  ;;  %3936 = vmatmul.mubr.msk.f32.gmra.mrb[198].mxu1 %vm158_vm0, %v3447_v25 }
 0x19a   :  { %v498_v13 = vpop.f32.mrb[66].mxu0  ;;  %3938 = vmatprep.mubr.msk.f32.mxu1 %vm158_vm0, %v3450_v14  ;;  %v3456_v40 = vld [vmem:[%s6936_s0 + $0xaf0] sm:$0xff]  ;;  %v3475_v14 = vld [vmem:[%s6936_s0 + $0xb88] sm:$0xff] }
 0x19b   :  { %v6057_v2 = vadd.f32 %v5458_v39, %v498_v13  ;;  %2595 = vmatmul.mubr.f32.gmra.mrb[172].mxu0 %v3472_v18  ;;  %v500_v46 = vpop.f32.mrb[67].mxu0  ;;  %v3479_v39 = vld [vmem:[%s6936_s0 + $0xba8] sm:$0xff] }
 0x19c   :  { %v6062_v25 = vpop.f32.mrb[94].mxu1  ;;  %2599 = vmatprep.mubr.f32.mxu0 %v3476_v9  ;;  %v3459_v13 = vld [vmem:[%s6936_s0 + $0xb08] sm:$0xff] }
 0x19d   :  { %6991 = vst [vmem:[#allocation14_spill] sm:$0xff] %v6057_v2  ;;  %v1187_v7 = vpop.f32.mrb[95].mxu1  ;;  %3939 = vmatmul.mubr.msk.f32.gmra.mrb[200].mxu1 %vm158_vm0, %v3453_v61 }
 0x19e   :  { %v503_v18 = vpop.f32.mrb[68].mxu0  ;;  %3941 = vmatprep.mubr.msk.f32.mxu1 %vm158_vm0, %v3456_v40  ;;  %v3462_v7 = vld [vmem:[%s6936_s0 + $0xb20] sm:$0xff] }
 0x19f   :  { %v6076_v9 = vadd.f32 %v5490_v6, %v503_v18  ;;  %2600 = vmatmul.mubr.f32.gmra.mrb[174].mxu0 %v3475_v14  ;;  %v505_v46 = vpop.f32.mrb[69].mxu0  ;;  %v3478_v40 = vld [vmem:[%s6936_s0 + $0xba0] sm:$0xff]  ;;  %v3465_v18 = vld [vmem:[%s6936_s0 + $0xb38] sm:$0xff] }
 0x1a0   :  { %v6081_v61 = vpop.f32.mrb[96].mxu1  ;;  %2604 = vmatprep.mubr.f32.mxu0 %v3479_v39  ;;  %v3482_v6 = vld [vmem:[%s6936_s0 + $0xbc0] sm:$0xff] }
 0x1a1   :  { %6992 = vst [vmem:[#allocation15_spill] sm:$0xff] %v6076_v9  ;;  %v1192_v2 = vpop.f32.mrb[97].mxu1  ;;  %3942 = vmatmul.mubr.msk.f32.gmra.mrb[202].mxu1 %vm158_vm0, %v3459_v13 }
 0x1a2   :  { %v508_v14 = vpop.f32.mrb[70].mxu0  ;;  %3944 = vmatprep.mubr.msk.f32.mxu1 %vm158_vm0, %v3462_v7  ;;  %v3468_v2 = vld [vmem:[%s6936_s0 + $0xb50] sm:$0xff]  ;;  %v3481_v7 = vld [vmem:[%s6936_s0 + $0xbb8] sm:$0xff] }
 0x1a3   :  { %v6095_v39 = vadd.f32 %v5483_v60, %v508_v14  ;;  %2605 = vmatmul.mubr.f32.gmra.mrb[176].mxu0 %v3478_v40  ;;  %v510_v46 = vpop.f32.mrb[71].mxu0  ;;  %v3485_v60 = vld [vmem:[%s6936_s0 + $0xbd8] sm:$0xff]  ;;  %v3471_v14 = vld [vmem:[%s6936_s0 + $0xb68] sm:$0xff] }
 0x1a4   :  { %v6100_v13 = vpop.f32.mrb[98].mxu1  ;;  %2609 = vmatprep.mubr.f32.mxu0 %v3482_v6 }
 0x1a5   :  { %6993 = vst [vmem:[#allocation16_spill] sm:$0xff] %v6095_v39  ;;  %v1197_v9 = vpop.f32.mrb[99].mxu1  ;;  %3945 = vmatmul.mubr.msk.f32.gmra.mrb[204].mxu1 %vm158_vm0, %v3465_v18 }
 0x1a6   :  { %v3807_v40 = vpop.f32.mrb[72].mxu0  ;;  %3947 = vmatprep.mubr.msk.f32.mxu1 %vm158_vm0, %v3468_v2  ;;  %v3474_v9 = vld [vmem:[%s6936_s0 + $0xb80] sm:$0xff]  ;;  %v3484_v2 = vld [vmem:[%s6936_s0 + $0xbd0] sm:$0xff] }
 0x1a7   :  { %v6114_v6 = vadd.f32 %v3807_v40, %v5527_v28  ;;  %v1285_v46 = vpop.f32.mrb[73].mxu0  ;;  %2610 = vmatmul.mubr.f32.gmra.mrb[178].mxu0 %v3481_v7  ;;  %v3488_v7 = vld [vmem:[%s6936_s0 + $0xbf0] sm:$0xff] }
 0x1a8   :  { %v6119_v18 = vpop.f32.mrb[100].mxu1  ;;  %v6122_v39 = vadd.f32 %v1285_v46, %v5506_v63  ;;  %2614 = vmatprep.mubr.f32.mxu0 %v3485_v60  ;;  %v3477_v60 = vld [vmem:[%s6936_s0 + $0xb98] sm:$0xff] }
 0x1a9   :  { %6994 = vst [vmem:[#allocation17_spill] sm:$0xff] %v6119_v18  ;;  %v1202_v40 = vpop.f32.mrb[101].mxu1  ;;  %3948 = vmatmul.mubr.msk.f32.gmra.mrb[206].mxu1 %vm158_vm0, %v3471_v14  ;;  %v3480_v14 = vld [vmem:[%s6936_s0 + $0xbb0] sm:$0xff] }
 0x1aa   :  { %6995 = vst [vmem:[#allocation18_spill] sm:$0xff] %v6122_v39  ;;  %v3810_v63 = vpop.f32.mrb[74].mxu0  ;;  %3950 = vmatprep.mubr.msk.f32.mxu1 %vm158_vm0, %v3474_v9  ;;  %v3487_v9 = vld [vmem:[%s6936_s0 + $0xbe8] sm:$0xff] }
 0x1ab   :  { %v6140_v46 = vadd.f32 %v3810_v63, %v5569_v43  ;;  %v1295_v40 = vpop.f32.mrb[75].mxu0  ;;  %2615 = vmatmul.mubr.f32.gmra.mrb[180].mxu0 %v3484_v2  ;;  %v3491_v2 = vld [vmem:[%s6936_s0 + $0xc08] sm:$0xff] }
 0x1ac   :  { %v6145_v28 = vpop.f32.mrb[102].mxu1  ;;  %v6148_v18 = vadd.f32 %v1295_v40, %v5548_v12  ;;  %2619 = vmatprep.mubr.f32.mxu0 %v3488_v7  ;;  %v3483_v7 = vld [vmem:[%s6936_s0 + $0xbc8] sm:$0xff] }
 0x1ad   :  { %v1207_v63 = vpop.f32.mrb[103].mxu1  ;;  %3951 = vmatmul.mubr.msk.f32.gmra.mrb[208].mxu1 %vm158_vm0, %v3477_v60  ;;  %v3486_v60 = vld [vmem:[%s6936_s0 + $0xbe0] sm:$0xff] }
 0x1ae   :  { %6996 = vst [vmem:[#allocation19_spill] sm:$0xff] %v6148_v18  ;;  %v3813_v12 = vpop.f32.mrb[76].mxu0  ;;  %3953 = vmatprep.mubr.msk.f32.mxu1 %vm158_vm0, %v3480_v14  ;;  %v3490_v14 = vld [vmem:[%s6936_s0 + $0xc00] sm:$0xff] }
 0x1af   :  { %v6166_v40 = vadd.f32 %v3813_v12, %v5611_v20  ;;  %v1305_v63 = vpop.f32.mrb[77].mxu0  ;;  %2620 = vmatmul.mubr.f32.gmra.mrb[182].mxu0 %v3487_v9  ;;  %v3494_v9 = vld [vmem:[%s6936_s0 + $0xc20] sm:$0xff] }
 0x1b0   :  { %v6171_v43 = vpop.f32.mrb[104].mxu1  ;;  %v6174_v39 = vadd.f32 %v1305_v63, %v5590_v23  ;;  %2624 = vmatprep.mubr.f32.mxu0 %v3491_v2  ;;  %v3489_v2 = vld [vmem:[%s6936_s0 + $0xbf8] sm:$0xff] }
 0x1b1   :  { %v1212_v12 = vpop.f32.mrb[105].mxu1  ;;  %3954 = vmatmul.mubr.msk.f32.gmra.mrb[210].mxu1 %vm158_vm0, %v3483_v7  ;;  %v3492_v7 = vld [vmem:[%s6936_s0 + $0xc10] sm:$0xff] }
 0x1b2   :  { %6997 = vst [vmem:[#allocation20_spill] sm:$0xff] %v6174_v39  ;;  %v3816_v23 = vpop.f32.mrb[78].mxu0  ;;  %3956 = vmatprep.mubr.msk.f32.mxu1 %vm158_vm0, %v3486_v60  ;;  %v3493_v60 = vld [vmem:[%s6936_s0 + $0xc18] sm:$0xff] }
 0x1b3   :  { %v6192_v63 = vadd.f32 %v3816_v23, %v5653_v29  ;;  %v1315_v12 = vpop.f32.mrb[79].mxu0  ;;  %2625 = vmatmul.mubr.f32.gmra.mrb[184].mxu0 %v3490_v14  ;;  %v3497_v14 = vld [vmem:[%s6936_s0 + $0xc38] sm:$0xff] }
 0x1b4   :  { %v6197_v20 = vpop.f32.mrb[106].mxu1  ;;  %v6200_v18 = vadd.f32 %v1315_v12, %v5632_v17  ;;  %2629 = vmatprep.mubr.f32.mxu0 %v3494_v9  ;;  %v3495_v9 = vld [vmem:[%s6936_s0 + $0xc28] sm:$0xff] }
 0x1b5   :  { %v1217_v23 = vpop.f32.mrb[107].mxu1  ;;  %3957 = vmatmul.mubr.msk.f32.gmra.mrb[212].mxu1 %vm158_vm0, %v3489_v2  ;;  %v3498_v2 = vld [vmem:[%s6936_s0 + $0xc40] sm:$0xff] }
 0x1b6   :  { %6998 = vst [vmem:[#allocation21_spill] sm:$0xff] %v6200_v18  ;;  %v3819_v17 = vpop.f32.mrb[80].mxu0  ;;  %3959 = vmatprep.mubr.msk.f32.mxu1 %vm158_vm0, %v3492_v7  ;;  %v3496_v7 = vld [vmem:[%s6936_s0 + $0xc30] sm:$0xff] }
 0x1b7   :  { %v6218_v12 = vadd.f32 %v3819_v17, %v5695_v36  ;;  %v1325_v23 = vpop.f32.mrb[81].mxu0  ;;  %2630 = vmatmul.mubr.f32.gmra.mrb[186].mxu0 %v3493_v60  ;;  %v3500_v60 = vld [vmem:[%s6936_s0 + $0xc50] sm:$0xff] }
 0x1b8   :  { %v6224_v29 = vadd.f32 %v1325_v23, %v5674_v27  ;;  %v6226_v39 = vpop.f32.mrb[108].mxu1  ;;  %2634 = vmatprep.mubr.f32.mxu0 %v3497_v14  ;;  %v3501_v14 = vld [vmem:[%s6936_s0 + $0xc58] sm:$0xff] }
 0x1b9   :  { %v1785_v17 = vpop.f32.mrb[109].mxu1  ;;  %3960 = vmatmul.mubr.msk.f32.gmra.mrb[214].mxu1 %vm158_vm0, %v3495_v9  ;;  %v3504_v9 = vld [vmem:[%s6936_s0 + $0xc70] sm:$0xff] }
 0x1ba   :  { %6999 = vst [vmem:[#allocation22_spill] sm:$0xff] %v6224_v29  ;;  %v3822_v23 = vpop.f32.mrb[82].mxu0  ;;  %3962 = vmatprep.mubr.msk.f32.mxu1 %vm158_vm0, %v3498_v2  ;;  %v3499_v2 = vld [vmem:[%s6936_s0 + $0xc48] sm:$0xff] }
 0x1bb   :  { %v6244_v18 = vadd.f32 %v3822_v23, %v5737_v44  ;;  %v1335_v17 = vpop.f32.mrb[83].mxu0  ;;  %2635 = vmatmul.mubr.f32.gmra.mrb[188].mxu0 %v3496_v7  ;;  %v3503_v7 = vld [vmem:[%s6936_s0 + $0xc68] sm:$0xff] }
 0x1bc   :  { %v6250_v36 = vadd.f32 %v1335_v17, %v5716_v34  ;;  %v6252_v27 = vpop.f32.mrb[110].mxu1  ;;  %2639 = vmatprep.mubr.f32.mxu0 %v3500_v60  ;;  %v3507_v60 = vld [vmem:[%s6936_s0 + $0xc88] sm:$0xff] }
 0x1bd   :  { %v1790_v23 = vpop.f32.mrb[111].mxu1  ;;  %3963 = vmatmul.mubr.msk.f32.gmra.mrb[216].mxu1 %vm158_vm0, %v3501_v14  ;;  %v3510_v14 = vld [vmem:[%s6936_s0 + $0xca0] sm:$0xff] }
 0x1be   :  { %7000 = vst [vmem:[#allocation23_spill] sm:$0xff] %v6250_v36  ;;  %v3825_v17 = vpop.f32.mrb[84].mxu0  ;;  %3965 = vmatprep.mubr.msk.f32.mxu1 %vm158_vm0, %v3504_v9  ;;  %v3502_v9 = vld [vmem:[%s6936_s0 + $0xc60] sm:$0xff] }
 0x1bf   :  { %v6270_v29 = vadd.f32 %v3825_v17, %v5778_v56  ;;  %v1345_v23 = vpop.f32.mrb[85].mxu0  ;;  %2640 = vmatmul.mubr.f32.gmra.mrb[190].mxu0 %v3499_v2  ;;  %v3506_v2 = vld [vmem:[%s6936_s0 + $0xc80] sm:$0xff] }
 0x1c0   :  { %v6276_v44 = vadd.f32 %v1345_v23, %v5758_v41  ;;  %v6278_v34 = vpop.f32.mrb[112].mxu1  ;;  %2644 = vmatprep.mubr.f32.mxu0 %v3503_v7  ;;  %v3513_v7 = vld [vmem:[%s6936_s0 + $0xcb8] sm:$0xff] }
 0x1c1   :  { %v1795_v17 = vpop.f32.mrb[113].mxu1  ;;  %3966 = vmatmul.mubr.msk.f32.gmra.mrb[218].mxu1 %vm158_vm0, %v3507_v60  ;;  %v3516_v60 = vld [vmem:[%s6936_s0 + $0xcd0] sm:$0xff] }
 0x1c2   :  { %7001 = vst [vmem:[#allocation24_spill] sm:$0xff] %v6276_v44  ;;  %v3828_v23 = vpop.f32.mrb[86].mxu0  ;;  %3968 = vmatprep.mubr.msk.f32.mxu1 %vm158_vm0, %v3510_v14  ;;  %v3505_v14 = vld [vmem:[%s6936_s0 + $0xc78] sm:$0xff] }
 0x1c3   :  { %v6296_v36 = vadd.f32 %v3828_v23, %v5814_v59  ;;  %v1355_v17 = vpop.f32.mrb[87].mxu0  ;;  %2645 = vmatmul.mubr.f32.gmra.mrb[192].mxu0 %v3502_v9  ;;  %v3509_v9 = vld [vmem:[%s6936_s0 + $0xc98] sm:$0xff] }
 0x1c4   :  { %v6302_v56 = vadd.f32 %v1355_v17, %v5797_v11  ;;  %v6304_v41 = vpop.f32.mrb[114].mxu1  ;;  %2649 = vmatprep.mubr.f32.mxu0 %v3506_v2  ;;  %v3519_v2 = vld [vmem:[%s6936_s0 + $0xce8] sm:$0xff] }
 0x1c5   :  { %v1800_v23 = vpop.f32.mrb[115].mxu1  ;;  %3969 = vmatmul.mubr.msk.f32.gmra.mrb[220].mxu1 %vm158_vm0, %v3513_v7  ;;  %v3522_v7 = vld [vmem:[%s6936_s0 + $0xd00] sm:$0xff] }
 0x1c6   :  { %7002 = vst [vmem:[#allocation25_spill] sm:$0xff] %v6302_v56  ;;  %v3831_v17 = vpop.f32.mrb[88].mxu0  ;;  %3971 = vmatprep.mubr.msk.f32.mxu1 %vm158_vm0, %v3516_v60  ;;  %v3508_v60 = vld [vmem:[%s6936_s0 + $0xc90] sm:$0xff] }
 0x1c7   :  { %v6322_v44 = vadd.f32 %v3831_v17, %v5848_v49  ;;  %v1365_v23 = vpop.f32.mrb[89].mxu0  ;;  %2650 = vmatmul.mubr.f32.gmra.mrb[194].mxu0 %v3505_v14  ;;  %v3512_v14 = vld [vmem:[%s6936_s0 + $0xcb0] sm:$0xff] }
 0x1c8   :  { %v6328_v59 = vadd.f32 %v1365_v23, %v5831_v51  ;;  %v6330_v11 = vpop.f32.mrb[116].mxu1  ;;  %2654 = vmatprep.mubr.f32.mxu0 %v3509_v9  ;;  %v3525_v9 = vld [vmem:[%s6936_s0 + $0xd18] sm:$0xff] }
 0x1c9   :  { %v1805_v17 = vpop.f32.mrb[117].mxu1  ;;  %3972 = vmatmul.mubr.msk.f32.gmra.mrb[222].mxu1 %vm158_vm0, %v3519_v2  ;;  %v3528_v2 = vld [vmem:[%s6936_s0 + $0xd30] sm:$0xff] }
 0x1ca   :  { %7003 = vst [vmem:[#allocation26_spill] sm:$0xff] %v6328_v59  ;;  %v3834_v23 = vpop.f32.mrb[90].mxu0  ;;  %3974 = vmatprep.mubr.msk.f32.mxu1 %vm158_vm0, %v3522_v7  ;;  %v3511_v7 = vld [vmem:[%s6936_s0 + $0xca8] sm:$0xff] }
 0x1cb   :  { %v6348_v56 = vadd.f32 %v3834_v23, %v5882_v19  ;;  %v1375_v17 = vpop.f32.mrb[91].mxu0  ;;  %2655 = vmatmul.mubr.f32.gmra.mrb[196].mxu0 %v3508_v60  ;;  %v3515_v60 = vld [vmem:[%s6936_s0 + $0xcc8] sm:$0xff] }
 0x1cc   :  { %v6354_v49 = vadd.f32 %v1375_v17, %v5865_v50  ;;  %v6356_v51 = vpop.f32.mrb[118].mxu1  ;;  %2659 = vmatprep.mubr.f32.mxu0 %v3512_v14  ;;  %v3531_v14 = vld [vmem:[%s6936_s0 + $0xd48] sm:$0xff] }
 0x1cd   :  { %7004 = vst [vmem:[#allocation27_spill] sm:$0xff] %v6348_v56  ;;  %v1810_v23 = vpop.f32.mrb[119].mxu1  ;;  %3975 = vmatmul.mubr.msk.f32.gmra.mrb[224].mxu1 %vm158_vm0, %v3525_v9  ;;  %v3534_v9 = vld [vmem:[%s6936_s0 + $0xd60] sm:$0xff] }
 0x1ce   :  { %7005 = vst [vmem:[#allocation28_spill] sm:$0xff] %v6354_v49  ;;  %v3837_v17 = vpop.f32.mrb[92].mxu0  ;;  %3977 = vmatprep.mubr.msk.f32.mxu1 %vm158_vm0, %v3528_v2  ;;  %v3514_v2 = vld [vmem:[%s6936_s0 + $0xcc0] sm:$0xff]  ;;  %v7007_v49 = vld [vmem:[#allocation4_spill] sm:$0xff] }
 0x1cf   :  { %v6374_v59 = vadd.f32 %v3837_v17, %v5919_v24  ;;  %v1385_v23 = vpop.f32.mrb[93].mxu0  ;;  %2660 = vmatmul.mubr.f32.gmra.mrb[198].mxu0 %v3511_v7 }
 0x1d0   :  { %v6380_v19 = vadd.f32 %v1385_v23, %v5901_v3  ;;  %v6382_v50 = vpop.f32.mrb[120].mxu1  ;;  %2664 = vmatprep.mubr.f32.mxu0 %v3515_v60  ;;  %v3537_v3 = vld [vmem:[%s6936_s0 + $0xd78] sm:$0xff] }
 0x1d1   :  { %v1815_v17 = vpop.f32.mrb[121].mxu1  ;;  %3978 = vmatmul.mubr.msk.f32.gmra.mrb[226].mxu1 %vm158_vm0, %v3531_v14 }
 0x1d2   :  { %7006 = vst [vmem:[#allocation29_spill] sm:$0xff] %v6380_v19  ;;  %v3840_v56 = vpop.f32.mrb[94].mxu0  ;;  %3980 = vmatprep.mubr.msk.f32.mxu1 %vm158_vm0, %v3534_v9 }
 0x1d3   :  { %v6397_v60 = vadd.f32 %v3840_v56, %v5953_v8  ;;  %v1395_v23 = vpop.f32.mrb[95].mxu0  ;;  %2665 = vmatmul.mubr.f32.gmra.mrb[200].mxu0 %v3514_v2 }
 0x1d4   :  { %v6400_v24 = vadd.f32 %v1395_v23, %v5936_v10  ;;  %v6402_v17 = vpop.f32.mrb[122].mxu1  ;;  %v7034_v23 = vld [vmem:[#allocation15_spill] sm:$0xff] }
 0x1d5   :  { %7009 = vst [vmem:[#allocation4_spill] sm:$0xff] %v6397_v60  ;;  %v1820_v0 = vpop.f32.mrb[123].mxu1  ;;  %3981 = vmatmul.mubr.msk.f32.gmra.mrb[228].mxu1 %vm158_vm0, %v3537_v3 }
 0x1d6   :  { %7010 = vst [vmem:[#allocation30_spill] sm:$0xff] %v6400_v24  ;;  %v3843_v7 = vpop.f32.mrb[96].mxu0 }
 0x1d7   :  { %v6410_v8 = vadd.f32 %v3843_v7, %v5987_v33  ;;  %v1405_v56 = vpop.f32.mrb[97].mxu0 }
 0x1d8   :  { %v6413_v2 = vadd.f32 %v1405_v56, %v5970_v22  ;;  %v6415_v10 = vpop.f32.mrb[124].mxu1  ;;  %v7022_v56 = vld [vmem:[#allocation9_spill] sm:$0xff] }
 0x1d9   :  { %7012 = vst [vmem:[#allocation31_spill] sm:$0xff] %v6410_v8  ;;  %v1825_v14 = vpop.f32.mrb[125].mxu1 }
 0x1da   :  { %7013 = vst [vmem:[#allocation32_spill] sm:$0xff] %v6413_v2  ;;  %v3846_v60 = vpop.f32.mrb[98].mxu0 }
 0x1db   :  { %v6422_v19 = vadd.f32 %v3846_v60, %v6024_v5  ;;  %v1415_v24 = vpop.f32.mrb[99].mxu0 }
 0x1dc   :  { %v6425_v33 = vadd.f32 %v1415_v24, %v6005_v48  ;;  %v6427_v7 = vpop.f32.mrb[126].mxu1  ;;  %v7028_v48 = vld [vmem:[#allocation17_spill] sm:$0xff] }
 0x1dd   :  { %7015 = vst [vmem:[#allocation33_spill] sm:$0xff] %v6422_v19  ;;  %v1830_v9 = vpop.f32.mrb[127].mxu1 }
 0x1de   :  { %7016 = vst [vmem:[#allocation34_spill] sm:$0xff] %v6425_v33  ;;  %v3849_v8 = vpop.f32.mrb[100].mxu0 }
 0x1df   :  { %v6434_v3 = vadd.f32 %v3849_v8, %v6062_v25  ;;  %v1425_v2 = vpop.f32.mrb[101].mxu0 }
 0x1e0   :  { %v6437_v5 = vadd.f32 %v1425_v2, %v6043_v55  ;;  %v6439_v60 = vpop.f32.mrb[128].mxu1  ;;  %v7031_v2 = vld [vmem:[#allocation13_spill] sm:$0xff] }
 0x1e1   :  { %7019 = vst [vmem:[#allocation35_spill] sm:$0xff] %v6434_v3  ;;  %v1835_v0 = vpop.f32.mrb[129].mxu1 }
 0x1e2   :  { %7020 = vst [vmem:[#allocation36_spill] sm:$0xff] %v6437_v5  ;;  %v3852_v19 = vpop.f32.mrb[102].mxu0 }
 0x1e3   :  { %v6446_v14 = vadd.f32 %v3852_v19, %v6100_v13  ;;  %v1435_v22 = vpop.f32.mrb[103].mxu0 }
 0x1e4   :  { %v6449_v25 = vadd.f32 %v1435_v22, %v6081_v61  ;;  %v1838_v8 = vpop.f32.mrb[130].mxu1 }
 0x1e5   :  { %7023 = vst [vmem:[#allocation9_spill] sm:$0xff] %v6446_v14  ;;  %v1840_v33 = vpop.f32.mrb[131].mxu1 }
 0x1e6   :  { %7024 = vst [vmem:[#allocation37_spill] sm:$0xff] %v6449_v25  ;;  %v3855_v0 = vpop.f32.mrb[104].mxu0 }
 0x1e7   :  { %v6456_v3 = vadd.f32 %v3855_v0, %v6145_v28  ;;  %v1445_v9 = vpop.f32.mrb[105].mxu0 }
 0x1e8   :  { %v6459_v13 = vadd.f32 %v1445_v9, %v7028_v48  ;;  %v6461_v19 = vpop.f32.mrb[132].mxu1 }
 0x1e9   :  { %7027 = vst [vmem:[#allocation38_spill] sm:$0xff] %v6456_v3  ;;  %v1845_v5 = vpop.f32.mrb[133].mxu1 }
 0x1ea   :  { %7029 = vst [vmem:[#allocation17_spill] sm:$0xff] %v6459_v13  ;;  %v3858_v14 = vpop.f32.mrb[106].mxu0  ;;  %v7036_v13 = vld [vmem:[#allocation18_spill] sm:$0xff] }
 0x1eb   :  { %v6468_v24 = vadd.f32 %v3858_v14, %v6197_v20  ;;  %v1455_v55 = vpop.f32.mrb[107].mxu0  ;;  %v7035_v14 = vmax.f32 %v5426_v54, %v6114_v6  ;;  %v7037_v9 = vmax.f32 %v5403_v32, %v7036_v13  ;;  %v7039_v6 = vld [vmem:[#allocation19_spill] sm:$0xff] }
 0x1ec   :  { %v6471_v28 = vadd.f32 %v1455_v55, %v6171_v43  ;;  %v1848_v0 = vpop.f32.mrb[134].mxu1 }
 0x1ed   :  { %7032 = vst [vmem:[#allocation13_spill] sm:$0xff] %v6468_v24  ;;  %v1850_v25 = vpop.f32.mrb[135].mxu1 }
 0x1ee   :  { %v3869_v5 = vpop.f32.mrb[108].mxu0 }
 0x1ef   :  { %v2034_v3 = vadd.f32 %v3869_v5, %v6252_v27  ;;  %v2028_v33 = vpop.f32.mrb[109].mxu0 }
 0x1f0   :  { %v1853_v61 = vpop.f32.mrb[136].mxu1  ;;  %v2029_v20 = vadd.f32 %v2028_v33, %v6226_v39  ;;  %v7038_v39 = vmax.f32 %v5476_v58, %v6140_v46  ;;  %v7042_v46 = vld [vmem:[#allocation20_spill] sm:$0xff] }
 0x1f1   :  { %v6482_v43 = vmax.f32 %v7035_v14, %v2034_v3  ;;  %v1855_v55 = vpop.f32.mrb[137].mxu1  ;;  %v7040_v3 = vmax.f32 %v5451_v4, %v7039_v6 }
 0x1f2   :  { %v6487_v25 = vmax.f32 %v7037_v9, %v2029_v20  ;;  %v3872_v24 = vpop.f32.mrb[110].mxu0 }
 0x1f3   :  { %v2044_v22 = vadd.f32 %v3872_v24, %v6304_v41  ;;  %v2038_v48 = vpop.f32.mrb[111].mxu0 }
 0x1f4   :  { %v1858_v27 = vpop.f32.mrb[138].mxu1  ;;  %v2039_v5 = vadd.f32 %v2038_v48, %v6278_v34  ;;  %v7041_v34 = vmax.f32 %v5521_v15, %v6166_v40  ;;  %v7045_v40 = vld [vmem:[#allocation21_spill] sm:$0xff] }
 0x1f5   :  { %v6494_v33 = vmax.f32 %v7038_v39, %v2044_v22  ;;  %v1860_v54 = vpop.f32.mrb[139].mxu1  ;;  %v7043_v22 = vmax.f32 %v5500_v35, %v7042_v46  ;;  %v7046_v6 = vmax.f32 %v5542_v53, %v7045_v40 }
 0x1f6   :  { %v6499_v14 = vmax.f32 %v7040_v3, %v2039_v5  ;;  %v3875_v32 = vpop.f32.mrb[112].mxu0 }
 0x1f7   :  { %v2054_v13 = vadd.f32 %v3875_v32, %v6356_v51  ;;  %v2048_v9 = vpop.f32.mrb[113].mxu0 }
 0x1f8   :  { %v1863_v41 = vpop.f32.mrb[140].mxu1  ;;  %v2049_v24 = vadd.f32 %v2048_v9, %v6330_v11  ;;  %v7044_v11 = vmax.f32 %v5563_v16, %v6192_v63  ;;  %v7048_v63 = vld [vmem:[#allocation22_spill] sm:$0xff] }
 0x1f9   :  { %v6506_v48 = vmax.f32 %v7041_v34, %v2054_v13  ;;  %v1865_v58 = vpop.f32.mrb[141].mxu1  ;;  %v7049_v34 = vmax.f32 %v5584_v21, %v7048_v63 }
 0x1fa   :  { %v6511_v20 = vmax.f32 %v7043_v22, %v2049_v24  ;;  %v3878_v4 = vpop.f32.mrb[114].mxu0 }
 0x1fb   :  { %v2064_v55 = vadd.f32 %v3878_v4, %v6402_v17  ;;  %v2058_v5 = vpop.f32.mrb[115].mxu0 }
 0x1fc   :  { %v1868_v51 = vpop.f32.mrb[142].mxu1  ;;  %v2059_v39 = vadd.f32 %v2058_v5, %v6382_v50  ;;  %v7047_v50 = vmax.f32 %v5605_v26, %v6218_v12  ;;  %v7051_v12 = vld [vmem:[#allocation23_spill] sm:$0xff] }
 0x1fd   :  { %v6518_v54 = vmax.f32 %v7044_v11, %v2064_v55  ;;  %v1870_v15 = vpop.f32.mrb[143].mxu1  ;;  %v7052_v5 = vmax.f32 %v5626_v31, %v7051_v12 }
 0x1fe   :  { %v6523_v3 = vmax.f32 %v7046_v6, %v2059_v39  ;;  %v3881_v35 = vpop.f32.mrb[116].mxu0 }
 0x1ff   :  { %v2074_v32 = vadd.f32 %v3881_v35, %v6427_v7  ;;  %v2068_v13 = vpop.f32.mrb[117].mxu0 }
 0x200   :  { %v1873_v17 = vpop.f32.mrb[144].mxu1  ;;  %v2069_v9 = vadd.f32 %v2068_v13, %v6415_v10  ;;  %v7050_v10 = vmax.f32 %v5647_v37, %v6244_v18  ;;  %v7054_v18 = vld [vmem:[#allocation24_spill] sm:$0xff] }
 0x201   :  { %v6530_v24 = vmax.f32 %v7047_v50, %v2074_v32  ;;  %v1875_v16 = vpop.f32.mrb[145].mxu1  ;;  %v7055_v35 = vmax.f32 %v5668_v42, %v7054_v18 }
 0x202   :  { %v6535_v58 = vmax.f32 %v7049_v34, %v2069_v9  ;;  %v3884_v53 = vpop.f32.mrb[118].mxu0  ;;  %v7056_v16 = vmax.f32 %v5731_v57, %v6296_v36  ;;  %v7060_v57 = vld [vmem:[#allocation26_spill] sm:$0xff] }
 0x203   :  { %v2084_v46 = vadd.f32 %v3884_v53, %v1838_v8  ;;  %v2078_v22 = vpop.f32.mrb[119].mxu0  ;;  %v7061_v36 = vmax.f32 %v5752_v62, %v7060_v57 }
 0x204   :  { %v1878_v4 = vpop.f32.mrb[146].mxu1  ;;  %v2079_v7 = vadd.f32 %v2078_v22, %v6439_v60  ;;  %v7053_v60 = vmax.f32 %v5689_v47, %v6270_v29  ;;  %v7057_v47 = vld [vmem:[#allocation25_spill] sm:$0xff] }
 0x205   :  { %v6541_v55 = vmax.f32 %v7050_v10, %v2084_v46  ;;  %v1880_v26 = vpop.f32.mrb[147].mxu1  ;;  %v7058_v29 = vmax.f32 %v5710_v52, %v7057_v47 }
 0x206   :  { %v6546_v39 = vmax.f32 %v7052_v5, %v2079_v7  ;;  %v3887_v21 = vpop.f32.mrb[120].mxu0 }
 0x207   :  { %v2094_v11 = vadd.f32 %v3887_v21, %v1848_v0  ;;  %v2088_v15 = vpop.f32.mrb[121].mxu0 }
 0x208   :  { %v1883_v40 = vpop.f32.mrb[148].mxu1  ;;  %v2089_v8 = vadd.f32 %v2088_v15, %v6461_v19 }
 0x209   :  { %v6552_v6 = vmax.f32 %v7053_v60, %v2094_v11  ;;  %v1885_v37 = vpop.f32.mrb[149].mxu1 }
 0x20a   :  { %v6557_v32 = vmax.f32 %v7055_v35, %v2089_v8  ;;  %v3890_v31 = vpop.f32.mrb[122].mxu0 }
 0x20b   :  { %v2104_v13 = vadd.f32 %v3890_v31, %v1858_v27  ;;  %v2098_v9 = vpop.f32.mrb[123].mxu0  ;;  %v7059_v27 = vmax.f32 %v5772_v1, %v6322_v44  ;;  %v7064_v1 = vld [vmem:[#allocation2_spill] sm:$0xff]  ;;  %v7065_v44 = vld [vmem:[#allocation28_spill] sm:$0xff] }
 0x20c   :  { %v1888_v50 = vpop.f32.mrb[150].mxu1  ;;  %v2099_v0 = vadd.f32 %v2098_v9, %v1853_v61  ;;  %v7066_v60 = vmax.f32 %v7064_v1, %v7065_v44 }
 0x20d   :  { %v6562_v19 = vmax.f32 %v7056_v16, %v2104_v13  ;;  %v1890_v63 = vpop.f32.mrb[151].mxu1 }
 0x20e   :  { %v6567_v34 = vmax.f32 %v7058_v29, %v2099_v0  ;;  %v3893_v53 = vpop.f32.mrb[124].mxu0  ;;  %v7069_v0 = vld [vmem:[#allocation29_spill] sm:$0xff] }
 0x20f   :  { %v2114_v42 = vadd.f32 %v3893_v53, %v1868_v51  ;;  %v2108_v46 = vpop.f32.mrb[125].mxu0  ;;  %v7062_v51 = vld [vmem:[#allocation27_spill] sm:$0xff] }
 0x210   :  { %v1893_v22 = vpop.f32.mrb[152].mxu1  ;;  %v2109_v7 = vadd.f32 %v2108_v46, %v1863_v41  ;;  %v7063_v15 = vmax.f32 %v5809_v30, %v7062_v51  ;;  %v7068_v30 = vld [vmem:[#allocation3_spill] sm:$0xff] }
 0x211   :  { %v6572_v61 = vmax.f32 %v7059_v27, %v2114_v42  ;;  %v1895_v10 = vpop.f32.mrb[153].mxu1  ;;  %v7070_v16 = vmax.f32 %v7068_v30, %v7069_v0  ;;  %v7082_v30 = vld [vmem:[#allocation34_spill] sm:$0xff] }
 0x212   :  { %v6577_v26 = vmax.f32 %v7061_v36, %v2109_v7  ;;  %v3896_v12 = vpop.f32.mrb[126].mxu0 }
 0x213   :  { %v2124_v52 = vadd.f32 %v3896_v12, %v1878_v4  ;;  %v2118_v5 = vpop.f32.mrb[127].mxu0  ;;  %v7067_v4 = vmax.f32 %v7007_v49, %v6374_v59  ;;  %v7073_v59 = vld [vmem:[#allocation5_spill] sm:$0xff]  ;;  %v7074_v49 = vld [vmem:[#allocation30_spill] sm:$0xff] }
 0x214   :  { %v1898_v21 = vpop.f32.mrb[154].mxu1  ;;  %v2119_v11 = vadd.f32 %v2118_v5, %v1873_v17  ;;  %v7075_v10 = vmax.f32 %v7073_v59, %v7074_v49  ;;  %v7087_v59 = vld [vmem:[#allocation36_spill] sm:$0xff] }
 0x215   :  { %v6582_v41 = vmax.f32 %v7063_v15, %v2124_v52  ;;  %v1900_v8 = vpop.f32.mrb[155].mxu1  ;;  %v7088_v49 = vmax.f32 %v7022_v56, %v7087_v59 }
 0x216   :  { %v6587_v37 = vmax.f32 %v7066_v60, %v2119_v11  ;;  %v3899_v18 = vpop.f32.mrb[128].mxu0  ;;  %v7079_v8 = vld [vmem:[#allocation32_spill] sm:$0xff] }
 0x217   :  { %v2134_v62 = vadd.f32 %v3899_v18, %v1888_v50  ;;  %v2128_v35 = vpop.f32.mrb[129].mxu0  ;;  %v7071_v50 = vld [vmem:[#allocation4_spill] sm:$0xff] }
 0x218   :  { %v1903_v31 = vpop.f32.mrb[156].mxu1  ;;  %v2129_v13 = vadd.f32 %v2128_v35, %v1883_v40  ;;  %v7072_v7 = vmax.f32 %v5877_v38, %v7071_v50  ;;  %v7078_v38 = vld [vmem:[#allocation6_spill] sm:$0xff] }
 0x219   :  { %v6592_v17 = vmax.f32 %v7067_v4, %v2134_v62  ;;  %v1905_v9 = vpop.f32.mrb[157].mxu1  ;;  %v7080_v1 = vmax.f32 %v7078_v38, %v7079_v8 }
 0x21a   :  { %v6597_v63 = vmax.f32 %v7070_v16, %v2129_v13  ;;  %v3902_v47 = vpop.f32.mrb[130].mxu0  ;;  %v7081_v9 = vld [vmem:[#allocation7_spill] sm:$0xff]  ;;  %v7084_v16 = vld [vmem:[#allocation8_spill] sm:$0xff] }
 0x21b   :  { %v2144_v29 = vadd.f32 %v3902_v47, %v1898_v21  ;;  %v2138_v53 = vpop.f32.mrb[131].mxu0  ;;  %v7076_v21 = vld [vmem:[#allocation31_spill] sm:$0xff]  ;;  %v7085_v47 = vld [vmem:[#allocation33_spill] sm:$0xff] }
 0x21c   :  { %v1908_v42 = vpop.f32.mrb[158].mxu1  ;;  %v2139_v46 = vadd.f32 %v2138_v53, %v1893_v22  ;;  %v7077_v51 = vmax.f32 %v5914_v45, %v7076_v21  ;;  %v7090_v21 = vld [vmem:[#allocation10_spill] sm:$0xff] }
 0x21d   :  { %v6602_v40 = vmax.f32 %v7072_v7, %v2144_v29  ;;  %v1910_v27 = vpop.f32.mrb[159].mxu1  ;;  %v7086_v29 = vmax.f32 %v7084_v16, %v7085_v47  ;;  %v7096_v47 = vld [vmem:[#allocation12_spill] sm:$0xff] }
 0x21e   :  { %v6607_v57 = vmax.f32 %v7075_v10, %v2139_v46  ;;  %v3905_v36 = vpop.f32.mrb[132].mxu0 }
 0x21f   :  { %v2154_v12 = vadd.f32 %v3905_v36, %v1908_v42  ;;  %v2148_v52 = vpop.f32.mrb[133].mxu0 }
 0x220   :  { %v1913_v5 = vpop.f32.mrb[160].mxu1  ;;  %v2149_v11 = vadd.f32 %v2148_v52, %v1903_v31  ;;  %v7083_v31 = vmax.f32 %v7081_v9, %v7082_v30 }
 0x221   :  { %v6612_v22 = vmax.f32 %v7077_v51, %v2154_v12  ;;  %v1915_v15 = vpop.f32.mrb[161].mxu1  ;;  %v7091_v51 = vld [vmem:[#allocation35_spill] sm:$0xff] }
 0x222   :  { %v6617_v44 = vmax.f32 %v7080_v1, %v2149_v11  ;;  %v3908_v60 = vpop.f32.mrb[134].mxu0  ;;  %v7092_v15 = vmax.f32 %v7090_v21, %v7091_v51 }
 0x223   :  { %v2158_v18 = vpop.f32.mrb[135].mxu0 }
 0x224   :  { %v1918_v62 = vpop.f32.mrb[162].mxu1  ;;  %v2159_v35 = vadd.f32 %v2158_v18, %v1913_v5 }
 0x225   :  { %v2164_v13 = vadd.f32 %v3908_v60, %v1918_v62  ;;  %v1920_v4 = vpop.f32.mrb[163].mxu1 }
 0x226   :  { %v6622_v0 = vmax.f32 %v7083_v31, %v2159_v35  ;;  %v3911_v45 = vpop.f32.mrb[136].mxu0  ;;  %v7093_v35 = vld [vmem:[#allocation11_spill] sm:$0xff] }
 0x227   :  { %v6627_v53 = vmax.f32 %v7086_v29, %v2164_v13  ;;  %v2168_v42 = vpop.f32.mrb[137].mxu0  ;;  %v7094_v13 = vld [vmem:[#allocation37_spill] sm:$0xff] }
 0x228   :  { %v1923_v46 = vpop.f32.mrb[164].mxu1  ;;  %v7095_v56 = vmax.f32 %v7093_v35, %v7094_v13  ;;  %v7097_v29 = vld [vmem:[#allocation9_spill] sm:$0xff] }
 0x229   :  { %v2169_v50 = vadd.f32 %v2168_v42, %v1923_v46  ;;  %v1925_v7 = vpop.f32.mrb[165].mxu1  ;;  %v7098_v42 = vmax.f32 %v7096_v47, %v7097_v29 }
 0x22a   :  { %v3914_v27 = vpop.f32.mrb[138].mxu0 }
 0x22b   :  { %v6632_v10 = vmax.f32 %v7088_v49, %v2169_v50  ;;  %v2178_v36 = vpop.f32.mrb[139].mxu0 }
 0x22c   :  { %v1928_v12 = vpop.f32.mrb[166].mxu1 }
 0x22d   :  { %7089 = vst [vmem:[#allocation15_spill] sm:$0xff] %v6632_v10  ;;  %v2174_v52 = vadd.f32 %v3911_v45, %v1928_v12  ;;  %v1930_v5 = vpop.f32.mrb[167].mxu1  ;;  %v7099_v12 = vld [vmem:[#allocation17_spill] sm:$0xff] }
 0x22e   :  { %v3917_v11 = vpop.f32.mrb[140].mxu0 }
 0x22f   :  { %v6637_v38 = vmax.f32 %v7092_v15, %v2174_v52  ;;  %v2188_v8 = vpop.f32.mrb[141].mxu0  ;;  %v7100_v52 = vmax.f32 %v7031_v2, %v7099_v12  ;;  %v7106_v2 = vmax.f32 %v7034_v23, %v6471_v28 }
 0x230   :  { %v1933_v1 = vpop.f32.mrb[168].mxu1 }
 0x231   :  { %v2179_v60 = vadd.f32 %v2178_v36, %v1933_v1  ;;  %v1935_v18 = vpop.f32.mrb[169].mxu1 }
 0x232   :  { %v3920_v62 = vpop.f32.mrb[142].mxu0  ;;  %v7103_v18 = vld [vmem:[#allocation38_spill] sm:$0xff] }
 0x233   :  { %v6642_v4 = vmax.f32 %v7095_v56, %v2179_v60  ;;  %v2198_v9 = vpop.f32.mrb[143].mxu0  ;;  %v7102_v60 = vld [vmem:[#allocation14_spill] sm:$0xff] }
 0x234   :  { %v1938_v30 = vpop.f32.mrb[170].mxu1  ;;  %v7104_v35 = vmax.f32 %v7102_v60, %v7103_v18 }
 0x235   :  { %v2184_v31 = vadd.f32 %v3914_v27, %v1938_v30  ;;  %v1940_v45 = vpop.f32.mrb[171].mxu1 }
 0x236   :  { %v2526_v16 = vpop.f32.mrb[144].mxu0 }
 0x237   :  { %v6647_v46 = vmax.f32 %v7098_v42, %v2184_v31  ;;  %v2528_v50 = vpop.f32.mrb[145].mxu0 }
 0x238   :  { %v1943_v7 = vpop.f32.mrb[172].mxu1 }
 0x239   :  { %v2189_v59 = vadd.f32 %v2188_v8, %v1943_v7  ;;  %v1945_v49 = vpop.f32.mrb[173].mxu1 }
 0x23a   :  { %v2531_v36 = vpop.f32.mrb[146].mxu0  ;;  %v7109_v49 = vld [vmem:[#allocation13_spill] sm:$0xff] }
 0x23b   :  { %v6652_v5 = vmax.f32 %v7100_v52, %v2189_v59  ;;  %v2533_v21 = vpop.f32.mrb[147].mxu0  ;;  %v7108_v59 = vld [vmem:[#allocation16_spill] sm:$0xff] }
 0x23c   :  { %v1948_v51 = vpop.f32.mrb[174].mxu1  ;;  %v7110_v12 = vmax.f32 %v7108_v59, %v7109_v49 }
 0x23d   :  { %7101 = vst [vmem:[#allocation18_spill] sm:$0xff] %v6652_v5  ;;  %v2194_v27 = vadd.f32 %v3917_v11, %v1948_v51  ;;  %v1950_v15 = vpop.f32.mrb[175].mxu1 }
 0x23e   :  { %v2536_v1 = vpop.f32.mrb[148].mxu0 }
 0x23f   :  { %v6657_v13 = vmax.f32 %v7104_v35, %v2194_v27  ;;  %v2538_v56 = vpop.f32.mrb[149].mxu0 }
 0x240   :  { %v1953_v30 = vpop.f32.mrb[176].mxu1 }
 0x241   :  { %7105 = vst [vmem:[#allocation19_spill] sm:$0xff] %v6657_v13  ;;  %v2199_v8 = vadd.f32 %v2198_v9, %v1953_v30  ;;  %v1955_v31 = vpop.f32.mrb[177].mxu1 }
 0x242   :  { %v2541_v45 = vpop.f32.mrb[150].mxu0 }
 0x243   :  { %v6662_v47 = vmax.f32 %v7106_v2, %v2199_v8  ;;  %v2543_v29 = vpop.f32.mrb[151].mxu0 }
 0x244   :  { %v1958_v42 = vpop.f32.mrb[178].mxu1 }
 0x245   :  { %7107 = vst [vmem:[#allocation20_spill] sm:$0xff] %v6662_v47  ;;  %v2204_v11 = vadd.f32 %v3920_v62, %v1958_v42  ;;  %v1960_v50 = vpop.f32.mrb[179].mxu1 }
 0x246   :  { %v2546_v7 = vpop.f32.mrb[152].mxu0 }
 0x247   :  { %v6667_v52 = vmax.f32 %v7110_v12, %v2204_v11  ;;  %v2548_v21 = vpop.f32.mrb[153].mxu0 }
 0x248   :  { %v6669_v51 = vpop.f32.mrb[180].mxu1 }
 0x249   :  { %7111 = vst [vmem:[#allocation21_spill] sm:$0xff] %v6667_v52  ;;  %v2673_v9 = vpop.f32.mrb[181].mxu1 }
 0x24a   :  { %v2551_v27 = vpop.f32.mrb[154].mxu0 }
 0x24b   :  { %v2553_v15 = vpop.f32.mrb[155].mxu0 }
 0x24c   :  { %v6671_v60 = vpop.f32.mrb[182].mxu1 }
 0x24d   :  { %v2678_v23 = vpop.f32.mrb[183].mxu1 }
 0x24e   :  { %v6673_v28 = vpop.f32.mrb[156].mxu0 }
 0x24f   :  { %v2558_v18 = vpop.f32.mrb[157].mxu0 }
 0x250   :  { %v6675_v62 = vpop.f32.mrb[184].mxu1 }
 0x251   :  { %v2683_v35 = vpop.f32.mrb[185].mxu1 }
 0x252   :  { %v2561_v56 = vpop.f32.mrb[158].mxu0 }
 0x253   :  { %v2563_v30 = vpop.f32.mrb[159].mxu0 }
 0x254   :  { %v6677_v8 = vpop.f32.mrb[186].mxu1 }
 0x255   :  { %v2688_v31 = vpop.f32.mrb[187].mxu1 }
 0x256   :  { %v6679_v2 = vpop.f32.mrb[160].mxu0 }
 0x257   :  { %v2568_v29 = vpop.f32.mrb[161].mxu0 }
 0x258   :  { %v6681_v42 = vpop.f32.mrb[188].mxu1 }
 0x259   :  { %v2693_v11 = vpop.f32.mrb[189].mxu1 }
 0x25a   :  { %v6683_v50 = vpop.f32.mrb[162].mxu0  ;;  %v6696_v11 = vld [vmem:[%s6937_s2] ss:$0 sm:$0xff] }
 0x25b   :  { %v2573_v59 = vpop.f32.mrb[163].mxu0 }
 0x25c   :  { %v6685_v49 = vpop.f32.mrb[190].mxu1 }
 0x25d   :  { %7112 = vst [vmem:[#allocation22_spill] sm:$0xff] %v6685_v49  ;;  %v2698_v12 = vpop.f32.mrb[191].mxu1 }
 0x25e   :  { %v6687_v21 = vpop.f32.mrb[164].mxu0 }
 0x25f   :  { %v2578_v9 = vpop.f32.mrb[165].mxu0 }
 0x260   :  { %v6689_v15 = vpop.f32.mrb[192].mxu1 }
 0x261   :  { %7113 = vst [vmem:[#allocation23_spill] sm:$0xff] %v6689_v15  ;;  %v2703_v23 = vpop.f32.mrb[193].mxu1 }
 0x262   :  { %v6691_v18 = vpop.f32.mrb[166].mxu0 }
 0x263   :  { %v2583_v35 = vpop.f32.mrb[167].mxu0 }
 0x264   :  { %v3931_v30 = vpop.f32.mrb[194].mxu1 }
 0x265   :  { %v2777_v31 = vadd.f32 %v3931_v30, %v2531_v36  ;;  %v2771_v29 = vpop.f32.mrb[195].mxu1 }
 0x266   :  { %v2772_v59 = vadd.f32 %v2771_v29, %v2526_v16  ;;  %v6698_v47 = vpop.f32.mrb[168].mxu0 }
 0x267   :  { %v2951_v12 = vmax.f32 %v6482_v43, %v2777_v31  ;;  %v2588_v9 = vpop.f32.mrb[169].mxu0 }
 0x268   :  { %v2950_v52 = vmax.f32 %v6487_v25, %v2772_v59  ;;  %v3934_v23 = vpop.f32.mrb[196].mxu1 }
 0x269   :  { %v2994_v49 = vadd.f32 %v6696_v11, %v2951_v12  ;;  %v2787_v35 = vadd.f32 %v3934_v23, %v2541_v45  ;;  %v2781_v15 = vpop.f32.mrb[197].mxu1 }
 0x26a   :  { %v2993_v36 = vadd.f32 %v6696_v11, %v2950_v52  ;;  %v2782_v30 = vadd.f32 %v2781_v15, %v2536_v1  ;;  %v6704_v10 = vpop.f32.mrb[170].mxu0 }
 0x26b   :  { %v3030_v5 = vmax.f32 %v2994_v49, 0.0  ;;  %v2953_v16 = vmax.f32 %v6494_v33, %v2787_v35  ;;  %v2593_v29 = vpop.f32.mrb[171].mxu0 }
 0x26c   :  { %v3029_v13 = vmax.f32 %v2993_v36, 0.0  ;;  %v2952_v43 = vmax.f32 %v6499_v14, %v2782_v30  ;;  %v3937_v31 = vpop.f32.mrb[198].mxu1 }
 0x26d   :  { %3067 = vst.msk [vmem:[%s6938_s3 + $0x8] sm:$0xff] %vm3065_vm1, %v3030_v5  ;;  %v2996_v25 = vadd.f32 %v6696_v11, %v2953_v16  ;;  %v2797_v45 = vadd.f32 %v3937_v31, %v2551_v27  ;;  %v2791_v52 = vpop.f32.mrb[199].mxu1 }
 0x26e   :  { %3066 = vst.msk [vmem:[%s6938_s3] sm:$0xff] %vm3065_vm1, %v3029_v13  ;;  %v2995_v33 = vadd.f32 %v6696_v11, %v2952_v43  ;;  %v2792_v1 = vadd.f32 %v2791_v52, %v2546_v7  ;;  %v6718_v49 = vpop.f32.mrb[172].mxu0 }
 0x26f   :  { %v3032_v14 = vmax.f32 %v2996_v25, 0.0  ;;  %v2955_v15 = vmax.f32 %v6506_v48, %v2797_v45  ;;  %v2598_v59 = vpop.f32.mrb[173].mxu0 }
 0x270   :  { %v3031_v12 = vmax.f32 %v2995_v33, 0.0  ;;  %v2954_v5 = vmax.f32 %v6511_v20, %v2792_v1  ;;  %v3940_v9 = vpop.f32.mrb[200].mxu1 }
 0x271   :  { %3069 = vst.msk [vmem:[%s6938_s3 + $0x18] sm:$0xff] %vm3065_vm1, %v3032_v14  ;;  %v2998_v13 = vadd.f32 %v6696_v11, %v2955_v15  ;;  %v2807_v27 = vadd.f32 %v3940_v9, %v2561_v56  ;;  %v2801_v23 = vpop.f32.mrb[201].mxu1 }
 0x272   :  { %3068 = vst.msk [vmem:[%s6938_s3 + $0x10] sm:$0xff] %vm3065_vm1, %v3031_v12  ;;  %v2997_v48 = vadd.f32 %v6696_v11, %v2954_v5  ;;  %v2802_v7 = vadd.f32 %v2801_v23, %v6673_v28  ;;  %v2601_v20 = vpop.f32.mrb[174].mxu0 }
 0x273   :  { %v3034_v35 = vmax.f32 %v2998_v13, 0.0  ;;  %v2957_v36 = vmax.f32 %v6518_v54, %v2807_v27  ;;  %v2603_v30 = vpop.f32.mrb[175].mxu0 }
 0x274   :  { %v3033_v16 = vmax.f32 %v2997_v48, 0.0  ;;  %v2956_v29 = vmax.f32 %v6523_v3, %v2802_v7  ;;  %v3943_v43 = vpop.f32.mrb[202].mxu1 }
 0x275   :  { %3071 = vst.msk [vmem:[%s6938_s3 + $0x28] sm:$0xff] %vm3065_vm1, %v3034_v35  ;;  %v3000_v56 = vadd.f32 %v6696_v11, %v2957_v36  ;;  %v2817_v31 = vadd.f32 %v3943_v43, %v6683_v50  ;;  %v2811_v25 = vpop.f32.mrb[203].mxu1 }
 0x276   :  { %3070 = vst.msk [vmem:[%s6938_s3 + $0x20] sm:$0xff] %vm3065_vm1, %v3033_v16  ;;  %v2999_v54 = vadd.f32 %v6696_v11, %v2956_v29  ;;  %v2812_v3 = vadd.f32 %v2811_v25, %v6679_v2  ;;  %v2606_v28 = vpop.f32.mrb[176].mxu0 }
 0x277   :  { %v3036_v45 = vmax.f32 %v3000_v56, 0.0  ;;  %v2959_v52 = vmax.f32 %v6530_v24, %v2817_v31  ;;  %v2608_v33 = vpop.f32.mrb[177].mxu0 }
 0x278   :  { %v3035_v1 = vmax.f32 %v2999_v54, 0.0  ;;  %v2958_v14 = vmax.f32 %v6535_v58, %v2812_v3  ;;  %v3946_v15 = vpop.f32.mrb[204].mxu1 }
 0x279   :  { %3073 = vst.msk [vmem:[%s6938_s3 + $0x38] sm:$0xff] %vm3065_vm1, %v3036_v45  ;;  %v3002_v50 = vadd.f32 %v6696_v11, %v2959_v52  ;;  %v2827_v59 = vadd.f32 %v3946_v15, %v6691_v18  ;;  %v2821_v12 = vpop.f32.mrb[205].mxu1 }
 0x27a   :  { %3072 = vst.msk [vmem:[%s6938_s3 + $0x30] sm:$0xff] %vm3065_vm1, %v3035_v1  ;;  %v3001_v24 = vadd.f32 %v6696_v11, %v2958_v14  ;;  %v2822_v58 = vadd.f32 %v2821_v12, %v6687_v21  ;;  %v2611_v2 = vpop.f32.mrb[178].mxu0 }
 0x27b   :  { %v3038_v5 = vmax.f32 %v3002_v50, 0.0  ;;  %v2961_v9 = vmax.f32 %v6541_v55, %v2827_v59  ;;  %v2613_v13 = vpop.f32.mrb[179].mxu0 }
 0x27c   :  { %v3037_v27 = vmax.f32 %v3001_v24, 0.0  ;;  %v2960_v23 = vmax.f32 %v6546_v39, %v2822_v58  ;;  %v3949_v48 = vpop.f32.mrb[206].mxu1 }
 0x27d   :  { %3075 = vst.msk [vmem:[%s6938_s3 + $0x48] sm:$0xff] %vm3065_vm1, %v3038_v5  ;;  %v3004_v18 = vadd.f32 %v6696_v11, %v2961_v9  ;;  %v2837_v7 = vadd.f32 %v3949_v48, %v6704_v10  ;;  %v2831_v35 = vpop.f32.mrb[207].mxu1 }
 0x27e   :  { %3074 = vst.msk [vmem:[%s6938_s3 + $0x40] sm:$0xff] %vm3065_vm1, %v3037_v27  ;;  %v3003_v55 = vadd.f32 %v6696_v11, %v2960_v23  ;;  %v2832_v39 = vadd.f32 %v2831_v35, %v6698_v47  ;;  %v2616_v21 = vpop.f32.mrb[180].mxu0 }
 0x27f   :  { %v3040_v36 = vmax.f32 %v3004_v18, 0.0  ;;  %v2963_v30 = vmax.f32 %v6552_v6, %v2837_v7  ;;  %v2618_v16 = vpop.f32.mrb[181].mxu0 }
 0x280   :  { %v3039_v29 = vmax.f32 %v3003_v55, 0.0  ;;  %v2962_v43 = vmax.f32 %v6557_v32, %v2832_v39  ;;  %v3952_v56 = vpop.f32.mrb[208].mxu1 }
 0x281   :  { %3077 = vst.msk [vmem:[%s6938_s3 + $0x58] sm:$0xff] %vm3065_vm1, %v3040_v36  ;;  %v3006_v10 = vadd.f32 %v6696_v11, %v2963_v30  ;;  %v2847_v31 = vadd.f32 %v3952_v56, %v2601_v20  ;;  %v2841_v25 = vpop.f32.mrb[209].mxu1 }
 0x282   :  { %3076 = vst.msk [vmem:[%s6938_s3 + $0x50] sm:$0xff] %vm3065_vm1, %v3039_v29  ;;  %v3005_v6 = vadd.f32 %v6696_v11, %v2962_v43  ;;  %v2842_v47 = vadd.f32 %v2841_v25, %v6718_v49  ;;  %v2621_v32 = vpop.f32.mrb[182].mxu0 }
 0x283   :  { %v3042_v54 = vmax.f32 %v3006_v10, 0.0  ;;  %v2965_v3 = vmax.f32 %v6562_v19, %v2847_v31  ;;  %v2623_v45 = vpop.f32.mrb[183].mxu0 }
 0x284   :  { %v3041_v52 = vmax.f32 %v3005_v6, 0.0  ;;  %v2964_v33 = vmax.f32 %v6567_v34, %v2842_v47  ;;  %v3955_v1 = vpop.f32.mrb[210].mxu1 }
 0x285   :  { %3079 = vst.msk [vmem:[%s6938_s3 + $0x68] sm:$0xff] %vm3065_vm1, %v3042_v54  ;;  %v3008_v20 = vadd.f32 %v6696_v11, %v2965_v3  ;;  %v2857_v14 = vadd.f32 %v3955_v1, %v2611_v2  ;;  %v2851_v15 = vpop.f32.mrb[211].mxu1 }
 0x286   :  { %3078 = vst.msk [vmem:[%s6938_s3 + $0x60] sm:$0xff] %vm3065_vm1, %v3041_v52  ;;  %v3007_v19 = vadd.f32 %v6696_v11, %v2964_v33  ;;  %v2852_v49 = vadd.f32 %v2851_v15, %v2606_v28  ;;  %v2626_v50 = vpop.f32.mrb[184].mxu0 }
 0x287   :  { %v3044_v34 = vmax.f32 %v3008_v20, 0.0  ;;  %v2967_v59 = vmax.f32 %v6572_v61, %v2857_v14  ;;  %v2628_v12 = vpop.f32.mrb[185].mxu0 }
 0x288   :  { %v3043_v24 = vmax.f32 %v3007_v19, 0.0  ;;  %v2966_v58 = vmax.f32 %v6577_v26, %v2852_v49  ;;  %v3958_v5 = vpop.f32.mrb[212].mxu1 }
 0x289   :  { %3081 = vst.msk [vmem:[%s6938_s3 + $0x78] sm:$0xff] %vm3065_vm1, %v3044_v34  ;;  %v3010_v2 = vadd.f32 %v6696_v11, %v2967_v59  ;;  %v2867_v9 = vadd.f32 %v3958_v5, %v2621_v32  ;;  %v2861_v13 = vpop.f32.mrb[213].mxu1 }
 0x28a   :  { %3080 = vst.msk [vmem:[%s6938_s3 + $0x70] sm:$0xff] %vm3065_vm1, %v3043_v24  ;;  %v3009_v61 = vadd.f32 %v6696_v11, %v2966_v58  ;;  %v2862_v28 = vadd.f32 %v2861_v13, %v2616_v21  ;;  %v2631_v27 = vpop.f32.mrb[186].mxu0 }
 0x28b   :  { %v3046_v26 = vmax.f32 %v3010_v2, 0.0  ;;  %v2969_v23 = vmax.f32 %v6582_v41, %v2867_v9  ;;  %v2633_v48 = vpop.f32.mrb[187].mxu0 }
 0x28c   :  { %v3045_v18 = vmax.f32 %v3009_v61, 0.0  ;;  %v2968_v7 = vmax.f32 %v6587_v37, %v2862_v28  ;;  %v3961_v35 = vpop.f32.mrb[214].mxu1 }
 0x28d   :  { %3083 = vst.msk [vmem:[%s6938_s3 + $0x88] sm:$0xff] %vm3065_vm1, %v3046_v26  ;;  %v3012_v55 = vadd.f32 %v6696_v11, %v2969_v23  ;;  %v2877_v39 = vadd.f32 %v3961_v35, %v2631_v27  ;;  %v2871_v36 = vpop.f32.mrb[215].mxu1 }
 0x28e   :  { %3082 = vst.msk [vmem:[%s6938_s3 + $0x80] sm:$0xff] %vm3065_vm1, %v3045_v18  ;;  %v3011_v41 = vadd.f32 %v6696_v11, %v2968_v7  ;;  %v2872_v21 = vadd.f32 %v2871_v36, %v2626_v50  ;;  %v2636_v30 = vpop.f32.mrb[188].mxu0 }
 0x28f   :  { %v3048_v37 = vmax.f32 %v3012_v55, 0.0  ;;  %v2971_v16 = vmax.f32 %v6592_v17, %v2877_v39  ;;  %v2638_v29 = vpop.f32.mrb[189].mxu0 }
 0x290   :  { %v3047_v43 = vmax.f32 %v3011_v41, 0.0  ;;  %v2970_v56 = vmax.f32 %v6597_v63, %v2872_v21  ;;  %v3964_v10 = vpop.f32.mrb[216].mxu1 }
 0x291   :  { %3085 = vst.msk [vmem:[%s6938_s3 + $0x98] sm:$0xff] %vm3065_vm1, %v3048_v37  ;;  %v3014_v31 = vadd.f32 %v6696_v11, %v2971_v16  ;;  %v2881_v25 = vpop.f32.mrb[217].mxu1 }
 0x292   :  { %3084 = vst.msk [vmem:[%s6938_s3 + $0x90] sm:$0xff] %vm3065_vm1, %v3047_v43  ;;  %v3013_v17 = vadd.f32 %v6696_v11, %v2970_v56  ;;  %v2882_v6 = vadd.f32 %v2881_v25, %v2636_v30  ;;  %v2641_v47 = vpop.f32.mrb[190].mxu0 }
 0x293   :  { %v3050_v32 = vmax.f32 %v3014_v31, 0.0  ;;  %v2887_v63 = vadd.f32 %v3964_v10, %v2641_v47  ;;  %v2643_v54 = vpop.f32.mrb[191].mxu0 }
 0x294   :  { %v3049_v3 = vmax.f32 %v3013_v17, 0.0  ;;  %v2972_v45 = vmax.f32 %v6607_v57, %v2882_v6  ;;  %v3967_v52 = vpop.f32.mrb[218].mxu1  ;;  %v7114_v17 = vld [vmem:[#allocation19_spill] sm:$0xff] }
 0x295   :  { %3087 = vst.msk [vmem:[%s6938_s3 + $0xa8] sm:$0xff] %vm3065_vm1, %v3050_v32  ;;  %v2973_v33 = vmax.f32 %v6602_v40, %v2887_v63  ;;  %v2891_v1 = vpop.f32.mrb[219].mxu1 }
 0x296   :  { %3086 = vst.msk [vmem:[%s6938_s3 + $0xa0] sm:$0xff] %vm3065_vm1, %v3049_v3  ;;  %v3015_v20 = vadd.f32 %v6696_v11, %v2972_v45  ;;  %v2646_v14 = vpop.f32.mrb[192].mxu0  ;;  %v7116_v45 = vld [vmem:[#allocation15_spill] sm:$0xff] }
 0x297   :  { %v3016_v15 = vadd.f32 %v6696_v11, %v2973_v33  ;;  %v2892_v57 = vadd.f32 %v2891_v1, %v2646_v14  ;;  %v2648_v19 = vpop.f32.mrb[193].mxu0  ;;  %v7117_v33 = vld [vmem:[#allocation23_spill] sm:$0xff] }
 0x298   :  { %v3051_v49 = vmax.f32 %v3015_v20, 0.0  ;;  %v3970_v50 = vpop.f32.mrb[220].mxu1 }
 0x299   :  { %v3052_v34 = vmax.f32 %v3016_v15, 0.0  ;;  %v2974_v59 = vmax.f32 %v6617_v44, %v2892_v57  ;;  %v2901_v12 = vpop.f32.mrb[221].mxu1  ;;  %v7118_v15 = vld [vmem:[#allocation22_spill] sm:$0xff] }
 0x29a   :  { %3088 = vst.msk [vmem:[%s6938_s3 + $0xb0] sm:$0xff] %vm3065_vm1, %v3051_v49  ;;  %v2651_v40 = vpop.f32.mrb[194].mxu0 }
 0x29b   :  { %3089 = vst.msk [vmem:[%s6938_s3 + $0xb8] sm:$0xff] %vm3065_vm1, %v3052_v34  ;;  %v3017_v24 = vadd.f32 %v6696_v11, %v2974_v59  ;;  %v2897_v58 = vadd.f32 %v3967_v52, %v2651_v40  ;;  %v2653_v5 = vpop.f32.mrb[195].mxu0 }
 0x29c   :  { %v3973_v2 = vpop.f32.mrb[222].mxu1 }
 0x29d   :  { %v3053_v9 = vmax.f32 %v3017_v24, 0.0  ;;  %v2975_v44 = vmax.f32 %v6612_v22, %v2897_v58  ;;  %v2917_v13 = vadd.f32 %v3973_v2, %v6669_v51  ;;  %v2911_v61 = vpop.f32.mrb[223].mxu1 }
 0x29e   :  { %v2656_v28 = vpop.f32.mrb[196].mxu0 }
 0x29f   :  { %3090 = vst.msk [vmem:[%s6938_s3 + $0xc0] sm:$0xff] %vm3065_vm1, %v3053_v9  ;;  %v3018_v27 = vadd.f32 %v6696_v11, %v2975_v44  ;;  %v2979_v26 = vmax.f32 %v6637_v38, %v2917_v13  ;;  %v2902_v23 = vadd.f32 %v2901_v12, %v2656_v28  ;;  %v2658_v48 = vpop.f32.mrb[197].mxu0  ;;  %v7120_v12 = vld [vmem:[#allocation20_spill] sm:$0xff] }
 0x2a0   :  { %v3976_v18 = vpop.f32.mrb[224].mxu1 }
 0x2a1   :  { %v3054_v7 = vmax.f32 %v3018_v27, 0.0  ;;  %v3022_v35 = vadd.f32 %v6696_v11, %v2979_v26  ;;  %v2976_v22 = vmax.f32 %v6622_v0, %v2902_v23  ;;  %v2927_v51 = vadd.f32 %v3976_v18, %v6675_v62  ;;  %v2921_v55 = vpop.f32.mrb[225].mxu1 }
 0x2a2   :  { %v2922_v39 = vadd.f32 %v2921_v55, %v6671_v60  ;;  %v2661_v36 = vpop.f32.mrb[198].mxu0 }
 0x2a3   :  { %3091 = vst.msk [vmem:[%s6938_s3 + $0xc8] sm:$0xff] %vm3065_vm1, %v3054_v7  ;;  %v3058_v38 = vmax.f32 %v3022_v35, 0.0  ;;  %v3019_v41 = vadd.f32 %v6696_v11, %v2976_v22  ;;  %v2981_v21 = vmax.f32 %v6647_v46, %v2927_v51  ;;  %v2907_v30 = vadd.f32 %v3970_v50, %v2661_v36  ;;  %v2663_v37 = vpop.f32.mrb[199].mxu0  ;;  %v7119_v50 = vld [vmem:[#allocation21_spill] sm:$0xff] }
 0x2a4   :  { %v2980_v0 = vmax.f32 %v6642_v4, %v2922_v39  ;;  %v3979_v16 = vpop.f32.mrb[226].mxu1 }
 0x2a5   :  { %3095 = vst.msk [vmem:[%s6938_s3 + $0xe8] sm:$0xff] %vm3065_vm1, %v3058_v38  ;;  %v3055_v60 = vmax.f32 %v3019_v41, 0.0  ;;  %v3024_v62 = vadd.f32 %v6696_v11, %v2981_v21  ;;  %v2977_v29 = vmax.f32 %v6627_v53, %v2907_v30  ;;  %v2937_v43 = vadd.f32 %v3979_v16, %v6681_v42  ;;  %v2931_v56 = vpop.f32.mrb[227].mxu1  ;;  %v7115_v42 = vld [vmem:[#allocation18_spill] sm:$0xff] }
 0x2a6   :  { %v3023_v46 = vadd.f32 %v6696_v11, %v2980_v0  ;;  %v2932_v10 = vadd.f32 %v2931_v56, %v6677_v8  ;;  %v2666_v31 = vpop.f32.mrb[200].mxu0 }
 0x2a7   :  { %3092 = vst.msk [vmem:[%s6938_s3 + $0xd0] sm:$0xff] %vm3065_vm1, %v3055_v60  ;;  %v3060_v4 = vmax.f32 %v3024_v62, 0.0  ;;  %v3020_v25 = vadd.f32 %v6696_v11, %v2977_v29  ;;  %v2983_v6 = vmax.f32 %v7114_v17, %v2937_v43  ;;  %v2912_v47 = vadd.f32 %v2911_v61, %v2666_v31  ;;  %v2668_v53 = vpop.f32.mrb[201].mxu0 }
 0x2a8   :  { %v3059_v32 = vmax.f32 %v3023_v46, 0.0  ;;  %v2982_v63 = vmax.f32 %v7115_v42, %v2932_v10  ;;  %v3982_v54 = vpop.f32.mrb[228].mxu1 }
 0x2a9   :  { %3097 = vst.msk [vmem:[%s6938_s3 + $0xf8] sm:$0xff] %vm3065_vm1, %v3060_v4  ;;  %v3056_v8 = vmax.f32 %v3020_v25, 0.0  ;;  %v3026_v3 = vadd.f32 %v6696_v11, %v2983_v6  ;;  %v2978_v52 = vmax.f32 %v7116_v45, %v2912_v47  ;;  %v2947_v1 = vadd.f32 %v3982_v54, %v7117_v33  ;;  %v2941_v20 = vpop.f32.mrb[229].mxu1 }
 0x2aa   :  { %3096 = vst.msk [vmem:[%s6938_s3 + $0xf0] sm:$0xff] %vm3065_vm1, %v3059_v32  ;;  %v3025_v14 = vadd.f32 %v6696_v11, %v2982_v63  ;;  %v2942_v57 = vadd.f32 %v2941_v20, %v7118_v15 }
 0x2ab   :  { %3093 = vst.msk [vmem:[%s6938_s3 + $0xd8] sm:$0xff] %vm3065_vm1, %v3056_v8  ;;  %v3062_v19 = vmax.f32 %v3026_v3, 0.0  ;;  %v3021_v49 = vadd.f32 %v6696_v11, %v2978_v52  ;;  %v2985_v34 = vmax.f32 %v7119_v50, %v2947_v1 }
 0x2ac   :  { %v3061_v59 = vmax.f32 %v3025_v14, 0.0  ;;  %v2984_v40 = vmax.f32 %v7120_v12, %v2942_v57 }
 0x2ad   :  { %3099 = vst.msk [vmem:[%s6938_s3 + $0x108] sm:$0xff] %vm3065_vm1, %v3062_v19  ;;  %v3057_v24 = vmax.f32 %v3021_v49, 0.0  ;;  %v3028_v58 = vadd.f32 %v6696_v11, %v2985_v34 }
 0x2ae   :  { %3098 = vst.msk [vmem:[%s6938_s3 + $0x100] sm:$0xff] %vm3065_vm1, %v3061_v59  ;;  %v3027_v5 = vadd.f32 %v6696_v11, %v2984_v40 }
 0x2af   :  { %3094 = vst.msk [vmem:[%s6938_s3 + $0xe0] sm:$0xff] %vm3065_vm1, %v3057_v24  ;;  %v3064_v2 = vmax.f32 %v3028_v58, 0.0 }
 0x2b0   :  { %v3063_v9 = vmax.f32 %v3027_v5, 0.0 }
 0x2b1   :  { %3101 = vst.msk [vmem:[%s6938_s3 + $0x118] sm:$0xff] %vm3065_vm1, %v3064_v2 }
 0x2b2   :  { %3100 = vst.msk [vmem:[%s6938_s3 + $0x110] sm:$0xff] %vm3065_vm1, %v3063_v9 }

// kernel: cnn_forward.5
= control target key start
LH: loop header
LB: loop body
LE: loop exit
PB: predicated region body
PF: predicated region fallthrough
CT: control target
= control target key end

     0   :  { %v6581_v47 = vmov 1983009808   ;;  %v1214_v49 = vlaneseq  ;;  %s10366_s0 = inlined_call_operand.vmem [shape: f32[2,9216], index: 0, kind: input, shape index: {}]   ;;  %s10367_s1 = inlined_call_operand.vmem [shape: f32[9216,128], index: 1, kind: input, shape index: {}]   ;;  %s10368_s2 = inlined_call_operand.vmem [shape: f32[1,128], index: 2, kind: input, shape index: {}]   ;;  %s10369_s3 = inlined_call_operand.hbm [shape: f32[2,128], index: 3, kind: output, shape index: {}]  }
   0x1   :  { %v49_v0 = vld [vmem:[%s10367_s1 + $0x80] sm:$0xff]  ;;  %v50_v1 = vld [vmem:[%s10367_s1 + $0x88] sm:$0xff]  ;;  %v51_v11 = vld [vmem:[%s10367_s1 + $0x90] sm:$0xff]  ;;  %v1212_v48 = vunpack.c.l.s4 %v6581_v47 }
   0x2   :  { %v33_v2 = vld [vmem:[%s10367_s1] sm:$0xff]  ;;  %v5385_v3 = vpack.c.bf16 %v50_v1, %v49_v0  ;;  %v34_v4 = vld [vmem:[%s10367_s1 + $0x8] sm:$0xff]  ;;  %v52_v13 = vld [vmem:[%s10367_s1 + $0x98] sm:$0xff]  ;;  %v1215_v0 = vshrl.u32 %v1214_v49, 7 }
   0x3   :  { %v81_v5 = vld [vmem:[%s10367_s1 + $0x180] sm:$0xff]  ;;  %v82_v6 = vld [vmem:[%s10367_s1 + $0x188] sm:$0xff]  ;;  %v5387_v7 = vpack.c.bf16 %v34_v4, %v33_v2  ;;  %v35_v14 = vld [vmem:[%s10367_s1 + $0x10] sm:$0xff]  ;;  %v5389_v16 = vpack.c.bf16 %v52_v13, %v51_v11  ;;  %v1213_v63 = vunpack.c.0.s8 %v1212_v48 }
   0x4   :  { %v5417_v8 = vpack.c.bf16 %v82_v6, %v81_v5  ;;  %v65_v9 = vld [vmem:[%s10367_s1 + $0x100] sm:$0xff]  ;;  %v66_v10 = vld [vmem:[%s10367_s1 + $0x108] sm:$0xff]  ;;  %5386 = vmatprep.subr.bf16.mxu0 %v5385_v3  ;;  %v36_v15 = vld [vmem:[%s10367_s1 + $0x18] sm:$0xff] }
   0x5   :  { %v5419_v12 = vpack.c.bf16 %v66_v10, %v65_v9  ;;  %5388 = vmatpush3.bf16.msra.mxu0 %v5387_v7  ;;  %v5391_v17 = vpack.c.bf16 %v36_v15, %v35_v14  ;;  %v83_v18 = vld [vmem:[%s10367_s1 + $0x190] sm:$0xff]  ;;  %v84_v19 = vld [vmem:[%s10367_s1 + $0x198] sm:$0xff]  ;;  %v53_v23 = vld [vmem:[%s10367_s1 + $0xa0] sm:$0xff]  ;;  %v6753_v13 = vsub.s32 %v1213_v63, %v1215_v0 }
   0x6   :  { %5418 = vmatprep.subr.bf16.mxu1 %v5417_v8  ;;  %v67_v20 = vld [vmem:[%s10367_s1 + $0x110] sm:$0xff]  ;;  %v5421_v21 = vpack.c.bf16 %v84_v19, %v83_v18  ;;  %v68_v22 = vld [vmem:[%s10367_s1 + $0x118] sm:$0xff]  ;;  %v54_v24 = vld [vmem:[%s10367_s1 + $0xa8] sm:$0xff]  ;;  %5390 = vmatprep.subr.bf16.mxu0 %v5389_v16 }
   0x7   :  { %5420 = vmatpush3.bf16.msra.mxu1 %v5419_v12  ;;  %v5423_v25 = vpack.c.bf16 %v68_v22, %v67_v20  ;;  %v5393_v26 = vpack.c.bf16 %v54_v24, %v53_v23  ;;  %v37_v27 = vld [vmem:[%s10367_s1 + $0x20] sm:$0xff]  ;;  %v38_v28 = vld [vmem:[%s10367_s1 + $0x28] sm:$0xff]  ;;  %v55_v35 = vld [vmem:[%s10367_s1 + $0xb0] sm:$0xff] }
   0x8   :  { %v85_v29 = vld [vmem:[%s10367_s1 + $0x1a0] sm:$0xff]  ;;  %5422 = vmatprep.subr.bf16.mxu1 %v5421_v21  ;;  %v86_v30 = vld [vmem:[%s10367_s1 + $0x1a8] sm:$0xff]  ;;  %v5395_v33 = vpack.c.bf16 %v38_v28, %v37_v27  ;;  %v56_v36 = vld [vmem:[%s10367_s1 + $0xb8] sm:$0xff] }
   0x9   :  { %v69_v31 = vld [vmem:[%s10367_s1 + $0x120] sm:$0xff]  ;;  %v70_v32 = vld [vmem:[%s10367_s1 + $0x128] sm:$0xff]  ;;  %5392 = vmatpush3.bf16.msra.mxu0 %v5391_v17  ;;  %v5425_v34 = vpack.c.bf16 %v86_v30, %v85_v29  ;;  %v39_v37 = vld [vmem:[%s10367_s1 + $0x30] sm:$0xff]  ;;  %v5397_v39 = vpack.c.bf16 %v56_v36, %v55_v35 }
   0xa   :  { %5394 = vmatprep.subr.bf16.mxu0 %v5393_v26  ;;  %v5427_v38 = vpack.c.bf16 %v70_v32, %v69_v31  ;;  %v40_v40 = vld [vmem:[%s10367_s1 + $0x38] sm:$0xff]  ;;  %v87_v41 = vld [vmem:[%s10367_s1 + $0x1b0] sm:$0xff]  ;;  %v57_v46 = vld [vmem:[%s10367_s1 + $0xc0] sm:$0xff] }
   0xb   :  { %5424 = vmatpush3.bf16.msra.mxu1 %v5423_v25  ;;  %v88_v42 = vld [vmem:[%s10367_s1 + $0x1b8] sm:$0xff]  ;;  %v71_v44 = vld [vmem:[%s10367_s1 + $0x130] sm:$0xff]  ;;  %v58_v50 = vld [vmem:[%s10367_s1 + $0xc8] sm:$0xff]  ;;  %v5399_v51 = vpack.c.bf16 %v40_v40, %v39_v37 }
   0xc   :  { %5426 = vmatprep.subr.bf16.mxu1 %v5425_v34  ;;  %v5429_v43 = vpack.c.bf16 %v88_v42, %v87_v41  ;;  %v72_v45 = vld [vmem:[%s10367_s1 + $0x138] sm:$0xff]  ;;  %v89_v52 = vld [vmem:[%s10367_s1 + $0x1c0] sm:$0xff]  ;;  %v90_v53 = vld [vmem:[%s10367_s1 + $0x1c8] sm:$0xff]  ;;  %v5401_v55 = vpack.c.bf16 %v58_v50, %v57_v46 }
   0xd   :  { %5396 = vmatpush3.bf16.msra.mxu0 %v5395_v33  ;;  %v5431_v54 = vpack.c.bf16 %v72_v45, %v71_v44  ;;  %v41_v56 = vld [vmem:[%s10367_s1 + $0x40] sm:$0xff]  ;;  %v42_v57 = vld [vmem:[%s10367_s1 + $0x48] sm:$0xff]  ;;  %v5433_v59 = vpack.c.bf16 %v90_v53, %v89_v52  ;;  %v59_v61 = vld [vmem:[%s10367_s1 + $0xd0] sm:$0xff] }
   0xe   :  { %5398 = vmatprep.subr.bf16.mxu0 %v5397_v39  ;;  %v73_v58 = vld [vmem:[%s10367_s1 + $0x140] sm:$0xff]  ;;  %v74_v60 = vld [vmem:[%s10367_s1 + $0x148] sm:$0xff]  ;;  %v60_v62 = vld [vmem:[%s10367_s1 + $0xd8] sm:$0xff]  ;;  %v5403_v3 = vpack.c.bf16 %v42_v57, %v41_v56 }
   0xf   :  { %5428 = vmatpush3.bf16.msra.mxu1 %v5427_v38  ;;  %v91_v1 = vld [vmem:[%s10367_s1 + $0x1d0] sm:$0xff]  ;;  %v92_v2 = vld [vmem:[%s10367_s1 + $0x1d8] sm:$0xff]  ;;  %v5435_v4 = vpack.c.bf16 %v74_v60, %v73_v58  ;;  %v5405_v5 = vpack.c.bf16 %v60_v62, %v59_v61  ;;  %v61_v11 = vld [vmem:[%s10367_s1 + $0xe0] sm:$0xff] }
  0x10   :  { %5430 = vmatprep.subr.bf16.mxu1 %v5429_v43  ;;  %v43_v6 = vld [vmem:[%s10367_s1 + $0x50] sm:$0xff]  ;;  %v44_v7 = vld [vmem:[%s10367_s1 + $0x58] sm:$0xff]  ;;  %v5437_v9 = vpack.c.bf16 %v92_v2, %v91_v1  ;;  %v62_v12 = vld [vmem:[%s10367_s1 + $0xe8] sm:$0xff] }
  0x11   :  { %5400 = vmatpush3.bf16.msra.mxu0 %v5399_v51  ;;  %v75_v8 = vld [vmem:[%s10367_s1 + $0x150] sm:$0xff]  ;;  %v76_v10 = vld [vmem:[%s10367_s1 + $0x158] sm:$0xff]  ;;  %v93_v14 = vld [vmem:[%s10367_s1 + $0x1e0] sm:$0xff]  ;;  %v5407_v16 = vpack.c.bf16 %v44_v7, %v43_v6  ;;  %v5409_v19 = vpack.c.bf16 %v62_v12, %v61_v11 }
  0x12   :  { %5402 = vmatprep.subr.bf16.mxu0 %v5401_v55  ;;  %v94_v15 = vld [vmem:[%s10367_s1 + $0x1e8] sm:$0xff]  ;;  %v45_v17 = vld [vmem:[%s10367_s1 + $0x60] sm:$0xff]  ;;  %v5439_v18 = vpack.c.bf16 %v76_v10, %v75_v8  ;;  %v63_v25 = vld [vmem:[%s10367_s1 + $0xf0] sm:$0xff] }
  0x13   :  { %5432 = vmatpush3.bf16.msra.mxu1 %v5431_v54  ;;  %v46_v20 = vld [vmem:[%s10367_s1 + $0x68] sm:$0xff]  ;;  %v77_v21 = vld [vmem:[%s10367_s1 + $0x160] sm:$0xff]  ;;  %v5441_v23 = vpack.c.bf16 %v94_v15, %v93_v14  ;;  %v64_v26 = vld [vmem:[%s10367_s1 + $0xf8] sm:$0xff] }
  0x14   :  { %5434 = vmatprep.subr.bf16.mxu1 %v5433_v59  ;;  %v15_v22 = vld [vmem:[%s10366_s0] sm:$0xff]  ;;  %v78_v24 = vld [vmem:[%s10367_s1 + $0x168] sm:$0xff]  ;;  %v95_v29 = vld [vmem:[%s10367_s1 + $0x1f0] sm:$0xff]  ;;  %v5411_v31 = vpack.c.bf16 %v46_v20, %v45_v17  ;;  %v5413_v35 = vpack.c.bf16 %v64_v26, %v63_v25 }
  0x15   :  { %5404 = vmatpush3.bf16.msra.mxu0 %v5403_v3  ;;  %v1217_v27 = vrot.slane %v15_v22, %v6753_v13  ;;  %v1210_v28 = vcombine.high %v15_v22, %v15_v22  ;;  %v96_v30 = vld [vmem:[%s10367_s1 + $0x1f8] sm:$0xff]  ;;  %v5443_v34 = vpack.c.bf16 %v78_v24, %v77_v21  ;;  %v47_v36 = vld [vmem:[%s10367_s1 + $0x70] sm:$0xff]  ;;  %v113_v41 = vld [vmem:[%s10367_s1 + $0x280] sm:$0xff] }
  0x16   :  { %5406 = vmatprep.subr.bf16.mxu0 %v5405_v5  ;;  %v48_v37 = vld [vmem:[%s10367_s1 + $0x78] sm:$0xff]  ;;  %v79_v38 = vld [vmem:[%s10367_s1 + $0x170] sm:$0xff]  ;;  %v5445_v39 = vpack.c.bf16 %v96_v30, %v95_v29  ;;  %v114_v42 = vld [vmem:[%s10367_s1 + $0x288] sm:$0xff] }
  0x17   :  { %5436 = vmatpush3.bf16.msra.mxu1 %v5435_v4  ;;  %v1225_v32 = vcombine.high %v1217_v27, %v1217_v27  ;;  %v1224_v33 = vrot.slane %v1210_v28, %v6753_v13  ;;  %v80_v40 = vld [vmem:[%s10367_s1 + $0x178] sm:$0xff]  ;;  %v145_v44 = vld [vmem:[%s10367_s1 + $0x380] sm:$0xff]  ;;  %v146_v45 = vld [vmem:[%s10367_s1 + $0x388] sm:$0xff]  ;;  %v5415_v46 = vpack.c.bf16 %v48_v37, %v47_v36  ;;  %v5449_v48 = vpack.c.bf16 %v114_v42, %v113_v41 }
  0x18   :  { %5438 = vmatprep.subr.bf16.mxu1 %v5437_v9  ;;  %v5447_v47 = vpack.c.bf16 %v80_v40, %v79_v38  ;;  %v97_v49 = vld [vmem:[%s10367_s1 + $0x200] sm:$0xff]  ;;  %v98_v50 = vld [vmem:[%s10367_s1 + $0x208] sm:$0xff]  ;;  %v5481_v52 = vpack.c.bf16 %v146_v45, %v145_v44  ;;  %v115_v54 = vld [vmem:[%s10367_s1 + $0x290] sm:$0xff] }
  0x19   :  { %5408 = vmatpush3.bf16.msra.mxu0 %v5407_v16  ;;  %1652 = vmatprep.mubr.f32.mxu0 %v1225_v32  ;;  %v1226_v43 = vcombine.high %v1224_v33, %v1224_v33  ;;  %v129_v51 = vld [vmem:[%s10367_s1 + $0x300] sm:$0xff]  ;;  %v130_v53 = vld [vmem:[%s10367_s1 + $0x308] sm:$0xff]  ;;  %v116_v55 = vld [vmem:[%s10367_s1 + $0x298] sm:$0xff]  ;;  %v5451_v58 = vpack.c.bf16 %v98_v50, %v97_v49 }
  0x1a   :  { %5410 = vmatprep.subr.bf16.mxu0 %v5409_v19  ;;  %v147_v56 = vld [vmem:[%s10367_s1 + $0x390] sm:$0xff]  ;;  %v148_v57 = vld [vmem:[%s10367_s1 + $0x398] sm:$0xff]  ;;  %v5483_v59 = vpack.c.bf16 %v130_v53, %v129_v51  ;;  %v5453_v60 = vpack.c.bf16 %v116_v55, %v115_v54  ;;  %v117_v2 = vld [vmem:[%s10367_s1 + $0x2a0] sm:$0xff] }
  0x1b   :  { %5440 = vmatpush3.bf16.msra.mxu1 %v5439_v18  ;;  %1722 = vmatprep.mubr.f32.mxu1 %v1226_v43  ;;  %v99_v61 = vld [vmem:[%s10367_s1 + $0x210] sm:$0xff]  ;;  %v100_v62 = vld [vmem:[%s10367_s1 + $0x218] sm:$0xff]  ;;  %v5485_v0 = vpack.c.bf16 %v148_v57, %v147_v56  ;;  %v118_v3 = vld [vmem:[%s10367_s1 + $0x2a8] sm:$0xff] }
  0x1c   :  { %5442 = vmatprep.subr.bf16.mxu1 %v5441_v23  ;;  %v131_v63 = vld [vmem:[%s10367_s1 + $0x310] sm:$0xff]  ;;  %v132_v1 = vld [vmem:[%s10367_s1 + $0x318] sm:$0xff]  ;;  %v149_v4 = vld [vmem:[%s10367_s1 + $0x3a0] sm:$0xff]  ;;  %v5455_v6 = vpack.c.bf16 %v100_v62, %v99_v61  ;;  %v5457_v8 = vpack.c.bf16 %v118_v3, %v117_v2 }
  0x1d   :  { %5412 = vmatpush3.bf16.msra.mxu0 %v5411_v31  ;;  %v150_v5 = vld [vmem:[%s10367_s1 + $0x3a8] sm:$0xff]  ;;  %v5487_v7 = vpack.c.bf16 %v132_v1, %v131_v63  ;;  %v101_v9 = vld [vmem:[%s10367_s1 + $0x220] sm:$0xff]  ;;  %v119_v15 = vld [vmem:[%s10367_s1 + $0x2b0] sm:$0xff] }
  0x1e   :  { %5414 = vmatprep.subr.bf16.mxu0 %v5413_v35  ;;  %v102_v10 = vld [vmem:[%s10367_s1 + $0x228] sm:$0xff]  ;;  %v133_v11 = vld [vmem:[%s10367_s1 + $0x320] sm:$0xff]  ;;  %v5489_v12 = vpack.c.bf16 %v150_v5, %v149_v4  ;;  %v120_v16 = vld [vmem:[%s10367_s1 + $0x2b8] sm:$0xff] }
  0x1f   :  { %5444 = vmatpush3.bf16.msra.mxu1 %v5443_v34  ;;  %v134_v14 = vld [vmem:[%s10367_s1 + $0x328] sm:$0xff]  ;;  %v151_v17 = vld [vmem:[%s10367_s1 + $0x3b0] sm:$0xff]  ;;  %v152_v18 = vld [vmem:[%s10367_s1 + $0x3b8] sm:$0xff]  ;;  %v5459_v19 = vpack.c.bf16 %v102_v10, %v101_v9  ;;  %v5461_v21 = vpack.c.bf16 %v120_v16, %v119_v15 }
  0x20   :  { %5446 = vmatprep.subr.bf16.mxu1 %v5445_v39  ;;  %v5491_v20 = vpack.c.bf16 %v134_v14, %v133_v11  ;;  %v103_v22 = vld [vmem:[%s10367_s1 + $0x230] sm:$0xff]  ;;  %v104_v23 = vld [vmem:[%s10367_s1 + $0x238] sm:$0xff]  ;;  %v5493_v25 = vpack.c.bf16 %v152_v18, %v151_v17  ;;  %v122_v28 = vld [vmem:[%s10367_s1 + $0x2c8] sm:$0xff] }
  0x21   :  { %5416 = vmatpush3.bf16.msra.mxu0 %v5415_v46  ;;  %v135_v24 = vld [vmem:[%s10367_s1 + $0x330] sm:$0xff]  ;;  %v136_v26 = vld [vmem:[%s10367_s1 + $0x338] sm:$0xff]  ;;  %v153_v29 = vld [vmem:[%s10367_s1 + $0x3c0] sm:$0xff]  ;;  %v5463_v32 = vpack.c.bf16 %v104_v23, %v103_v22 }
  0x22   :  { %5450 = vmatprep.subr.bf16.mxu0 %v5449_v48  ;;  %v154_v30 = vld [vmem:[%s10367_s1 + $0x3c8] sm:$0xff]  ;;  %v5495_v35 = vpack.c.bf16 %v136_v26, %v135_v24  ;;  %v105_v37 = vld [vmem:[%s10367_s1 + $0x240] sm:$0xff]  ;;  %v123_v42 = vld [vmem:[%s10367_s1 + $0x2d0] sm:$0xff] }
  0x23   :  { %5448 = vmatpush3.bf16.msra.mxu1 %v5447_v47  ;;  %v16_v31 = vld [vmem:[%s10366_s0 + $0x8] sm:$0xff]  ;;  %v137_v39 = vld [vmem:[%s10367_s1 + $0x340] sm:$0xff]  ;;  %v5497_v40 = vpack.c.bf16 %v154_v30, %v153_v29  ;;  %v124_v43 = vld [vmem:[%s10367_s1 + $0x2d8] sm:$0xff] }
  0x24   :  { %5482 = vmatprep.subr.bf16.mxu1 %v5481_v52  ;;  %1653 = vmatmul.mubr.f32.vlgmr.msra.gmra.mrb[0].mxu0 %v1217_v27  ;;  %v121_v27 = vld [vmem:[%s10367_s1 + $0x2c0] sm:$0xff]  ;;  %v1227_v34 = vcombine.high %v16_v31, %v16_v31  ;;  %v106_v38 = vld [vmem:[%s10367_s1 + $0x248] sm:$0xff]  ;;  %v155_v46 = vld [vmem:[%s10367_s1 + $0x3d0] sm:$0xff]  ;;  %v5469_v51 = vpack.c.bf16 %v124_v43, %v123_v42 }
  0x25   :  { %5452 = vmatpush3.bf16.msra.mxu0 %v5451_v58  ;;  %v5465_v36 = vpack.c.bf16 %v122_v28, %v121_v27  ;;  %v138_v41 = vld [vmem:[%s10367_s1 + $0x348] sm:$0xff]  ;;  %v156_v47 = vld [vmem:[%s10367_s1 + $0x3d8] sm:$0xff]  ;;  %v5467_v48 = vpack.c.bf16 %v106_v38, %v105_v37  ;;  %v107_v52 = vld [vmem:[%s10367_s1 + $0x250] sm:$0xff] }
  0x26   :  { %1723 = vmatmul.mubr.f32.vlgmr.msra.gmra.mrb[0].mxu1 %v1224_v33  ;;  %5454 = vmatprep.subr.bf16.mxu0 %v5453_v60  ;;  %v6914_v33 = vrot.slane %v16_v31, %v6753_v13  ;;  %v6937_v45 = vrot.slane %v1227_v34, %v6753_v13  ;;  %v5499_v50 = vpack.c.bf16 %v138_v41, %v137_v39  ;;  %v108_v53 = vld [vmem:[%s10367_s1 + $0x258] sm:$0xff]  ;;  %v139_v54 = vld [vmem:[%s10367_s1 + $0x350] sm:$0xff]  ;;  %v125_v57 = vld [vmem:[%s10367_s1 + $0x2e0] sm:$0xff] }
  0x27   :  { %5484 = vmatpush3.bf16.msra.mxu1 %v5483_v59  ;;  %v5501_v55 = vpack.c.bf16 %v156_v47, %v155_v46  ;;  %v140_v56 = vld [vmem:[%s10367_s1 + $0x358] sm:$0xff]  ;;  %v126_v58 = vld [vmem:[%s10367_s1 + $0x2e8] sm:$0xff]  ;;  %v157_v59 = vld [vmem:[%s10367_s1 + $0x3e0] sm:$0xff]  ;;  %v5471_v61 = vpack.c.bf16 %v108_v53, %v107_v52 }
  0x28   :  { %5486 = vmatprep.subr.bf16.mxu1 %v5485_v0  ;;  %v1242_v44 = vcombine.high %v6914_v33, %v6914_v33  ;;  %v1243_v49 = vcombine.high %v6937_v45, %v6937_v45  ;;  %v158_v60 = vld [vmem:[%s10367_s1 + $0x3e8] sm:$0xff]  ;;  %v5503_v62 = vpack.c.bf16 %v140_v56, %v139_v54  ;;  %v5473_v63 = vpack.c.bf16 %v126_v58, %v125_v57  ;;  %v109_v0 = vld [vmem:[%s10367_s1 + $0x260] sm:$0xff]  ;;  %v127_v5 = vld [vmem:[%s10367_s1 + $0x2f0] sm:$0xff] }
  0x29   :  { %5456 = vmatpush3.bf16.msra.mxu0 %v5455_v6  ;;  %v110_v1 = vld [vmem:[%s10367_s1 + $0x268] sm:$0xff]  ;;  %v141_v2 = vld [vmem:[%s10367_s1 + $0x360] sm:$0xff]  ;;  %v5505_v3 = vpack.c.bf16 %v158_v60, %v157_v59  ;;  %v128_v6 = vld [vmem:[%s10367_s1 + $0x2f8] sm:$0xff] }
  0x2a   :  { %5458 = vmatprep.subr.bf16.mxu0 %v5457_v8  ;;  %1792 = vmatprep.mubr.f32.mxu0 %v1242_v44  ;;  %v142_v4 = vld [vmem:[%s10367_s1 + $0x368] sm:$0xff]  ;;  %v160_v8 = vld [vmem:[%s10367_s1 + $0x3f8] sm:$0xff]  ;;  %v5475_v9 = vpack.c.bf16 %v110_v1, %v109_v0  ;;  %v5477_v11 = vpack.c.bf16 %v128_v6, %v127_v5  ;;  %v143_v15 = vld [vmem:[%s10367_s1 + $0x370] sm:$0xff] }
  0x2b   :  { %5488 = vmatpush3.bf16.msra.mxu1 %v5487_v7  ;;  %1862 = vmatprep.mubr.f32.mxu1 %v1243_v49  ;;  %v159_v7 = vld [vmem:[%s10367_s1 + $0x3f0] sm:$0xff]  ;;  %v5507_v10 = vpack.c.bf16 %v142_v4, %v141_v2  ;;  %v112_v14 = vld [vmem:[%s10367_s1 + $0x278] sm:$0xff]  ;;  %v177_v18 = vld [vmem:[%s10367_s1 + $0x480] sm:$0xff] }
  0x2c   :  { %5490 = vmatprep.subr.bf16.mxu1 %v5489_v12  ;;  %v111_v12 = vld [vmem:[%s10367_s1 + $0x270] sm:$0xff]  ;;  %v5509_v16 = vpack.c.bf16 %v160_v8, %v159_v7  ;;  %v144_v17 = vld [vmem:[%s10367_s1 + $0x378] sm:$0xff]  ;;  %v161_v23 = vld [vmem:[%s10367_s1 + $0x400] sm:$0xff] }
  0x2d   :  { %5460 = vmatpush3.bf16.msra.mxu0 %v5459_v19  ;;  %v178_v19 = vld [vmem:[%s10367_s1 + $0x488] sm:$0xff]  ;;  %v5479_v22 = vpack.c.bf16 %v112_v14, %v111_v12  ;;  %v5511_v24 = vpack.c.bf16 %v144_v17, %v143_v15  ;;  %v193_v27 = vld [vmem:[%s10367_s1 + $0x500] sm:$0xff]  ;;  %v179_v30 = vld [vmem:[%s10367_s1 + $0x490] sm:$0xff] }
  0x2e   :  { %5462 = vmatprep.subr.bf16.mxu0 %v5461_v21  ;;  %v210_v21 = vld [vmem:[%s10367_s1 + $0x588] sm:$0xff]  ;;  %v180_v31 = vld [vmem:[%s10367_s1 + $0x498] sm:$0xff]  ;;  %v17_v37 = vld [vmem:[%s10366_s0 + $0x10] sm:$0xff] }
  0x2f   :  { %5492 = vmatpush3.bf16.msra.mxu1 %v5491_v20  ;;  %v209_v20 = vld [vmem:[%s10367_s1 + $0x580] sm:$0xff]  ;;  %v162_v26 = vld [vmem:[%s10367_s1 + $0x408] sm:$0xff]  ;;  %v212_v34 = vld [vmem:[%s10367_s1 + $0x598] sm:$0xff]  ;;  %v5517_v38 = vpack.c.bf16 %v180_v31, %v179_v30  ;;  %v7056_v42 = vrot.slane %v17_v37, %v6753_v13  ;;  %v1244_v43 = vcombine.high %v17_v37, %v17_v37 }
  0x30   :  { %5494 = vmatprep.subr.bf16.mxu1 %v5493_v25  ;;  %v5513_v25 = vpack.c.bf16 %v178_v19, %v177_v18  ;;  %v194_v28 = vld [vmem:[%s10367_s1 + $0x508] sm:$0xff]  ;;  %v5545_v29 = vpack.c.bf16 %v210_v21, %v209_v20  ;;  %v163_v39 = vld [vmem:[%s10367_s1 + $0x410] sm:$0xff]  ;;  %v196_v46 = vld [vmem:[%s10367_s1 + $0x518] sm:$0xff] }
  0x31   :  { %5464 = vmatpush3.bf16.msra.mxu0 %v5463_v32  ;;  %v211_v32 = vld [vmem:[%s10367_s1 + $0x590] sm:$0xff]  ;;  %v181_v47 = vld [vmem:[%s10367_s1 + $0x4a0] sm:$0xff]  ;;  %v7077_v52 = vrot.slane %v1244_v43, %v6753_v13  ;;  %v166_v56 = vld [vmem:[%s10367_s1 + $0x428] sm:$0xff] }
  0x32   :  { %5466 = vmatprep.subr.bf16.mxu0 %v5465_v36  ;;  %v5547_v36 = vpack.c.bf16 %v194_v28, %v193_v27  ;;  %v195_v41 = vld [vmem:[%s10367_s1 + $0x510] sm:$0xff]  ;;  %v5549_v44 = vpack.c.bf16 %v212_v34, %v211_v32  ;;  %v213_v49 = vld [vmem:[%s10367_s1 + $0x5a0] sm:$0xff]  ;;  %v198_v59 = vld [vmem:[%s10367_s1 + $0x528] sm:$0xff] }
  0x33   :  { %5496 = vmatpush3.bf16.msra.mxu1 %v5495_v35  ;;  %v5515_v35 = vpack.c.bf16 %v162_v26, %v161_v23  ;;  %v197_v57 = vld [vmem:[%s10367_s1 + $0x520] sm:$0xff]  ;;  %v183_v60 = vld [vmem:[%s10367_s1 + $0x4b0] sm:$0xff]  ;;  %v168_v4 = vld [vmem:[%s10367_s1 + $0x438] sm:$0xff] }
  0x34   :  { %5498 = vmatprep.subr.bf16.mxu1 %v5497_v40  ;;  %v164_v40 = vld [vmem:[%s10367_s1 + $0x418] sm:$0xff]  ;;  %v5555_v1 = vpack.c.bf16 %v198_v59, %v197_v57  ;;  %v199_v5 = vld [vmem:[%s10367_s1 + $0x530] sm:$0xff]  ;;  %v185_v8 = vld [vmem:[%s10367_s1 + $0x4c0] sm:$0xff] }
  0x35   :  { %5468 = vmatpush3.bf16.msra.mxu0 %v5467_v48  ;;  %v182_v48 = vld [vmem:[%s10367_s1 + $0x4a8] sm:$0xff]  ;;  %v5519_v53 = vpack.c.bf16 %v164_v40, %v163_v39  ;;  %v200_v7 = vld [vmem:[%s10367_s1 + $0x538] sm:$0xff]  ;;  %v201_v18 = vld [vmem:[%s10367_s1 + $0x540] sm:$0xff] }
  0x36   :  { %5470 = vmatprep.subr.bf16.mxu0 %v5469_v51  ;;  %v1259_v51 = vcombine.high %v7056_v42, %v7056_v42  ;;  %v5521_v54 = vpack.c.bf16 %v182_v48, %v181_v47  ;;  %v5559_v14 = vpack.c.bf16 %v200_v7, %v199_v5  ;;  %v170_v17 = vld [vmem:[%s10367_s1 + $0x448] sm:$0xff]  ;;  %v187_v21 = vld [vmem:[%s10367_s1 + $0x4d0] sm:$0xff]  ;;  %v204_v32 = vld [vmem:[%s10367_s1 + $0x558] sm:$0xff] }
  0x37   :  { %5500 = vmatpush3.bf16.msra.mxu1 %v5499_v50  ;;  %v214_v50 = vld [vmem:[%s10367_s1 + $0x5a8] sm:$0xff]  ;;  %v219_v23 = vld [vmem:[%s10367_s1 + $0x5d0] sm:$0xff]  ;;  %v189_v34 = vld [vmem:[%s10367_s1 + $0x4e0] sm:$0xff] }
  0x38   :  { %5502 = vmatprep.subr.bf16.mxu1 %v5501_v55  ;;  %v165_v55 = vld [vmem:[%s10367_s1 + $0x420] sm:$0xff]  ;;  %v5553_v58 = vpack.c.bf16 %v214_v50, %v213_v49  ;;  %v202_v20 = vld [vmem:[%s10367_s1 + $0x548] sm:$0xff]  ;;  %v171_v28 = vld [vmem:[%s10367_s1 + $0x450] sm:$0xff] }
  0x39   :  { %5472 = vmatpush3.bf16.msra.mxu0 %v5471_v61  ;;  %v184_v61 = vld [vmem:[%s10367_s1 + $0x4b8] sm:$0xff]  ;;  %v5523_v0 = vpack.c.bf16 %v166_v56, %v165_v55  ;;  %v5563_v26 = vpack.c.bf16 %v202_v20, %v201_v18  ;;  %v203_v30 = vld [vmem:[%s10367_s1 + $0x550] sm:$0xff]  ;;  %v222_v37 = vld [vmem:[%s10367_s1 + $0x5e8] sm:$0xff] }
  0x3a   :  { %5474 = vmatprep.subr.bf16.mxu0 %v5473_v63  ;;  %v216_v63 = vld [vmem:[%s10367_s1 + $0x5b8] sm:$0xff]  ;;  %v5525_v2 = vpack.c.bf16 %v184_v61, %v183_v60  ;;  %v5567_v39 = vpack.c.bf16 %v204_v32, %v203_v30  ;;  %v174_v43 = vld [vmem:[%s10367_s1 + $0x468] sm:$0xff]  ;;  %v191_v48 = vld [vmem:[%s10367_s1 + $0x4f0] sm:$0xff] }
  0x3b   :  { %5504 = vmatpush3.bf16.msra.mxu1 %v5503_v62  ;;  %v215_v62 = vld [vmem:[%s10367_s1 + $0x5b0] sm:$0xff]  ;;  %v206_v47 = vld [vmem:[%s10367_s1 + $0x568] sm:$0xff]  ;;  %v192_v49 = vld [vmem:[%s10367_s1 + $0x4f8] sm:$0xff] }
  0x3c   :  { %5506 = vmatprep.subr.bf16.mxu1 %v5505_v3  ;;  %v167_v3 = vld [vmem:[%s10367_s1 + $0x430] sm:$0xff]  ;;  %v5557_v6 = vpack.c.bf16 %v216_v63, %v215_v62  ;;  %v5541_v55 = vpack.c.bf16 %v192_v49, %v191_v48  ;;  %v176_v57 = vld [vmem:[%s10367_s1 + $0x478] sm:$0xff]  ;;  %v241_v60 = vld [vmem:[%s10367_s1 + $0x680] sm:$0xff] }
  0x3d   :  { %5476 = vmatpush3.bf16.msra.mxu0 %v5475_v9  ;;  %v186_v9 = vld [vmem:[%s10367_s1 + $0x4c8] sm:$0xff]  ;;  %v5527_v12 = vpack.c.bf16 %v168_v4, %v167_v3  ;;  %v223_v50 = vld [vmem:[%s10367_s1 + $0x5f0] sm:$0xff]  ;;  %v208_v59 = vld [vmem:[%s10367_s1 + $0x578] sm:$0xff] }
  0x3e   :  { %5478 = vmatprep.subr.bf16.mxu0 %v5477_v11  ;;  %v218_v11 = vld [vmem:[%s10367_s1 + $0x5c8] sm:$0xff]  ;;  %v5529_v15 = vpack.c.bf16 %v186_v9, %v185_v8  ;;  %v175_v56 = vld [vmem:[%s10367_s1 + $0x470] sm:$0xff]  ;;  %v273_v62 = vld [vmem:[%s10367_s1 + $0x780] sm:$0xff] }
  0x3f   :  { %5508 = vmatpush3.bf16.msra.mxu1 %v5507_v10  ;;  %v217_v10 = vld [vmem:[%s10367_s1 + $0x5c0] sm:$0xff]  ;;  %v242_v61 = vld [vmem:[%s10367_s1 + $0x688] sm:$0xff]  ;;  %v243_v9 = vld [vmem:[%s10367_s1 + $0x690] sm:$0xff] }
  0x40   :  { %5510 = vmatprep.subr.bf16.mxu1 %v5509_v16  ;;  %v169_v16 = vld [vmem:[%s10367_s1 + $0x440] sm:$0xff]  ;;  %v5561_v19 = vpack.c.bf16 %v218_v11, %v217_v10  ;;  %v274_v63 = vld [vmem:[%s10367_s1 + $0x788] sm:$0xff]  ;;  %v5577_v3 = vpack.c.bf16 %v242_v61, %v241_v60  ;;  %v244_v10 = vld [vmem:[%s10367_s1 + $0x698] sm:$0xff] }
  0x41   :  { %5480 = vmatpush3.bf16.msra.mxu0 %v5479_v22  ;;  %v188_v22 = vld [vmem:[%s10367_s1 + $0x4d8] sm:$0xff]  ;;  %v225_v4 = vld [vmem:[%s10367_s1 + $0x600] sm:$0xff]  ;;  %v226_v5 = vld [vmem:[%s10367_s1 + $0x608] sm:$0xff]  ;;  %v5609_v7 = vpack.c.bf16 %v274_v63, %v273_v62  ;;  %v5581_v18 = vpack.c.bf16 %v244_v10, %v243_v9 }
  0x42   :  { %5514 = vmatprep.subr.bf16.mxu0 %v5513_v25  ;;  %v5531_v25 = vpack.c.bf16 %v170_v17, %v169_v16  ;;  %v5533_v27 = vpack.c.bf16 %v188_v22, %v187_v21  ;;  %v258_v8 = vld [vmem:[%s10367_s1 + $0x708] sm:$0xff]  ;;  %v5579_v16 = vpack.c.bf16 %v226_v5, %v225_v4  ;;  %v228_v20 = vld [vmem:[%s10367_s1 + $0x618] sm:$0xff]  ;;  %v259_v21 = vld [vmem:[%s10367_s1 + $0x710] sm:$0xff] }
  0x43   :  { %5512 = vmatpush3.bf16.msra.mxu1 %v5511_v24  ;;  %v220_v24 = vld [vmem:[%s10367_s1 + $0x5d8] sm:$0xff]  ;;  %v263_v48 = vld [vmem:[%s10367_s1 + $0x730] sm:$0xff]  ;;  %v266_v61 = vld [vmem:[%s10367_s1 + $0x748] sm:$0xff] }
  0x44   :  { %5546 = vmatprep.subr.bf16.mxu1 %v5545_v29  ;;  %1793 = vmatmul.mubr.f32.vlgmr.msra.gmra.mrb[2].mxu0 %v6914_v33  ;;  %v5551_v33 = vpack.c.bf16 %v196_v46, %v195_v41  ;;  %v172_v29 = vld [vmem:[%s10367_s1 + $0x458] sm:$0xff]  ;;  %v5565_v31 = vpack.c.bf16 %v220_v24, %v219_v23  ;;  %v173_v41 = vld [vmem:[%s10367_s1 + $0x460] sm:$0xff]  ;;  %v251_v62 = vld [vmem:[%s10367_s1 + $0x6d0] sm:$0xff] }
  0x45   :  { %5516 = vmatpush3.bf16.msra.mxu0 %v5515_v35  ;;  %1932 = vmatprep.mubr.f32.mxu0 %v1259_v51  ;;  %v190_v35 = vld [vmem:[%s10367_s1 + $0x4e8] sm:$0xff]  ;;  %v224_v51 = vld [vmem:[%s10367_s1 + $0x5f8] sm:$0xff]  ;;  %v245_v24 = vld [vmem:[%s10367_s1 + $0x6a0] sm:$0xff] }
  0x46   :  { %1863 = vmatmul.mubr.f32.vlgmr.msra.gmra.mrb[2].mxu1 %v6937_v45  ;;  %5518 = vmatprep.subr.bf16.mxu0 %v5517_v38  ;;  %v1260_v45 = vcombine.high %v7077_v52, %v7077_v52  ;;  %v5535_v38 = vpack.c.bf16 %v172_v29, %v171_v28  ;;  %v5537_v40 = vpack.c.bf16 %v190_v35, %v189_v34  ;;  %v260_v23 = vld [vmem:[%s10367_s1 + $0x718] sm:$0xff]  ;;  %v278_v28 = vld [vmem:[%s10367_s1 + $0x7a8] sm:$0xff]  ;;  %v261_v35 = vld [vmem:[%s10367_s1 + $0x720] sm:$0xff] }
  0x47   :  { %5548 = vmatpush3.bf16.msra.mxu1 %v5547_v36  ;;  %v221_v36 = vld [vmem:[%s10367_s1 + $0x5e0] sm:$0xff]  ;;  %v230_v34 = vld [vmem:[%s10367_s1 + $0x628] sm:$0xff]  ;;  %v252_v63 = vld [vmem:[%s10367_s1 + $0x6d8] sm:$0xff] }
  0x48   :  { %5550 = vmatprep.subr.bf16.mxu1 %v5549_v44  ;;  %2002 = vmatprep.mubr.f32.mxu1 %v1260_v45  ;;  %v205_v44 = vld [vmem:[%s10367_s1 + $0x560] sm:$0xff]  ;;  %v5569_v46 = vpack.c.bf16 %v222_v37, %v221_v36  ;;  %v207_v45 = vld [vmem:[%s10367_s1 + $0x570] sm:$0xff]  ;;  %v5597_v4 = vpack.c.bf16 %v252_v63, %v251_v62  ;;  %v268_v9 = vld [vmem:[%s10367_s1 + $0x758] sm:$0xff] }
  0x49   :  { %5520 = vmatpush3.bf16.msra.mxu0 %v5519_v53  ;;  %v5539_v53 = vpack.c.bf16 %v174_v43, %v173_v41  ;;  %v247_v37 = vld [vmem:[%s10367_s1 + $0x6b0] sm:$0xff]  ;;  %v253_v10 = vld [vmem:[%s10367_s1 + $0x6e0] sm:$0xff] }
  0x4a   :  { %5522 = vmatprep.subr.bf16.mxu0 %v5521_v54  ;;  %v5571_v54 = vpack.c.bf16 %v206_v47, %v205_v44  ;;  %v232_v47 = vld [vmem:[%s10367_s1 + $0x638] sm:$0xff]  ;;  %v235_v5 = vld [vmem:[%s10367_s1 + $0x650] sm:$0xff] }
  0x4b   :  { %5552 = vmatpush3.bf16.msra.mxu1 %v5551_v33  ;;  %v18_v33 = vld [vmem:[%s10366_s0 + $0x18] sm:$0xff]  ;;  %v323_v62 = vld [vmem:[%s10367_s1 + $0x910] sm:$0xff] }
  0x4c   :  { %5554 = vmatprep.subr.bf16.mxu1 %v5553_v58  ;;  %v5573_v58 = vpack.c.bf16 %v224_v51, %v223_v50  ;;  %v7248_v11 = vrot.slane %v18_v33, %v6753_v13  ;;  %v264_v50 = vld [vmem:[%s10367_s1 + $0x738] sm:$0xff]  ;;  %v249_v51 = vld [vmem:[%s10367_s1 + $0x6c0] sm:$0xff] }
  0x4d   :  { %5524 = vmatpush3.bf16.msra.mxu0 %v5523_v0  ;;  %v1261_v0 = vcombine.high %v18_v33, %v18_v33  ;;  %v281_v33 = vld [vmem:[%s10367_s1 + $0x7c0] sm:$0xff] }
  0x4e   :  { %5526 = vmatprep.subr.bf16.mxu0 %v5525_v2  ;;  %v5575_v2 = vpack.c.bf16 %v208_v59, %v207_v45  ;;  %v233_v45 = vld [vmem:[%s10367_s1 + $0x640] sm:$0xff] }
  0x4f   :  { %5556 = vmatpush3.bf16.msra.mxu1 %v5555_v1  ;;  %v5543_v1 = vpack.c.bf16 %v176_v57, %v175_v56  ;;  %v5623_v56 = vpack.c.bf16 %v264_v50, %v263_v48  ;;  %v265_v59 = vld [vmem:[%s10367_s1 + $0x740] sm:$0xff]  ;;  %v290_v48 = vld [vmem:[%s10367_s1 + $0x808] sm:$0xff] }
  0x50   :  { %5558 = vmatprep.subr.bf16.mxu1 %v5557_v6  ;;  %v257_v6 = vld [vmem:[%s10367_s1 + $0x700] sm:$0xff] }
  0x51   :  { %5528 = vmatpush3.bf16.msra.mxu0 %v5527_v12  ;;  %v275_v12 = vld [vmem:[%s10367_s1 + $0x790] sm:$0xff]  ;;  %v5611_v17 = vpack.c.bf16 %v258_v8, %v257_v6  ;;  %v236_v6 = vld [vmem:[%s10367_s1 + $0x658] sm:$0xff] }
  0x52   :  { %5530 = vmatprep.subr.bf16.mxu0 %v5529_v15  ;;  %v7257_v15 = vrot.slane %v1261_v0, %v6753_v13  ;;  %v283_v0 = vld [vmem:[%s10367_s1 + $0x7d0] sm:$0xff] }
  0x53   :  { %5560 = vmatpush3.bf16.msra.mxu1 %v5559_v14  ;;  %v276_v14 = vld [vmem:[%s10367_s1 + $0x798] sm:$0xff] }
  0x54   :  { %5562 = vmatprep.subr.bf16.mxu1 %v5561_v19  ;;  %v227_v19 = vld [vmem:[%s10367_s1 + $0x610] sm:$0xff]  ;;  %v5613_v22 = vpack.c.bf16 %v276_v14, %v275_v12  ;;  %v1277_v29 = vcombine.high %v7257_v15, %v7257_v15  ;;  %v254_v12 = vld [vmem:[%s10367_s1 + $0x6e8] sm:$0xff]  ;;  %v285_v14 = vld [vmem:[%s10367_s1 + $0x7e0] sm:$0xff] }
  0x55   :  { %5532 = vmatpush3.bf16.msra.mxu0 %v5531_v25  ;;  %v246_v25 = vld [vmem:[%s10367_s1 + $0x6a8] sm:$0xff]  ;;  %v5583_v30 = vpack.c.bf16 %v228_v20, %v227_v19  ;;  %v5601_v19 = vpack.c.bf16 %v254_v12, %v253_v10  ;;  %v237_v20 = vld [vmem:[%s10367_s1 + $0x660] sm:$0xff] }
  0x56   :  { %5534 = vmatprep.subr.bf16.mxu0 %v5533_v27  ;;  %v277_v27 = vld [vmem:[%s10367_s1 + $0x7a0] sm:$0xff]  ;;  %v5585_v32 = vpack.c.bf16 %v246_v25, %v245_v24  ;;  %v270_v24 = vld [vmem:[%s10367_s1 + $0x768] sm:$0xff]  ;;  %v255_v25 = vld [vmem:[%s10367_s1 + $0x6f0] sm:$0xff] }
  0x57   :  { %5564 = vmatpush3.bf16.msra.mxu1 %v5563_v26  ;;  %v1276_v26 = vcombine.high %v7248_v11, %v7248_v11  ;;  %v5617_v36 = vpack.c.bf16 %v278_v28, %v277_v27  ;;  %v287_v27 = vld [vmem:[%s10367_s1 + $0x7f0] sm:$0xff]  ;;  %v288_v28 = vld [vmem:[%s10367_s1 + $0x7f8] sm:$0xff]  ;;  %v294_v10 = vld [vmem:[%s10367_s1 + $0x828] sm:$0xff] }
  0x58   :  { %5566 = vmatprep.subr.bf16.mxu1 %v5565_v31  ;;  %v5615_v31 = vpack.c.bf16 %v260_v23, %v259_v21  ;;  %v238_v21 = vld [vmem:[%s10367_s1 + $0x668] sm:$0xff]  ;;  %v325_v12 = vld [vmem:[%s10367_s1 + $0x920] sm:$0xff] }
  0x59   :  { %5536 = vmatpush3.bf16.msra.mxu0 %v5535_v38  ;;  %v248_v38 = vld [vmem:[%s10367_s1 + $0x6b8] sm:$0xff] }
  0x5a   :  { %5538 = vmatprep.subr.bf16.mxu0 %v5537_v40  ;;  %v280_v40 = vld [vmem:[%s10367_s1 + $0x7b8] sm:$0xff]  ;;  %v5589_v44 = vpack.c.bf16 %v248_v38, %v247_v37  ;;  %v305_v37 = vld [vmem:[%s10367_s1 + $0x880] sm:$0xff]  ;;  %v306_v38 = vld [vmem:[%s10367_s1 + $0x888] sm:$0xff] }
  0x5b   :  { %5568 = vmatpush3.bf16.msra.mxu1 %v5567_v39  ;;  %v279_v39 = vld [vmem:[%s10367_s1 + $0x7b0] sm:$0xff] }
  0x5c   :  { %5570 = vmatprep.subr.bf16.mxu1 %v5569_v46  ;;  %v231_v46 = vld [vmem:[%s10367_s1 + $0x630] sm:$0xff]  ;;  %v5621_v49 = vpack.c.bf16 %v280_v40, %v279_v39  ;;  %v337_v39 = vld [vmem:[%s10367_s1 + $0x980] sm:$0xff]  ;;  %v338_v40 = vld [vmem:[%s10367_s1 + $0x988] sm:$0xff] }
  0x5d   :  { %5540 = vmatpush3.bf16.msra.mxu0 %v5539_v53  ;;  %v250_v53 = vld [vmem:[%s10367_s1 + $0x6c8] sm:$0xff]  ;;  %v5673_v50 = vpack.c.bf16 %v338_v40, %v337_v39  ;;  %v315_v39 = vld [vmem:[%s10367_s1 + $0x8d0] sm:$0xff]  ;;  %v316_v40 = vld [vmem:[%s10367_s1 + $0x8d8] sm:$0xff] }
  0x5e   :  { %5542 = vmatprep.subr.bf16.mxu0 %v5541_v55  ;;  %v5591_v55 = vpack.c.bf16 %v232_v47, %v231_v46  ;;  %v5593_v57 = vpack.c.bf16 %v250_v53, %v249_v51  ;;  %v5641_v46 = vpack.c.bf16 %v306_v38, %v305_v37  ;;  %v289_v47 = vld [vmem:[%s10367_s1 + $0x800] sm:$0xff]  ;;  %v322_v51 = vld [vmem:[%s10367_s1 + $0x908] sm:$0xff]  ;;  %v307_v53 = vld [vmem:[%s10367_s1 + $0x890] sm:$0xff] }
  0x5f   :  { %5572 = vmatpush3.bf16.msra.mxu1 %v5571_v54  ;;  %v282_v54 = vld [vmem:[%s10367_s1 + $0x7c8] sm:$0xff] }
  0x60   :  { %5574 = vmatprep.subr.bf16.mxu1 %v5573_v58  ;;  %v234_v58 = vld [vmem:[%s10367_s1 + $0x648] sm:$0xff]  ;;  %v5625_v60 = vpack.c.bf16 %v282_v54, %v281_v33  ;;  %v308_v33 = vld [vmem:[%s10367_s1 + $0x898] sm:$0xff] }
  0x61   :  { %5544 = vmatpush3.bf16.msra.mxu0 %v5543_v1  ;;  %v284_v1 = vld [vmem:[%s10367_s1 + $0x7d8] sm:$0xff]  ;;  %v330_v38 = vld [vmem:[%s10367_s1 + $0x948] sm:$0xff] }
  0x62   :  { %5578 = vmatprep.subr.bf16.mxu0 %v5577_v3  ;;  %v5627_v3 = vpack.c.bf16 %v266_v61, %v265_v59  ;;  %v5629_v8 = vpack.c.bf16 %v284_v1, %v283_v0  ;;  %v5645_v59 = vpack.c.bf16 %v308_v33, %v307_v53  ;;  %v292_v61 = vld [vmem:[%s10367_s1 + $0x818] sm:$0xff]  ;;  %v309_v1 = vld [vmem:[%s10367_s1 + $0x8a0] sm:$0xff] }
  0x63   :  { %5576 = vmatpush3.bf16.msra.mxu1 %v5575_v2  ;;  %v5595_v2 = vpack.c.bf16 %v234_v58, %v233_v45  ;;  %v5643_v45 = vpack.c.bf16 %v290_v48, %v289_v47  ;;  %v324_v0 = vld [vmem:[%s10367_s1 + $0x918] sm:$0xff]  ;;  %v5661_v47 = vpack.c.bf16 %v316_v40, %v315_v39  ;;  %v299_v48 = vld [vmem:[%s10367_s1 + $0x850] sm:$0xff]  ;;  %v317_v33 = vld [vmem:[%s10367_s1 + $0x8e0] sm:$0xff] }
  0x64   :  { %5610 = vmatprep.subr.bf16.mxu1 %v5609_v7  ;;  %1933 = vmatmul.mubr.f32.vlgmr.msra.gmra.mrb[4].mxu0 %v7056_v42  ;;  %v229_v42 = vld [vmem:[%s10367_s1 + $0x620] sm:$0xff]  ;;  %v267_v7 = vld [vmem:[%s10367_s1 + $0x750] sm:$0xff]  ;;  %v332_v53 = vld [vmem:[%s10367_s1 + $0x958] sm:$0xff] }
  0x65   :  { %5580 = vmatpush3.bf16.msra.mxu0 %v5579_v16  ;;  %2072 = vmatprep.mubr.f32.mxu0 %v1276_v26  ;;  %v5587_v41 = vpack.c.bf16 %v230_v34, %v229_v42  ;;  %v286_v16 = vld [vmem:[%s10367_s1 + $0x7e8] sm:$0xff]  ;;  %v256_v26 = vld [vmem:[%s10367_s1 + $0x6f8] sm:$0xff]  ;;  %v239_v42 = vld [vmem:[%s10367_s1 + $0x670] sm:$0xff] }
  0x66   :  { %2003 = vmatmul.mubr.f32.vlgmr.msra.gmra.mrb[4].mxu1 %v7077_v52  ;;  %5582 = vmatprep.subr.bf16.mxu0 %v5581_v18  ;;  %v262_v52 = vld [vmem:[%s10367_s1 + $0x728] sm:$0xff]  ;;  %v5631_v18 = vpack.c.bf16 %v268_v9, %v267_v7  ;;  %v5633_v23 = vpack.c.bf16 %v286_v16, %v285_v14  ;;  %v240_v34 = vld [vmem:[%s10367_s1 + $0x678] sm:$0xff]  ;;  %v311_v16 = vld [vmem:[%s10367_s1 + $0x8b0] sm:$0xff] }
  0x67   :  { %5612 = vmatpush3.bf16.msra.mxu1 %v5611_v17  ;;  %2142 = vmatprep.mubr.f32.mxu1 %v1277_v29  ;;  %v5619_v43 = vpack.c.bf16 %v262_v52, %v261_v35  ;;  %v5599_v17 = vpack.c.bf16 %v236_v6, %v235_v5  ;;  %v5603_v29 = vpack.c.bf16 %v238_v21, %v237_v20  ;;  %v271_v35 = vld [vmem:[%s10367_s1 + $0x770] sm:$0xff]  ;;  %v272_v52 = vld [vmem:[%s10367_s1 + $0x778] sm:$0xff]  ;;  %v342_v5 = vld [vmem:[%s10367_s1 + $0x9a8] sm:$0xff] }
  0x68   :  { %5614 = vmatprep.subr.bf16.mxu1 %v5613_v22  ;;  %v269_v22 = vld [vmem:[%s10367_s1 + $0x760] sm:$0xff]  ;;  %v387_v39 = vld [vmem:[%s10367_s1 + $0xb10] sm:$0xff] }
  0x69   :  { %5584 = vmatpush3.bf16.msra.mxu0 %v5583_v30  ;;  %v19_v30 = vld [vmem:[%s10366_s0 + $0x20] sm:$0xff] }
  0x6a   :  { %5586 = vmatprep.subr.bf16.mxu0 %v5585_v32  ;;  %v5605_v32 = vpack.c.bf16 %v256_v26, %v255_v25  ;;  %v7455_v54 = vrot.slane %v19_v30, %v6753_v13  ;;  %v327_v25 = vld [vmem:[%s10367_s1 + $0x930] sm:$0xff] }
  0x6b   :  { %5616 = vmatpush3.bf16.msra.mxu1 %v5615_v31  ;;  %v5635_v31 = vpack.c.bf16 %v270_v24, %v269_v22  ;;  %v296_v24 = vld [vmem:[%s10367_s1 + $0x838] sm:$0xff] }
  0x6c   :  { %5618 = vmatprep.subr.bf16.mxu1 %v5617_v36  ;;  %v5637_v36 = vpack.c.bf16 %v288_v28, %v287_v27  ;;  %v328_v27 = vld [vmem:[%s10367_s1 + $0x938] sm:$0xff]  ;;  %v313_v28 = vld [vmem:[%s10367_s1 + $0x8c0] sm:$0xff] }
  0x6d   :  { %5588 = vmatpush3.bf16.msra.mxu0 %v5587_v41  ;;  %v1278_v41 = vcombine.high %v19_v30, %v19_v30  ;;  %v345_v30 = vld [vmem:[%s10367_s1 + $0x9c0] sm:$0xff] }
  0x6e   :  { %5590 = vmatprep.subr.bf16.mxu0 %v5589_v44  ;;  %v5639_v44 = vpack.c.bf16 %v272_v52, %v271_v35  ;;  %v297_v35 = vld [vmem:[%s10367_s1 + $0x840] sm:$0xff] }
  0x6f   :  { %5620 = vmatpush3.bf16.msra.mxu1 %v5619_v43  ;;  %v5607_v43 = vpack.c.bf16 %v240_v34, %v239_v42  ;;  %v5687_v42 = vpack.c.bf16 %v328_v27, %v327_v25  ;;  %v329_v52 = vld [vmem:[%s10367_s1 + $0x940] sm:$0xff]  ;;  %v354_v25 = vld [vmem:[%s10367_s1 + $0xa08] sm:$0xff] }
  0x70   :  { %5622 = vmatprep.subr.bf16.mxu1 %v5621_v49  ;;  %v321_v49 = vld [vmem:[%s10367_s1 + $0x900] sm:$0xff] }
  0x71   :  { %5592 = vmatpush3.bf16.msra.mxu0 %v5591_v55  ;;  %v339_v55 = vld [vmem:[%s10367_s1 + $0x990] sm:$0xff]  ;;  %v5675_v58 = vpack.c.bf16 %v322_v51, %v321_v49  ;;  %v300_v49 = vld [vmem:[%s10367_s1 + $0x858] sm:$0xff] }
  0x72   :  { %5594 = vmatprep.subr.bf16.mxu0 %v5593_v57  ;;  %v7464_v57 = vrot.slane %v1278_v41, %v6753_v13  ;;  %v347_v41 = vld [vmem:[%s10367_s1 + $0x9d0] sm:$0xff] }
  0x73   :  { %5624 = vmatpush3.bf16.msra.mxu1 %v5623_v56  ;;  %v340_v56 = vld [vmem:[%s10367_s1 + $0x998] sm:$0xff] }
  0x74   :  { %5626 = vmatprep.subr.bf16.mxu1 %v5625_v60  ;;  %v291_v60 = vld [vmem:[%s10367_s1 + $0x810] sm:$0xff]  ;;  %v5677_v63 = vpack.c.bf16 %v340_v56, %v339_v55  ;;  %v1294_v6 = vcombine.high %v7464_v57, %v7464_v57  ;;  %v318_v55 = vld [vmem:[%s10367_s1 + $0x8e8] sm:$0xff]  ;;  %v349_v56 = vld [vmem:[%s10367_s1 + $0x9e0] sm:$0xff] }
  0x75   :  { %5596 = vmatpush3.bf16.msra.mxu0 %v5595_v2  ;;  %v310_v2 = vld [vmem:[%s10367_s1 + $0x8a8] sm:$0xff]  ;;  %v5647_v7 = vpack.c.bf16 %v292_v61, %v291_v60  ;;  %v5665_v60 = vpack.c.bf16 %v318_v55, %v317_v33  ;;  %v301_v61 = vld [vmem:[%s10367_s1 + $0x860] sm:$0xff] }
  0x76   :  { %5598 = vmatprep.subr.bf16.mxu0 %v5597_v4  ;;  %v341_v4 = vld [vmem:[%s10367_s1 + $0x9a0] sm:$0xff]  ;;  %v5649_v9 = vpack.c.bf16 %v310_v2, %v309_v1  ;;  %v334_v1 = vld [vmem:[%s10367_s1 + $0x968] sm:$0xff]  ;;  %v319_v2 = vld [vmem:[%s10367_s1 + $0x8f0] sm:$0xff] }
  0x77   :  { %5628 = vmatpush3.bf16.msra.mxu1 %v5627_v3  ;;  %v1293_v3 = vcombine.high %v7455_v54, %v7455_v54  ;;  %v5681_v14 = vpack.c.bf16 %v342_v5, %v341_v4  ;;  %v351_v4 = vld [vmem:[%s10367_s1 + $0x9f0] sm:$0xff]  ;;  %v352_v5 = vld [vmem:[%s10367_s1 + $0x9f8] sm:$0xff]  ;;  %v358_v33 = vld [vmem:[%s10367_s1 + $0xa28] sm:$0xff] }
  0x78   :  { %5630 = vmatprep.subr.bf16.mxu1 %v5629_v8  ;;  %v5679_v8 = vpack.c.bf16 %v324_v0, %v323_v62  ;;  %v302_v62 = vld [vmem:[%s10367_s1 + $0x868] sm:$0xff]  ;;  %v389_v55 = vld [vmem:[%s10367_s1 + $0xb20] sm:$0xff] }
  0x79   :  { %5600 = vmatpush3.bf16.msra.mxu0 %v5599_v17  ;;  %v312_v17 = vld [vmem:[%s10367_s1 + $0x8b8] sm:$0xff] }
  0x7a   :  { %5602 = vmatprep.subr.bf16.mxu0 %v5601_v19  ;;  %v344_v19 = vld [vmem:[%s10367_s1 + $0x9b8] sm:$0xff]  ;;  %v5653_v22 = vpack.c.bf16 %v312_v17, %v311_v16  ;;  %v369_v16 = vld [vmem:[%s10367_s1 + $0xa80] sm:$0xff]  ;;  %v370_v17 = vld [vmem:[%s10367_s1 + $0xa88] sm:$0xff] }
  0x7b   :  { %5632 = vmatpush3.bf16.msra.mxu1 %v5631_v18  ;;  %v343_v18 = vld [vmem:[%s10367_s1 + $0x9b0] sm:$0xff] }
  0x7c   :  { %5634 = vmatprep.subr.bf16.mxu1 %v5633_v23  ;;  %v295_v23 = vld [vmem:[%s10367_s1 + $0x830] sm:$0xff]  ;;  %v5685_v26 = vpack.c.bf16 %v344_v19, %v343_v18  ;;  %v401_v18 = vld [vmem:[%s10367_s1 + $0xb80] sm:$0xff]  ;;  %v402_v19 = vld [vmem:[%s10367_s1 + $0xb88] sm:$0xff] }
  0x7d   :  { %5604 = vmatpush3.bf16.msra.mxu0 %v5603_v29  ;;  %v314_v29 = vld [vmem:[%s10367_s1 + $0x8c8] sm:$0xff]  ;;  %v5737_v27 = vpack.c.bf16 %v402_v19, %v401_v18  ;;  %v379_v18 = vld [vmem:[%s10367_s1 + $0xad0] sm:$0xff]  ;;  %v380_v19 = vld [vmem:[%s10367_s1 + $0xad8] sm:$0xff] }
  0x7e   :  { %5606 = vmatprep.subr.bf16.mxu0 %v5605_v32  ;;  %v5655_v32 = vpack.c.bf16 %v296_v24, %v295_v23  ;;  %v5657_v34 = vpack.c.bf16 %v314_v29, %v313_v28  ;;  %v5705_v23 = vpack.c.bf16 %v370_v17, %v369_v16  ;;  %v353_v24 = vld [vmem:[%s10367_s1 + $0xa00] sm:$0xff]  ;;  %v386_v28 = vld [vmem:[%s10367_s1 + $0xb08] sm:$0xff]  ;;  %v371_v29 = vld [vmem:[%s10367_s1 + $0xa90] sm:$0xff] }
  0x7f   :  { %5636 = vmatpush3.bf16.msra.mxu1 %v5635_v31  ;;  %v346_v31 = vld [vmem:[%s10367_s1 + $0x9c8] sm:$0xff] }
  0x80   :  { %5638 = vmatprep.subr.bf16.mxu1 %v5637_v36  ;;  %v298_v36 = vld [vmem:[%s10367_s1 + $0x848] sm:$0xff]  ;;  %v5689_v37 = vpack.c.bf16 %v346_v31, %v345_v30  ;;  %v372_v30 = vld [vmem:[%s10367_s1 + $0xa98] sm:$0xff] }
  0x81   :  { %5608 = vmatpush3.bf16.msra.mxu0 %v5607_v43  ;;  %v348_v43 = vld [vmem:[%s10367_s1 + $0x9d8] sm:$0xff]  ;;  %v394_v17 = vld [vmem:[%s10367_s1 + $0xb48] sm:$0xff] }
  0x82   :  { %5642 = vmatprep.subr.bf16.mxu0 %v5641_v46  ;;  %v5691_v46 = vpack.c.bf16 %v330_v38, %v329_v52  ;;  %v5693_v51 = vpack.c.bf16 %v348_v43, %v347_v41  ;;  %v5709_v52 = vpack.c.bf16 %v372_v30, %v371_v29  ;;  %v356_v38 = vld [vmem:[%s10367_s1 + $0xa18] sm:$0xff]  ;;  %v373_v43 = vld [vmem:[%s10367_s1 + $0xaa0] sm:$0xff] }
  0x83   :  { %5640 = vmatpush3.bf16.msra.mxu1 %v5639_v44  ;;  %v5659_v44 = vpack.c.bf16 %v298_v36, %v297_v35  ;;  %v5707_v35 = vpack.c.bf16 %v354_v25, %v353_v24  ;;  %v388_v41 = vld [vmem:[%s10367_s1 + $0xb18] sm:$0xff]  ;;  %v5725_v24 = vpack.c.bf16 %v380_v19, %v379_v18  ;;  %v363_v25 = vld [vmem:[%s10367_s1 + $0xa50] sm:$0xff]  ;;  %v381_v30 = vld [vmem:[%s10367_s1 + $0xae0] sm:$0xff] }
  0x84   :  { %5674 = vmatprep.subr.bf16.mxu1 %v5673_v50  ;;  %2073 = vmatmul.mubr.f32.vlgmr.msra.gmra.mrb[6].mxu0 %v7248_v11  ;;  %v293_v11 = vld [vmem:[%s10367_s1 + $0x820] sm:$0xff]  ;;  %v331_v50 = vld [vmem:[%s10367_s1 + $0x950] sm:$0xff]  ;;  %v396_v29 = vld [vmem:[%s10367_s1 + $0xb58] sm:$0xff] }
  0x85   :  { %5644 = vmatpush3.bf16.msra.mxu0 %v5643_v45  ;;  %2212 = vmatprep.mubr.f32.mxu0 %v1293_v3  ;;  %v5651_v20 = vpack.c.bf16 %v294_v10, %v293_v11  ;;  %v350_v45 = vld [vmem:[%s10367_s1 + $0x9e8] sm:$0xff]  ;;  %v320_v3 = vld [vmem:[%s10367_s1 + $0x8f8] sm:$0xff]  ;;  %v303_v11 = vld [vmem:[%s10367_s1 + $0x870] sm:$0xff] }
  0x86   :  { %2143 = vmatmul.mubr.f32.vlgmr.msra.gmra.mrb[6].mxu1 %v7257_v15  ;;  %5646 = vmatprep.subr.bf16.mxu0 %v5645_v59  ;;  %v326_v15 = vld [vmem:[%s10367_s1 + $0x928] sm:$0xff]  ;;  %v5695_v59 = vpack.c.bf16 %v332_v53, %v331_v50  ;;  %v5697_v0 = vpack.c.bf16 %v350_v45, %v349_v56  ;;  %v304_v10 = vld [vmem:[%s10367_s1 + $0x878] sm:$0xff]  ;;  %v375_v45 = vld [vmem:[%s10367_s1 + $0xab0] sm:$0xff] }
  0x87   :  { %5676 = vmatpush3.bf16.msra.mxu1 %v5675_v58  ;;  %2282 = vmatprep.mubr.f32.mxu1 %v1294_v6  ;;  %v5683_v21 = vpack.c.bf16 %v326_v15, %v325_v12  ;;  %v5663_v58 = vpack.c.bf16 %v300_v49, %v299_v48  ;;  %v5667_v6 = vpack.c.bf16 %v302_v62, %v301_v61  ;;  %v335_v12 = vld [vmem:[%s10367_s1 + $0x970] sm:$0xff]  ;;  %v336_v15 = vld [vmem:[%s10367_s1 + $0x978] sm:$0xff]  ;;  %v406_v48 = vld [vmem:[%s10367_s1 + $0xba8] sm:$0xff] }
  0x88   :  { %5678 = vmatprep.subr.bf16.mxu1 %v5677_v63  ;;  %v333_v63 = vld [vmem:[%s10367_s1 + $0x960] sm:$0xff]  ;;  %v451_v18 = vld [vmem:[%s10367_s1 + $0xd10] sm:$0xff] }
  0x89   :  { %5648 = vmatpush3.bf16.msra.mxu0 %v5647_v7  ;;  %v20_v7 = vld [vmem:[%s10366_s0 + $0x28] sm:$0xff] }
  0x8a   :  { %5650 = vmatprep.subr.bf16.mxu0 %v5649_v9  ;;  %v5669_v9 = vpack.c.bf16 %v320_v3, %v319_v2  ;;  %v7662_v31 = vrot.slane %v20_v7, %v6753_v13  ;;  %v391_v2 = vld [vmem:[%s10367_s1 + $0xb30] sm:$0xff] }
  0x8b   :  { %5680 = vmatpush3.bf16.msra.mxu1 %v5679_v8  ;;  %v5699_v8 = vpack.c.bf16 %v334_v1, %v333_v63  ;;  %v360_v1 = vld [vmem:[%s10367_s1 + $0xa38] sm:$0xff] }
  0x8c   :  { %5682 = vmatprep.subr.bf16.mxu1 %v5681_v14  ;;  %v5701_v14 = vpack.c.bf16 %v352_v5, %v351_v4  ;;  %v392_v4 = vld [vmem:[%s10367_s1 + $0xb38] sm:$0xff]  ;;  %v377_v5 = vld [vmem:[%s10367_s1 + $0xac0] sm:$0xff] }
  0x8d   :  { %5652 = vmatpush3.bf16.msra.mxu0 %v5651_v20  ;;  %v1295_v20 = vcombine.high %v20_v7, %v20_v7  ;;  %v409_v7 = vld [vmem:[%s10367_s1 + $0xbc0] sm:$0xff] }
  0x8e   :  { %5654 = vmatprep.subr.bf16.mxu0 %v5653_v22  ;;  %v5703_v22 = vpack.c.bf16 %v336_v15, %v335_v12  ;;  %v361_v12 = vld [vmem:[%s10367_s1 + $0xa40] sm:$0xff] }
  0x8f   :  { %5684 = vmatpush3.bf16.msra.mxu1 %v5683_v21  ;;  %v5671_v21 = vpack.c.bf16 %v304_v10, %v303_v11  ;;  %v5751_v11 = vpack.c.bf16 %v392_v4, %v391_v2  ;;  %v393_v15 = vld [vmem:[%s10367_s1 + $0xb40] sm:$0xff]  ;;  %v418_v2 = vld [vmem:[%s10367_s1 + $0xc08] sm:$0xff] }
  0x90   :  { %5686 = vmatprep.subr.bf16.mxu1 %v5685_v26  ;;  %v385_v26 = vld [vmem:[%s10367_s1 + $0xb00] sm:$0xff] }
  0x91   :  { %5656 = vmatpush3.bf16.msra.mxu0 %v5655_v32  ;;  %v403_v32 = vld [vmem:[%s10367_s1 + $0xb90] sm:$0xff]  ;;  %v5739_v36 = vpack.c.bf16 %v386_v28, %v385_v26  ;;  %v364_v26 = vld [vmem:[%s10367_s1 + $0xa58] sm:$0xff] }
  0x92   :  { %5658 = vmatprep.subr.bf16.mxu0 %v5657_v34  ;;  %v7671_v34 = vrot.slane %v1295_v20, %v6753_v13  ;;  %v411_v20 = vld [vmem:[%s10367_s1 + $0xbd0] sm:$0xff] }
  0x93   :  { %5688 = vmatpush3.bf16.msra.mxu1 %v5687_v42  ;;  %v404_v42 = vld [vmem:[%s10367_s1 + $0xb98] sm:$0xff] }
  0x94   :  { %5690 = vmatprep.subr.bf16.mxu1 %v5689_v37  ;;  %v355_v37 = vld [vmem:[%s10367_s1 + $0xa10] sm:$0xff]  ;;  %v5741_v40 = vpack.c.bf16 %v404_v42, %v403_v32  ;;  %v1311_v49 = vcombine.high %v7671_v34, %v7671_v34  ;;  %v382_v32 = vld [vmem:[%s10367_s1 + $0xae8] sm:$0xff]  ;;  %v413_v42 = vld [vmem:[%s10367_s1 + $0xbe0] sm:$0xff] }
  0x95   :  { %5660 = vmatpush3.bf16.msra.mxu0 %v5659_v44  ;;  %v374_v44 = vld [vmem:[%s10367_s1 + $0xaa8] sm:$0xff]  ;;  %v5711_v50 = vpack.c.bf16 %v356_v38, %v355_v37  ;;  %v5729_v37 = vpack.c.bf16 %v382_v32, %v381_v30  ;;  %v365_v38 = vld [vmem:[%s10367_s1 + $0xa60] sm:$0xff] }
  0x96   :  { %5662 = vmatprep.subr.bf16.mxu0 %v5661_v47  ;;  %v405_v47 = vld [vmem:[%s10367_s1 + $0xba0] sm:$0xff]  ;;  %v5713_v53 = vpack.c.bf16 %v374_v44, %v373_v43  ;;  %v398_v43 = vld [vmem:[%s10367_s1 + $0xb68] sm:$0xff]  ;;  %v383_v44 = vld [vmem:[%s10367_s1 + $0xaf0] sm:$0xff] }
  0x97   :  { %5692 = vmatpush3.bf16.msra.mxu1 %v5691_v46  ;;  %v1310_v46 = vcombine.high %v7662_v31, %v7662_v31  ;;  %v5745_v56 = vpack.c.bf16 %v406_v48, %v405_v47  ;;  %v415_v47 = vld [vmem:[%s10367_s1 + $0xbf0] sm:$0xff]  ;;  %v416_v48 = vld [vmem:[%s10367_s1 + $0xbf8] sm:$0xff]  ;;  %v422_v30 = vld [vmem:[%s10367_s1 + $0xc28] sm:$0xff] }
  0x98   :  { %5694 = vmatprep.subr.bf16.mxu1 %v5693_v51  ;;  %v5743_v51 = vpack.c.bf16 %v388_v41, %v387_v39  ;;  %v366_v39 = vld [vmem:[%s10367_s1 + $0xa68] sm:$0xff]  ;;  %v453_v32 = vld [vmem:[%s10367_s1 + $0xd20] sm:$0xff] }
  0x99   :  { %5664 = vmatpush3.bf16.msra.mxu0 %v5663_v58  ;;  %v376_v58 = vld [vmem:[%s10367_s1 + $0xab8] sm:$0xff] }
  0x9a   :  { %5666 = vmatprep.subr.bf16.mxu0 %v5665_v60  ;;  %v408_v60 = vld [vmem:[%s10367_s1 + $0xbb8] sm:$0xff]  ;;  %v5717_v63 = vpack.c.bf16 %v376_v58, %v375_v45  ;;  %v433_v45 = vld [vmem:[%s10367_s1 + $0xc80] sm:$0xff]  ;;  %v434_v58 = vld [vmem:[%s10367_s1 + $0xc88] sm:$0xff] }
  0x9b   :  { %5696 = vmatpush3.bf16.msra.mxu1 %v5695_v59  ;;  %v407_v59 = vld [vmem:[%s10367_s1 + $0xbb0] sm:$0xff] }
  0x9c   :  { %5698 = vmatprep.subr.bf16.mxu1 %v5697_v0  ;;  %v359_v0 = vld [vmem:[%s10367_s1 + $0xa30] sm:$0xff]  ;;  %v5749_v3 = vpack.c.bf16 %v408_v60, %v407_v59  ;;  %v465_v59 = vld [vmem:[%s10367_s1 + $0xd80] sm:$0xff]  ;;  %v466_v60 = vld [vmem:[%s10367_s1 + $0xd88] sm:$0xff] }
  0x9d   :  { %5668 = vmatpush3.bf16.msra.mxu0 %v5667_v6  ;;  %v378_v6 = vld [vmem:[%s10367_s1 + $0xac8] sm:$0xff]  ;;  %v5801_v4 = vpack.c.bf16 %v466_v60, %v465_v59  ;;  %v443_v59 = vld [vmem:[%s10367_s1 + $0xcd0] sm:$0xff]  ;;  %v444_v60 = vld [vmem:[%s10367_s1 + $0xcd8] sm:$0xff] }
  0x9e   :  { %5670 = vmatprep.subr.bf16.mxu0 %v5669_v9  ;;  %v5719_v9 = vpack.c.bf16 %v360_v1, %v359_v0  ;;  %v5721_v10 = vpack.c.bf16 %v378_v6, %v377_v5  ;;  %v5769_v0 = vpack.c.bf16 %v434_v58, %v433_v45  ;;  %v417_v1 = vld [vmem:[%s10367_s1 + $0xc00] sm:$0xff]  ;;  %v450_v5 = vld [vmem:[%s10367_s1 + $0xd08] sm:$0xff]  ;;  %v435_v6 = vld [vmem:[%s10367_s1 + $0xc90] sm:$0xff] }
  0x9f   :  { %5700 = vmatpush3.bf16.msra.mxu1 %v5699_v8  ;;  %v410_v8 = vld [vmem:[%s10367_s1 + $0xbc8] sm:$0xff] }
  0xa0   :  { %5702 = vmatprep.subr.bf16.mxu1 %v5701_v14  ;;  %v362_v14 = vld [vmem:[%s10367_s1 + $0xa48] sm:$0xff]  ;;  %v5753_v16 = vpack.c.bf16 %v410_v8, %v409_v7  ;;  %v436_v7 = vld [vmem:[%s10367_s1 + $0xc98] sm:$0xff] }
  0xa1   :  { %5672 = vmatpush3.bf16.msra.mxu0 %v5671_v21  ;;  %v412_v21 = vld [vmem:[%s10367_s1 + $0xbd8] sm:$0xff]  ;;  %v458_v58 = vld [vmem:[%s10367_s1 + $0xd48] sm:$0xff] }
  0xa2   :  { %5706 = vmatprep.subr.bf16.mxu0 %v5705_v23  ;;  %v5755_v23 = vpack.c.bf16 %v394_v17, %v393_v15  ;;  %v5757_v28 = vpack.c.bf16 %v412_v21, %v411_v20  ;;  %v5773_v15 = vpack.c.bf16 %v436_v7, %v435_v6  ;;  %v420_v17 = vld [vmem:[%s10367_s1 + $0xc18] sm:$0xff]  ;;  %v437_v21 = vld [vmem:[%s10367_s1 + $0xca0] sm:$0xff] }
  0xa3   :  { %5704 = vmatpush3.bf16.msra.mxu1 %v5703_v22  ;;  %v5723_v22 = vpack.c.bf16 %v362_v14, %v361_v12  ;;  %v5771_v12 = vpack.c.bf16 %v418_v2, %v417_v1  ;;  %v452_v20 = vld [vmem:[%s10367_s1 + $0xd18] sm:$0xff]  ;;  %v5789_v1 = vpack.c.bf16 %v444_v60, %v443_v59  ;;  %v427_v2 = vld [vmem:[%s10367_s1 + $0xc50] sm:$0xff]  ;;  %v445_v7 = vld [vmem:[%s10367_s1 + $0xce0] sm:$0xff] }
  0xa4   :  { %5738 = vmatprep.subr.bf16.mxu1 %v5737_v27  ;;  %2213 = vmatmul.mubr.f32.vlgmr.msra.gmra.mrb[8].mxu0 %v7455_v54  ;;  %v357_v54 = vld [vmem:[%s10367_s1 + $0xa20] sm:$0xff]  ;;  %v395_v27 = vld [vmem:[%s10367_s1 + $0xb50] sm:$0xff]  ;;  %v460_v6 = vld [vmem:[%s10367_s1 + $0xd58] sm:$0xff] }
  0xa5   :  { %5708 = vmatpush3.bf16.msra.mxu0 %v5707_v35  ;;  %2352 = vmatprep.mubr.f32.mxu0 %v1310_v46  ;;  %v5715_v61 = vpack.c.bf16 %v358_v33, %v357_v54  ;;  %v414_v35 = vld [vmem:[%s10367_s1 + $0xbe8] sm:$0xff]  ;;  %v384_v46 = vld [vmem:[%s10367_s1 + $0xaf8] sm:$0xff]  ;;  %v367_v54 = vld [vmem:[%s10367_s1 + $0xa70] sm:$0xff] }
  0xa6   :  { %2283 = vmatmul.mubr.f32.vlgmr.msra.gmra.mrb[8].mxu1 %v7464_v57  ;;  %5710 = vmatprep.subr.bf16.mxu0 %v5709_v52  ;;  %v390_v57 = vld [vmem:[%s10367_s1 + $0xb28] sm:$0xff]  ;;  %v5759_v52 = vpack.c.bf16 %v396_v29, %v395_v27  ;;  %v5761_v41 = vpack.c.bf16 %v414_v35, %v413_v42  ;;  %v368_v33 = vld [vmem:[%s10367_s1 + $0xa78] sm:$0xff]  ;;  %v439_v35 = vld [vmem:[%s10367_s1 + $0xcb0] sm:$0xff] }
  0xa7   :  { %5740 = vmatpush3.bf16.msra.mxu1 %v5739_v36  ;;  %2422 = vmatprep.mubr.f32.mxu1 %v1311_v49  ;;  %v5747_v62 = vpack.c.bf16 %v390_v57, %v389_v55  ;;  %v5727_v36 = vpack.c.bf16 %v364_v26, %v363_v25  ;;  %v5731_v49 = vpack.c.bf16 %v366_v39, %v365_v38  ;;  %v399_v55 = vld [vmem:[%s10367_s1 + $0xb70] sm:$0xff]  ;;  %v400_v57 = vld [vmem:[%s10367_s1 + $0xb78] sm:$0xff]  ;;  %v470_v25 = vld [vmem:[%s10367_s1 + $0xda8] sm:$0xff] }
  0xa8   :  { %5742 = vmatprep.subr.bf16.mxu1 %v5741_v40  ;;  %v397_v40 = vld [vmem:[%s10367_s1 + $0xb60] sm:$0xff]  ;;  %v515_v59 = vld [vmem:[%s10367_s1 + $0xf10] sm:$0xff] }
  0xa9   :  { %5712 = vmatpush3.bf16.msra.mxu0 %v5711_v50  ;;  %v21_v50 = vld [vmem:[%s10366_s0 + $0x30] sm:$0xff] }
  0xaa   :  { %5714 = vmatprep.subr.bf16.mxu0 %v5713_v53  ;;  %v5733_v53 = vpack.c.bf16 %v384_v46, %v383_v44  ;;  %v7869_v8 = vrot.slane %v21_v50, %v6753_v13  ;;  %v455_v44 = vld [vmem:[%s10367_s1 + $0xd30] sm:$0xff] }
  0xab   :  { %5744 = vmatpush3.bf16.msra.mxu1 %v5743_v51  ;;  %v5763_v51 = vpack.c.bf16 %v398_v43, %v397_v40  ;;  %v424_v43 = vld [vmem:[%s10367_s1 + $0xc38] sm:$0xff] }
  0xac   :  { %5746 = vmatprep.subr.bf16.mxu1 %v5745_v56  ;;  %v5765_v56 = vpack.c.bf16 %v416_v48, %v415_v47  ;;  %v456_v47 = vld [vmem:[%s10367_s1 + $0xd38] sm:$0xff]  ;;  %v441_v48 = vld [vmem:[%s10367_s1 + $0xcc0] sm:$0xff] }
  0xad   :  { %5716 = vmatpush3.bf16.msra.mxu0 %v5715_v61  ;;  %v1312_v61 = vcombine.high %v21_v50, %v21_v50  ;;  %v473_v50 = vld [vmem:[%s10367_s1 + $0xdc0] sm:$0xff] }
  0xae   :  { %5718 = vmatprep.subr.bf16.mxu0 %v5717_v63  ;;  %v5767_v63 = vpack.c.bf16 %v400_v57, %v399_v55  ;;  %v425_v55 = vld [vmem:[%s10367_s1 + $0xc40] sm:$0xff] }
  0xaf   :  { %5748 = vmatpush3.bf16.msra.mxu1 %v5747_v62  ;;  %v5735_v62 = vpack.c.bf16 %v368_v33, %v367_v54  ;;  %v5815_v54 = vpack.c.bf16 %v456_v47, %v455_v44  ;;  %v457_v57 = vld [vmem:[%s10367_s1 + $0xd40] sm:$0xff]  ;;  %v482_v44 = vld [vmem:[%s10367_s1 + $0xe08] sm:$0xff] }
  0xb0   :  { %5750 = vmatprep.subr.bf16.mxu1 %v5749_v3  ;;  %v449_v3 = vld [vmem:[%s10367_s1 + $0xd00] sm:$0xff] }
  0xb1   :  { %5720 = vmatpush3.bf16.msra.mxu0 %v5719_v9  ;;  %v467_v9 = vld [vmem:[%s10367_s1 + $0xd90] sm:$0xff]  ;;  %v5803_v14 = vpack.c.bf16 %v450_v5, %v449_v3  ;;  %v428_v3 = vld [vmem:[%s10367_s1 + $0xc58] sm:$0xff] }
  0xb2   :  { %5722 = vmatprep.subr.bf16.mxu0 %v5721_v10  ;;  %v7878_v10 = vrot.slane %v1312_v61, %v6753_v13  ;;  %v475_v61 = vld [vmem:[%s10367_s1 + $0xdd0] sm:$0xff] }
  0xb3   :  { %5752 = vmatpush3.bf16.msra.mxu1 %v5751_v11  ;;  %v468_v11 = vld [vmem:[%s10367_s1 + $0xd98] sm:$0xff] }
  0xb4   :  { %5754 = vmatprep.subr.bf16.mxu1 %v5753_v16  ;;  %v419_v16 = vld [vmem:[%s10367_s1 + $0xc10] sm:$0xff]  ;;  %v5805_v19 = vpack.c.bf16 %v468_v11, %v467_v9  ;;  %v1328_v26 = vcombine.high %v7878_v10, %v7878_v10  ;;  %v446_v9 = vld [vmem:[%s10367_s1 + $0xce8] sm:$0xff]  ;;  %v477_v11 = vld [vmem:[%s10367_s1 + $0xde0] sm:$0xff] }
  0xb5   :  { %5724 = vmatpush3.bf16.msra.mxu0 %v5723_v22  ;;  %v438_v22 = vld [vmem:[%s10367_s1 + $0xca8] sm:$0xff]  ;;  %v5775_v27 = vpack.c.bf16 %v420_v17, %v419_v16  ;;  %v5793_v16 = vpack.c.bf16 %v446_v9, %v445_v7  ;;  %v429_v17 = vld [vmem:[%s10367_s1 + $0xc60] sm:$0xff] }
  0xb6   :  { %5726 = vmatprep.subr.bf16.mxu0 %v5725_v24  ;;  %v469_v24 = vld [vmem:[%s10367_s1 + $0xda0] sm:$0xff]  ;;  %v5777_v29 = vpack.c.bf16 %v438_v22, %v437_v21  ;;  %v462_v21 = vld [vmem:[%s10367_s1 + $0xd68] sm:$0xff]  ;;  %v447_v22 = vld [vmem:[%s10367_s1 + $0xcf0] sm:$0xff] }
  0xb7   :  { %5756 = vmatpush3.bf16.msra.mxu1 %v5755_v23  ;;  %v1327_v23 = vcombine.high %v7869_v8, %v7869_v8  ;;  %v5809_v42 = vpack.c.bf16 %v470_v25, %v469_v24  ;;  %v479_v24 = vld [vmem:[%s10367_s1 + $0xdf0] sm:$0xff]  ;;  %v480_v25 = vld [vmem:[%s10367_s1 + $0xdf8] sm:$0xff]  ;;  %v486_v7 = vld [vmem:[%s10367_s1 + $0xe28] sm:$0xff] }
  0xb8   :  { %5758 = vmatprep.subr.bf16.mxu1 %v5757_v28  ;;  %v5807_v28 = vpack.c.bf16 %v452_v20, %v451_v18  ;;  %v430_v18 = vld [vmem:[%s10367_s1 + $0xc68] sm:$0xff]  ;;  %v517_v9 = vld [vmem:[%s10367_s1 + $0xf20] sm:$0xff] }
  0xb9   :  { %5728 = vmatpush3.bf16.msra.mxu0 %v5727_v36  ;;  %v440_v36 = vld [vmem:[%s10367_s1 + $0xcb8] sm:$0xff] }
  0xba   :  { %5730 = vmatprep.subr.bf16.mxu0 %v5729_v37  ;;  %v472_v37 = vld [vmem:[%s10367_s1 + $0xdb8] sm:$0xff]  ;;  %v5781_v40 = vpack.c.bf16 %v440_v36, %v439_v35  ;;  %v497_v35 = vld [vmem:[%s10367_s1 + $0xe80] sm:$0xff]  ;;  %v498_v36 = vld [vmem:[%s10367_s1 + $0xe88] sm:$0xff] }
  0xbb   :  { %5760 = vmatpush3.bf16.msra.mxu1 %v5759_v52  ;;  %v471_v52 = vld [vmem:[%s10367_s1 + $0xdb0] sm:$0xff] }
  0xbc   :  { %5762 = vmatprep.subr.bf16.mxu1 %v5761_v41  ;;  %v423_v41 = vld [vmem:[%s10367_s1 + $0xc30] sm:$0xff]  ;;  %v5813_v46 = vpack.c.bf16 %v472_v37, %v471_v52  ;;  %v529_v52 = vld [vmem:[%s10367_s1 + $0xf80] sm:$0xff]  ;;  %v530_v37 = vld [vmem:[%s10367_s1 + $0xf88] sm:$0xff] }
  0xbd   :  { %5732 = vmatpush3.bf16.msra.mxu0 %v5731_v49  ;;  %v442_v49 = vld [vmem:[%s10367_s1 + $0xcc8] sm:$0xff]  ;;  %v5865_v47 = vpack.c.bf16 %v530_v37, %v529_v52  ;;  %v507_v52 = vld [vmem:[%s10367_s1 + $0xed0] sm:$0xff]  ;;  %v508_v37 = vld [vmem:[%s10367_s1 + $0xed8] sm:$0xff] }
  0xbe   :  { %5734 = vmatprep.subr.bf16.mxu0 %v5733_v53  ;;  %v5783_v53 = vpack.c.bf16 %v424_v43, %v423_v41  ;;  %v5785_v33 = vpack.c.bf16 %v442_v49, %v441_v48  ;;  %v5833_v41 = vpack.c.bf16 %v498_v36, %v497_v35  ;;  %v481_v43 = vld [vmem:[%s10367_s1 + $0xe00] sm:$0xff]  ;;  %v514_v48 = vld [vmem:[%s10367_s1 + $0xf08] sm:$0xff]  ;;  %v499_v49 = vld [vmem:[%s10367_s1 + $0xe90] sm:$0xff] }
  0xbf   :  { %5764 = vmatpush3.bf16.msra.mxu1 %v5763_v51  ;;  %v474_v51 = vld [vmem:[%s10367_s1 + $0xdc8] sm:$0xff] }
  0xc0   :  { %5766 = vmatprep.subr.bf16.mxu1 %v5765_v56  ;;  %v426_v56 = vld [vmem:[%s10367_s1 + $0xc48] sm:$0xff]  ;;  %v5817_v45 = vpack.c.bf16 %v474_v51, %v473_v50  ;;  %v500_v50 = vld [vmem:[%s10367_s1 + $0xe98] sm:$0xff] }
  0xc1   :  { %5736 = vmatpush3.bf16.msra.mxu0 %v5735_v62  ;;  %v476_v62 = vld [vmem:[%s10367_s1 + $0xdd8] sm:$0xff]  ;;  %v522_v36 = vld [vmem:[%s10367_s1 + $0xf48] sm:$0xff] }
  0xc2   :  { %5770 = vmatprep.subr.bf16.mxu0 %v5769_v0  ;;  %v5819_v0 = vpack.c.bf16 %v458_v58, %v457_v57  ;;  %v5821_v5 = vpack.c.bf16 %v476_v62, %v475_v61  ;;  %v5837_v57 = vpack.c.bf16 %v500_v50, %v499_v49  ;;  %v484_v58 = vld [vmem:[%s10367_s1 + $0xe18] sm:$0xff]  ;;  %v501_v62 = vld [vmem:[%s10367_s1 + $0xea0] sm:$0xff] }
  0xc3   :  { %5768 = vmatpush3.bf16.msra.mxu1 %v5767_v63  ;;  %v5787_v63 = vpack.c.bf16 %v426_v56, %v425_v55  ;;  %v5835_v55 = vpack.c.bf16 %v482_v44, %v481_v43  ;;  %v516_v61 = vld [vmem:[%s10367_s1 + $0xf18] sm:$0xff]  ;;  %v5853_v43 = vpack.c.bf16 %v508_v37, %v507_v52  ;;  %v491_v44 = vld [vmem:[%s10367_s1 + $0xe50] sm:$0xff]  ;;  %v509_v50 = vld [vmem:[%s10367_s1 + $0xee0] sm:$0xff] }
  0xc4   :  { %5802 = vmatprep.subr.bf16.mxu1 %v5801_v4  ;;  %2353 = vmatmul.mubr.f32.vlgmr.msra.gmra.mrb[10].mxu0 %v7662_v31  ;;  %v421_v31 = vld [vmem:[%s10367_s1 + $0xc20] sm:$0xff]  ;;  %v459_v4 = vld [vmem:[%s10367_s1 + $0xd50] sm:$0xff]  ;;  %v524_v49 = vld [vmem:[%s10367_s1 + $0xf58] sm:$0xff] }
  0xc5   :  { %5772 = vmatpush3.bf16.msra.mxu0 %v5771_v12  ;;  %2492 = vmatprep.mubr.f32.mxu0 %v1327_v23  ;;  %v5779_v38 = vpack.c.bf16 %v422_v30, %v421_v31  ;;  %v478_v12 = vld [vmem:[%s10367_s1 + $0xde8] sm:$0xff]  ;;  %v448_v23 = vld [vmem:[%s10367_s1 + $0xcf8] sm:$0xff]  ;;  %v431_v31 = vld [vmem:[%s10367_s1 + $0xc70] sm:$0xff] }
  0xc6   :  { %2423 = vmatmul.mubr.f32.vlgmr.msra.gmra.mrb[10].mxu1 %v7671_v34  ;;  %5774 = vmatprep.subr.bf16.mxu0 %v5773_v15  ;;  %v454_v34 = vld [vmem:[%s10367_s1 + $0xd28] sm:$0xff]  ;;  %v5823_v15 = vpack.c.bf16 %v460_v6, %v459_v4  ;;  %v5825_v20 = vpack.c.bf16 %v478_v12, %v477_v11  ;;  %v432_v30 = vld [vmem:[%s10367_s1 + $0xc78] sm:$0xff]  ;;  %v503_v12 = vld [vmem:[%s10367_s1 + $0xeb0] sm:$0xff] }
  0xc7   :  { %5804 = vmatpush3.bf16.msra.mxu1 %v5803_v14  ;;  %2562 = vmatprep.mubr.f32.mxu1 %v1328_v26  ;;  %v5811_v39 = vpack.c.bf16 %v454_v34, %v453_v32  ;;  %v5791_v14 = vpack.c.bf16 %v428_v3, %v427_v2  ;;  %v5795_v26 = vpack.c.bf16 %v430_v18, %v429_v17  ;;  %v463_v32 = vld [vmem:[%s10367_s1 + $0xd70] sm:$0xff]  ;;  %v464_v34 = vld [vmem:[%s10367_s1 + $0xd78] sm:$0xff]  ;;  %v534_v2 = vld [vmem:[%s10367_s1 + $0xfa8] sm:$0xff] }
  0xc8   :  { %5806 = vmatprep.subr.bf16.mxu1 %v5805_v19  ;;  %v461_v19 = vld [vmem:[%s10367_s1 + $0xd60] sm:$0xff]  ;;  %v595_v37 = vld [vmem:[%s10367_s1 + $0x1190] sm:$0xff] }
  0xc9   :  { %5776 = vmatpush3.bf16.msra.mxu0 %v5775_v27  ;;  %v22_v27 = vld [vmem:[%s10366_s0 + $0x38] sm:$0xff] }
  0xca   :  { %5778 = vmatprep.subr.bf16.mxu0 %v5777_v29  ;;  %v5797_v29 = vpack.c.bf16 %v448_v23, %v447_v22  ;;  %v8076_v51 = vrot.slane %v22_v27, %v6753_v13  ;;  %v519_v22 = vld [vmem:[%s10367_s1 + $0xf30] sm:$0xff] }
  0xcb   :  { %5808 = vmatpush3.bf16.msra.mxu1 %v5807_v28  ;;  %v5827_v28 = vpack.c.bf16 %v462_v21, %v461_v19  ;;  %v488_v21 = vld [vmem:[%s10367_s1 + $0xe38] sm:$0xff] }
  0xcc   :  { %5810 = vmatprep.subr.bf16.mxu1 %v5809_v42  ;;  %v5829_v42 = vpack.c.bf16 %v480_v25, %v479_v24  ;;  %v520_v24 = vld [vmem:[%s10367_s1 + $0xf38] sm:$0xff]  ;;  %v505_v25 = vld [vmem:[%s10367_s1 + $0xec0] sm:$0xff] }
  0xcd   :  { %5780 = vmatpush3.bf16.msra.mxu0 %v5779_v38  ;;  %v1329_v38 = vcombine.high %v22_v27, %v22_v27  ;;  %v537_v27 = vld [vmem:[%s10367_s1 + $0xfc0] sm:$0xff] }
  0xce   :  { %5782 = vmatprep.subr.bf16.mxu0 %v5781_v40  ;;  %v5831_v40 = vpack.c.bf16 %v464_v34, %v463_v32  ;;  %v489_v32 = vld [vmem:[%s10367_s1 + $0xe40] sm:$0xff] }
  0xcf   :  { %5812 = vmatpush3.bf16.msra.mxu1 %v5811_v39  ;;  %v5799_v39 = vpack.c.bf16 %v432_v30, %v431_v31  ;;  %v5879_v31 = vpack.c.bf16 %v520_v24, %v519_v22  ;;  %v521_v34 = vld [vmem:[%s10367_s1 + $0xf40] sm:$0xff]  ;;  %v562_v22 = vld [vmem:[%s10367_s1 + $0x1088] sm:$0xff] }
  0xd0   :  { %5814 = vmatprep.subr.bf16.mxu1 %v5813_v46  ;;  %v513_v46 = vld [vmem:[%s10367_s1 + $0xf00] sm:$0xff]  ;;  %v594_v24 = vld [vmem:[%s10367_s1 + $0x1188] sm:$0xff] }
  0xd1   :  { %5784 = vmatpush3.bf16.msra.mxu0 %v5783_v53  ;;  %v531_v53 = vld [vmem:[%s10367_s1 + $0xf90] sm:$0xff]  ;;  %v5867_v56 = vpack.c.bf16 %v514_v48, %v513_v46  ;;  %v492_v46 = vld [vmem:[%s10367_s1 + $0xe58] sm:$0xff] }
  0xd2   :  { %5786 = vmatprep.subr.bf16.mxu0 %v5785_v33  ;;  %v8085_v33 = vrot.slane %v1329_v38, %v6753_v13  ;;  %v539_v38 = vld [vmem:[%s10367_s1 + $0xfd0] sm:$0xff] }
  0xd3   :  { %5816 = vmatpush3.bf16.msra.mxu1 %v5815_v54  ;;  %v532_v54 = vld [vmem:[%s10367_s1 + $0xf98] sm:$0xff] }
  0xd4   :  { %5818 = vmatprep.subr.bf16.mxu1 %v5817_v45  ;;  %v483_v45 = vld [vmem:[%s10367_s1 + $0xe10] sm:$0xff]  ;;  %v5869_v60 = vpack.c.bf16 %v532_v54, %v531_v53  ;;  %v1345_v3 = vcombine.high %v8085_v33, %v8085_v33  ;;  %v510_v53 = vld [vmem:[%s10367_s1 + $0xee8] sm:$0xff]  ;;  %v541_v54 = vld [vmem:[%s10367_s1 + $0xfe0] sm:$0xff] }
  0xd5   :  { %5788 = vmatpush3.bf16.msra.mxu0 %v5787_v63  ;;  %v502_v63 = vld [vmem:[%s10367_s1 + $0xea8] sm:$0xff]  ;;  %v5839_v4 = vpack.c.bf16 %v484_v58, %v483_v45  ;;  %v5857_v45 = vpack.c.bf16 %v510_v53, %v509_v50  ;;  %v493_v58 = vld [vmem:[%s10367_s1 + $0xe60] sm:$0xff] }
  0xd6   :  { %5790 = vmatprep.subr.bf16.mxu0 %v5789_v1  ;;  %v533_v1 = vld [vmem:[%s10367_s1 + $0xfa0] sm:$0xff]  ;;  %v5841_v6 = vpack.c.bf16 %v502_v63, %v501_v62  ;;  %v526_v63 = vld [vmem:[%s10367_s1 + $0xf68] sm:$0xff] }
  0xd7   :  { %5820 = vmatpush3.bf16.msra.mxu1 %v5819_v0  ;;  %v1344_v0 = vcombine.high %v8076_v51, %v8076_v51  ;;  %v5873_v11 = vpack.c.bf16 %v534_v2, %v533_v1  ;;  %v512_v1 = vld [vmem:[%s10367_s1 + $0xef8] sm:$0xff]  ;;  %v4124_v2 = vld [vmem:[%s10368_s2] ss:$0 sm:$0xff]  ;;  %v566_v53 = vld [vmem:[%s10367_s1 + $0x10a8] sm:$0xff] }
  0xd8   :  { %5822 = vmatprep.subr.bf16.mxu1 %v5821_v5  ;;  %v5871_v5 = vpack.c.bf16 %v516_v61, %v515_v59  ;;  %v494_v59 = vld [vmem:[%s10367_s1 + $0xe68] sm:$0xff]  ;;  %v565_v50 = vld [vmem:[%s10367_s1 + $0x10a0] sm:$0xff] }
  0xd9   :  { %5792 = vmatpush3.bf16.msra.mxu0 %v5791_v14  ;;  %v504_v14 = vld [vmem:[%s10367_s1 + $0xeb8] sm:$0xff] }
  0xda   :  { %5794 = vmatprep.subr.bf16.mxu0 %v5793_v16  ;;  %v536_v16 = vld [vmem:[%s10367_s1 + $0xfb8] sm:$0xff]  ;;  %v5845_v19 = vpack.c.bf16 %v504_v14, %v503_v12 }
  0xdb   :  { %5824 = vmatpush3.bf16.msra.mxu1 %v5823_v15  ;;  %v535_v15 = vld [vmem:[%s10367_s1 + $0xfb0] sm:$0xff] }
  0xdc   :  { %5826 = vmatprep.subr.bf16.mxu1 %v5825_v20  ;;  %v487_v20 = vld [vmem:[%s10367_s1 + $0xe30] sm:$0xff]  ;;  %v5877_v23 = vpack.c.bf16 %v536_v16, %v535_v15  ;;  %v496_v16 = vld [vmem:[%s10367_s1 + $0xe78] sm:$0xff] }
  0xdd   :  { %5796 = vmatpush3.bf16.msra.mxu0 %v5795_v26  ;;  %v506_v26 = vld [vmem:[%s10367_s1 + $0xec8] sm:$0xff]  ;;  %v495_v15 = vld [vmem:[%s10367_s1 + $0xe70] sm:$0xff] }
  0xde   :  { %5798 = vmatprep.subr.bf16.mxu0 %v5797_v29  ;;  %v5847_v29 = vpack.c.bf16 %v488_v21, %v487_v20  ;;  %v5849_v30 = vpack.c.bf16 %v506_v26, %v505_v25  ;;  %v528_v20 = vld [vmem:[%s10367_s1 + $0xf78] sm:$0xff]  ;;  %v561_v21 = vld [vmem:[%s10367_s1 + $0x1080] sm:$0xff] }
  0xdf   :  { %5828 = vmatpush3.bf16.msra.mxu1 %v5827_v28  ;;  %v538_v28 = vld [vmem:[%s10367_s1 + $0xfc8] sm:$0xff] }
  0xe0   :  { %5830 = vmatprep.subr.bf16.mxu1 %v5829_v42  ;;  %v490_v42 = vld [vmem:[%s10367_s1 + $0xe48] sm:$0xff]  ;;  %v5881_v35 = vpack.c.bf16 %v538_v28, %v537_v27  ;;  %v5863_v27 = vpack.c.bf16 %v496_v16, %v495_v15 }
  0xe1   :  { %5800 = vmatpush3.bf16.msra.mxu0 %v5799_v39  ;;  %v540_v39 = vld [vmem:[%s10367_s1 + $0xfd8] sm:$0xff]  ;;  %v602_v15 = vld [vmem:[%s10367_s1 + $0x11c8] sm:$0xff] }
  0xe2   :  { %5834 = vmatprep.subr.bf16.mxu0 %v5833_v41  ;;  %v5883_v41 = vpack.c.bf16 %v522_v36, %v521_v34  ;;  %v5885_v48 = vpack.c.bf16 %v540_v39, %v539_v38  ;;  %v578_v34 = vld [vmem:[%s10367_s1 + $0x1108] sm:$0xff]  ;;  %v564_v36 = vld [vmem:[%s10367_s1 + $0x1098] sm:$0xff] }
  0xe3   :  { %5832 = vmatpush3.bf16.msra.mxu1 %v5831_v40  ;;  %v5851_v40 = vpack.c.bf16 %v490_v42, %v489_v32  ;;  %v577_v32 = vld [vmem:[%s10367_s1 + $0x1100] sm:$0xff]  ;;  %v596_v38 = vld [vmem:[%s10367_s1 + $0x1198] sm:$0xff] }
  0xe4   :  { %5866 = vmatprep.subr.bf16.mxu1 %v5865_v47  ;;  %2493 = vmatmul.mubr.f32.vlgmr.msra.gmra.mrb[12].mxu0 %v7869_v8  ;;  %v485_v8 = vld [vmem:[%s10367_s1 + $0xe20] sm:$0xff]  ;;  %v523_v47 = vld [vmem:[%s10367_s1 + $0xf50] sm:$0xff] }
  0xe5   :  { %5836 = vmatpush3.bf16.msra.mxu0 %v5835_v55  ;;  %2632 = vmatprep.mubr.f32.mxu0 %v1344_v0  ;;  %v5843_v17 = vpack.c.bf16 %v486_v7, %v485_v8  ;;  %v542_v55 = vld [vmem:[%s10367_s1 + $0xfe8] sm:$0xff]  ;;  %v511_v0 = vld [vmem:[%s10367_s1 + $0xef0] sm:$0xff] }
  0xe6   :  { %2563 = vmatmul.mubr.f32.vlgmr.msra.gmra.mrb[12].mxu1 %v7878_v10  ;;  %5838 = vmatprep.subr.bf16.mxu0 %v5837_v57  ;;  %v518_v10 = vld [vmem:[%s10367_s1 + $0xf28] sm:$0xff]  ;;  %v5887_v57 = vpack.c.bf16 %v524_v49, %v523_v47  ;;  %v5889_v62 = vpack.c.bf16 %v542_v55, %v541_v54  ;;  %v5861_v14 = vpack.c.bf16 %v512_v1, %v511_v0  ;;  %v579_v47 = vld [vmem:[%s10367_s1 + $0x1110] sm:$0xff]  ;;  %v580_v49 = vld [vmem:[%s10367_s1 + $0x1118] sm:$0xff] }
  0xe7   :  { %5868 = vmatpush3.bf16.msra.mxu1 %v5867_v56  ;;  %2702 = vmatprep.mubr.f32.mxu1 %v1345_v3  ;;  %v5875_v18 = vpack.c.bf16 %v518_v10, %v517_v9  ;;  %v5855_v56 = vpack.c.bf16 %v492_v46, %v491_v44  ;;  %v5859_v9 = vpack.c.bf16 %v494_v59, %v493_v58  ;;  %v547_v44 = vld [vmem:[%s10367_s1 + $0x1010] sm:$0xff]  ;;  %v548_v46 = vld [vmem:[%s10367_s1 + $0x1018] sm:$0xff]  ;;  %v597_v55 = vld [vmem:[%s10367_s1 + $0x11a0] sm:$0xff] }
  0xe8   :  { %5870 = vmatprep.subr.bf16.mxu1 %v5869_v60  ;;  %v525_v60 = vld [vmem:[%s10367_s1 + $0xf60] sm:$0xff]  ;;  %v5935_v58 = vpack.c.bf16 %v580_v49, %v579_v47  ;;  %v5905_v59 = vpack.c.bf16 %v566_v53, %v565_v50  ;;  %v568_v0 = vld [vmem:[%s10367_s1 + $0x10b8] sm:$0xff]  ;;  %v599_v1 = vld [vmem:[%s10367_s1 + $0x11b0] sm:$0xff] }
  0xe9   :  { %5840 = vmatpush3.bf16.msra.mxu0 %v5839_v4  ;;  %v5891_v12 = vpack.c.bf16 %v526_v63, %v525_v60  ;;  %v550_v60 = vld [vmem:[%s10367_s1 + $0x1028] sm:$0xff]  ;;  %v567_v63 = vld [vmem:[%s10367_s1 + $0x10b0] sm:$0xff] }
  0xea   :  { %5842 = vmatprep.subr.bf16.mxu0 %v5841_v6  ;;  %v544_v6 = vld [vmem:[%s10367_s1 + $0xff8] sm:$0xff] }
  0xeb   :  { %5872 = vmatpush3.bf16.msra.mxu1 %v5871_v5  ;;  %v543_v5 = vld [vmem:[%s10367_s1 + $0xff0] sm:$0xff] }
  0xec   :  { %5874 = vmatprep.subr.bf16.mxu1 %v5873_v11  ;;  %v23_v11 = vld [vmem:[%s10366_s0 + $0x40] sm:$0xff] }
  0xed   :  { %5844 = vmatpush3.bf16.msra.mxu0 %v5843_v17  ;;  %v527_v17 = vld [vmem:[%s10367_s1 + $0xf70] sm:$0xff]  ;;  %v1346_v25 = vcombine.high %v23_v11, %v23_v11  ;;  %v8288_v52 = vrot.slane %v23_v11, %v6753_v13  ;;  %v584_v11 = vld [vmem:[%s10367_s1 + $0x1138] sm:$0xff] }
  0xee   :  { %5846 = vmatprep.subr.bf16.mxu0 %v5845_v19  ;;  %v5893_v19 = vpack.c.bf16 %v544_v6, %v543_v5  ;;  %v5895_v28 = vpack.c.bf16 %v528_v20, %v527_v17  ;;  %v5909_v5 = vpack.c.bf16 %v568_v0, %v567_v63  ;;  %v551_v6 = vld [vmem:[%s10367_s1 + $0x1030] sm:$0xff]  ;;  %v554_v20 = vld [vmem:[%s10367_s1 + $0x1048] sm:$0xff] }
  0xef   :  { %5876 = vmatpush3.bf16.msra.mxu1 %v5875_v18  ;;  %v8297_v39 = vrot.slane %v1346_v25, %v6753_v13  ;;  %v1361_v54 = vcombine.high %v8288_v52, %v8288_v52  ;;  %v572_v25 = vld [vmem:[%s10367_s1 + $0x10d8] sm:$0xff] }
  0xf0   :  { %5878 = vmatprep.subr.bf16.mxu1 %v5877_v23  ;;  %v593_v23 = vld [vmem:[%s10367_s1 + $0x1180] sm:$0xff] }
  0xf1   :  { %5848 = vmatpush3.bf16.msra.mxu0 %v5847_v29  ;;  %v5897_v29 = vpack.c.bf16 %v562_v22, %v561_v21  ;;  %v5929_v42 = vpack.c.bf16 %v594_v24, %v593_v23  ;;  %v585_v21 = vld [vmem:[%s10367_s1 + $0x1140] sm:$0xff]  ;;  %v586_v23 = vld [vmem:[%s10367_s1 + $0x1148] sm:$0xff]  ;;  %v571_v24 = vld [vmem:[%s10367_s1 + $0x10d0] sm:$0xff] }
  0xf2   :  { %5850 = vmatprep.subr.bf16.mxu0 %v5849_v30  ;;  %v546_v30 = vld [vmem:[%s10367_s1 + $0x1008] sm:$0xff] }
  0xf3   :  { %5880 = vmatpush3.bf16.msra.mxu1 %v5879_v31  ;;  %v545_v31 = vld [vmem:[%s10367_s1 + $0x1000] sm:$0xff] }
  0xf4   :  { %5882 = vmatprep.subr.bf16.mxu1 %v5881_v35  ;;  %v563_v35 = vld [vmem:[%s10367_s1 + $0x1090] sm:$0xff] }
  0xf5   :  { %5852 = vmatpush3.bf16.msra.mxu0 %v5851_v40  ;;  %v5899_v40 = vpack.c.bf16 %v546_v30, %v545_v31 }
  0xf6   :  { %5854 = vmatprep.subr.bf16.mxu0 %v5853_v43  ;;  %v5901_v43 = vpack.c.bf16 %v564_v36, %v563_v35 }
  0xf7   :  { %5884 = vmatpush3.bf16.msra.mxu1 %v5883_v41  ;;  %v4157_v61 = vpop.f32.mrb[0].mxu0  ;;  %v5931_v41 = vpack.c.bf16 %v578_v34, %v577_v32 }
  0xf8   :  { %5886 = vmatprep.subr.bf16.mxu1 %v5885_v48  ;;  %v4158_v3 = vpop.f32.mrb[1].mxu0  ;;  %v5933_v48 = vpack.c.bf16 %v596_v38, %v595_v37 }
  0xf9   :  { %v4192_v4 = vpop.f32.mrb[0].mxu1  ;;  %v4159_v8 = vadd.f32 %v4158_v3, %v4157_v61  ;;  %5856 = vmatpush3.bf16.msra.mxu0 %v5855_v56  ;;  %v598_v56 = vld [vmem:[%s10367_s1 + $0x11a8] sm:$0xff]  ;;  %v581_v61 = vld [vmem:[%s10367_s1 + $0x1120] sm:$0xff] }
  0xfa   :  { %v4193_v7 = vpop.f32.mrb[1].mxu1  ;;  %5858 = vmatprep.subr.bf16.mxu0 %v5857_v45  ;;  %v5903_v45 = vpack.c.bf16 %v548_v46, %v547_v44 }
  0xfb   :  { %v4194_v10 = vadd.f32 %v4193_v7, %v4192_v4  ;;  %5888 = vmatpush3.bf16.msra.mxu1 %v5887_v57  ;;  %v1655_v18 = vadd.f32 %v4159_v8, %v4124_v2  ;;  %v1362_v57 = vcombine.high %v8297_v39, %v8297_v39  ;;  %v600_v2 = vld [vmem:[%s10367_s1 + $0x11b8] sm:$0xff]  ;;  %v583_v7 = vld [vmem:[%s10367_s1 + $0x1130] sm:$0xff] }
  0xfc   :  { %5890 = vmatprep.subr.bf16.mxu1 %v5889_v62  ;;  %v5937_v62 = vpack.c.bf16 %v598_v56, %v597_v55  ;;  %v552_v8 = vld [vmem:[%s10367_s1 + $0x1038] sm:$0xff]  ;;  %v5943_v17 = vpack.c.bf16 %v584_v11, %v583_v7 }
  0xfd   :  { %v8267_v26 = vadd.f32 %v4194_v10, %v1655_v18  ;;  %5860 = vmatpush3.bf16.msra.mxu0 %v5859_v9  ;;  %v5941_v9 = vpack.c.bf16 %v600_v2, %v599_v1  ;;  %v569_v10 = vld [vmem:[%s10367_s1 + $0x10c0] sm:$0xff]  ;;  %v5911_v16 = vpack.c.bf16 %v552_v8, %v551_v6 }
  0xfe   :  { %5862 = vmatprep.subr.bf16.mxu0 %v5861_v14  ;;  %v601_v14 = vld [vmem:[%s10367_s1 + $0x11c0] sm:$0xff] }
  0xff   :  { %5892 = vmatpush3.bf16.msra.mxu1 %v5891_v12  ;;  %v570_v12 = vld [vmem:[%s10367_s1 + $0x10c8] sm:$0xff]  ;;  %v5945_v22 = vpack.c.bf16 %v602_v15, %v601_v14 }
 0x100   :  { %5894 = vmatprep.subr.bf16.mxu1 %v5893_v19  ;;  %v5913_v18 = vpack.c.bf16 %v570_v12, %v569_v10  ;;  %v553_v19 = vld [vmem:[%s10367_s1 + $0x1040] sm:$0xff] }
 0x101   :  { %5864 = vmatpush3.bf16.msra.mxu0 %v5863_v27  ;;  %v603_v27 = vld [vmem:[%s10367_s1 + $0x11d0] sm:$0xff] }
 0x102   :  { %5898 = vmatprep.subr.bf16.mxu0 %v5897_v29 }
 0x103   :  { %5896 = vmatpush3.bf16.msra.mxu1 %v5895_v28  ;;  %v604_v28 = vld [vmem:[%s10367_s1 + $0x11d8] sm:$0xff] }
 0x104   :  { %5930 = vmatprep.subr.bf16.mxu1 %v5929_v42  ;;  %2633 = vmatmul.mubr.f32.vlgmr.msra.gmra.mrb[14].mxu0 %v8076_v51  ;;  %v549_v51 = vld [vmem:[%s10367_s1 + $0x1020] sm:$0xff] }
 0x105   :  { %5900 = vmatpush3.bf16.msra.mxu0 %v5899_v40  ;;  %2772 = vmatprep.mubr.f32.mxu0 %v1361_v54  ;;  %v5907_v3 = vpack.c.bf16 %v550_v60, %v549_v51 }
 0x106   :  { %2703 = vmatmul.mubr.f32.vlgmr.msra.gmra.mrb[14].mxu1 %v8085_v33  ;;  %5902 = vmatprep.subr.bf16.mxu0 %v5901_v43  ;;  %v582_v33 = vld [vmem:[%s10367_s1 + $0x1128] sm:$0xff] }
 0x107   :  { %5932 = vmatpush3.bf16.msra.mxu1 %v5931_v41  ;;  %2842 = vmatprep.mubr.f32.mxu1 %v1362_v57  ;;  %v5939_v4 = vpack.c.bf16 %v582_v33, %v581_v61 }
 0x108   :  { %5934 = vmatprep.subr.bf16.mxu1 %v5933_v48 }
 0x109   :  { %5904 = vmatpush3.bf16.msra.mxu0 %v5903_v45 }
 0x10a   :  { %5906 = vmatprep.subr.bf16.mxu0 %v5905_v59 }
 0x10b   :  { %5936 = vmatpush3.bf16.msra.mxu1 %v5935_v58 }
 0x10c   :  { %5938 = vmatprep.subr.bf16.mxu1 %v5937_v62 }
 0x10d   :  { %5908 = vmatpush3.bf16.msra.mxu0 %v5907_v3 }
 0x10e   :  { %5910 = vmatprep.subr.bf16.mxu0 %v5909_v5 }
 0x10f   :  { %5940 = vmatpush3.bf16.msra.mxu1 %v5939_v4 }
 0x110   :  { %5942 = vmatprep.subr.bf16.mxu1 %v5941_v9 }
 0x111   :  { %8 = vsyncpa [#allocation3], 0  ;;  %5912 = vmatpush3.bf16.msra.mxu0 %v5911_v16  ;;  %v5915_v29 = vpack.c.bf16 %v554_v20, %v553_v19  ;;  %v5947_v31 = vpack.c.bf16 %v586_v23, %v585_v21  ;;  %v5917_v30 = vpack.c.bf16 %v572_v25, %v571_v24  ;;  %v555_v32 = vld [vmem:[%s10367_s1 + $0x1050] sm:$0xff]  ;;  %v556_v42 = vld [vmem:[%s10367_s1 + $0x1058] sm:$0xff]  ;;  %v5949_v35 = vpack.c.bf16 %v604_v28, %v603_v27 }
 0x112   :  { %5914 = vmatprep.subr.bf16.mxu0 %v5913_v18  ;;  %v587_v34 = vld [vmem:[%s10367_s1 + $0x1150] sm:$0xff]  ;;  %v588_v36 = vld [vmem:[%s10367_s1 + $0x1158] sm:$0xff]  ;;  %v573_v37 = vld [vmem:[%s10367_s1 + $0x10e0] sm:$0xff]  ;;  %v5919_v43 = vpack.c.bf16 %v556_v42, %v555_v32 }
 0x113   :  { %5944 = vmatpush3.bf16.msra.mxu1 %v5943_v17  ;;  %v574_v38 = vld [vmem:[%s10367_s1 + $0x10e8] sm:$0xff]  ;;  %v605_v40 = vld [vmem:[%s10367_s1 + $0x11e0] sm:$0xff]  ;;  %v5951_v44 = vpack.c.bf16 %v588_v36, %v587_v34  ;;  %v575_v55 = vld [vmem:[%s10367_s1 + $0x10f0] sm:$0xff] }
 0x114   :  { %5946 = vmatprep.subr.bf16.mxu1 %v5945_v22  ;;  %v606_v41 = vld [vmem:[%s10367_s1 + $0x11e8] sm:$0xff]  ;;  %v5921_v46 = vpack.c.bf16 %v574_v38, %v573_v37  ;;  %v557_v47 = vld [vmem:[%s10367_s1 + $0x1060] sm:$0xff]  ;;  %v576_v56 = vld [vmem:[%s10367_s1 + $0x10f8] sm:$0xff] }
 0x115   :  { %5916 = vmatpush3.bf16.msra.mxu0 %v5915_v29  ;;  %v558_v48 = vld [vmem:[%s10367_s1 + $0x1068] sm:$0xff]  ;;  %v589_v49 = vld [vmem:[%s10367_s1 + $0x1160] sm:$0xff]  ;;  %v5953_v53 = vpack.c.bf16 %v606_v41, %v605_v40  ;;  %v607_v58 = vld [vmem:[%s10367_s1 + $0x11f0] sm:$0xff]  ;;  %v5925_v0 = vpack.c.bf16 %v576_v56, %v575_v55 }
 0x116   :  { %5918 = vmatprep.subr.bf16.mxu0 %v5917_v30  ;;  %v590_v54 = vld [vmem:[%s10367_s1 + $0x1168] sm:$0xff]  ;;  %v608_v59 = vld [vmem:[%s10367_s1 + $0x11f8] sm:$0xff]  ;;  %v5923_v61 = vpack.c.bf16 %v558_v48, %v557_v47  ;;  %v559_v1 = vld [vmem:[%s10367_s1 + $0x1070] sm:$0xff] }
 0x117   :  { %5948 = vmatpush3.bf16.msra.mxu1 %v5947_v31  ;;  %v4227_v50 = vpop.f32.mrb[2].mxu0  ;;  %v24_v62 = vld [vmem:[%s10366_s0 + $0x48] sm:$0xff]  ;;  %v5955_v63 = vpack.c.bf16 %v590_v54, %v589_v49  ;;  %v560_v2 = vld [vmem:[%s10367_s1 + $0x1078] sm:$0xff]  ;;  %v591_v3 = vld [vmem:[%s10367_s1 + $0x1170] sm:$0xff]  ;;  %v5957_v5 = vpack.c.bf16 %v608_v59, %v607_v58 }
 0x118   :  { %5950 = vmatprep.subr.bf16.mxu1 %v5949_v35  ;;  %v4228_v57 = vpop.f32.mrb[3].mxu0  ;;  %v592_v6 = vld [vmem:[%s10367_s1 + $0x1178] sm:$0xff]  ;;  %v625_v8 = vld [vmem:[%s10367_s1 + $0x1280] sm:$0xff]  ;;  %v626_v7 = vld [vmem:[%s10367_s1 + $0x1288] sm:$0xff]  ;;  %v1363_v11 = vcombine.high %v24_v62, %v24_v62  ;;  %v5927_v12 = vpack.c.bf16 %v560_v2, %v559_v1  ;;  %v8498_v23 = vrot.slane %v24_v62, %v6753_v13 }
 0x119   :  { %v4262_v45 = vpop.f32.mrb[2].mxu1  ;;  %v4229_v51 = vadd.f32 %v4228_v57, %v4227_v50  ;;  %5920 = vmatpush3.bf16.msra.mxu0 %v5919_v43  ;;  %v657_v9 = vld [vmem:[%s10367_s1 + $0x1380] sm:$0xff]  ;;  %v5959_v14 = vpack.c.bf16 %v592_v6, %v591_v3  ;;  %v5961_v15 = vpack.c.bf16 %v626_v7, %v625_v8  ;;  %v610_v17 = vld [vmem:[%s10367_s1 + $0x1208] sm:$0xff]  ;;  %v627_v21 = vld [vmem:[%s10367_s1 + $0x1290] sm:$0xff] }
 0x11a   :  { %v4263_v60 = vpop.f32.mrb[3].mxu1  ;;  %5922 = vmatprep.subr.bf16.mxu0 %v5921_v46  ;;  %v609_v16 = vld [vmem:[%s10367_s1 + $0x1200] sm:$0xff]  ;;  %v642_v20 = vld [vmem:[%s10367_s1 + $0x1308] sm:$0xff]  ;;  %v628_v22 = vld [vmem:[%s10367_s1 + $0x1298] sm:$0xff]  ;;  %v8507_v27 = vrot.slane %v1363_v11, %v6753_v13  ;;  %v1378_v38 = vcombine.high %v8498_v23, %v8498_v23 }
 0x11b   :  { %v4264_v33 = vadd.f32 %v4263_v60, %v4262_v45  ;;  %5952 = vmatpush3.bf16.msra.mxu1 %v5951_v44  ;;  %v1795_v4 = vadd.f32 %v4229_v51, %v8267_v26  ;;  %v658_v26 = vld [vmem:[%s10367_s1 + $0x1388] sm:$0xff]  ;;  %v641_v18 = vld [vmem:[%s10367_s1 + $0x1300] sm:$0xff]  ;;  %v659_v24 = vld [vmem:[%s10367_s1 + $0x1390] sm:$0xff]  ;;  %v5963_v28 = vpack.c.bf16 %v610_v17, %v609_v16  ;;  %v5965_v31 = vpack.c.bf16 %v628_v22, %v627_v21 }
 0x11c   :  { %5954 = vmatprep.subr.bf16.mxu1 %v5953_v53  ;;  %v5993_v19 = vpack.c.bf16 %v658_v26, %v657_v9  ;;  %v660_v25 = vld [vmem:[%s10367_s1 + $0x1398] sm:$0xff]  ;;  %v5995_v29 = vpack.c.bf16 %v642_v20, %v641_v18  ;;  %v611_v30 = vld [vmem:[%s10367_s1 + $0x1210] sm:$0xff]  ;;  %v629_v36 = vld [vmem:[%s10367_s1 + $0x12a0] sm:$0xff]  ;;  %v1379_v43 = vcombine.high %v8507_v27, %v8507_v27 }
 0x11d   :  { %v8477_v10 = vadd.f32 %v4264_v33, %v1795_v4  ;;  %5924 = vmatpush3.bf16.msra.mxu0 %v5923_v61  ;;  %v612_v32 = vld [vmem:[%s10367_s1 + $0x1218] sm:$0xff]  ;;  %v643_v42 = vld [vmem:[%s10367_s1 + $0x1310] sm:$0xff]  ;;  %v5997_v34 = vpack.c.bf16 %v660_v25, %v659_v24  ;;  %v630_v37 = vld [vmem:[%s10367_s1 + $0x12a8] sm:$0xff] }
 0x11e   :  { %5926 = vmatprep.subr.bf16.mxu0 %v5925_v0  ;;  %v644_v35 = vld [vmem:[%s10367_s1 + $0x1318] sm:$0xff]  ;;  %v661_v40 = vld [vmem:[%s10367_s1 + $0x13a0] sm:$0xff]  ;;  %v662_v41 = vld [vmem:[%s10367_s1 + $0x13a8] sm:$0xff]  ;;  %v5967_v44 = vpack.c.bf16 %v612_v32, %v611_v30  ;;  %v5969_v47 = vpack.c.bf16 %v630_v37, %v629_v36 }
 0x11f   :  { %5956 = vmatpush3.bf16.msra.mxu1 %v5955_v63  ;;  %v5999_v46 = vpack.c.bf16 %v644_v35, %v643_v42  ;;  %v614_v48 = vld [vmem:[%s10367_s1 + $0x1228] sm:$0xff]  ;;  %v645_v49 = vld [vmem:[%s10367_s1 + $0x1320] sm:$0xff]  ;;  %v6001_v50 = vpack.c.bf16 %v662_v41, %v661_v40  ;;  %v631_v53 = vld [vmem:[%s10367_s1 + $0x12b0] sm:$0xff] }
 0x120   :  { %5958 = vmatprep.subr.bf16.mxu1 %v5957_v5  ;;  %v632_v54 = vld [vmem:[%s10367_s1 + $0x12b8] sm:$0xff]  ;;  %v663_v55 = vld [vmem:[%s10367_s1 + $0x13b0] sm:$0xff]  ;;  %v633_v33 = vld [vmem:[%s10367_s1 + $0x12c0] sm:$0xff] }
 0x121   :  { %5928 = vmatpush3.bf16.msra.mxu0 %v5927_v12  ;;  %v664_v56 = vld [vmem:[%s10367_s1 + $0x13b8] sm:$0xff]  ;;  %v5973_v58 = vpack.c.bf16 %v632_v54, %v631_v53  ;;  %v615_v59 = vld [vmem:[%s10367_s1 + $0x1230] sm:$0xff]  ;;  %v634_v63 = vld [vmem:[%s10367_s1 + $0x12c8] sm:$0xff] }
 0x122   :  { %5962 = vmatprep.subr.bf16.mxu0 %v5961_v15  ;;  %v616_v51 = vld [vmem:[%s10367_s1 + $0x1238] sm:$0xff]  ;;  %v647_v60 = vld [vmem:[%s10367_s1 + $0x1330] sm:$0xff]  ;;  %v6005_v61 = vpack.c.bf16 %v664_v56, %v663_v55  ;;  %v665_v0 = vld [vmem:[%s10367_s1 + $0x13c0] sm:$0xff]  ;;  %v5977_v4 = vpack.c.bf16 %v634_v63, %v633_v33 }
 0x123   :  { %5960 = vmatpush3.bf16.msra.mxu1 %v5959_v14  ;;  %v648_v62 = vld [vmem:[%s10367_s1 + $0x1338] sm:$0xff]  ;;  %v666_v1 = vld [vmem:[%s10367_s1 + $0x13c8] sm:$0xff]  ;;  %v5975_v2 = vpack.c.bf16 %v616_v51, %v615_v59  ;;  %v617_v5 = vld [vmem:[%s10367_s1 + $0x1240] sm:$0xff] }
 0x124   :  { %5994 = vmatprep.subr.bf16.mxu1 %v5993_v19  ;;  %2773 = vmatmul.mubr.f32.vlgmr.msra.gmra.mrb[16].mxu0 %v8288_v52  ;;  %v613_v52 = vld [vmem:[%s10367_s1 + $0x1220] sm:$0xff]  ;;  %v6007_v3 = vpack.c.bf16 %v648_v62, %v647_v60  ;;  %v618_v6 = vld [vmem:[%s10367_s1 + $0x1248] sm:$0xff]  ;;  %v6009_v7 = vpack.c.bf16 %v666_v1, %v665_v0  ;;  %v635_v26 = vld [vmem:[%s10367_s1 + $0x12d0] sm:$0xff] }
 0x125   :  { %5964 = vmatpush3.bf16.msra.mxu0 %v5963_v28  ;;  %2912 = vmatprep.mubr.f32.mxu0 %v1378_v38  ;;  %v5971_v57 = vpack.c.bf16 %v614_v48, %v613_v52  ;;  %v649_v8 = vld [vmem:[%s10367_s1 + $0x1340] sm:$0xff]  ;;  %v650_v9 = vld [vmem:[%s10367_s1 + $0x1348] sm:$0xff]  ;;  %v636_v11 = vld [vmem:[%s10367_s1 + $0x12d8] sm:$0xff]  ;;  %v5979_v15 = vpack.c.bf16 %v618_v6, %v617_v5 }
 0x126   :  { %2843 = vmatmul.mubr.f32.vlgmr.msra.gmra.mrb[16].mxu1 %v8297_v39  ;;  %5966 = vmatprep.subr.bf16.mxu0 %v5965_v31  ;;  %v646_v39 = vld [vmem:[%s10367_s1 + $0x1328] sm:$0xff]  ;;  %v667_v12 = vld [vmem:[%s10367_s1 + $0x13d0] sm:$0xff]  ;;  %v668_v14 = vld [vmem:[%s10367_s1 + $0x13d8] sm:$0xff]  ;;  %v6011_v16 = vpack.c.bf16 %v650_v9, %v649_v8  ;;  %v5981_v17 = vpack.c.bf16 %v636_v11, %v635_v26 }
 0x127   :  { %5996 = vmatpush3.bf16.msra.mxu1 %v5995_v29  ;;  %2982 = vmatprep.mubr.f32.mxu1 %v1379_v43  ;;  %v6003_v45 = vpack.c.bf16 %v646_v39, %v645_v49  ;;  %v619_v18 = vld [vmem:[%s10367_s1 + $0x1250] sm:$0xff]  ;;  %v620_v19 = vld [vmem:[%s10367_s1 + $0x1258] sm:$0xff]  ;;  %v6013_v21 = vpack.c.bf16 %v668_v14, %v667_v12  ;;  %v637_v24 = vld [vmem:[%s10367_s1 + $0x12e0] sm:$0xff] }
 0x128   :  { %5998 = vmatprep.subr.bf16.mxu1 %v5997_v34  ;;  %v651_v20 = vld [vmem:[%s10367_s1 + $0x1350] sm:$0xff]  ;;  %v652_v22 = vld [vmem:[%s10367_s1 + $0x1358] sm:$0xff]  ;;  %v638_v25 = vld [vmem:[%s10367_s1 + $0x12e8] sm:$0xff]  ;;  %v5983_v31 = vpack.c.bf16 %v620_v19, %v619_v18 }
 0x129   :  { %5968 = vmatpush3.bf16.msra.mxu0 %v5967_v44  ;;  %v669_v28 = vld [vmem:[%s10367_s1 + $0x13e0] sm:$0xff]  ;;  %v670_v29 = vld [vmem:[%s10367_s1 + $0x13e8] sm:$0xff]  ;;  %v6015_v30 = vpack.c.bf16 %v652_v22, %v651_v20  ;;  %v5985_v32 = vpack.c.bf16 %v638_v25, %v637_v24  ;;  %v639_v40 = vld [vmem:[%s10367_s1 + $0x12f0] sm:$0xff] }
 0x12a   :  { %5970 = vmatprep.subr.bf16.mxu0 %v5969_v47  ;;  %v621_v42 = vld [vmem:[%s10367_s1 + $0x1260] sm:$0xff]  ;;  %v622_v34 = vld [vmem:[%s10367_s1 + $0x1268] sm:$0xff]  ;;  %v6017_v37 = vpack.c.bf16 %v670_v29, %v669_v28  ;;  %v640_v41 = vld [vmem:[%s10367_s1 + $0x12f8] sm:$0xff] }
 0x12b   :  { %6000 = vmatpush3.bf16.msra.mxu1 %v5999_v46  ;;  %v653_v35 = vld [vmem:[%s10367_s1 + $0x1360] sm:$0xff]  ;;  %v654_v38 = vld [vmem:[%s10367_s1 + $0x1368] sm:$0xff]  ;;  %v671_v46 = vld [vmem:[%s10367_s1 + $0x13f0] sm:$0xff]  ;;  %v5987_v49 = vpack.c.bf16 %v622_v34, %v621_v42  ;;  %v5989_v54 = vpack.c.bf16 %v640_v41, %v639_v40 }
 0x12c   :  { %6002 = vmatprep.subr.bf16.mxu1 %v6001_v50  ;;  %v672_v47 = vld [vmem:[%s10367_s1 + $0x13f8] sm:$0xff]  ;;  %v25_v50 = vld [vmem:[%s10366_s0 + $0x50] sm:$0xff]  ;;  %v6019_v53 = vpack.c.bf16 %v654_v38, %v653_v35  ;;  %v689_v51 = vld [vmem:[%s10367_s1 + $0x1480] sm:$0xff] }
 0x12d   :  { %5972 = vmatpush3.bf16.msra.mxu0 %v5971_v57  ;;  %v623_v55 = vld [vmem:[%s10367_s1 + $0x1270] sm:$0xff]  ;;  %v624_v56 = vld [vmem:[%s10367_s1 + $0x1278] sm:$0xff]  ;;  %v690_v60 = vld [vmem:[%s10367_s1 + $0x1488] sm:$0xff]  ;;  %v1380_v62 = vcombine.high %v25_v50, %v25_v50  ;;  %v8708_v9 = vrot.slane %v25_v50, %v6753_v13 }
 0x12e   :  { %5974 = vmatprep.subr.bf16.mxu0 %v5973_v58  ;;  %v655_v57 = vld [vmem:[%s10367_s1 + $0x1370] sm:$0xff]  ;;  %v6021_v58 = vpack.c.bf16 %v672_v47, %v671_v46  ;;  %v656_v59 = vld [vmem:[%s10367_s1 + $0x1378] sm:$0xff]  ;;  %v5991_v63 = vpack.c.bf16 %v624_v56, %v623_v55  ;;  %v6025_v1 = vpack.c.bf16 %v690_v60, %v689_v51  ;;  %v706_v6 = vld [vmem:[%s10367_s1 + $0x1508] sm:$0xff] }
 0x12f   :  { %6004 = vmatpush3.bf16.msra.mxu1 %v6003_v45  ;;  %v6023_v0 = vpack.c.bf16 %v656_v59, %v655_v57  ;;  %v691_v8 = vld [vmem:[%s10367_s1 + $0x1490] sm:$0xff]  ;;  %v724_v11 = vld [vmem:[%s10367_s1 + $0x1598] sm:$0xff]  ;;  %v8717_v12 = vrot.slane %v1380_v62, %v6753_v13  ;;  %v693_v22 = vld [vmem:[%s10367_s1 + $0x14a0] sm:$0xff]  ;;  %v1395_v25 = vcombine.high %v8708_v9, %v8708_v9 }
 0x130   :  { %6006 = vmatprep.subr.bf16.mxu1 %v6005_v61  ;;  %v721_v61 = vld [vmem:[%s10367_s1 + $0x1580] sm:$0xff]  ;;  %v723_v26 = vld [vmem:[%s10367_s1 + $0x1590] sm:$0xff]  ;;  %v676_v18 = vld [vmem:[%s10367_s1 + $0x1418] sm:$0xff] }
 0x131   :  { %5976 = vmatpush3.bf16.msra.mxu0 %v5975_v2  ;;  %v673_v2 = vld [vmem:[%s10367_s1 + $0x1400] sm:$0xff]  ;;  %v707_v19 = vld [vmem:[%s10367_s1 + $0x1510] sm:$0xff]  ;;  %v6061_v20 = vpack.c.bf16 %v724_v11, %v723_v26  ;;  %v694_v24 = vld [vmem:[%s10367_s1 + $0x14a8] sm:$0xff] }
 0x132   :  { %5978 = vmatprep.subr.bf16.mxu0 %v5977_v4  ;;  %v705_v4 = vld [vmem:[%s10367_s1 + $0x1500] sm:$0xff]  ;;  %v726_v29 = vld [vmem:[%s10367_s1 + $0x15a8] sm:$0xff]  ;;  %v6033_v42 = vpack.c.bf16 %v694_v24, %v693_v22  ;;  %v696_v38 = vld [vmem:[%s10367_s1 + $0x14b8] sm:$0xff] }
 0x133   :  { %6008 = vmatpush3.bf16.msra.mxu1 %v6007_v3  ;;  %v674_v3 = vld [vmem:[%s10367_s1 + $0x1408] sm:$0xff]  ;;  %v725_v28 = vld [vmem:[%s10367_s1 + $0x15a0] sm:$0xff]  ;;  %v727_v40 = vld [vmem:[%s10367_s1 + $0x15b0] sm:$0xff] }
 0x134   :  { %6010 = vmatprep.subr.bf16.mxu1 %v6009_v7  ;;  %v692_v7 = vld [vmem:[%s10367_s1 + $0x1498] sm:$0xff]  ;;  %v6027_v14 = vpack.c.bf16 %v674_v3, %v673_v2  ;;  %v678_v34 = vld [vmem:[%s10367_s1 + $0x1428] sm:$0xff]  ;;  %v709_v35 = vld [vmem:[%s10367_s1 + $0x1520] sm:$0xff] }
 0x135   :  { %5980 = vmatpush3.bf16.msra.mxu0 %v5979_v15  ;;  %v6059_v15 = vpack.c.bf16 %v706_v6, %v705_v4  ;;  %v728_v41 = vld [vmem:[%s10367_s1 + $0x15b8] sm:$0xff]  ;;  %v679_v47 = vld [vmem:[%s10367_s1 + $0x1430] sm:$0xff]  ;;  %v730_v55 = vld [vmem:[%s10367_s1 + $0x15c8] sm:$0xff] }
 0x136   :  { %5982 = vmatprep.subr.bf16.mxu0 %v5981_v17  ;;  %v675_v17 = vld [vmem:[%s10367_s1 + $0x1410] sm:$0xff]  ;;  %v712_v50 = vld [vmem:[%s10367_s1 + $0x1538] sm:$0xff]  ;;  %v682_v59 = vld [vmem:[%s10367_s1 + $0x1448] sm:$0xff] }
 0x137   :  { %6012 = vmatpush3.bf16.msra.mxu1 %v6011_v16  ;;  %v4297_v36 = vpop.f32.mrb[4].mxu0  ;;  %v6029_v16 = vpack.c.bf16 %v692_v7, %v691_v8  ;;  %v713_v51 = vld [vmem:[%s10367_s1 + $0x1540] sm:$0xff]  ;;  %v700_v62 = vld [vmem:[%s10367_s1 + $0x14d8] sm:$0xff]  ;;  %v683_v4 = vld [vmem:[%s10367_s1 + $0x1450] sm:$0xff] }
 0x138   :  { %6014 = vmatprep.subr.bf16.mxu1 %v6013_v21  ;;  %v4298_v43 = vpop.f32.mrb[5].mxu0  ;;  %v708_v21 = vld [vmem:[%s10367_s1 + $0x1518] sm:$0xff]  ;;  %v715_v6 = vld [vmem:[%s10367_s1 + $0x1550] sm:$0xff]  ;;  %v701_v26 = vld [vmem:[%s10367_s1 + $0x14e0] sm:$0xff] }
 0x139   :  { %v4332_v44 = vpop.f32.mrb[4].mxu1  ;;  %v4299_v52 = vadd.f32 %v4298_v43, %v4297_v36  ;;  %5984 = vmatpush3.bf16.msra.mxu0 %v5983_v31  ;;  %v1396_v31 = vcombine.high %v8717_v12, %v8717_v12  ;;  %v6065_v36 = vpack.c.bf16 %v726_v29, %v725_v28  ;;  %v716_v7 = vld [vmem:[%s10367_s1 + $0x1558] sm:$0xff]  ;;  %v702_v11 = vld [vmem:[%s10367_s1 + $0x14e8] sm:$0xff]  ;;  %v703_v28 = vld [vmem:[%s10367_s1 + $0x14f0] sm:$0xff] }
 0x13a   :  { %v4333_v48 = vpop.f32.mrb[5].mxu1  ;;  %5986 = vmatprep.subr.bf16.mxu0 %v5985_v32  ;;  %v6063_v32 = vpack.c.bf16 %v708_v21, %v707_v19  ;;  %v685_v19 = vld [vmem:[%s10367_s1 + $0x1460] sm:$0xff]  ;;  %v704_v29 = vld [vmem:[%s10367_s1 + $0x14f8] sm:$0xff] }
 0x13b   :  { %v4334_v39 = vadd.f32 %v4333_v48, %v4332_v44  ;;  %6016 = vmatpush3.bf16.msra.mxu1 %v6015_v30  ;;  %v1935_v45 = vadd.f32 %v4299_v52, %v8477_v10  ;;  %v722_v10 = vld [vmem:[%s10367_s1 + $0x1588] sm:$0xff]  ;;  %v6031_v30 = vpack.c.bf16 %v676_v18, %v675_v17  ;;  %v680_v52 = vld [vmem:[%s10367_s1 + $0x1438] sm:$0xff]  ;;  %v711_v48 = vld [vmem:[%s10367_s1 + $0x1530] sm:$0xff]  ;;  %v6079_v17 = vpack.c.bf16 %v716_v7, %v715_v6 }
 0x13c   :  { %6018 = vmatprep.subr.bf16.mxu1 %v6017_v37  ;;  %v6057_v5 = vpack.c.bf16 %v722_v10, %v721_v61  ;;  %v695_v37 = vld [vmem:[%s10367_s1 + $0x14b0] sm:$0xff]  ;;  %v6039_v56 = vpack.c.bf16 %v680_v52, %v679_v47  ;;  %v6071_v57 = vpack.c.bf16 %v712_v50, %v711_v48  ;;  %v714_v61 = vld [vmem:[%s10367_s1 + $0x1548] sm:$0xff]  ;;  %v6049_v18 = vpack.c.bf16 %v702_v11, %v701_v26  ;;  %v717_v21 = vld [vmem:[%s10367_s1 + $0x1560] sm:$0xff] }
 0x13d   :  { %v8687_v33 = vadd.f32 %v4334_v39, %v1935_v45  ;;  %5988 = vmatpush3.bf16.msra.mxu0 %v5987_v49  ;;  %v6037_v46 = vpack.c.bf16 %v696_v38, %v695_v37  ;;  %v6069_v49 = vpack.c.bf16 %v728_v41, %v727_v40  ;;  %v697_v39 = vld [vmem:[%s10367_s1 + $0x14c0] sm:$0xff]  ;;  %v699_v10 = vld [vmem:[%s10367_s1 + $0x14d0] sm:$0xff]  ;;  %v6075_v2 = vpack.c.bf16 %v714_v61, %v713_v51  ;;  %v688_v41 = vld [vmem:[%s10367_s1 + $0x1478] sm:$0xff] }
 0x13e   :  { %5990 = vmatprep.subr.bf16.mxu0 %v5989_v54  ;;  %v729_v54 = vld [vmem:[%s10367_s1 + $0x15c0] sm:$0xff]  ;;  %v6045_v3 = vpack.c.bf16 %v700_v62, %v699_v10  ;;  %v6053_v38 = vpack.c.bf16 %v704_v29, %v703_v28  ;;  %v687_v40 = vld [vmem:[%s10367_s1 + $0x1470] sm:$0xff]  ;;  %v720_v47 = vld [vmem:[%s10367_s1 + $0x1578] sm:$0xff] }
 0x13f   :  { %6020 = vmatpush3.bf16.msra.mxu1 %v6019_v53  ;;  %v698_v53 = vld [vmem:[%s10367_s1 + $0x14c8] sm:$0xff]  ;;  %v6073_v60 = vpack.c.bf16 %v730_v55, %v729_v54  ;;  %v753_v52 = vld [vmem:[%s10367_s1 + $0x1680] sm:$0xff]  ;;  %v755_v51 = vld [vmem:[%s10367_s1 + $0x1690] sm:$0xff] }
 0x140   :  { %6022 = vmatprep.subr.bf16.mxu1 %v6021_v58  ;;  %v6041_v45 = vpack.c.bf16 %v698_v53, %v697_v39  ;;  %v681_v58 = vld [vmem:[%s10367_s1 + $0x1440] sm:$0xff]  ;;  %v754_v48 = vld [vmem:[%s10367_s1 + $0x1688] sm:$0xff]  ;;  %v6055_v53 = vpack.c.bf16 %v688_v41, %v687_v40  ;;  %v787_v10 = vld [vmem:[%s10367_s1 + $0x1790] sm:$0xff] }
 0x141   :  { %5992 = vmatpush3.bf16.msra.mxu0 %v5991_v63  ;;  %v731_v63 = vld [vmem:[%s10367_s1 + $0x15d0] sm:$0xff]  ;;  %v6089_v55 = vpack.c.bf16 %v754_v48, %v753_v52  ;;  %v788_v62 = vld [vmem:[%s10367_s1 + $0x1798] sm:$0xff]  ;;  %v757_v7 = vld [vmem:[%s10367_s1 + $0x16a0] sm:$0xff] }
 0x142   :  { %6026 = vmatprep.subr.bf16.mxu0 %v6025_v1  ;;  %v6043_v1 = vpack.c.bf16 %v682_v59, %v681_v58  ;;  %v770_v59 = vld [vmem:[%s10367_s1 + $0x1708] sm:$0xff]  ;;  %v6125_v6 = vpack.c.bf16 %v788_v62, %v787_v10  ;;  %v791_v28 = vld [vmem:[%s10367_s1 + $0x17b0] sm:$0xff]  ;;  %v792_v29 = vld [vmem:[%s10367_s1 + $0x17b8] sm:$0xff] }
 0x143   :  { %6024 = vmatpush3.bf16.msra.mxu1 %v6023_v0  ;;  %v732_v0 = vld [vmem:[%s10367_s1 + $0x15d8] sm:$0xff]  ;;  %v758_v26 = vld [vmem:[%s10367_s1 + $0x16a8] sm:$0xff]  ;;  %v777_v52 = vld [vmem:[%s10367_s1 + $0x1740] sm:$0xff] }
 0x144   :  { %6058 = vmatprep.subr.bf16.mxu1 %v6057_v5  ;;  %2913 = vmatmul.mubr.f32.vlgmr.msra.gmra.mrb[18].mxu0 %v8498_v23  ;;  %v677_v23 = vld [vmem:[%s10367_s1 + $0x1420] sm:$0xff]  ;;  %v684_v5 = vld [vmem:[%s10367_s1 + $0x1458] sm:$0xff]  ;;  %v6077_v8 = vpack.c.bf16 %v732_v0, %v731_v63  ;;  %v794_v40 = vld [vmem:[%s10367_s1 + $0x17c8] sm:$0xff] }
 0x145   :  { %6028 = vmatpush3.bf16.msra.mxu0 %v6027_v14  ;;  %3052 = vmatprep.mubr.f32.mxu0 %v1395_v25  ;;  %v6035_v43 = vpack.c.bf16 %v678_v34, %v677_v23  ;;  %v733_v14 = vld [vmem:[%s10367_s1 + $0x15e0] sm:$0xff]  ;;  %v718_v25 = vld [vmem:[%s10367_s1 + $0x1568] sm:$0xff] }
 0x146   :  { %2983 = vmatmul.mubr.f32.vlgmr.msra.gmra.mrb[18].mxu1 %v8507_v27  ;;  %6030 = vmatprep.subr.bf16.mxu0 %v6029_v16  ;;  %v710_v27 = vld [vmem:[%s10367_s1 + $0x1528] sm:$0xff]  ;;  %v6047_v16 = vpack.c.bf16 %v684_v5, %v683_v4  ;;  %v6083_v37 = vpack.c.bf16 %v718_v25, %v717_v21  ;;  %v740_v4 = vld [vmem:[%s10367_s1 + $0x1618] sm:$0xff]  ;;  %v771_v5 = vld [vmem:[%s10367_s1 + $0x1710] sm:$0xff] }
 0x147   :  { %6060 = vmatpush3.bf16.msra.mxu1 %v6059_v15  ;;  %3122 = vmatprep.mubr.f32.mxu1 %v1396_v31  ;;  %v6067_v44 = vpack.c.bf16 %v710_v27, %v709_v35  ;;  %v734_v15 = vld [vmem:[%s10367_s1 + $0x15e8] sm:$0xff]  ;;  %v773_v21 = vld [vmem:[%s10367_s1 + $0x1720] sm:$0xff]  ;;  %v760_v25 = vld [vmem:[%s10367_s1 + $0x16b8] sm:$0xff] }
 0x148   :  { %6062 = vmatprep.subr.bf16.mxu1 %v6061_v20  ;;  %v686_v20 = vld [vmem:[%s10367_s1 + $0x1468] sm:$0xff]  ;;  %v6081_v24 = vpack.c.bf16 %v734_v15, %v733_v14  ;;  %v789_v14 = vld [vmem:[%s10367_s1 + $0x17a0] sm:$0xff] }
 0x149   :  { %6032 = vmatpush3.bf16.msra.mxu0 %v6031_v30  ;;  %v6051_v35 = vpack.c.bf16 %v686_v20, %v685_v19  ;;  %v790_v15 = vld [vmem:[%s10367_s1 + $0x17a8] sm:$0xff]  ;;  %v6097_v19 = vpack.c.bf16 %v758_v26, %v757_v7  ;;  %v765_v10 = vld [vmem:[%s10367_s1 + $0x16e0] sm:$0xff] }
 0x14a   :  { %6034 = vmatprep.subr.bf16.mxu0 %v6033_v42  ;;  %v736_v42 = vld [vmem:[%s10367_s1 + $0x15f8] sm:$0xff]  ;;  %v742_v20 = vld [vmem:[%s10367_s1 + $0x1628] sm:$0xff] }
 0x14b   :  { %6064 = vmatpush3.bf16.msra.mxu1 %v6063_v32  ;;  %v735_v32 = vld [vmem:[%s10367_s1 + $0x15f0] sm:$0xff]  ;;  %v766_v62 = vld [vmem:[%s10367_s1 + $0x16e8] sm:$0xff] }
 0x14c   :  { %6066 = vmatprep.subr.bf16.mxu1 %v6065_v36  ;;  %v26_v36 = vld [vmem:[%s10366_s0 + $0x58] sm:$0xff] }
 0x14d   :  { %6036 = vmatpush3.bf16.msra.mxu0 %v6035_v43  ;;  %v719_v43 = vld [vmem:[%s10367_s1 + $0x1570] sm:$0xff]  ;;  %v1397_v50 = vcombine.high %v26_v36, %v26_v36  ;;  %v8918_v61 = vrot.slane %v26_v36, %v6753_v13  ;;  %v776_v36 = vld [vmem:[%s10367_s1 + $0x1738] sm:$0xff] }
 0x14e   :  { %6038 = vmatprep.subr.bf16.mxu0 %v6037_v46  ;;  %v6085_v46 = vpack.c.bf16 %v736_v42, %v735_v32  ;;  %v6087_v54 = vpack.c.bf16 %v720_v47, %v719_v43  ;;  %v743_v42 = vld [vmem:[%s10367_s1 + $0x1630] sm:$0xff]  ;;  %v746_v47 = vld [vmem:[%s10367_s1 + $0x1648] sm:$0xff] }
 0x14f   :  { %6068 = vmatpush3.bf16.msra.mxu1 %v6067_v44  ;;  %v8927_v63 = vrot.slane %v1397_v50, %v6753_v13  ;;  %v1412_v11 = vcombine.high %v8918_v61, %v8918_v61  ;;  %v764_v50 = vld [vmem:[%s10367_s1 + $0x16d8] sm:$0xff] }
 0x150   :  { %6070 = vmatprep.subr.bf16.mxu1 %v6069_v49  ;;  %v785_v49 = vld [vmem:[%s10367_s1 + $0x1780] sm:$0xff] }
 0x151   :  { %6040 = vmatpush3.bf16.msra.mxu0 %v6039_v56  ;;  %v737_v56 = vld [vmem:[%s10367_s1 + $0x1600] sm:$0xff] }
 0x152   :  { %6042 = vmatprep.subr.bf16.mxu0 %v6041_v45  ;;  %v769_v45 = vld [vmem:[%s10367_s1 + $0x1700] sm:$0xff] }
 0x153   :  { %6072 = vmatpush3.bf16.msra.mxu1 %v6071_v57  ;;  %v738_v57 = vld [vmem:[%s10367_s1 + $0x1608] sm:$0xff] }
 0x154   :  { %6074 = vmatprep.subr.bf16.mxu1 %v6073_v60  ;;  %v756_v60 = vld [vmem:[%s10367_s1 + $0x1698] sm:$0xff]  ;;  %v6091_v0 = vpack.c.bf16 %v738_v57, %v737_v56 }
 0x155   :  { %6044 = vmatpush3.bf16.msra.mxu0 %v6043_v1  ;;  %v6123_v1 = vpack.c.bf16 %v770_v59, %v769_v45  ;;  %v747_v45 = vld [vmem:[%s10367_s1 + $0x1650] sm:$0xff] }
 0x156   :  { %6046 = vmatprep.subr.bf16.mxu0 %v6045_v3  ;;  %v739_v3 = vld [vmem:[%s10367_s1 + $0x1610] sm:$0xff] }
 0x157   :  { %6076 = vmatpush3.bf16.msra.mxu1 %v6075_v2  ;;  %v4367_v22 = vpop.f32.mrb[6].mxu0  ;;  %v6093_v2 = vpack.c.bf16 %v756_v60, %v755_v51  ;;  %v779_v59 = vld [vmem:[%s10367_s1 + $0x1750] sm:$0xff]  ;;  %v780_v60 = vld [vmem:[%s10367_s1 + $0x1758] sm:$0xff] }
 0x158   :  { %6078 = vmatprep.subr.bf16.mxu1 %v6077_v8  ;;  %v4368_v31 = vpop.f32.mrb[7].mxu0  ;;  %v772_v8 = vld [vmem:[%s10367_s1 + $0x1718] sm:$0xff] }
 0x159   :  { %v4402_v30 = vpop.f32.mrb[6].mxu1  ;;  %v4369_v23 = vadd.f32 %v4368_v31, %v4367_v22  ;;  %6048 = vmatpush3.bf16.msra.mxu0 %v6047_v16  ;;  %v1413_v16 = vcombine.high %v8927_v63, %v8927_v63  ;;  %v6129_v22 = vpack.c.bf16 %v790_v15, %v789_v14  ;;  %v767_v14 = vld [vmem:[%s10367_s1 + $0x16f0] sm:$0xff]  ;;  %v768_v15 = vld [vmem:[%s10367_s1 + $0x16f8] sm:$0xff] }
 0x15a   :  { %v4403_v34 = vpop.f32.mrb[7].mxu1  ;;  %6050 = vmatprep.subr.bf16.mxu0 %v6049_v18  ;;  %v6127_v18 = vpack.c.bf16 %v772_v8, %v771_v5  ;;  %v749_v5 = vld [vmem:[%s10367_s1 + $0x1660] sm:$0xff] }
 0x15b   :  { %v4404_v27 = vadd.f32 %v4403_v34, %v4402_v30  ;;  %6080 = vmatpush3.bf16.msra.mxu1 %v6079_v17  ;;  %v2075_v44 = vadd.f32 %v4369_v23, %v8687_v33  ;;  %v786_v33 = vld [vmem:[%s10367_s1 + $0x1788] sm:$0xff]  ;;  %v6095_v17 = vpack.c.bf16 %v740_v4, %v739_v3  ;;  %v744_v23 = vld [vmem:[%s10367_s1 + $0x1638] sm:$0xff]  ;;  %v775_v34 = vld [vmem:[%s10367_s1 + $0x1730] sm:$0xff]  ;;  %v6143_v3 = vpack.c.bf16 %v780_v60, %v779_v59 }
 0x15c   :  { %6082 = vmatprep.subr.bf16.mxu1 %v6081_v24  ;;  %v6121_v58 = vpack.c.bf16 %v786_v33, %v785_v49  ;;  %v759_v24 = vld [vmem:[%s10367_s1 + $0x16b0] sm:$0xff]  ;;  %v6103_v41 = vpack.c.bf16 %v744_v23, %v743_v42  ;;  %v6135_v43 = vpack.c.bf16 %v776_v36, %v775_v34  ;;  %v778_v49 = vld [vmem:[%s10367_s1 + $0x1748] sm:$0xff]  ;;  %v6113_v4 = vpack.c.bf16 %v766_v62, %v765_v10  ;;  %v781_v8 = vld [vmem:[%s10367_s1 + $0x1760] sm:$0xff] }
 0x15d   :  { %v8897_v39 = vadd.f32 %v4404_v27, %v2075_v44  ;;  %6052 = vmatpush3.bf16.msra.mxu0 %v6051_v35  ;;  %v6101_v32 = vpack.c.bf16 %v760_v25, %v759_v24  ;;  %v6133_v35 = vpack.c.bf16 %v792_v29, %v791_v28  ;;  %v761_v27 = vld [vmem:[%s10367_s1 + $0x16c0] sm:$0xff]  ;;  %v763_v33 = vld [vmem:[%s10367_s1 + $0x16d0] sm:$0xff]  ;;  %v6139_v56 = vpack.c.bf16 %v778_v49, %v777_v52  ;;  %v752_v29 = vld [vmem:[%s10367_s1 + $0x1678] sm:$0xff] }
 0x15e   :  { %6054 = vmatprep.subr.bf16.mxu0 %v6053_v38  ;;  %v793_v38 = vld [vmem:[%s10367_s1 + $0x17c0] sm:$0xff]  ;;  %v6109_v57 = vpack.c.bf16 %v764_v50, %v763_v33  ;;  %v6117_v25 = vpack.c.bf16 %v768_v15, %v767_v14  ;;  %v751_v28 = vld [vmem:[%s10367_s1 + $0x1670] sm:$0xff]  ;;  %v784_v42 = vld [vmem:[%s10367_s1 + $0x1778] sm:$0xff] }
 0x15f   :  { %6084 = vmatpush3.bf16.msra.mxu1 %v6083_v37  ;;  %v762_v37 = vld [vmem:[%s10367_s1 + $0x16c8] sm:$0xff]  ;;  %v6137_v48 = vpack.c.bf16 %v794_v40, %v793_v38  ;;  %v817_v23 = vld [vmem:[%s10367_s1 + $0x1880] sm:$0xff]  ;;  %v819_v52 = vld [vmem:[%s10367_s1 + $0x1890] sm:$0xff] }
 0x160   :  { %6086 = vmatprep.subr.bf16.mxu1 %v6085_v46  ;;  %v6105_v44 = vpack.c.bf16 %v762_v37, %v761_v27  ;;  %v745_v46 = vld [vmem:[%s10367_s1 + $0x1640] sm:$0xff]  ;;  %v818_v34 = vld [vmem:[%s10367_s1 + $0x1888] sm:$0xff]  ;;  %v6119_v37 = vpack.c.bf16 %v752_v29, %v751_v28  ;;  %v851_v33 = vld [vmem:[%s10367_s1 + $0x1990] sm:$0xff] }
 0x161   :  { %6056 = vmatpush3.bf16.msra.mxu0 %v6055_v53  ;;  %v795_v53 = vld [vmem:[%s10367_s1 + $0x17d0] sm:$0xff]  ;;  %v6153_v40 = vpack.c.bf16 %v818_v34, %v817_v23  ;;  %v852_v50 = vld [vmem:[%s10367_s1 + $0x1998] sm:$0xff]  ;;  %v821_v60 = vld [vmem:[%s10367_s1 + $0x18a0] sm:$0xff] }
 0x162   :  { %6090 = vmatprep.subr.bf16.mxu0 %v6089_v55  ;;  %v6107_v55 = vpack.c.bf16 %v746_v47, %v745_v46  ;;  %v834_v47 = vld [vmem:[%s10367_s1 + $0x1908] sm:$0xff]  ;;  %v6189_v59 = vpack.c.bf16 %v852_v50, %v851_v33  ;;  %v855_v14 = vld [vmem:[%s10367_s1 + $0x19b0] sm:$0xff]  ;;  %v856_v15 = vld [vmem:[%s10367_s1 + $0x19b8] sm:$0xff] }
 0x163   :  { %6088 = vmatpush3.bf16.msra.mxu1 %v6087_v54  ;;  %v796_v54 = vld [vmem:[%s10367_s1 + $0x17d8] sm:$0xff]  ;;  %v822_v10 = vld [vmem:[%s10367_s1 + $0x18a8] sm:$0xff]  ;;  %v841_v23 = vld [vmem:[%s10367_s1 + $0x1940] sm:$0xff] }
 0x164   :  { %6122 = vmatprep.subr.bf16.mxu1 %v6121_v58  ;;  %3053 = vmatmul.mubr.f32.vlgmr.msra.gmra.mrb[20].mxu0 %v8708_v9  ;;  %v741_v9 = vld [vmem:[%s10367_s1 + $0x1620] sm:$0xff]  ;;  %v748_v58 = vld [vmem:[%s10367_s1 + $0x1658] sm:$0xff]  ;;  %v6141_v51 = vpack.c.bf16 %v796_v54, %v795_v53  ;;  %v858_v28 = vld [vmem:[%s10367_s1 + $0x19c8] sm:$0xff] }
 0x165   :  { %6092 = vmatpush3.bf16.msra.mxu0 %v6091_v0  ;;  %3192 = vmatprep.mubr.f32.mxu0 %v1412_v11  ;;  %v6099_v31 = vpack.c.bf16 %v742_v20, %v741_v9  ;;  %v797_v0 = vld [vmem:[%s10367_s1 + $0x17e0] sm:$0xff]  ;;  %v782_v11 = vld [vmem:[%s10367_s1 + $0x1768] sm:$0xff] }
 0x166   :  { %3123 = vmatmul.mubr.f32.vlgmr.msra.gmra.mrb[20].mxu1 %v8717_v12  ;;  %6094 = vmatprep.subr.bf16.mxu0 %v6093_v2  ;;  %v774_v12 = vld [vmem:[%s10367_s1 + $0x1728] sm:$0xff]  ;;  %v6111_v2 = vpack.c.bf16 %v748_v58, %v747_v45  ;;  %v6147_v24 = vpack.c.bf16 %v782_v11, %v781_v8  ;;  %v804_v45 = vld [vmem:[%s10367_s1 + $0x1818] sm:$0xff]  ;;  %v835_v58 = vld [vmem:[%s10367_s1 + $0x1910] sm:$0xff] }
 0x167   :  { %6124 = vmatpush3.bf16.msra.mxu1 %v6123_v1  ;;  %3262 = vmatprep.mubr.f32.mxu1 %v1413_v16  ;;  %v6131_v30 = vpack.c.bf16 %v774_v12, %v773_v21  ;;  %v798_v1 = vld [vmem:[%s10367_s1 + $0x17e8] sm:$0xff]  ;;  %v837_v8 = vld [vmem:[%s10367_s1 + $0x1920] sm:$0xff]  ;;  %v824_v11 = vld [vmem:[%s10367_s1 + $0x18b8] sm:$0xff] }
 0x168   :  { %6126 = vmatprep.subr.bf16.mxu1 %v6125_v6  ;;  %v750_v6 = vld [vmem:[%s10367_s1 + $0x1668] sm:$0xff]  ;;  %v6145_v26 = vpack.c.bf16 %v798_v1, %v797_v0  ;;  %v853_v0 = vld [vmem:[%s10367_s1 + $0x19a0] sm:$0xff] }
 0x169   :  { %6096 = vmatpush3.bf16.msra.mxu0 %v6095_v17  ;;  %v6115_v21 = vpack.c.bf16 %v750_v6, %v749_v5  ;;  %v854_v1 = vld [vmem:[%s10367_s1 + $0x19a8] sm:$0xff]  ;;  %v6161_v5 = vpack.c.bf16 %v822_v10, %v821_v60  ;;  %v829_v33 = vld [vmem:[%s10367_s1 + $0x18e0] sm:$0xff] }
 0x16a   :  { %6098 = vmatprep.subr.bf16.mxu0 %v6097_v19  ;;  %v800_v19 = vld [vmem:[%s10367_s1 + $0x17f8] sm:$0xff]  ;;  %v806_v6 = vld [vmem:[%s10367_s1 + $0x1828] sm:$0xff] }
 0x16b   :  { %6128 = vmatpush3.bf16.msra.mxu1 %v6127_v18  ;;  %v799_v18 = vld [vmem:[%s10367_s1 + $0x17f0] sm:$0xff]  ;;  %v830_v50 = vld [vmem:[%s10367_s1 + $0x18e8] sm:$0xff] }
 0x16c   :  { %6130 = vmatprep.subr.bf16.mxu1 %v6129_v22  ;;  %v27_v22 = vld [vmem:[%s10366_s0 + $0x60] sm:$0xff] }
 0x16d   :  { %6100 = vmatpush3.bf16.msra.mxu0 %v6099_v31  ;;  %v783_v31 = vld [vmem:[%s10367_s1 + $0x1770] sm:$0xff]  ;;  %v1414_v36 = vcombine.high %v27_v22, %v27_v22  ;;  %v9128_v49 = vrot.slane %v27_v22, %v6753_v13  ;;  %v840_v22 = vld [vmem:[%s10367_s1 + $0x1938] sm:$0xff] }
 0x16e   :  { %6102 = vmatprep.subr.bf16.mxu0 %v6101_v32  ;;  %v6149_v32 = vpack.c.bf16 %v800_v19, %v799_v18  ;;  %v6151_v38 = vpack.c.bf16 %v784_v42, %v783_v31  ;;  %v807_v19 = vld [vmem:[%s10367_s1 + $0x1830] sm:$0xff]  ;;  %v810_v42 = vld [vmem:[%s10367_s1 + $0x1848] sm:$0xff] }
 0x16f   :  { %6132 = vmatpush3.bf16.msra.mxu1 %v6131_v30  ;;  %v9137_v53 = vrot.slane %v1414_v36, %v6753_v13  ;;  %v1429_v62 = vcombine.high %v9128_v49, %v9128_v49  ;;  %v828_v36 = vld [vmem:[%s10367_s1 + $0x18d8] sm:$0xff] }
 0x170   :  { %6134 = vmatprep.subr.bf16.mxu1 %v6133_v35  ;;  %v849_v35 = vld [vmem:[%s10367_s1 + $0x1980] sm:$0xff] }
 0x171   :  { %6104 = vmatpush3.bf16.msra.mxu0 %v6103_v41  ;;  %v801_v41 = vld [vmem:[%s10367_s1 + $0x1800] sm:$0xff] }
 0x172   :  { %6106 = vmatprep.subr.bf16.mxu0 %v6105_v44  ;;  %v833_v44 = vld [vmem:[%s10367_s1 + $0x1900] sm:$0xff] }
 0x173   :  { %6136 = vmatpush3.bf16.msra.mxu1 %v6135_v43  ;;  %v802_v43 = vld [vmem:[%s10367_s1 + $0x1808] sm:$0xff] }
 0x174   :  { %6138 = vmatprep.subr.bf16.mxu1 %v6137_v48  ;;  %v820_v48 = vld [vmem:[%s10367_s1 + $0x1898] sm:$0xff]  ;;  %v6155_v54 = vpack.c.bf16 %v802_v43, %v801_v41 }
 0x175   :  { %6108 = vmatpush3.bf16.msra.mxu0 %v6107_v55  ;;  %v6187_v55 = vpack.c.bf16 %v834_v47, %v833_v44  ;;  %v811_v44 = vld [vmem:[%s10367_s1 + $0x1850] sm:$0xff] }
 0x176   :  { %6110 = vmatprep.subr.bf16.mxu0 %v6109_v57  ;;  %v803_v57 = vld [vmem:[%s10367_s1 + $0x1810] sm:$0xff] }
 0x177   :  { %6140 = vmatpush3.bf16.msra.mxu1 %v6139_v56  ;;  %v4437_v7 = vpop.f32.mrb[8].mxu0  ;;  %v6157_v56 = vpack.c.bf16 %v820_v48, %v819_v52  ;;  %v843_v47 = vld [vmem:[%s10367_s1 + $0x1950] sm:$0xff]  ;;  %v844_v48 = vld [vmem:[%s10367_s1 + $0x1958] sm:$0xff] }
 0x178   :  { %6142 = vmatprep.subr.bf16.mxu1 %v6141_v51  ;;  %v4438_v16 = vpop.f32.mrb[9].mxu0  ;;  %v836_v51 = vld [vmem:[%s10367_s1 + $0x1918] sm:$0xff] }
 0x179   :  { %v4472_v17 = vpop.f32.mrb[8].mxu1  ;;  %v4439_v9 = vadd.f32 %v4438_v16, %v4437_v7  ;;  %6112 = vmatpush3.bf16.msra.mxu0 %v6111_v2  ;;  %v1430_v2 = vcombine.high %v9137_v53, %v9137_v53  ;;  %v6193_v7 = vpack.c.bf16 %v854_v1, %v853_v0  ;;  %v831_v0 = vld [vmem:[%s10367_s1 + $0x18f0] sm:$0xff]  ;;  %v832_v1 = vld [vmem:[%s10367_s1 + $0x18f8] sm:$0xff] }
 0x17a   :  { %v4473_v20 = vpop.f32.mrb[9].mxu1  ;;  %6114 = vmatprep.subr.bf16.mxu0 %v6113_v4  ;;  %v6191_v4 = vpack.c.bf16 %v836_v51, %v835_v58  ;;  %v813_v58 = vld [vmem:[%s10367_s1 + $0x1860] sm:$0xff] }
 0x17b   :  { %v4474_v12 = vadd.f32 %v4473_v20, %v4472_v17  ;;  %6144 = vmatpush3.bf16.msra.mxu1 %v6143_v3  ;;  %v2215_v30 = vadd.f32 %v4439_v9, %v8897_v39  ;;  %v850_v39 = vld [vmem:[%s10367_s1 + $0x1988] sm:$0xff]  ;;  %v6159_v3 = vpack.c.bf16 %v804_v45, %v803_v57  ;;  %v808_v9 = vld [vmem:[%s10367_s1 + $0x1838] sm:$0xff]  ;;  %v839_v20 = vld [vmem:[%s10367_s1 + $0x1930] sm:$0xff]  ;;  %v6207_v57 = vpack.c.bf16 %v844_v48, %v843_v47 }
 0x17c   :  { %6146 = vmatprep.subr.bf16.mxu1 %v6145_v26  ;;  %v6185_v46 = vpack.c.bf16 %v850_v39, %v849_v35  ;;  %v823_v26 = vld [vmem:[%s10367_s1 + $0x18b0] sm:$0xff]  ;;  %v6167_v29 = vpack.c.bf16 %v808_v9, %v807_v19  ;;  %v6199_v31 = vpack.c.bf16 %v840_v22, %v839_v20  ;;  %v842_v35 = vld [vmem:[%s10367_s1 + $0x1948] sm:$0xff]  ;;  %v6177_v45 = vpack.c.bf16 %v830_v50, %v829_v33  ;;  %v845_v51 = vld [vmem:[%s10367_s1 + $0x1960] sm:$0xff] }
 0x17d   :  { %v9107_v27 = vadd.f32 %v4474_v12, %v2215_v30  ;;  %6116 = vmatpush3.bf16.msra.mxu0 %v6115_v21  ;;  %v6165_v18 = vpack.c.bf16 %v824_v11, %v823_v26  ;;  %v6197_v21 = vpack.c.bf16 %v856_v15, %v855_v14  ;;  %v825_v12 = vld [vmem:[%s10367_s1 + $0x18c0] sm:$0xff]  ;;  %v827_v39 = vld [vmem:[%s10367_s1 + $0x18d0] sm:$0xff]  ;;  %v6203_v41 = vpack.c.bf16 %v842_v35, %v841_v23  ;;  %v816_v15 = vld [vmem:[%s10367_s1 + $0x1878] sm:$0xff] }
 0x17e   :  { %6118 = vmatprep.subr.bf16.mxu0 %v6117_v25  ;;  %v857_v25 = vld [vmem:[%s10367_s1 + $0x19c0] sm:$0xff]  ;;  %v6173_v43 = vpack.c.bf16 %v828_v36, %v827_v39  ;;  %v6181_v11 = vpack.c.bf16 %v832_v1, %v831_v0  ;;  %v815_v14 = vld [vmem:[%s10367_s1 + $0x1870] sm:$0xff]  ;;  %v848_v19 = vld [vmem:[%s10367_s1 + $0x1978] sm:$0xff] }
 0x17f   :  { %6148 = vmatpush3.bf16.msra.mxu1 %v6147_v24  ;;  %v826_v24 = vld [vmem:[%s10367_s1 + $0x18c8] sm:$0xff]  ;;  %v6201_v34 = vpack.c.bf16 %v858_v28, %v857_v25  ;;  %v881_v9 = vld [vmem:[%s10367_s1 + $0x1a80] sm:$0xff]  ;;  %v883_v23 = vld [vmem:[%s10367_s1 + $0x1a90] sm:$0xff] }
 0x180   :  { %6150 = vmatprep.subr.bf16.mxu1 %v6149_v32  ;;  %v6169_v30 = vpack.c.bf16 %v826_v24, %v825_v12  ;;  %v809_v32 = vld [vmem:[%s10367_s1 + $0x1840] sm:$0xff]  ;;  %v882_v20 = vld [vmem:[%s10367_s1 + $0x1a88] sm:$0xff]  ;;  %v6183_v24 = vpack.c.bf16 %v816_v15, %v815_v14  ;;  %v915_v39 = vld [vmem:[%s10367_s1 + $0x1b90] sm:$0xff] }
 0x181   :  { %6120 = vmatpush3.bf16.msra.mxu0 %v6119_v37  ;;  %v859_v37 = vld [vmem:[%s10367_s1 + $0x19d0] sm:$0xff]  ;;  %v6217_v28 = vpack.c.bf16 %v882_v20, %v881_v9  ;;  %v916_v36 = vld [vmem:[%s10367_s1 + $0x1b98] sm:$0xff]  ;;  %v885_v48 = vld [vmem:[%s10367_s1 + $0x1aa0] sm:$0xff] }
 0x182   :  { %6154 = vmatprep.subr.bf16.mxu0 %v6153_v40  ;;  %v6171_v40 = vpack.c.bf16 %v810_v42, %v809_v32  ;;  %v898_v42 = vld [vmem:[%s10367_s1 + $0x1b08] sm:$0xff]  ;;  %v6253_v47 = vpack.c.bf16 %v916_v36, %v915_v39  ;;  %v919_v0 = vld [vmem:[%s10367_s1 + $0x1bb0] sm:$0xff]  ;;  %v920_v1 = vld [vmem:[%s10367_s1 + $0x1bb8] sm:$0xff] }
 0x183   :  { %6152 = vmatpush3.bf16.msra.mxu1 %v6151_v38  ;;  %v860_v38 = vld [vmem:[%s10367_s1 + $0x19d8] sm:$0xff]  ;;  %v886_v33 = vld [vmem:[%s10367_s1 + $0x1aa8] sm:$0xff]  ;;  %v905_v9 = vld [vmem:[%s10367_s1 + $0x1b40] sm:$0xff] }
 0x184   :  { %6186 = vmatprep.subr.bf16.mxu1 %v6185_v46  ;;  %3193 = vmatmul.mubr.f32.vlgmr.msra.gmra.mrb[22].mxu0 %v8918_v61  ;;  %v805_v61 = vld [vmem:[%s10367_s1 + $0x1820] sm:$0xff]  ;;  %v812_v46 = vld [vmem:[%s10367_s1 + $0x1858] sm:$0xff]  ;;  %v6205_v52 = vpack.c.bf16 %v860_v38, %v859_v37  ;;  %v922_v14 = vld [vmem:[%s10367_s1 + $0x1bc8] sm:$0xff] }
 0x185   :  { %6156 = vmatpush3.bf16.msra.mxu0 %v6155_v54  ;;  %3332 = vmatprep.mubr.f32.mxu0 %v1429_v62  ;;  %v6163_v16 = vpack.c.bf16 %v806_v6, %v805_v61  ;;  %v861_v54 = vld [vmem:[%s10367_s1 + $0x19e0] sm:$0xff]  ;;  %v846_v62 = vld [vmem:[%s10367_s1 + $0x1968] sm:$0xff] }
 0x186   :  { %3263 = vmatmul.mubr.f32.vlgmr.msra.gmra.mrb[22].mxu1 %v8927_v63  ;;  %6158 = vmatprep.subr.bf16.mxu0 %v6157_v56  ;;  %v838_v63 = vld [vmem:[%s10367_s1 + $0x1928] sm:$0xff]  ;;  %v6175_v56 = vpack.c.bf16 %v812_v46, %v811_v44  ;;  %v6211_v26 = vpack.c.bf16 %v846_v62, %v845_v51  ;;  %v868_v44 = vld [vmem:[%s10367_s1 + $0x1a18] sm:$0xff]  ;;  %v899_v46 = vld [vmem:[%s10367_s1 + $0x1b10] sm:$0xff] }
 0x187   :  { %6188 = vmatpush3.bf16.msra.mxu1 %v6187_v55  ;;  %3402 = vmatprep.mubr.f32.mxu1 %v1430_v2  ;;  %v6195_v17 = vpack.c.bf16 %v838_v63, %v837_v8  ;;  %v862_v55 = vld [vmem:[%s10367_s1 + $0x19e8] sm:$0xff]  ;;  %v901_v51 = vld [vmem:[%s10367_s1 + $0x1b20] sm:$0xff]  ;;  %v888_v62 = vld [vmem:[%s10367_s1 + $0x1ab8] sm:$0xff] }
 0x188   :  { %6190 = vmatprep.subr.bf16.mxu1 %v6189_v59  ;;  %v814_v59 = vld [vmem:[%s10367_s1 + $0x1868] sm:$0xff]  ;;  %v6209_v10 = vpack.c.bf16 %v862_v55, %v861_v54  ;;  %v917_v54 = vld [vmem:[%s10367_s1 + $0x1ba0] sm:$0xff] }
 0x189   :  { %6160 = vmatpush3.bf16.msra.mxu0 %v6159_v3  ;;  %v6179_v8 = vpack.c.bf16 %v814_v59, %v813_v58  ;;  %v918_v55 = vld [vmem:[%s10367_s1 + $0x1ba8] sm:$0xff]  ;;  %v6225_v58 = vpack.c.bf16 %v886_v33, %v885_v48  ;;  %v893_v39 = vld [vmem:[%s10367_s1 + $0x1ae0] sm:$0xff] }
 0x18a   :  { %6162 = vmatprep.subr.bf16.mxu0 %v6161_v5  ;;  %v864_v5 = vld [vmem:[%s10367_s1 + $0x19f8] sm:$0xff]  ;;  %v870_v59 = vld [vmem:[%s10367_s1 + $0x1a28] sm:$0xff] }
 0x18b   :  { %6192 = vmatpush3.bf16.msra.mxu1 %v6191_v4  ;;  %v863_v4 = vld [vmem:[%s10367_s1 + $0x19f0] sm:$0xff]  ;;  %v894_v36 = vld [vmem:[%s10367_s1 + $0x1ae8] sm:$0xff] }
 0x18c   :  { %6194 = vmatprep.subr.bf16.mxu1 %v6193_v7  ;;  %v28_v7 = vld [vmem:[%s10366_s0 + $0x68] sm:$0xff] }
 0x18d   :  { %6164 = vmatpush3.bf16.msra.mxu0 %v6163_v16  ;;  %v847_v16 = vld [vmem:[%s10367_s1 + $0x1970] sm:$0xff]  ;;  %v1431_v22 = vcombine.high %v28_v7, %v28_v7  ;;  %v9338_v35 = vrot.slane %v28_v7, %v6753_v13  ;;  %v904_v7 = vld [vmem:[%s10367_s1 + $0x1b38] sm:$0xff] }
 0x18e   :  { %6166 = vmatprep.subr.bf16.mxu0 %v6165_v18  ;;  %v6213_v18 = vpack.c.bf16 %v864_v5, %v863_v4  ;;  %v6215_v25 = vpack.c.bf16 %v848_v19, %v847_v16  ;;  %v871_v5 = vld [vmem:[%s10367_s1 + $0x1a30] sm:$0xff]  ;;  %v874_v19 = vld [vmem:[%s10367_s1 + $0x1a48] sm:$0xff] }
 0x18f   :  { %6196 = vmatpush3.bf16.msra.mxu1 %v6195_v17  ;;  %v9347_v37 = vrot.slane %v1431_v22, %v6753_v13  ;;  %v1446_v50 = vcombine.high %v9338_v35, %v9338_v35  ;;  %v892_v22 = vld [vmem:[%s10367_s1 + $0x1ad8] sm:$0xff] }
 0x190   :  { %6198 = vmatprep.subr.bf16.mxu1 %v6197_v21  ;;  %v913_v21 = vld [vmem:[%s10367_s1 + $0x1b80] sm:$0xff] }
 0x191   :  { %6168 = vmatpush3.bf16.msra.mxu0 %v6167_v29  ;;  %v865_v29 = vld [vmem:[%s10367_s1 + $0x1a00] sm:$0xff] }
 0x192   :  { %6170 = vmatprep.subr.bf16.mxu0 %v6169_v30  ;;  %v897_v30 = vld [vmem:[%s10367_s1 + $0x1b00] sm:$0xff] }
 0x193   :  { %6200 = vmatpush3.bf16.msra.mxu1 %v6199_v31  ;;  %v866_v31 = vld [vmem:[%s10367_s1 + $0x1a08] sm:$0xff] }
 0x194   :  { %6202 = vmatprep.subr.bf16.mxu1 %v6201_v34  ;;  %v884_v34 = vld [vmem:[%s10367_s1 + $0x1a98] sm:$0xff]  ;;  %v6219_v38 = vpack.c.bf16 %v866_v31, %v865_v29 }
 0x195   :  { %6172 = vmatpush3.bf16.msra.mxu0 %v6171_v40  ;;  %v6251_v40 = vpack.c.bf16 %v898_v42, %v897_v30  ;;  %v875_v30 = vld [vmem:[%s10367_s1 + $0x1a50] sm:$0xff] }
 0x196   :  { %6174 = vmatprep.subr.bf16.mxu0 %v6173_v43  ;;  %v867_v43 = vld [vmem:[%s10367_s1 + $0x1a10] sm:$0xff] }
 0x197   :  { %6204 = vmatpush3.bf16.msra.mxu1 %v6203_v41  ;;  %v4507_v60 = vpop.f32.mrb[10].mxu0  ;;  %v6221_v41 = vpack.c.bf16 %v884_v34, %v883_v23  ;;  %v907_v42 = vld [vmem:[%s10367_s1 + $0x1b50] sm:$0xff]  ;;  %v908_v34 = vld [vmem:[%s10367_s1 + $0x1b58] sm:$0xff] }
 0x198   :  { %6206 = vmatprep.subr.bf16.mxu1 %v6205_v52  ;;  %v4508_v2 = vpop.f32.mrb[11].mxu0  ;;  %v900_v52 = vld [vmem:[%s10367_s1 + $0x1b18] sm:$0xff] }
 0x199   :  { %v4542_v3 = vpop.f32.mrb[10].mxu1  ;;  %v4509_v61 = vadd.f32 %v4508_v2, %v4507_v60  ;;  %6176 = vmatpush3.bf16.msra.mxu0 %v6175_v56  ;;  %v1447_v56 = vcombine.high %v9347_v37, %v9347_v37  ;;  %v6257_v60 = vpack.c.bf16 %v918_v55, %v917_v54  ;;  %v895_v54 = vld [vmem:[%s10367_s1 + $0x1af0] sm:$0xff]  ;;  %v896_v55 = vld [vmem:[%s10367_s1 + $0x1af8] sm:$0xff] }
 0x19a   :  { %v4543_v6 = vpop.f32.mrb[11].mxu1  ;;  %6178 = vmatprep.subr.bf16.mxu0 %v6177_v45  ;;  %v6255_v45 = vpack.c.bf16 %v900_v52, %v899_v46  ;;  %v877_v46 = vld [vmem:[%s10367_s1 + $0x1a60] sm:$0xff] }
 0x19b   :  { %v4544_v63 = vadd.f32 %v4543_v6, %v4542_v3  ;;  %6208 = vmatpush3.bf16.msra.mxu1 %v6207_v57  ;;  %v2355_v17 = vadd.f32 %v4509_v61, %v9107_v27  ;;  %v914_v27 = vld [vmem:[%s10367_s1 + $0x1b88] sm:$0xff]  ;;  %v6223_v57 = vpack.c.bf16 %v868_v44, %v867_v43  ;;  %v872_v61 = vld [vmem:[%s10367_s1 + $0x1a38] sm:$0xff]  ;;  %v903_v6 = vld [vmem:[%s10367_s1 + $0x1b30] sm:$0xff]  ;;  %v6271_v43 = vpack.c.bf16 %v908_v34, %v907_v42 }
 0x19c   :  { %6210 = vmatprep.subr.bf16.mxu1 %v6209_v10  ;;  %v6249_v32 = vpack.c.bf16 %v914_v27, %v913_v21  ;;  %v887_v10 = vld [vmem:[%s10367_s1 + $0x1ab0] sm:$0xff]  ;;  %v6231_v15 = vpack.c.bf16 %v872_v61, %v871_v5  ;;  %v6263_v16 = vpack.c.bf16 %v904_v7, %v903_v6  ;;  %v906_v21 = vld [vmem:[%s10367_s1 + $0x1b48] sm:$0xff]  ;;  %v6241_v44 = vpack.c.bf16 %v894_v36, %v893_v39  ;;  %v909_v52 = vld [vmem:[%s10367_s1 + $0x1b60] sm:$0xff] }
 0x19d   :  { %v9317_v12 = vadd.f32 %v4544_v63, %v2355_v17  ;;  %6180 = vmatpush3.bf16.msra.mxu0 %v6179_v8  ;;  %v6229_v4 = vpack.c.bf16 %v888_v62, %v887_v10  ;;  %v6261_v8 = vpack.c.bf16 %v920_v1, %v919_v0  ;;  %v889_v63 = vld [vmem:[%s10367_s1 + $0x1ac0] sm:$0xff]  ;;  %v891_v27 = vld [vmem:[%s10367_s1 + $0x1ad0] sm:$0xff]  ;;  %v6267_v29 = vpack.c.bf16 %v906_v21, %v905_v9  ;;  %v880_v1 = vld [vmem:[%s10367_s1 + $0x1a78] sm:$0xff] }
 0x19e   :  { %6182 = vmatprep.subr.bf16.mxu0 %v6181_v11  ;;  %v921_v11 = vld [vmem:[%s10367_s1 + $0x1bc0] sm:$0xff]  ;;  %v6237_v31 = vpack.c.bf16 %v892_v22, %v891_v27  ;;  %v6245_v62 = vpack.c.bf16 %v896_v55, %v895_v54  ;;  %v879_v0 = vld [vmem:[%s10367_s1 + $0x1a70] sm:$0xff]  ;;  %v912_v5 = vld [vmem:[%s10367_s1 + $0x1b78] sm:$0xff] }
 0x19f   :  { %6212 = vmatpush3.bf16.msra.mxu1 %v6211_v26  ;;  %v890_v26 = vld [vmem:[%s10367_s1 + $0x1ac8] sm:$0xff]  ;;  %v6265_v20 = vpack.c.bf16 %v922_v14, %v921_v11  ;;  %v945_v61 = vld [vmem:[%s10367_s1 + $0x1c80] sm:$0xff]  ;;  %v947_v9 = vld [vmem:[%s10367_s1 + $0x1c90] sm:$0xff] }
 0x1a0   :  { %6214 = vmatprep.subr.bf16.mxu1 %v6213_v18  ;;  %v6233_v17 = vpack.c.bf16 %v890_v26, %v889_v63  ;;  %v873_v18 = vld [vmem:[%s10367_s1 + $0x1a40] sm:$0xff]  ;;  %v946_v6 = vld [vmem:[%s10367_s1 + $0x1c88] sm:$0xff]  ;;  %v6247_v26 = vpack.c.bf16 %v880_v1, %v879_v0  ;;  %v979_v27 = vld [vmem:[%s10367_s1 + $0x1d90] sm:$0xff] }
 0x1a1   :  { %6184 = vmatpush3.bf16.msra.mxu0 %v6183_v24  ;;  %v923_v24 = vld [vmem:[%s10367_s1 + $0x1bd0] sm:$0xff]  ;;  %v6281_v14 = vpack.c.bf16 %v946_v6, %v945_v61  ;;  %v980_v22 = vld [vmem:[%s10367_s1 + $0x1d98] sm:$0xff]  ;;  %v949_v34 = vld [vmem:[%s10367_s1 + $0x1ca0] sm:$0xff] }
 0x1a2   :  { %6218 = vmatprep.subr.bf16.mxu0 %v6217_v28  ;;  %v6235_v28 = vpack.c.bf16 %v874_v19, %v873_v18  ;;  %v962_v19 = vld [vmem:[%s10367_s1 + $0x1d08] sm:$0xff]  ;;  %v6317_v42 = vpack.c.bf16 %v980_v22, %v979_v27  ;;  %v983_v54 = vld [vmem:[%s10367_s1 + $0x1db0] sm:$0xff]  ;;  %v984_v55 = vld [vmem:[%s10367_s1 + $0x1db8] sm:$0xff] }
 0x1a3   :  { %6216 = vmatpush3.bf16.msra.mxu1 %v6215_v25  ;;  %v924_v25 = vld [vmem:[%s10367_s1 + $0x1bd8] sm:$0xff]  ;;  %v950_v39 = vld [vmem:[%s10367_s1 + $0x1ca8] sm:$0xff]  ;;  %v969_v61 = vld [vmem:[%s10367_s1 + $0x1d40] sm:$0xff] }
 0x1a4   :  { %6250 = vmatprep.subr.bf16.mxu1 %v6249_v32  ;;  %3333 = vmatmul.mubr.f32.vlgmr.msra.gmra.mrb[24].mxu0 %v9128_v49  ;;  %v869_v49 = vld [vmem:[%s10367_s1 + $0x1a20] sm:$0xff]  ;;  %v876_v32 = vld [vmem:[%s10367_s1 + $0x1a58] sm:$0xff]  ;;  %v6269_v23 = vpack.c.bf16 %v924_v25, %v923_v24  ;;  %v986_v0 = vld [vmem:[%s10367_s1 + $0x1dc8] sm:$0xff] }
 0x1a5   :  { %6220 = vmatpush3.bf16.msra.mxu0 %v6219_v38  ;;  %3472 = vmatprep.mubr.f32.mxu0 %v1446_v50  ;;  %v6227_v2 = vpack.c.bf16 %v870_v59, %v869_v49  ;;  %v925_v38 = vld [vmem:[%s10367_s1 + $0x1be0] sm:$0xff]  ;;  %v910_v50 = vld [vmem:[%s10367_s1 + $0x1b68] sm:$0xff] }
 0x1a6   :  { %3403 = vmatmul.mubr.f32.vlgmr.msra.gmra.mrb[24].mxu1 %v9137_v53  ;;  %6222 = vmatprep.subr.bf16.mxu0 %v6221_v41  ;;  %v902_v53 = vld [vmem:[%s10367_s1 + $0x1b28] sm:$0xff]  ;;  %v6239_v41 = vpack.c.bf16 %v876_v32, %v875_v30  ;;  %v6275_v10 = vpack.c.bf16 %v910_v50, %v909_v52  ;;  %v932_v30 = vld [vmem:[%s10367_s1 + $0x1c18] sm:$0xff]  ;;  %v963_v32 = vld [vmem:[%s10367_s1 + $0x1d10] sm:$0xff] }
 0x1a7   :  { %6252 = vmatpush3.bf16.msra.mxu1 %v6251_v40  ;;  %3542 = vmatprep.mubr.f32.mxu1 %v1447_v56  ;;  %v6259_v3 = vpack.c.bf16 %v902_v53, %v901_v51  ;;  %v926_v40 = vld [vmem:[%s10367_s1 + $0x1be8] sm:$0xff]  ;;  %v965_v52 = vld [vmem:[%s10367_s1 + $0x1d20] sm:$0xff]  ;;  %v952_v50 = vld [vmem:[%s10367_s1 + $0x1cb8] sm:$0xff] }
 0x1a8   :  { %6254 = vmatprep.subr.bf16.mxu1 %v6253_v47  ;;  %v878_v47 = vld [vmem:[%s10367_s1 + $0x1a68] sm:$0xff]  ;;  %v6273_v33 = vpack.c.bf16 %v926_v40, %v925_v38  ;;  %v981_v38 = vld [vmem:[%s10367_s1 + $0x1da0] sm:$0xff] }
 0x1a9   :  { %6224 = vmatpush3.bf16.msra.mxu0 %v6223_v57  ;;  %v6243_v51 = vpack.c.bf16 %v878_v47, %v877_v46  ;;  %v982_v40 = vld [vmem:[%s10367_s1 + $0x1da8] sm:$0xff]  ;;  %v6289_v46 = vpack.c.bf16 %v950_v39, %v949_v34  ;;  %v957_v27 = vld [vmem:[%s10367_s1 + $0x1ce0] sm:$0xff] }
 0x1aa   :  { %6226 = vmatprep.subr.bf16.mxu0 %v6225_v58  ;;  %v928_v58 = vld [vmem:[%s10367_s1 + $0x1bf8] sm:$0xff]  ;;  %v934_v47 = vld [vmem:[%s10367_s1 + $0x1c28] sm:$0xff] }
 0x1ab   :  { %6256 = vmatpush3.bf16.msra.mxu1 %v6255_v45  ;;  %v927_v45 = vld [vmem:[%s10367_s1 + $0x1bf0] sm:$0xff]  ;;  %v958_v22 = vld [vmem:[%s10367_s1 + $0x1ce8] sm:$0xff] }
 0x1ac   :  { %6258 = vmatprep.subr.bf16.mxu1 %v6257_v60  ;;  %v29_v60 = vld [vmem:[%s10366_s0 + $0x70] sm:$0xff] }
 0x1ad   :  { %6228 = vmatpush3.bf16.msra.mxu0 %v6227_v2  ;;  %v911_v2 = vld [vmem:[%s10367_s1 + $0x1b70] sm:$0xff]  ;;  %v1448_v7 = vcombine.high %v29_v60, %v29_v60  ;;  %v9548_v21 = vrot.slane %v29_v60, %v6753_v13  ;;  %v968_v60 = vld [vmem:[%s10367_s1 + $0x1d38] sm:$0xff] }
 0x1ae   :  { %6230 = vmatprep.subr.bf16.mxu0 %v6229_v4  ;;  %v6277_v4 = vpack.c.bf16 %v928_v58, %v927_v45  ;;  %v6279_v11 = vpack.c.bf16 %v912_v5, %v911_v2  ;;  %v935_v58 = vld [vmem:[%s10367_s1 + $0x1c30] sm:$0xff]  ;;  %v938_v5 = vld [vmem:[%s10367_s1 + $0x1c48] sm:$0xff] }
 0x1af   :  { %6260 = vmatpush3.bf16.msra.mxu1 %v6259_v3  ;;  %v9557_v24 = vrot.slane %v1448_v7, %v6753_v13  ;;  %v1463_v36 = vcombine.high %v9548_v21, %v9548_v21  ;;  %v956_v7 = vld [vmem:[%s10367_s1 + $0x1cd8] sm:$0xff] }
 0x1b0   :  { %6262 = vmatprep.subr.bf16.mxu1 %v6261_v8  ;;  %v977_v8 = vld [vmem:[%s10367_s1 + $0x1d80] sm:$0xff] }
 0x1b1   :  { %6232 = vmatpush3.bf16.msra.mxu0 %v6231_v15  ;;  %v929_v15 = vld [vmem:[%s10367_s1 + $0x1c00] sm:$0xff] }
 0x1b2   :  { %6234 = vmatprep.subr.bf16.mxu0 %v6233_v17  ;;  %v961_v17 = vld [vmem:[%s10367_s1 + $0x1d00] sm:$0xff] }
 0x1b3   :  { %6264 = vmatpush3.bf16.msra.mxu1 %v6263_v16  ;;  %v930_v16 = vld [vmem:[%s10367_s1 + $0x1c08] sm:$0xff] }
 0x1b4   :  { %6266 = vmatprep.subr.bf16.mxu1 %v6265_v20  ;;  %v948_v20 = vld [vmem:[%s10367_s1 + $0x1c98] sm:$0xff]  ;;  %v6283_v25 = vpack.c.bf16 %v930_v16, %v929_v15 }
 0x1b5   :  { %6236 = vmatpush3.bf16.msra.mxu0 %v6235_v28  ;;  %v6315_v28 = vpack.c.bf16 %v962_v19, %v961_v17  ;;  %v939_v17 = vld [vmem:[%s10367_s1 + $0x1c50] sm:$0xff] }
 0x1b6   :  { %6238 = vmatprep.subr.bf16.mxu0 %v6237_v31  ;;  %v931_v31 = vld [vmem:[%s10367_s1 + $0x1c10] sm:$0xff] }
 0x1b7   :  { %6268 = vmatpush3.bf16.msra.mxu1 %v6267_v29  ;;  %v4577_v48 = vpop.f32.mrb[12].mxu0  ;;  %v6285_v29 = vpack.c.bf16 %v948_v20, %v947_v9  ;;  %v971_v19 = vld [vmem:[%s10367_s1 + $0x1d50] sm:$0xff]  ;;  %v972_v20 = vld [vmem:[%s10367_s1 + $0x1d58] sm:$0xff] }
 0x1b8   :  { %6270 = vmatprep.subr.bf16.mxu1 %v6269_v23  ;;  %v4578_v56 = vpop.f32.mrb[13].mxu0  ;;  %v964_v23 = vld [vmem:[%s10367_s1 + $0x1d18] sm:$0xff] }
 0x1b9   :  { %v4612_v57 = vpop.f32.mrb[12].mxu1  ;;  %v4579_v49 = vadd.f32 %v4578_v56, %v4577_v48  ;;  %6240 = vmatpush3.bf16.msra.mxu0 %v6239_v41  ;;  %v1464_v41 = vcombine.high %v9557_v24, %v9557_v24  ;;  %v6321_v48 = vpack.c.bf16 %v982_v40, %v981_v38  ;;  %v959_v38 = vld [vmem:[%s10367_s1 + $0x1cf0] sm:$0xff]  ;;  %v960_v40 = vld [vmem:[%s10367_s1 + $0x1cf8] sm:$0xff] }
 0x1ba   :  { %v4613_v59 = vpop.f32.mrb[13].mxu1  ;;  %6242 = vmatprep.subr.bf16.mxu0 %v6241_v44  ;;  %v6319_v44 = vpack.c.bf16 %v964_v23, %v963_v32  ;;  %v941_v32 = vld [vmem:[%s10367_s1 + $0x1c60] sm:$0xff] }
 0x1bb   :  { %v4614_v53 = vadd.f32 %v4613_v59, %v4612_v57  ;;  %6272 = vmatpush3.bf16.msra.mxu1 %v6271_v43  ;;  %v2495_v3 = vadd.f32 %v4579_v49, %v9317_v12  ;;  %v978_v12 = vld [vmem:[%s10367_s1 + $0x1d88] sm:$0xff]  ;;  %v6287_v43 = vpack.c.bf16 %v932_v30, %v931_v31  ;;  %v936_v49 = vld [vmem:[%s10367_s1 + $0x1c38] sm:$0xff]  ;;  %v967_v59 = vld [vmem:[%s10367_s1 + $0x1d30] sm:$0xff]  ;;  %v6335_v31 = vpack.c.bf16 %v972_v20, %v971_v19 }
 0x1bc   :  { %6274 = vmatprep.subr.bf16.mxu1 %v6273_v33  ;;  %v6313_v18 = vpack.c.bf16 %v978_v12, %v977_v8  ;;  %v951_v33 = vld [vmem:[%s10367_s1 + $0x1cb0] sm:$0xff]  ;;  %v6295_v1 = vpack.c.bf16 %v936_v49, %v935_v58  ;;  %v6327_v2 = vpack.c.bf16 %v968_v60, %v967_v59  ;;  %v970_v8 = vld [vmem:[%s10367_s1 + $0x1d48] sm:$0xff]  ;;  %v6305_v30 = vpack.c.bf16 %v958_v22, %v957_v27  ;;  %v973_v23 = vld [vmem:[%s10367_s1 + $0x1d60] sm:$0xff] }
 0x1bd   :  { %v9527_v63 = vadd.f32 %v4614_v53, %v2495_v3  ;;  %6244 = vmatpush3.bf16.msra.mxu0 %v6243_v51  ;;  %v6293_v45 = vpack.c.bf16 %v952_v50, %v951_v33  ;;  %v6325_v51 = vpack.c.bf16 %v984_v55, %v983_v54  ;;  %v953_v53 = vld [vmem:[%s10367_s1 + $0x1cc0] sm:$0xff]  ;;  %v955_v12 = vld [vmem:[%s10367_s1 + $0x1cd0] sm:$0xff]  ;;  %v6331_v15 = vpack.c.bf16 %v970_v8, %v969_v61  ;;  %v944_v55 = vld [vmem:[%s10367_s1 + $0x1c78] sm:$0xff] }
 0x1be   :  { %6246 = vmatprep.subr.bf16.mxu0 %v6245_v62  ;;  %v985_v62 = vld [vmem:[%s10367_s1 + $0x1dc0] sm:$0xff]  ;;  %v6301_v16 = vpack.c.bf16 %v956_v7, %v955_v12  ;;  %v6309_v50 = vpack.c.bf16 %v960_v40, %v959_v38  ;;  %v943_v54 = vld [vmem:[%s10367_s1 + $0x1c70] sm:$0xff]  ;;  %v976_v58 = vld [vmem:[%s10367_s1 + $0x1d78] sm:$0xff] }
 0x1bf   :  { %6276 = vmatpush3.bf16.msra.mxu1 %v6275_v10  ;;  %v954_v10 = vld [vmem:[%s10367_s1 + $0x1cc8] sm:$0xff]  ;;  %v6329_v6 = vpack.c.bf16 %v986_v0, %v985_v62  ;;  %v1009_v49 = vld [vmem:[%s10367_s1 + $0x1e80] sm:$0xff]  ;;  %v1011_v61 = vld [vmem:[%s10367_s1 + $0x1e90] sm:$0xff] }
 0x1c0   :  { %6278 = vmatprep.subr.bf16.mxu1 %v6277_v4  ;;  %v6297_v3 = vpack.c.bf16 %v954_v10, %v953_v53  ;;  %v937_v4 = vld [vmem:[%s10367_s1 + $0x1c40] sm:$0xff]  ;;  %v1010_v59 = vld [vmem:[%s10367_s1 + $0x1e88] sm:$0xff]  ;;  %v6311_v10 = vpack.c.bf16 %v944_v55, %v943_v54  ;;  %v1043_v12 = vld [vmem:[%s10367_s1 + $0x1f90] sm:$0xff] }
 0x1c1   :  { %6248 = vmatpush3.bf16.msra.mxu0 %v6247_v26  ;;  %v987_v26 = vld [vmem:[%s10367_s1 + $0x1dd0] sm:$0xff]  ;;  %v6345_v0 = vpack.c.bf16 %v1010_v59, %v1009_v49  ;;  %v1044_v7 = vld [vmem:[%s10367_s1 + $0x1f98] sm:$0xff]  ;;  %v1013_v20 = vld [vmem:[%s10367_s1 + $0x1ea0] sm:$0xff] }
 0x1c2   :  { %6282 = vmatprep.subr.bf16.mxu0 %v6281_v14  ;;  %v6299_v14 = vpack.c.bf16 %v938_v5, %v937_v4  ;;  %v1026_v5 = vld [vmem:[%s10367_s1 + $0x1f08] sm:$0xff]  ;;  %v6381_v19 = vpack.c.bf16 %v1044_v7, %v1043_v12  ;;  %v1047_v38 = vld [vmem:[%s10367_s1 + $0x1fb0] sm:$0xff]  ;;  %v1048_v40 = vld [vmem:[%s10367_s1 + $0x1fb8] sm:$0xff] }
 0x1c3   :  { %6280 = vmatpush3.bf16.msra.mxu1 %v6279_v11  ;;  %v988_v11 = vld [vmem:[%s10367_s1 + $0x1dd8] sm:$0xff]  ;;  %v1014_v27 = vld [vmem:[%s10367_s1 + $0x1ea8] sm:$0xff]  ;;  %v1033_v49 = vld [vmem:[%s10367_s1 + $0x1f40] sm:$0xff] }
 0x1c4   :  { %6314 = vmatprep.subr.bf16.mxu1 %v6313_v18  ;;  %3473 = vmatmul.mubr.f32.vlgmr.msra.gmra.mrb[26].mxu0 %v9338_v35  ;;  %v933_v35 = vld [vmem:[%s10367_s1 + $0x1c20] sm:$0xff]  ;;  %v940_v18 = vld [vmem:[%s10367_s1 + $0x1c58] sm:$0xff]  ;;  %v6333_v9 = vpack.c.bf16 %v988_v11, %v987_v26  ;;  %v1050_v54 = vld [vmem:[%s10367_s1 + $0x1fc8] sm:$0xff] }
 0x1c5   :  { %6284 = vmatpush3.bf16.msra.mxu0 %v6283_v25  ;;  %3612 = vmatprep.mubr.f32.mxu0 %v1463_v36  ;;  %v6291_v56 = vpack.c.bf16 %v934_v47, %v933_v35  ;;  %v989_v25 = vld [vmem:[%s10367_s1 + $0x1de0] sm:$0xff]  ;;  %v974_v36 = vld [vmem:[%s10367_s1 + $0x1d68] sm:$0xff] }
 0x1c6   :  { %3543 = vmatmul.mubr.f32.vlgmr.msra.gmra.mrb[26].mxu1 %v9347_v37  ;;  %6286 = vmatprep.subr.bf16.mxu0 %v6285_v29  ;;  %v966_v37 = vld [vmem:[%s10367_s1 + $0x1d28] sm:$0xff]  ;;  %v6303_v29 = vpack.c.bf16 %v940_v18, %v939_v17  ;;  %v6339_v33 = vpack.c.bf16 %v974_v36, %v973_v23  ;;  %v996_v17 = vld [vmem:[%s10367_s1 + $0x1e18] sm:$0xff]  ;;  %v1027_v18 = vld [vmem:[%s10367_s1 + $0x1f10] sm:$0xff] }
 0x1c7   :  { %6316 = vmatpush3.bf16.msra.mxu1 %v6315_v28  ;;  %3682 = vmatprep.mubr.f32.mxu1 %v1464_v41  ;;  %v6323_v57 = vpack.c.bf16 %v966_v37, %v965_v52  ;;  %v990_v28 = vld [vmem:[%s10367_s1 + $0x1de8] sm:$0xff]  ;;  %v1029_v23 = vld [vmem:[%s10367_s1 + $0x1f20] sm:$0xff]  ;;  %v1016_v36 = vld [vmem:[%s10367_s1 + $0x1eb8] sm:$0xff] }
 0x1c8   :  { %6318 = vmatprep.subr.bf16.mxu1 %v6317_v42  ;;  %v942_v42 = vld [vmem:[%s10367_s1 + $0x1c68] sm:$0xff]  ;;  %v6337_v39 = vpack.c.bf16 %v990_v28, %v989_v25  ;;  %v1045_v25 = vld [vmem:[%s10367_s1 + $0x1fa0] sm:$0xff] }
 0x1c9   :  { %6288 = vmatpush3.bf16.msra.mxu0 %v6287_v43  ;;  %v6307_v52 = vpack.c.bf16 %v942_v42, %v941_v32  ;;  %v1046_v28 = vld [vmem:[%s10367_s1 + $0x1fa8] sm:$0xff]  ;;  %v6353_v32 = vpack.c.bf16 %v1014_v27, %v1013_v20  ;;  %v1021_v12 = vld [vmem:[%s10367_s1 + $0x1ee0] sm:$0xff] }
 0x1ca   :  { %6290 = vmatprep.subr.bf16.mxu0 %v6289_v46  ;;  %v992_v46 = vld [vmem:[%s10367_s1 + $0x1df8] sm:$0xff]  ;;  %v998_v42 = vld [vmem:[%s10367_s1 + $0x1e28] sm:$0xff] }
 0x1cb   :  { %6320 = vmatpush3.bf16.msra.mxu1 %v6319_v44  ;;  %v991_v44 = vld [vmem:[%s10367_s1 + $0x1df0] sm:$0xff]  ;;  %v1022_v7 = vld [vmem:[%s10367_s1 + $0x1ee8] sm:$0xff] }
 0x1cc   :  { %6322 = vmatprep.subr.bf16.mxu1 %v6321_v48  ;;  %v30_v48 = vld [vmem:[%s10366_s0 + $0x78] sm:$0xff] }
 0x1cd   :  { %6292 = vmatpush3.bf16.msra.mxu0 %v6291_v56  ;;  %v975_v56 = vld [vmem:[%s10367_s1 + $0x1d70] sm:$0xff]  ;;  %v1465_v60 = vcombine.high %v30_v48, %v30_v48  ;;  %v9758_v8 = vrot.slane %v30_v48, %v6753_v13  ;;  %v1032_v48 = vld [vmem:[%s10367_s1 + $0x1f38] sm:$0xff] }
 0x1ce   :  { %6294 = vmatprep.subr.bf16.mxu0 %v6293_v45  ;;  %v6341_v45 = vpack.c.bf16 %v992_v46, %v991_v44  ;;  %v6343_v62 = vpack.c.bf16 %v976_v58, %v975_v56  ;;  %v999_v46 = vld [vmem:[%s10367_s1 + $0x1e30] sm:$0xff]  ;;  %v1002_v58 = vld [vmem:[%s10367_s1 + $0x1e48] sm:$0xff] }
 0x1cf   :  { %6324 = vmatpush3.bf16.msra.mxu1 %v6323_v57  ;;  %v9767_v26 = vrot.slane %v1465_v60, %v6753_v13  ;;  %v1480_v22 = vcombine.high %v9758_v8, %v9758_v8  ;;  %v1020_v60 = vld [vmem:[%s10367_s1 + $0x1ed8] sm:$0xff] }
 0x1d0   :  { %6326 = vmatprep.subr.bf16.mxu1 %v6325_v51  ;;  %v1041_v51 = vld [vmem:[%s10367_s1 + $0x1f80] sm:$0xff] }
 0x1d1   :  { %6296 = vmatpush3.bf16.msra.mxu0 %v6295_v1  ;;  %v993_v1 = vld [vmem:[%s10367_s1 + $0x1e00] sm:$0xff] }
 0x1d2   :  { %6298 = vmatprep.subr.bf16.mxu0 %v6297_v3  ;;  %v1025_v3 = vld [vmem:[%s10367_s1 + $0x1f00] sm:$0xff] }
 0x1d3   :  { %6328 = vmatpush3.bf16.msra.mxu1 %v6327_v2  ;;  %v994_v2 = vld [vmem:[%s10367_s1 + $0x1e08] sm:$0xff] }
 0x1d4   :  { %6330 = vmatprep.subr.bf16.mxu1 %v6329_v6  ;;  %v1012_v6 = vld [vmem:[%s10367_s1 + $0x1e98] sm:$0xff]  ;;  %v6347_v11 = vpack.c.bf16 %v994_v2, %v993_v1 }
 0x1d5   :  { %6300 = vmatpush3.bf16.msra.mxu0 %v6299_v14  ;;  %v6379_v14 = vpack.c.bf16 %v1026_v5, %v1025_v3  ;;  %v1003_v3 = vld [vmem:[%s10367_s1 + $0x1e50] sm:$0xff] }
 0x1d6   :  { %6302 = vmatprep.subr.bf16.mxu0 %v6301_v16  ;;  %v995_v16 = vld [vmem:[%s10367_s1 + $0x1e10] sm:$0xff] }
 0x1d7   :  { %6332 = vmatpush3.bf16.msra.mxu1 %v6331_v15  ;;  %v4647_v34 = vpop.f32.mrb[14].mxu0  ;;  %v6349_v15 = vpack.c.bf16 %v1012_v6, %v1011_v61  ;;  %v1035_v5 = vld [vmem:[%s10367_s1 + $0x1f50] sm:$0xff]  ;;  %v1036_v6 = vld [vmem:[%s10367_s1 + $0x1f58] sm:$0xff] }
 0x1d8   :  { %6334 = vmatprep.subr.bf16.mxu1 %v6333_v9  ;;  %v4648_v41 = vpop.f32.mrb[15].mxu0  ;;  %v1028_v9 = vld [vmem:[%s10367_s1 + $0x1f18] sm:$0xff] }
 0x1d9   :  { %v4682_v43 = vpop.f32.mrb[14].mxu1  ;;  %v4649_v35 = vadd.f32 %v4648_v41, %v4647_v34  ;;  %6304 = vmatpush3.bf16.msra.mxu0 %v6303_v29  ;;  %v1481_v29 = vcombine.high %v9767_v26, %v9767_v26  ;;  %v6385_v34 = vpack.c.bf16 %v1046_v28, %v1045_v25  ;;  %v1023_v25 = vld [vmem:[%s10367_s1 + $0x1ef0] sm:$0xff]  ;;  %v1024_v28 = vld [vmem:[%s10367_s1 + $0x1ef8] sm:$0xff] }
 0x1da   :  { %v4683_v47 = vpop.f32.mrb[15].mxu1  ;;  %6306 = vmatprep.subr.bf16.mxu0 %v6305_v30  ;;  %v6383_v30 = vpack.c.bf16 %v1028_v9, %v1027_v18  ;;  %v1005_v18 = vld [vmem:[%s10367_s1 + $0x1e60] sm:$0xff] }
 0x1db   :  { %v4684_v37 = vadd.f32 %v4683_v47, %v4682_v43  ;;  %6336 = vmatpush3.bf16.msra.mxu1 %v6335_v31  ;;  %v2635_v57 = vadd.f32 %v4649_v35, %v9527_v63  ;;  %v1042_v63 = vld [vmem:[%s10367_s1 + $0x1f88] sm:$0xff]  ;;  %v6351_v31 = vpack.c.bf16 %v996_v17, %v995_v16  ;;  %v1000_v35 = vld [vmem:[%s10367_s1 + $0x1e38] sm:$0xff]  ;;  %v1031_v47 = vld [vmem:[%s10367_s1 + $0x1f30] sm:$0xff]  ;;  %v6399_v16 = vpack.c.bf16 %v1036_v6, %v1035_v5 }
 0x1dc   :  { %6338 = vmatprep.subr.bf16.mxu1 %v6337_v39  ;;  %v6377_v4 = vpack.c.bf16 %v1042_v63, %v1041_v51  ;;  %v1015_v39 = vld [vmem:[%s10367_s1 + $0x1eb0] sm:$0xff]  ;;  %v6359_v55 = vpack.c.bf16 %v1000_v35, %v999_v46  ;;  %v6391_v56 = vpack.c.bf16 %v1032_v48, %v1031_v47  ;;  %v1034_v51 = vld [vmem:[%s10367_s1 + $0x1f48] sm:$0xff]  ;;  %v6369_v17 = vpack.c.bf16 %v1022_v7, %v1021_v12  ;;  %v1037_v9 = vld [vmem:[%s10367_s1 + $0x1f60] sm:$0xff] }
 0x1dd   :  { %v9737_v53 = vadd.f32 %v4684_v37, %v2635_v57  ;;  %6308 = vmatpush3.bf16.msra.mxu0 %v6307_v52  ;;  %v6357_v44 = vpack.c.bf16 %v1016_v36, %v1015_v39  ;;  %v6389_v52 = vpack.c.bf16 %v1048_v40, %v1047_v38  ;;  %v1017_v37 = vld [vmem:[%s10367_s1 + $0x1ec0] sm:$0xff]  ;;  %v1019_v63 = vld [vmem:[%s10367_s1 + $0x1ed0] sm:$0xff]  ;;  %v6395_v1 = vpack.c.bf16 %v1034_v51, %v1033_v49  ;;  %v1008_v40 = vld [vmem:[%s10367_s1 + $0x1e78] sm:$0xff] }
 0x1de   :  { %6310 = vmatprep.subr.bf16.mxu0 %v6309_v50  ;;  %v1049_v50 = vld [vmem:[%s10367_s1 + $0x1fc0] sm:$0xff]  ;;  %v6365_v2 = vpack.c.bf16 %v1020_v60, %v1019_v63  ;;  %v6373_v36 = vpack.c.bf16 %v1024_v28, %v1023_v25  ;;  %v1007_v38 = vld [vmem:[%s10367_s1 + $0x1e70] sm:$0xff]  ;;  %v1040_v46 = vld [vmem:[%s10367_s1 + $0x1f78] sm:$0xff] }
 0x1df   :  { %6340 = vmatpush3.bf16.msra.mxu1 %v6339_v33  ;;  %v1018_v33 = vld [vmem:[%s10367_s1 + $0x1ec8] sm:$0xff]  ;;  %v6393_v59 = vpack.c.bf16 %v1050_v54, %v1049_v50  ;;  %v1073_v35 = vld [vmem:[%s10367_s1 + $0x2080] sm:$0xff]  ;;  %v1075_v49 = vld [vmem:[%s10367_s1 + $0x2090] sm:$0xff] }
 0x1e0   :  { %6342 = vmatprep.subr.bf16.mxu1 %v6341_v45  ;;  %v6361_v57 = vpack.c.bf16 %v1018_v33, %v1017_v37  ;;  %v1001_v45 = vld [vmem:[%s10367_s1 + $0x1e40] sm:$0xff]  ;;  %v1074_v47 = vld [vmem:[%s10367_s1 + $0x2088] sm:$0xff]  ;;  %v6375_v33 = vpack.c.bf16 %v1008_v40, %v1007_v38  ;;  %v1107_v63 = vld [vmem:[%s10367_s1 + $0x2190] sm:$0xff] }
 0x1e1   :  { %6312 = vmatpush3.bf16.msra.mxu0 %v6311_v10  ;;  %v1051_v10 = vld [vmem:[%s10367_s1 + $0x1fd0] sm:$0xff]  ;;  %v6409_v54 = vpack.c.bf16 %v1074_v47, %v1073_v35  ;;  %v1108_v60 = vld [vmem:[%s10367_s1 + $0x2198] sm:$0xff]  ;;  %v1077_v6 = vld [vmem:[%s10367_s1 + $0x20a0] sm:$0xff] }
 0x1e2   :  { %6346 = vmatprep.subr.bf16.mxu0 %v6345_v0  ;;  %v6363_v0 = vpack.c.bf16 %v1002_v58, %v1001_v45  ;;  %v1090_v58 = vld [vmem:[%s10367_s1 + $0x2108] sm:$0xff]  ;;  %v6445_v5 = vpack.c.bf16 %v1108_v60, %v1107_v63  ;;  %v1111_v25 = vld [vmem:[%s10367_s1 + $0x21b0] sm:$0xff]  ;;  %v1112_v28 = vld [vmem:[%s10367_s1 + $0x21b8] sm:$0xff] }
 0x1e3   :  { %6344 = vmatpush3.bf16.msra.mxu1 %v6343_v62  ;;  %v1052_v62 = vld [vmem:[%s10367_s1 + $0x1fd8] sm:$0xff]  ;;  %v1078_v12 = vld [vmem:[%s10367_s1 + $0x20a8] sm:$0xff]  ;;  %v1097_v35 = vld [vmem:[%s10367_s1 + $0x2140] sm:$0xff] }
 0x1e4   :  { %6378 = vmatprep.subr.bf16.mxu1 %v6377_v4  ;;  %3613 = vmatmul.mubr.f32.vlgmr.msra.gmra.mrb[28].mxu0 %v9548_v21  ;;  %v997_v21 = vld [vmem:[%s10367_s1 + $0x1e20] sm:$0xff]  ;;  %v1004_v4 = vld [vmem:[%s10367_s1 + $0x1e58] sm:$0xff]  ;;  %v6397_v61 = vpack.c.bf16 %v1052_v62, %v1051_v10  ;;  %v1114_v38 = vld [vmem:[%s10367_s1 + $0x21c8] sm:$0xff] }
 0x1e5   :  { %6348 = vmatpush3.bf16.msra.mxu0 %v6347_v11  ;;  %3752 = vmatprep.mubr.f32.mxu0 %v1480_v22  ;;  %v6355_v41 = vpack.c.bf16 %v998_v42, %v997_v21  ;;  %v1053_v11 = vld [vmem:[%s10367_s1 + $0x1fe0] sm:$0xff]  ;;  %v1038_v22 = vld [vmem:[%s10367_s1 + $0x1f68] sm:$0xff] }
 0x1e6   :  { %3683 = vmatmul.mubr.f32.vlgmr.msra.gmra.mrb[28].mxu1 %v9557_v24  ;;  %6350 = vmatprep.subr.bf16.mxu0 %v6349_v15  ;;  %v1030_v24 = vld [vmem:[%s10367_s1 + $0x1f28] sm:$0xff]  ;;  %v6367_v15 = vpack.c.bf16 %v1004_v4, %v1003_v3  ;;  %v6403_v39 = vpack.c.bf16 %v1038_v22, %v1037_v9  ;;  %v1060_v3 = vld [vmem:[%s10367_s1 + $0x2018] sm:$0xff]  ;;  %v1091_v4 = vld [vmem:[%s10367_s1 + $0x2110] sm:$0xff] }
 0x1e7   :  { %6380 = vmatpush3.bf16.msra.mxu1 %v6379_v14  ;;  %3822 = vmatprep.mubr.f32.mxu1 %v1481_v29  ;;  %v6387_v43 = vpack.c.bf16 %v1030_v24, %v1029_v23  ;;  %v1054_v14 = vld [vmem:[%s10367_s1 + $0x1fe8] sm:$0xff]  ;;  %v1093_v9 = vld [vmem:[%s10367_s1 + $0x2120] sm:$0xff]  ;;  %v1080_v22 = vld [vmem:[%s10367_s1 + $0x20b8] sm:$0xff] }
 0x1e8   :  { %6382 = vmatprep.subr.bf16.mxu1 %v6381_v19  ;;  %v1006_v19 = vld [vmem:[%s10367_s1 + $0x1e68] sm:$0xff]  ;;  %v6401_v27 = vpack.c.bf16 %v1054_v14, %v1053_v11  ;;  %v1109_v11 = vld [vmem:[%s10367_s1 + $0x21a0] sm:$0xff] }
 0x1e9   :  { %6352 = vmatpush3.bf16.msra.mxu0 %v6351_v31  ;;  %v6371_v23 = vpack.c.bf16 %v1006_v19, %v1005_v18  ;;  %v1110_v14 = vld [vmem:[%s10367_s1 + $0x21a8] sm:$0xff]  ;;  %v6417_v18 = vpack.c.bf16 %v1078_v12, %v1077_v6  ;;  %v1085_v63 = vld [vmem:[%s10367_s1 + $0x20e0] sm:$0xff] }
 0x1ea   :  { %6354 = vmatprep.subr.bf16.mxu0 %v6353_v32  ;;  %v1056_v32 = vld [vmem:[%s10367_s1 + $0x1ff8] sm:$0xff]  ;;  %v1062_v19 = vld [vmem:[%s10367_s1 + $0x2028] sm:$0xff] }
 0x1eb   :  { %6384 = vmatpush3.bf16.msra.mxu1 %v6383_v30  ;;  %v1055_v30 = vld [vmem:[%s10367_s1 + $0x1ff0] sm:$0xff]  ;;  %v1086_v60 = vld [vmem:[%s10367_s1 + $0x20e8] sm:$0xff] }
 0x1ec   :  { %6386 = vmatprep.subr.bf16.mxu1 %v6385_v34  ;;  %v31_v34 = vld [vmem:[%s10366_s0 + $0x80] sm:$0xff] }
 0x1ed   :  { %6356 = vmatpush3.bf16.msra.mxu0 %v6355_v41  ;;  %v1039_v41 = vld [vmem:[%s10367_s1 + $0x1f70] sm:$0xff]  ;;  %v1482_v48 = vcombine.high %v31_v34, %v31_v34  ;;  %v9968_v51 = vrot.slane %v31_v34, %v6753_v13  ;;  %v1096_v34 = vld [vmem:[%s10367_s1 + $0x2138] sm:$0xff] }
 0x1ee   :  { %6358 = vmatprep.subr.bf16.mxu0 %v6357_v44  ;;  %v6405_v44 = vpack.c.bf16 %v1056_v32, %v1055_v30  ;;  %v6407_v50 = vpack.c.bf16 %v1040_v46, %v1039_v41  ;;  %v1063_v32 = vld [vmem:[%s10367_s1 + $0x2030] sm:$0xff]  ;;  %v1066_v46 = vld [vmem:[%s10367_s1 + $0x2048] sm:$0xff] }
 0x1ef   :  { %6388 = vmatpush3.bf16.msra.mxu1 %v6387_v43  ;;  %v9977_v10 = vrot.slane %v1482_v48, %v6753_v13  ;;  %v1497_v7 = vcombine.high %v9968_v51, %v9968_v51  ;;  %v1084_v48 = vld [vmem:[%s10367_s1 + $0x20d8] sm:$0xff] }
 0x1f0   :  { %6390 = vmatprep.subr.bf16.mxu1 %v6389_v52  ;;  %v1105_v52 = vld [vmem:[%s10367_s1 + $0x2180] sm:$0xff] }
 0x1f1   :  { %6360 = vmatpush3.bf16.msra.mxu0 %v6359_v55  ;;  %v1057_v55 = vld [vmem:[%s10367_s1 + $0x2000] sm:$0xff] }
 0x1f2   :  { %6362 = vmatprep.subr.bf16.mxu0 %v6361_v57  ;;  %v1089_v57 = vld [vmem:[%s10367_s1 + $0x2100] sm:$0xff] }
 0x1f3   :  { %6392 = vmatpush3.bf16.msra.mxu1 %v6391_v56  ;;  %v1058_v56 = vld [vmem:[%s10367_s1 + $0x2008] sm:$0xff] }
 0x1f4   :  { %6394 = vmatprep.subr.bf16.mxu1 %v6393_v59  ;;  %v1076_v59 = vld [vmem:[%s10367_s1 + $0x2098] sm:$0xff]  ;;  %v6411_v62 = vpack.c.bf16 %v1058_v56, %v1057_v55 }
 0x1f5   :  { %6364 = vmatpush3.bf16.msra.mxu0 %v6363_v0  ;;  %v6443_v0 = vpack.c.bf16 %v1090_v58, %v1089_v57  ;;  %v1067_v57 = vld [vmem:[%s10367_s1 + $0x2050] sm:$0xff] }
 0x1f6   :  { %6366 = vmatprep.subr.bf16.mxu0 %v6365_v2  ;;  %v1059_v2 = vld [vmem:[%s10367_s1 + $0x2010] sm:$0xff] }
 0x1f7   :  { %6396 = vmatpush3.bf16.msra.mxu1 %v6395_v1  ;;  %v4717_v20 = vpop.f32.mrb[16].mxu0  ;;  %v6413_v1 = vpack.c.bf16 %v1076_v59, %v1075_v49  ;;  %v1099_v58 = vld [vmem:[%s10367_s1 + $0x2150] sm:$0xff]  ;;  %v1100_v59 = vld [vmem:[%s10367_s1 + $0x2158] sm:$0xff] }
 0x1f8   :  { %6398 = vmatprep.subr.bf16.mxu1 %v6397_v61  ;;  %v4718_v29 = vpop.f32.mrb[17].mxu0  ;;  %v1092_v61 = vld [vmem:[%s10367_s1 + $0x2118] sm:$0xff] }
 0x1f9   :  { %v4752_v31 = vpop.f32.mrb[16].mxu1  ;;  %v4719_v21 = vadd.f32 %v4718_v29, %v4717_v20  ;;  %6368 = vmatpush3.bf16.msra.mxu0 %v6367_v15  ;;  %v1498_v15 = vcombine.high %v9977_v10, %v9977_v10  ;;  %v6449_v20 = vpack.c.bf16 %v1110_v14, %v1109_v11  ;;  %v1087_v11 = vld [vmem:[%s10367_s1 + $0x20f0] sm:$0xff]  ;;  %v1088_v14 = vld [vmem:[%s10367_s1 + $0x20f8] sm:$0xff] }
 0x1fa   :  { %v4753_v42 = vpop.f32.mrb[17].mxu1  ;;  %6370 = vmatprep.subr.bf16.mxu0 %v6369_v17  ;;  %v6447_v17 = vpack.c.bf16 %v1092_v61, %v1091_v4  ;;  %v1069_v4 = vld [vmem:[%s10367_s1 + $0x2060] sm:$0xff] }
 0x1fb   :  { %v4754_v24 = vadd.f32 %v4753_v42, %v4752_v31  ;;  %6400 = vmatpush3.bf16.msra.mxu1 %v6399_v16  ;;  %v2775_v43 = vadd.f32 %v4719_v21, %v9737_v53  ;;  %v1106_v53 = vld [vmem:[%s10367_s1 + $0x2188] sm:$0xff]  ;;  %v6415_v16 = vpack.c.bf16 %v1060_v3, %v1059_v2  ;;  %v1064_v21 = vld [vmem:[%s10367_s1 + $0x2038] sm:$0xff]  ;;  %v1095_v42 = vld [vmem:[%s10367_s1 + $0x2130] sm:$0xff]  ;;  %v6463_v2 = vpack.c.bf16 %v1100_v59, %v1099_v58 }
 0x1fc   :  { %6402 = vmatprep.subr.bf16.mxu1 %v6401_v27  ;;  %v6441_v45 = vpack.c.bf16 %v1106_v53, %v1105_v52  ;;  %v1079_v27 = vld [vmem:[%s10367_s1 + $0x20b0] sm:$0xff]  ;;  %v6423_v40 = vpack.c.bf16 %v1064_v21, %v1063_v32  ;;  %v6455_v41 = vpack.c.bf16 %v1096_v34, %v1095_v42  ;;  %v1098_v52 = vld [vmem:[%s10367_s1 + $0x2148] sm:$0xff]  ;;  %v6433_v3 = vpack.c.bf16 %v1086_v60, %v1085_v63  ;;  %v1101_v61 = vld [vmem:[%s10367_s1 + $0x2160] sm:$0xff] }
 0x1fd   :  { %v9947_v37 = vadd.f32 %v4754_v24, %v2775_v43  ;;  %6372 = vmatpush3.bf16.msra.mxu0 %v6371_v23  ;;  %v6421_v30 = vpack.c.bf16 %v1080_v22, %v1079_v27  ;;  %v6453_v23 = vpack.c.bf16 %v1112_v28, %v1111_v25  ;;  %v1081_v24 = vld [vmem:[%s10367_s1 + $0x20c0] sm:$0xff]  ;;  %v1083_v53 = vld [vmem:[%s10367_s1 + $0x20d0] sm:$0xff]  ;;  %v6459_v55 = vpack.c.bf16 %v1098_v52, %v1097_v35  ;;  %v1072_v28 = vld [vmem:[%s10367_s1 + $0x2078] sm:$0xff] }
 0x1fe   :  { %6374 = vmatprep.subr.bf16.mxu0 %v6373_v36  ;;  %v1113_v36 = vld [vmem:[%s10367_s1 + $0x21c0] sm:$0xff]  ;;  %v6429_v56 = vpack.c.bf16 %v1084_v48, %v1083_v53  ;;  %v6437_v22 = vpack.c.bf16 %v1088_v14, %v1087_v11  ;;  %v1071_v25 = vld [vmem:[%s10367_s1 + $0x2070] sm:$0xff]  ;;  %v1104_v32 = vld [vmem:[%s10367_s1 + $0x2178] sm:$0xff] }
 0x1ff   :  { %6404 = vmatpush3.bf16.msra.mxu1 %v6403_v39  ;;  %v1082_v39 = vld [vmem:[%s10367_s1 + $0x20c8] sm:$0xff]  ;;  %v6457_v47 = vpack.c.bf16 %v1114_v38, %v1113_v36  ;;  %v1137_v21 = vld [vmem:[%s10367_s1 + $0x2280] sm:$0xff]  ;;  %v1139_v35 = vld [vmem:[%s10367_s1 + $0x2290] sm:$0xff] }
 0x200   :  { %6406 = vmatprep.subr.bf16.mxu1 %v6405_v44  ;;  %v6425_v43 = vpack.c.bf16 %v1082_v39, %v1081_v24  ;;  %v1065_v44 = vld [vmem:[%s10367_s1 + $0x2040] sm:$0xff]  ;;  %v1138_v42 = vld [vmem:[%s10367_s1 + $0x2288] sm:$0xff]  ;;  %v6439_v39 = vpack.c.bf16 %v1072_v28, %v1071_v25  ;;  %v1171_v53 = vld [vmem:[%s10367_s1 + $0x2390] sm:$0xff] }
 0x201   :  { %6376 = vmatpush3.bf16.msra.mxu0 %v6375_v33  ;;  %v1115_v33 = vld [vmem:[%s10367_s1 + $0x21d0] sm:$0xff]  ;;  %v6473_v38 = vpack.c.bf16 %v1138_v42, %v1137_v21  ;;  %v1172_v48 = vld [vmem:[%s10367_s1 + $0x2398] sm:$0xff]  ;;  %v1142_v59 = vld [vmem:[%s10367_s1 + $0x22a8] sm:$0xff] }
 0x202   :  { %6410 = vmatprep.subr.bf16.mxu0 %v6409_v54  ;;  %v6427_v54 = vpack.c.bf16 %v1066_v46, %v1065_v44  ;;  %v1154_v46 = vld [vmem:[%s10367_s1 + $0x2308] sm:$0xff]  ;;  %v1156_v58 = vld [vmem:[%s10367_s1 + $0x2318] sm:$0xff]  ;;  %v1173_v60 = vld [vmem:[%s10367_s1 + $0x23a0] sm:$0xff] }
 0x203   :  { %6408 = vmatpush3.bf16.msra.mxu1 %v6407_v50  ;;  %v1116_v50 = vld [vmem:[%s10367_s1 + $0x21d8] sm:$0xff]  ;;  %v1162_v42 = vld [vmem:[%s10367_s1 + $0x2348] sm:$0xff] }
 0x204   :  { %6442 = vmatprep.subr.bf16.mxu1 %v6441_v45  ;;  %3753 = vmatmul.mubr.f32.vlgmr.msra.gmra.mrb[30].mxu0 %v9758_v8  ;;  %v1061_v8 = vld [vmem:[%s10367_s1 + $0x2020] sm:$0xff]  ;;  %v1068_v45 = vld [vmem:[%s10367_s1 + $0x2058] sm:$0xff]  ;;  %v6461_v49 = vpack.c.bf16 %v1116_v50, %v1115_v33 }
 0x205   :  { %6412 = vmatpush3.bf16.msra.mxu0 %v6411_v62  ;;  %3892 = vmatprep.mubr.f32.mxu0 %v1497_v7  ;;  %v6419_v29 = vpack.c.bf16 %v1062_v19, %v1061_v8  ;;  %v1117_v62 = vld [vmem:[%s10367_s1 + $0x21e0] sm:$0xff]  ;;  %v1102_v7 = vld [vmem:[%s10367_s1 + $0x2168] sm:$0xff]  ;;  %v1176_v11 = vld [vmem:[%s10367_s1 + $0x23b8] sm:$0xff] }
 0x206   :  { %3823 = vmatmul.mubr.f32.vlgmr.msra.gmra.mrb[30].mxu1 %v9767_v26  ;;  %6414 = vmatprep.subr.bf16.mxu0 %v6413_v1  ;;  %v1094_v26 = vld [vmem:[%s10367_s1 + $0x2128] sm:$0xff]  ;;  %v6431_v1 = vpack.c.bf16 %v1068_v45, %v1067_v57  ;;  %v6467_v27 = vpack.c.bf16 %v1102_v7, %v1101_v61  ;;  %v1124_v57 = vld [vmem:[%s10367_s1 + $0x2218] sm:$0xff]  ;;  %v1155_v45 = vld [vmem:[%s10367_s1 + $0x2310] sm:$0xff] }
 0x207   :  { %6444 = vmatpush3.bf16.msra.mxu1 %v6443_v0  ;;  %3962 = vmatprep.mubr.f32.mxu1 %v1498_v15  ;;  %v6451_v31 = vpack.c.bf16 %v1094_v26, %v1093_v9  ;;  %v1118_v0 = vld [vmem:[%s10367_s1 + $0x21e8] sm:$0xff]  ;;  %v1175_v7 = vld [vmem:[%s10367_s1 + $0x23b0] sm:$0xff] }
 0x208   :  { %6446 = vmatprep.subr.bf16.mxu1 %v6445_v5  ;;  %v1070_v5 = vld [vmem:[%s10367_s1 + $0x2068] sm:$0xff]  ;;  %v6465_v12 = vpack.c.bf16 %v1118_v0, %v1117_v62 }
 0x209   :  { %6416 = vmatpush3.bf16.msra.mxu0 %v6415_v16  ;;  %v6435_v9 = vpack.c.bf16 %v1070_v5, %v1069_v4  ;;  %v1174_v62 = vld [vmem:[%s10367_s1 + $0x23a8] sm:$0xff]  ;;  %v1157_v5 = vld [vmem:[%s10367_s1 + $0x2320] sm:$0xff] }
 0x20a   :  { %6418 = vmatprep.subr.bf16.mxu0 %v6417_v18  ;;  %v1120_v18 = vld [vmem:[%s10367_s1 + $0x21f8] sm:$0xff]  ;;  %v1126_v4 = vld [vmem:[%s10367_s1 + $0x2228] sm:$0xff]  ;;  %v6513_v61 = vpack.c.bf16 %v1174_v62, %v1173_v60 }
 0x20b   :  { %6448 = vmatpush3.bf16.msra.mxu1 %v6447_v17  ;;  %v1119_v17 = vld [vmem:[%s10367_s1 + $0x21f0] sm:$0xff]  ;;  %v1152_v60 = vld [vmem:[%s10367_s1 + $0x22f8] sm:$0xff] }
 0x20c   :  { %6450 = vmatprep.subr.bf16.mxu1 %v6449_v20  ;;  %v32_v20 = vld [vmem:[%s10366_s0 + $0x88] sm:$0xff] }
 0x20d   :  { %6420 = vmatpush3.bf16.msra.mxu0 %v6419_v29  ;;  %v1103_v29 = vld [vmem:[%s10367_s1 + $0x2170] sm:$0xff]  ;;  %v1499_v34 = vcombine.high %v32_v20, %v32_v20  ;;  %v10178_v52 = vrot.slane %v32_v20, %v6753_v13  ;;  %v1145_v20 = vld [vmem:[%s10367_s1 + $0x22c0] sm:$0xff] }
 0x20e   :  { %6422 = vmatprep.subr.bf16.mxu0 %v6421_v30  ;;  %v6469_v30 = vpack.c.bf16 %v1120_v18, %v1119_v17  ;;  %v6471_v36 = vpack.c.bf16 %v1104_v32, %v1103_v29  ;;  %v1127_v17 = vld [vmem:[%s10367_s1 + $0x2230] sm:$0xff]  ;;  %v1128_v18 = vld [vmem:[%s10367_s1 + $0x2238] sm:$0xff]  ;;  %v1161_v32 = vld [vmem:[%s10367_s1 + $0x2340] sm:$0xff] }
 0x20f   :  { %6452 = vmatpush3.bf16.msra.mxu1 %v6451_v31  ;;  %v10187_v33 = vrot.slane %v1499_v34, %v6753_v13  ;;  %v6509_v13 = vpack.c.bf16 %v1172_v48, %v1171_v53  ;;  %v1514_v63 = vcombine.high %v10178_v52, %v10178_v52  ;;  %v6487_v25 = vpack.c.bf16 %v1128_v18, %v1127_v17  ;;  %v1179_v34 = vld [vmem:[%s10367_s1 + $0x23d0] sm:$0xff]  ;;  %v1150_v53 = vld [vmem:[%s10367_s1 + $0x22e8] sm:$0xff]  ;;  %v1181_v48 = vld [vmem:[%s10367_s1 + $0x23e0] sm:$0xff] }
 0x210   :  { %6454 = vmatprep.subr.bf16.mxu1 %v6453_v23  ;;  %v1169_v23 = vld [vmem:[%s10367_s1 + $0x2380] sm:$0xff] }
 0x211   :  { %6424 = vmatpush3.bf16.msra.mxu0 %v6423_v40  ;;  %v1121_v40 = vld [vmem:[%s10367_s1 + $0x2200] sm:$0xff]  ;;  %v1515_v0 = vcombine.high %v10187_v33, %v10187_v33 }
 0x212   :  { %6426 = vmatprep.subr.bf16.mxu0 %v6425_v43  ;;  %v1153_v43 = vld [vmem:[%s10367_s1 + $0x2300] sm:$0xff] }
 0x213   :  { %6456 = vmatpush3.bf16.msra.mxu1 %v6455_v41  ;;  %v1122_v41 = vld [vmem:[%s10367_s1 + $0x2208] sm:$0xff] }
 0x214   :  { %6458 = vmatprep.subr.bf16.mxu1 %v6457_v47  ;;  %v1140_v47 = vld [vmem:[%s10367_s1 + $0x2298] sm:$0xff]  ;;  %v6475_v50 = vpack.c.bf16 %v1122_v41, %v1121_v40  ;;  %v1131_v41 = vld [vmem:[%s10367_s1 + $0x2250] sm:$0xff] }
 0x215   :  { %6428 = vmatpush3.bf16.msra.mxu0 %v6427_v54  ;;  %v6507_v54 = vpack.c.bf16 %v1154_v46, %v1153_v43  ;;  %v1132_v43 = vld [vmem:[%s10367_s1 + $0x2258] sm:$0xff] }
 0x216   :  { %6430 = vmatprep.subr.bf16.mxu0 %v6429_v56  ;;  %v1123_v56 = vld [vmem:[%s10367_s1 + $0x2210] sm:$0xff] }
 0x217   :  { %6460 = vmatpush3.bf16.msra.mxu1 %v6459_v55  ;;  %v4787_v6 = vpop.f32.mrb[18].mxu0  ;;  %v6477_v55 = vpack.c.bf16 %v1140_v47, %v1139_v35  ;;  %v1164_v35 = vld [vmem:[%s10367_s1 + $0x2358] sm:$0xff]  ;;  %v1149_v47 = vld [vmem:[%s10367_s1 + $0x22e0] sm:$0xff] }
 0x218   :  { %6462 = vmatprep.subr.bf16.mxu1 %v6461_v49  ;;  %v4788_v15 = vpop.f32.mrb[19].mxu0  ;;  %v1141_v49 = vld [vmem:[%s10367_s1 + $0x22a0] sm:$0xff] }
 0x219   :  { %v4822_v16 = vpop.f32.mrb[18].mxu1  ;;  %v4789_v8 = vadd.f32 %v4788_v15, %v4787_v6  ;;  %6432 = vmatpush3.bf16.msra.mxu0 %v6431_v1  ;;  %v6479_v1 = vpack.c.bf16 %v1124_v57, %v1123_v56  ;;  %v1143_v6 = vld [vmem:[%s10367_s1 + $0x22b0] sm:$0xff]  ;;  %v6497_v56 = vpack.c.bf16 %v1150_v53, %v1149_v47  ;;  %v1133_v57 = vld [vmem:[%s10367_s1 + $0x2260] sm:$0xff] }
 0x21a   :  { %v4823_v19 = vpop.f32.mrb[19].mxu1  ;;  %6434 = vmatprep.subr.bf16.mxu0 %v6433_v3  ;;  %v6481_v3 = vpack.c.bf16 %v1142_v59, %v1141_v49  ;;  %v1166_v59 = vld [vmem:[%s10367_s1 + $0x2368] sm:$0xff] }
 0x21b   :  { %v4824_v26 = vadd.f32 %v4823_v19, %v4822_v16  ;;  %6464 = vmatpush3.bf16.msra.mxu1 %v6463_v2  ;;  %v2915_v31 = vadd.f32 %v4789_v8, %v9947_v37  ;;  %v1170_v37 = vld [vmem:[%s10367_s1 + $0x2388] sm:$0xff]  ;;  %v6511_v2 = vpack.c.bf16 %v1156_v58, %v1155_v45  ;;  %v1159_v8 = vld [vmem:[%s10367_s1 + $0x2330] sm:$0xff]  ;;  %v6517_v19 = vpack.c.bf16 %v1176_v11, %v1175_v7 }
 0x21c   :  { %6466 = vmatprep.subr.bf16.mxu1 %v6465_v12  ;;  %v6505_v44 = vpack.c.bf16 %v1170_v37, %v1169_v23  ;;  %v1144_v12 = vld [vmem:[%s10367_s1 + $0x22b8] sm:$0xff]  ;;  %v1147_v23 = vld [vmem:[%s10367_s1 + $0x22d0] sm:$0xff]  ;;  %v1134_v45 = vld [vmem:[%s10367_s1 + $0x2268] sm:$0xff] }
 0x21d   :  { %v10157_v24 = vadd.f32 %v4824_v26, %v2915_v31  ;;  %6436 = vmatpush3.bf16.msra.mxu0 %v6435_v9  ;;  %v6485_v16 = vpack.c.bf16 %v1144_v12, %v1143_v6  ;;  %v1160_v9 = vld [vmem:[%s10367_s1 + $0x2338] sm:$0xff]  ;;  %v1146_v26 = vld [vmem:[%s10367_s1 + $0x22c8] sm:$0xff]  ;;  %v1129_v31 = vld [vmem:[%s10367_s1 + $0x2240] sm:$0xff] }
 0x21e   :  { %6438 = vmatprep.subr.bf16.mxu0 %v6437_v22  ;;  %v1178_v22 = vld [vmem:[%s10367_s1 + $0x23c8] sm:$0xff]  ;;  %v6519_v28 = vpack.c.bf16 %v1160_v9, %v1159_v8  ;;  %v6489_v29 = vpack.c.bf16 %v1146_v26, %v1145_v20  ;;  %v1148_v37 = vld [vmem:[%s10367_s1 + $0x22d8] sm:$0xff]  ;;  %v1135_v6 = vld [vmem:[%s10367_s1 + $0x2270] sm:$0xff] }
 0x21f   :  { %6468 = vmatpush3.bf16.msra.mxu1 %v6467_v27  ;;  %v1177_v27 = vld [vmem:[%s10367_s1 + $0x23c0] sm:$0xff]  ;;  %v6493_v40 = vpack.c.bf16 %v1148_v37, %v1147_v23  ;;  %v1136_v12 = vld [vmem:[%s10367_s1 + $0x2278] sm:$0xff] }
 0x220   :  { %6470 = vmatprep.subr.bf16.mxu1 %v6469_v30  ;;  %v1130_v30 = vld [vmem:[%s10367_s1 + $0x2248] sm:$0xff]  ;;  %v6521_v21 = vpack.c.bf16 %v1178_v22, %v1177_v27  ;;  %v6503_v17 = vpack.c.bf16 %v1136_v12, %v1135_v6 }
 0x221   :  { %6440 = vmatpush3.bf16.msra.mxu0 %v6439_v39  ;;  %v1180_v39 = vld [vmem:[%s10367_s1 + $0x23d8] sm:$0xff] }
 0x222   :  { %6474 = vmatprep.subr.bf16.mxu0 %v6473_v38  ;;  %v6523_v38 = vpack.c.bf16 %v1162_v42, %v1161_v32  ;;  %v6525_v46 = vpack.c.bf16 %v1180_v39, %v1179_v34 }
 0x223   :  { %6472 = vmatpush3.bf16.msra.mxu1 %v6471_v36  ;;  %v6491_v36 = vpack.c.bf16 %v1130_v30, %v1129_v31 }
 0x224   :  { %6506 = vmatprep.subr.bf16.mxu1 %v6505_v44  ;;  %3893 = vmatmul.mubr.f32.vlgmr.msra.gmra.mrb[32].mxu0 %v9968_v51  ;;  %v1125_v51 = vld [vmem:[%s10367_s1 + $0x2220] sm:$0xff]  ;;  %v1163_v44 = vld [vmem:[%s10367_s1 + $0x2350] sm:$0xff] }
 0x225   :  { %6476 = vmatpush3.bf16.msra.mxu0 %v6475_v50  ;;  %4032 = vmatprep.mubr.f32.mxu0 %v1514_v63  ;;  %v6483_v14 = vpack.c.bf16 %v1126_v4, %v1125_v51  ;;  %v1182_v50 = vld [vmem:[%s10367_s1 + $0x23e8] sm:$0xff]  ;;  %v1151_v63 = vld [vmem:[%s10367_s1 + $0x22f0] sm:$0xff]  ;;  %v6499_v4 = vpack.c.bf16 %v1134_v45, %v1133_v57 }
 0x226   :  { %3963 = vmatmul.mubr.f32.vlgmr.msra.gmra.mrb[32].mxu1 %v9977_v10  ;;  %6478 = vmatprep.subr.bf16.mxu0 %v6477_v55  ;;  %v1158_v10 = vld [vmem:[%s10367_s1 + $0x2328] sm:$0xff]  ;;  %v6527_v55 = vpack.c.bf16 %v1164_v35, %v1163_v44  ;;  %v6529_v49 = vpack.c.bf16 %v1182_v50, %v1181_v48 }
 0x227   :  { %6508 = vmatpush3.bf16.msra.mxu1 %v6507_v54  ;;  %4102 = vmatprep.mubr.f32.mxu1 %v1515_v0  ;;  %v6515_v15 = vpack.c.bf16 %v1158_v10, %v1157_v5  ;;  %v6495_v54 = vpack.c.bf16 %v1132_v43, %v1131_v41  ;;  %v6501_v10 = vpack.c.bf16 %v1152_v60, %v1151_v63 }
 0x228   :  { %6510 = vmatprep.subr.bf16.mxu1 %v6509_v13  ;;  %v1165_v13 = vld [vmem:[%s10367_s1 + $0x2360] sm:$0xff] }
 0x229   :  { %6480 = vmatpush3.bf16.msra.mxu0 %v6479_v1  ;;  %v1183_v1 = vld [vmem:[%s10367_s1 + $0x23f0] sm:$0xff] }
 0x22a   :  { %6482 = vmatprep.subr.bf16.mxu0 %v6481_v3 }
 0x22b   :  { %6512 = vmatpush3.bf16.msra.mxu1 %v6511_v2  ;;  %v1184_v2 = vld [vmem:[%s10367_s1 + $0x23f8] sm:$0xff] }
 0x22c   :  { %6514 = vmatprep.subr.bf16.mxu1 %v6513_v61  ;;  %v6531_v61 = vpack.c.bf16 %v1166_v59, %v1165_v13  ;;  %v6533_v11 = vpack.c.bf16 %v1184_v2, %v1183_v1 }
 0x22d   :  { %6484 = vmatpush3.bf16.msra.mxu0 %v6483_v14  ;;  %v1167_v14 = vld [vmem:[%s10367_s1 + $0x2370] sm:$0xff] }
 0x22e   :  { %6486 = vmatprep.subr.bf16.mxu0 %v6485_v16 }
 0x22f   :  { %6516 = vmatpush3.bf16.msra.mxu1 %v6515_v15  ;;  %v1168_v15 = vld [vmem:[%s10367_s1 + $0x2378] sm:$0xff]  ;;  %s6582_s1 = smov [#allocation2]  }
 0x230   :  { %6518 = vmatprep.subr.bf16.mxu1 %v6517_v19  ;;  %v6535_v18 = vpack.c.bf16 %v1168_v15, %v1167_v14  ;;  %s4116_s7 = sshll.u32 %s6582_s1, 4  ;;  %s4117_s7 = int_to_ptr.vmem [resolvable:$true] %s4116_s7 }
 0x231   :  { %6488 = vmatpush3.bf16.msra.mxu0 %v6487_v25  ;;  %s6557_s8 = scalar_lea.vmem %s4117_s7, 32  ;;  %p6562_p1 = scmp.lt.s32.totalorder %s4117_s7, %s4117_s7 }
 0x232   :  { %6490 = vmatprep.subr.bf16.mxu0 %v6489_v29  ;;  %p6558_p0 = scmp.ne.s32.totalorder %s4117_s7, %s6557_s8  ;;  %p6563_p2 = scmp.lt.s32.totalorder %s6557_s8, %s6557_s8 }
 0x233   :  { %6520 = vmatpush3.bf16.msra.mxu1 %v6519_v28 }
 0x234   :  { %6522 = vmatprep.subr.bf16.mxu1 %v6521_v21  ;;  %p6564_p3 = por %p6563_p2, %p6562_p1 }
 0x235   :  { %6492 = vmatpush3.bf16.msra.mxu0 %v6491_v36 }
 0x236   :  { %6494 = vmatprep.subr.bf16.mxu0 %v6493_v40  ;;  %p6565_p4 = pnand %p6564_p3, %p6558_p0 }
 0x237   :  { %6524 = vmatpush3.bf16.msra.mxu1 %v6523_v38  ;;  %v4857_v58 = vpop.f32.mrb[20].mxu0 }
 0x238   :  { %6526 = vmatprep.subr.bf16.mxu1 %v6525_v46  ;;  %v4858_v62 = vpop.f32.mrb[21].mxu0 }
 0x239   :  { %v4892_v0 = vpop.f32.mrb[20].mxu1  ;;  %v4859_v3 = vadd.f32 %v4858_v62, %v4857_v58  ;;  %6496 = vmatpush3.bf16.msra.mxu0 %v6495_v54 }
 0x23a   :  { %v4893_v51 = vpop.f32.mrb[21].mxu1  ;;  %6498 = vmatprep.subr.bf16.mxu0 %v6497_v56 }
 0x23b   :  { %v4894_v5 = vadd.f32 %v4893_v51, %v4892_v0  ;;  %6528 = vmatpush3.bf16.msra.mxu1 %v6527_v55  ;;  %v3055_v7 = vadd.f32 %v4859_v3, %v10157_v24 }
 0x23c   :  { %6530 = vmatprep.subr.bf16.mxu1 %v6529_v49 }
 0x23d   :  { %v3125_v16 = vadd.f32 %v4894_v5, %v3055_v7  ;;  %6500 = vmatpush3.bf16.msra.mxu0 %v6499_v4 }
 0x23e   :  { %6502 = vmatprep.subr.bf16.mxu0 %v6501_v10 }
 0x23f   :  { %6532 = vmatpush3.bf16.msra.mxu1 %v6531_v61 }
 0x240   :  { %6534 = vmatprep.subr.bf16.mxu1 %v6533_v11 }
 0x241   :  { %6504 = vmatpush3.bf16.msra.mxu0 %v6503_v17 }
 0x243   :  { %6536 = vmatpush3.bf16.msra.mxu1 %v6535_v18 }
 0x244   :  { %4033 = vmatmul.mubr.f32.vlgmr.msra.gmra.mrb[34].mxu0 %v10178_v52 }
 0x246   :  { %4103 = vmatmul.mubr.f32.vlgmr.msra.gmra.mrb[34].mxu1 %v10187_v33 }
 0x257   :  { %v4927_v24 = vpop.f32.mrb[22].mxu0 }
 0x258   :  { %v4928_v8 = vpop.f32.mrb[23].mxu0 }
 0x259   :  { %v4962_v19 = vpop.f32.mrb[22].mxu1  ;;  %v4929_v9 = vadd.f32 %v4928_v8, %v4927_v24 }
 0x25a   :  { %v4963_v20 = vpop.f32.mrb[23].mxu1 }
 0x25b   :  { %v4964_v26 = vadd.f32 %v4963_v20, %v4962_v19  ;;  %v3195_v27 = vadd.f32 %v4929_v9, %v3125_v16 }
 0x25d   :  { %v3265_v22 = vadd.f32 %v4964_v26, %v3195_v27 }
 0x277   :  { %v4997_v25 = vpop.f32.mrb[24].mxu0 }
 0x278   :  { %v4998_v28 = vpop.f32.mrb[25].mxu0 }
 0x279   :  { %v5032_v29 = vpop.f32.mrb[24].mxu1  ;;  %v4999_v31 = vadd.f32 %v4998_v28, %v4997_v25 }
 0x27a   :  { %v5033_v30 = vpop.f32.mrb[25].mxu1 }
 0x27b   :  { %v5034_v32 = vadd.f32 %v5033_v30, %v5032_v29  ;;  %v3335_v21 = vadd.f32 %v4999_v31, %v3265_v22 }
 0x27d   :  { %v3405_v42 = vadd.f32 %v5034_v32, %v3335_v21 }
 0x297   :  { %v5067_v23 = vpop.f32.mrb[26].mxu0 }
 0x298   :  { %v5068_v52 = vpop.f32.mrb[27].mxu0 }
 0x299   :  { %v5102_v37 = vpop.f32.mrb[26].mxu1  ;;  %v5069_v33 = vadd.f32 %v5068_v52, %v5067_v23 }
 0x29a   :  { %v5103_v34 = vpop.f32.mrb[27].mxu1 }
 0x29b   :  { %v5104_v39 = vadd.f32 %v5103_v34, %v5102_v37  ;;  %v3475_v36 = vadd.f32 %v5069_v33, %v3405_v42 }
 0x29d   :  { %v3545_v38 = vadd.f32 %v5104_v39, %v3475_v36 }
 0x2b7   :  { %v5137_v40 = vpop.f32.mrb[28].mxu0 }
 0x2b8   :  { %v5138_v41 = vpop.f32.mrb[29].mxu0 }
 0x2b9   :  { %v5172_v43 = vpop.f32.mrb[28].mxu1  ;;  %v5139_v44 = vadd.f32 %v5138_v41, %v5137_v40 }
 0x2ba   :  { %v5173_v46 = vpop.f32.mrb[29].mxu1 }
 0x2bb   :  { %v5174_v35 = vadd.f32 %v5173_v46, %v5172_v43  ;;  %v3615_v47 = vadd.f32 %v5139_v44, %v3545_v38 }
 0x2bd   :  { %v3685_v53 = vadd.f32 %v5174_v35, %v3615_v47 }
 0x2d7   :  { %v5207_v48 = vpop.f32.mrb[30].mxu0 }
 0x2d8   :  { %v5208_v50 = vpop.f32.mrb[31].mxu0 }
 0x2d9   :  { %v5242_v54 = vpop.f32.mrb[30].mxu1  ;;  %v5209_v55 = vadd.f32 %v5208_v50, %v5207_v48 }
 0x2da   :  { %v5243_v56 = vpop.f32.mrb[31].mxu1 }
 0x2db   :  { %v5244_v57 = vadd.f32 %v5243_v56, %v5242_v54  ;;  %v3755_v45 = vadd.f32 %v5209_v55, %v3685_v53 }
 0x2dd   :  { %v3825_v13 = vadd.f32 %v5244_v57, %v3755_v45 }
 0x2f7   :  { %v5277_v58 = vpop.f32.mrb[32].mxu0 }
 0x2f8   :  { %v5278_v49 = vpop.f32.mrb[33].mxu0 }
 0x2f9   :  { %v5312_v59 = vpop.f32.mrb[32].mxu1  ;;  %v5279_v63 = vadd.f32 %v5278_v49, %v5277_v58 }
 0x2fa   :  { %v5313_v60 = vpop.f32.mrb[33].mxu1 }
 0x2fb   :  { %v5314_v62 = vadd.f32 %v5313_v60, %v5312_v59  ;;  %v3895_v0 = vadd.f32 %v5279_v63, %v3825_v13 }
 0x2fd   :  { %v3965_v1 = vadd.f32 %v5314_v62, %v3895_v0 }
 0x317   :  { %v5347_v2 = vpop.f32.mrb[34].mxu0 }
 0x318   :  { %v5348_v3 = vpop.f32.mrb[35].mxu0 }
 0x319   :  { %v5382_v51 = vpop.f32.mrb[34].mxu1  ;;  %v5349_v4 = vadd.f32 %v5348_v3, %v5347_v2 }
 0x31a   :  { %v5383_v5 = vpop.f32.mrb[35].mxu1 }
 0x31b   :  { %v5384_v61 = vadd.f32 %v5383_v5, %v5382_v51  ;;  %v4035_v10 = vadd.f32 %v5349_v4, %v3965_v1 }
 0x31d   :  { %v4105_v6 = vadd.f32 %v5384_v61, %v4035_v10 }
 0x31f   :  { %v4108_v12 = vmax.f32 %v4105_v6, 0.0 }
 0x321   :  { %4109 = vst [vmem:[#allocation2] sm:$0x3] %v4108_v12 }
 0x322   :  { %6568 = shalt.err (!%p6565_p4)
}
 0x323   :  { %s6569_s11 = scalar_lea.hbm %s10369_s3, 32 }
 0x324   :  { %p6570_p5 = scmp.ne.s32.totalorder %s10369_s3, %s6569_s11  ;;  %p6573_p6 = scmp.lt.u32.totalorder %s6569_s11, %s10369_s3 }
 0x326   :  { %p6575_p7 = pnand %p6573_p6, %p6570_p5 }
 0x328   :  { %6578 = shalt.err (!%p6575_p7)
}
 0x329   :  { %4119 = dma.vmem_to_hbm [thread:$0]  %s4117_s7, 32, %s10369_s3, [#allocation3]  }
 0x32a   :  { %6579 = dma.done.wait [#allocation3], 32  }
 0x32b   :  { %6580 = vsyncadd [#allocation3], 4294967264 }
 0x32c   :  { %4123 = vsyncpa [#allocation3], 1 }

</bundles_post_ra>
